<compile_context>
chip_gen: v7x
topology: tpu7x:2x2x1
jax: 0.10.0
libtpu: 0.0.40
codegen_flags: <defaults>
</compile_context>

<pallas_src>
import functools

import jax
import jax.numpy as jnp
from jax.experimental import pallas as pl
from jax.experimental.pallas import tpu as pltpu


def _window_attention_kernel(
    x_ref,        # (TB, N, C)        input tokens for TB windows
    wqkv_ref,     # (C, 3C)           fused qkv weight (resident)
    bqkv_ref,     # (1, 3C)           fused qkv bias
    wproj_ref,    # (C, C)            output projection weight (resident)
    bproj_ref,    # (1, C)            output projection bias
    bias_ref,     # (1 or TB, H, N, N) relative-position bias (+ mask)
    o_ref,        # (TB, N, C)        output tokens
    *,
    num_heads,
    scale,
):
    TB, N, C = x_ref.shape
    H = num_heads
    Dh = C // H

    # Hoist all loads once per grid step (no per-head re-loads / re-broadcasts).
    x = x_ref[...]
    wqkv = wqkv_ref[...]
    bqkv = bqkv_ref[...].astype(jnp.float32)
    wproj = wproj_ref[...]
    bproj = bproj_ref[...].astype(jnp.float32)
    bias = bias_ref[...].astype(jnp.float32)   # broadcasts over TB if leading dim is 1

    # Fused QKV projection on the MXU: (TB*N, C) @ (C, 3C), f32 accumulation.
    x2 = x.reshape(TB * N, C)
    qkv = jnp.dot(x2, wqkv, preferred_element_type=jnp.float32) + bqkv
    qkv = qkv.reshape(TB, N, 3 * C)

    q = qkv[:, :, 0 * C:1 * C] * jnp.float32(scale)   # scale applied to q (incl. bias)
    k = qkv[:, :, 1 * C:2 * C]
    v = qkv[:, :, 2 * C:3 * C]

    # Per-head attention (H is small and static -> unrolled Python loop).
    head_outs = []
    for h in range(H):
        sl = slice(h * Dh, (h + 1) * Dh)
        qh = q[:, :, sl]                      # (TB, N, Dh)
        kh = k[:, :, sl]
        vh = v[:, :, sl]

        attn = jnp.einsum('bnd,bmd->bnm', qh, kh,
                          preferred_element_type=jnp.float32)   # (TB, N, N)
        attn = attn + bias[:, h, :, :]

        # numerically-stable softmax along the key axis (matches nn.Softmax)
        m = jnp.max(attn, axis=-1, keepdims=True)
        p = jnp.exp(attn - m)
        attn = p / jnp.sum(p, axis=-1, keepdims=True)

        head_outs.append(
            jnp.einsum('bnm,bmd->bnd', attn, vh,
                       preferred_element_type=jnp.float32))     # (TB, N, Dh)

    # Re-assemble heads on the lane axis, then a single wide proj matmul (K = C).
    out = jnp.concatenate(head_outs, axis=-1)                   # (TB, N, C) f32
    out2 = jnp.dot(out.reshape(TB * N, C).astype(wproj.dtype), wproj,
                   preferred_element_type=jnp.float32)
    out2 = out2 + bproj

    o_ref[...] = out2.reshape(TB, N, C).astype(o_ref.dtype)


def _relative_position_index(window_size):
    """Replicates the PyTorch buffer `relative_position_index` (N, N) int32."""
    Wh, Ww = window_size
    coords_h = jnp.arange(Wh)
    coords_w = jnp.arange(Ww)
    coords = jnp.stack(jnp.meshgrid(coords_h, coords_w, indexing='ij'))   # (2, Wh, Ww)
    coords_flatten = coords.reshape(2, -1)                                # (2, N)
    rel = coords_flatten[:, :, None] - coords_flatten[:, None, :]         # (2, N, N)
    rel = rel.transpose(1, 2, 0)                                          # (N, N, 2)
    rel = rel.at[:, :, 0].add(Wh - 1)
    rel = rel.at[:, :, 1].add(Ww - 1)
    rel = rel.at[:, :, 0].multiply(2 * Ww - 1)
    return rel.sum(-1).astype(jnp.int32)                                  # (N, N)


def _choose_tb(B_, N, target_rows=256):
    """Largest divisor of B_ so that TB*N token rows per grid step <= ~target."""
    cap = max(1, target_rows // max(N, 1))
    tb = 1
    for d in range(1, B_ + 1):
        if B_ % d == 0 and d <= cap:
            tb = d
    return tb


def window_attention_pallas(x, w_qkv, b_qkv, w_proj, b_proj,
                            rel_bias_table, rel_pos_index, *,
                            num_heads, scale=None, mask=None, tb=None,
                            vmem_limit_bytes=48 * 1024 * 1024):
    """x: (B_, N, C) with B_ = num_windows * B, N = Wh*Ww. Returns (B_, N, C)."""
    B_, N, C = x.shape
    H = num_heads
    assert C % H == 0, "dim must be divisible by num_heads"
    Dh = C // H
    if scale is None:
        scale = Dh ** (-0.5)

    # Relative-position bias gather (parameter-only) done once outside the kernel.
    rel_bias = rel_bias_table[rel_pos_index.reshape(-1)]
    rel_bias = rel_bias.reshape(N, N, H).transpose(2, 0, 1).astype(jnp.float32)  # (H, N, N)

    if mask is None:
        bias_full = rel_bias[None]                                  # (1, H, N, N)
    else:
        nW = mask.shape[0]
        assert B_ % nW == 0, "B_ must be a multiple of num_windows when mask is given"
        bias_full = rel_bias[None] + mask[:, None].astype(jnp.float32)   # (nW, H, N, N)
        bias_full = jnp.tile(bias_full, (B_ // nW, 1, 1, 1))             # (B_, H, N, N)

    if tb is None:
        tb = _choose_tb(B_, N)
    assert B_ % tb == 0, "window-tile size must divide the number of windows"
    grid = (B_ // tb,)

    b_qkv2 = b_qkv.reshape(1, 3 * C)
    b_proj2 = b_proj.reshape(1, C)

    if mask is None:
        bias_block = (1, H, N, N)
        bias_index = lambda i: (0, 0, 0, 0)     # resident, shared by all windows
    else:
        bias_block = (tb, H, N, N)
        bias_index = lambda i: (i, 0, 0, 0)     # per-window (mask folded in)

    kernel = functools.partial(_window_attention_kernel,
                               num_heads=H, scale=float(scale))

    out = pl.pallas_call(
        kernel,
        out_shape=jax.ShapeDtypeStruct((B_, N, C), x.dtype),
        grid_spec=pltpu.PrefetchScalarGridSpec(
            num_scalar_prefetch=0,
            grid=grid,
            in_specs=[
                pl.BlockSpec((tb, N, C), lambda i: (i, 0, 0)),    # x tile (TB windows)
                pl.BlockSpec((C, 3 * C), lambda i: (0, 0)),       # w_qkv (resident)
                pl.BlockSpec((1, 3 * C), lambda i: (0, 0)),       # b_qkv
                pl.BlockSpec((C, C), lambda i: (0, 0)),           # w_proj (resident)
                pl.BlockSpec((1, C), lambda i: (0, 0)),           # b_proj
                pl.BlockSpec(bias_block, bias_index),             # rel-pos bias (+mask)
            ],
            out_specs=pl.BlockSpec((tb, N, C), lambda i: (i, 0, 0)),
        ),
        compiler_params=pltpu.CompilerParams(
            dimension_semantics=("parallel",),       # shards window tiles across TCs
            vmem_limit_bytes=vmem_limit_bytes,       # headroom under v7x's 64 MiB
        ),
    )(x, w_qkv, b_qkv2, w_proj, b_proj2, bias_full)

    return out


def _reference(x, w_qkv, b_qkv, w_proj, b_proj, table, rel_index,
               num_heads, scale, mask=None):
    """Pure-JAX replica of WindowAttention.forward (weights as (in, out))."""
    B_, N, C = x.shape
    H = num_heads
    Dh = C // H
    qkv = jnp.einsum('bnc,cd->bnd', x, w_qkv) + b_qkv
    qkv = qkv.reshape(B_, N, 3, H, Dh).transpose(2, 0, 3, 1, 4)
    q, k, v = qkv[0], qkv[1], qkv[2]
    q = q * scale
    attn = jnp.einsum('bhnd,bhmd->bhnm', q, k)
    rel_bias = table[rel_index.reshape(-1)].reshape(N, N, H).transpose(2, 0, 1)
    attn = attn + rel_bias[None]
    if mask is not None:
        nW = mask.shape[0]
        attn = attn.reshape(B_ // nW, nW, H, N, N) + mask[None, :, None]
        attn = attn.reshape(B_, H, N, N)
    attn = jax.nn.softmax(attn, axis=-1)
    out = jnp.einsum('bhnm,bhmd->bhnd', attn, v)
    out = out.transpose(0, 2, 1, 3).reshape(B_, N, C)
    return jnp.einsum('bnc,cd->bnd', out, w_proj) + b_proj


if __name__ == "__main__":
    # Small but lane-dense shapes: 2 images, 16x16 feature map, 4x4 windows.
    B = 2
    window_size = (4, 4)
    Wh, Ww = window_size
    N = Wh * Ww                    # 16 tokens per window
    dim = 128                      # channels (multiple of 128 -> lane-dense)
    num_heads = 4
    head_dim = dim // num_heads
    scale = head_dim ** (-0.5)
    nW = 16                        # windows per image
    B_ = B * nW                    # 32 windows total

    key = jax.random.PRNGKey(0)
    keys = jax.random.split(key, 7)

    x = jax.random.normal(keys[0], (B_, N, dim), dtype=jnp.float32)
    bound = 1.0 / dim ** 0.5
    w_qkv = jax.random.uniform(keys[1], (dim, 3 * dim),
                               minval=-bound, maxval=bound, dtype=jnp.float32)
    b_qkv = jax.random.uniform(keys[2], (3 * dim,),
                               minval=-bound, maxval=bound, dtype=jnp.float32)
    w_proj = jax.random.uniform(keys[3], (dim, dim),
                                minval=-bound, maxval=bound, dtype=jnp.float32)
    b_proj = jax.random.uniform(keys[4], (dim,),
                                minval=-bound, maxval=bound, dtype=jnp.float32)
    # trunc_normal_(std=0.02)-style table init (exact distribution irrelevant here)
    table = 0.02 * jax.random.normal(
        keys[5], ((2 * Wh - 1) * (2 * Ww - 1), num_heads), dtype=jnp.float32)
    rel_index = _relative_position_index(window_size)

    # --- W-MSA path (mask=None) ---
    out = window_attention_pallas(x, w_qkv, b_qkv, w_proj, b_proj,
                                  table, rel_index, num_heads=num_heads)
    out = jax.block_until_ready(out)
    ref = _reference(x, w_qkv, b_qkv, w_proj, b_proj, table, rel_index,
                     num_heads, scale)
    assert out.shape == (B_, N, dim)
    assert jnp.allclose(out, ref, atol=1e-4, rtol=1e-4), "mismatch vs reference (no mask)"

    # --- SW-MSA path (additive 0 / -100 window mask) ---
    mask_bits = jax.random.bernoulli(keys[6], 0.5, (nW, N, N))
    mask = jnp.where(mask_bits, 0.0, -100.0).astype(jnp.float32)
    out_m = window_attention_pallas(x, w_qkv, b_qkv, w_proj, b_proj,
                                    table, rel_index, num_heads=num_heads, mask=mask)
    out_m = jax.block_until_ready(out_m)
    ref_m = _reference(x, w_qkv, b_qkv, w_proj, b_proj, table, rel_index,
                       num_heads, scale, mask=mask)
    assert jnp.allclose(out_m, ref_m, atol=1e-4, rtol=1e-4), "mismatch vs reference (mask)"

    print("KERNEL_OK")
</pallas_src>

<mosaic_0001>
module attributes {stable_mosaic.version = 11 : i64} {
  func.func @_window_attention_kernel(%arg0: i32, %arg1: memref<16x16x128xf32, #tpu.memory_space<vmem>>, %arg2: memref<128x384xf32, #tpu.memory_space<vmem>>, %arg3: memref<1x384xf32, #tpu.memory_space<vmem>>, %arg4: memref<128x128xf32, #tpu.memory_space<vmem>>, %arg5: memref<1x128xf32, #tpu.memory_space<vmem>>, %arg6: memref<1x4x16x16xf32, #tpu.memory_space<vmem>>, %arg7: memref<16x16x128xf32, #tpu.memory_space<vmem>>) attributes {dimension_semantics = [#tpu.dimension_semantics<parallel>], iteration_bounds = array<i64: 2>, scalar_prefetch = 0 : i64, scratch_operands = 0 : i64, tpu.core_type = #tpu.core_type<tc>, window_params = [{transform_indices = @transform_0, window_bounds = array<i64: 16, 16, 128>}, {pipeline_mode = #tpu.pipeline_mode<synchronous>, transform_indices = @transform_1, window_bounds = array<i64: 128, 384>}, {pipeline_mode = #tpu.pipeline_mode<synchronous>, transform_indices = @transform_2, window_bounds = array<i64: 1, 384>}, {pipeline_mode = #tpu.pipeline_mode<synchronous>, transform_indices = @transform_3, window_bounds = array<i64: 128, 128>}, {pipeline_mode = #tpu.pipeline_mode<synchronous>, transform_indices = @transform_4, window_bounds = array<i64: 1, 128>}, {pipeline_mode = #tpu.pipeline_mode<synchronous>, transform_indices = @transform_5, window_bounds = array<i64: 1, 4, 16, 16>}, {transform_indices = @transform_6, window_bounds = array<i64: 16, 16, 128>}]} {
    %c0 = arith.constant 0 : index
    %c0_0 = arith.constant 0 : index
    %c0_1 = arith.constant 0 : index
    %0 = vector.load %arg1[%c0, %c0_0, %c0_1] : memref<16x16x128xf32, #tpu.memory_space<vmem>>, vector<16x16x128xf32>
    %c0_2 = arith.constant 0 : index
    %c0_3 = arith.constant 0 : index
    %1 = vector.load %arg2[%c0_2, %c0_3] : memref<128x384xf32, #tpu.memory_space<vmem>>, vector<128x384xf32>
    %c0_4 = arith.constant 0 : index
    %c0_5 = arith.constant 0 : index
    %2 = vector.load %arg3[%c0_4, %c0_5] : memref<1x384xf32, #tpu.memory_space<vmem>>, vector<1x384xf32>
    %c0_6 = arith.constant 0 : index
    %c0_7 = arith.constant 0 : index
    %3 = vector.load %arg4[%c0_6, %c0_7] : memref<128x128xf32, #tpu.memory_space<vmem>>, vector<128x128xf32>
    %c0_8 = arith.constant 0 : index
    %c0_9 = arith.constant 0 : index
    %4 = vector.load %arg5[%c0_8, %c0_9] : memref<1x128xf32, #tpu.memory_space<vmem>>, vector<1x128xf32>
    %c0_10 = arith.constant 0 : index
    %c0_11 = arith.constant 0 : index
    %c0_12 = arith.constant 0 : index
    %c0_13 = arith.constant 0 : index
    %5 = vector.load %arg6[%c0_10, %c0_11, %c0_12, %c0_13] : memref<1x4x16x16xf32, #tpu.memory_space<vmem>>, vector<1x4x16x16xf32>
    %6 = vector.shape_cast %0 : vector<16x16x128xf32> to vector<256x128xf32>
    %cst = arith.constant dense<0.000000e+00> : vector<256x384xf32>
    %7 = tpu.matmul %6, %1, %cst {dimension_numbers = #tpu.dot_dimension_numbers<[1], [0], [0], [1], [0, 0, 1, 1], [], []>} : vector<256x128xf32>, vector<128x384xf32>, vector<256x384xf32> -> vector<256x384xf32>
    %8 = vector.broadcast %2 : vector<1x384xf32> to vector<256x384xf32>
    %9 = arith.addf %7, %8 : vector<256x384xf32>
    %10 = vector.shape_cast %9 : vector<256x384xf32> to vector<16x16x384xf32>
    %11 = vector.extract_strided_slice %10 {offsets = [0, 0, 0], sizes = [16, 16, 128], strides = [1, 1, 1]} : vector<16x16x384xf32> to vector<16x16x128xf32>
    %cst_14 = arith.constant 0.176776692 : f32
    %12 = vector.broadcast %cst_14 : f32 to vector<16x16x128xf32>
    %13 = arith.mulf %11, %12 : vector<16x16x128xf32>
    %14 = vector.extract_strided_slice %10 {offsets = [0, 0, 128], sizes = [16, 16, 128], strides = [1, 1, 1]} : vector<16x16x384xf32> to vector<16x16x128xf32>
    %15 = vector.extract_strided_slice %10 {offsets = [0, 0, 256], sizes = [16, 16, 128], strides = [1, 1, 1]} : vector<16x16x384xf32> to vector<16x16x128xf32>
    %16 = vector.extract_strided_slice %13 {offsets = [0, 0, 0], sizes = [16, 16, 32], strides = [1, 1, 1]} : vector<16x16x128xf32> to vector<16x16x32xf32>
    %17 = vector.extract_strided_slice %14 {offsets = [0, 0, 0], sizes = [16, 16, 32], strides = [1, 1, 1]} : vector<16x16x128xf32> to vector<16x16x32xf32>
    %18 = vector.extract_strided_slice %15 {offsets = [0, 0, 0], sizes = [16, 16, 32], strides = [1, 1, 1]} : vector<16x16x128xf32> to vector<16x16x32xf32>
    "tpu.trace_start"() <{level = 10 : i32, message = "bnd,bmd->bnm"}> : () -> ()
    %cst_15 = arith.constant dense<0.000000e+00> : vector<16x16x16xf32>
    %19 = tpu.matmul %16, %17, %cst_15 {dimension_numbers = #tpu.dot_dimension_numbers<[2], [2], [1], [1], [0, 0, 0, 1, 1, 1], [0], [0]>} : vector<16x16x32xf32>, vector<16x16x32xf32>, vector<16x16x16xf32> -> vector<16x16x16xf32>
    "tpu.trace_stop"() : () -> ()
    %20 = vector.extract_strided_slice %5 {offsets = [0, 0, 0, 0], sizes = [1, 1, 16, 16], strides = [1, 1, 1, 1]} : vector<1x4x16x16xf32> to vector<1x1x16x16xf32>
    %21 = vector.shape_cast %20 : vector<1x1x16x16xf32> to vector<1x16x16xf32>
    %22 = vector.broadcast %21 : vector<1x16x16xf32> to vector<16x16x16xf32>
    %23 = arith.addf %19, %22 : vector<16x16x16xf32>
    %cst_16 = arith.constant dense<0xFF800000> : vector<16x16xf32>
    %24 = vector.multi_reduction <maximumf>, %23, %cst_16 [2] : vector<16x16x16xf32> to vector<16x16xf32>
    %25 = vector.shape_cast %24 : vector<16x16xf32> to vector<16x16x1xf32>
    %26 = vector.broadcast %25 : vector<16x16x1xf32> to vector<16x16x16xf32>
    %27 = arith.subf %23, %26 : vector<16x16x16xf32>
    %28 = math.exp %27 : vector<16x16x16xf32>
    %cst_17 = arith.constant dense<0.000000e+00> : vector<16x16xf32>
    %29 = vector.multi_reduction <add>, %28, %cst_17 [2] : vector<16x16x16xf32> to vector<16x16xf32>
    %30 = vector.shape_cast %29 : vector<16x16xf32> to vector<16x16x1xf32>
    %31 = vector.broadcast %30 : vector<16x16x1xf32> to vector<16x16x16xf32>
    %32 = arith.divf %28, %31 : vector<16x16x16xf32>
    "tpu.trace_start"() <{level = 10 : i32, message = "bnm,bmd->bnd"}> : () -> ()
    %cst_18 = arith.constant dense<0.000000e+00> : vector<16x16x32xf32>
    %33 = tpu.matmul %32, %18, %cst_18 {dimension_numbers = #tpu.dot_dimension_numbers<[2], [1], [1], [2], [0, 0, 0, 1, 1, 2], [0], [0]>} : vector<16x16x16xf32>, vector<16x16x32xf32>, vector<16x16x32xf32> -> vector<16x16x32xf32>
    "tpu.trace_stop"() : () -> ()
    %34 = vector.extract_strided_slice %13 {offsets = [0, 0, 32], sizes = [16, 16, 32], strides = [1, 1, 1]} : vector<16x16x128xf32> to vector<16x16x32xf32>
    %35 = vector.extract_strided_slice %14 {offsets = [0, 0, 32], sizes = [16, 16, 32], strides = [1, 1, 1]} : vector<16x16x128xf32> to vector<16x16x32xf32>
    %36 = vector.extract_strided_slice %15 {offsets = [0, 0, 32], sizes = [16, 16, 32], strides = [1, 1, 1]} : vector<16x16x128xf32> to vector<16x16x32xf32>
    "tpu.trace_start"() <{level = 10 : i32, message = "bnd,bmd->bnm"}> : () -> ()
    %cst_19 = arith.constant dense<0.000000e+00> : vector<16x16x16xf32>
    %37 = tpu.matmul %34, %35, %cst_19 {dimension_numbers = #tpu.dot_dimension_numbers<[2], [2], [1], [1], [0, 0, 0, 1, 1, 1], [0], [0]>} : vector<16x16x32xf32>, vector<16x16x32xf32>, vector<16x16x16xf32> -> vector<16x16x16xf32>
    "tpu.trace_stop"() : () -> ()
    %38 = vector.extract_strided_slice %5 {offsets = [0, 1, 0, 0], sizes = [1, 1, 16, 16], strides = [1, 1, 1, 1]} : vector<1x4x16x16xf32> to vector<1x1x16x16xf32>
    %39 = vector.shape_cast %38 : vector<1x1x16x16xf32> to vector<1x16x16xf32>
    %40 = vector.broadcast %39 : vector<1x16x16xf32> to vector<16x16x16xf32>
    %41 = arith.addf %37, %40 : vector<16x16x16xf32>
    %cst_20 = arith.constant dense<0xFF800000> : vector<16x16xf32>
    %42 = vector.multi_reduction <maximumf>, %41, %cst_20 [2] : vector<16x16x16xf32> to vector<16x16xf32>
    %43 = vector.shape_cast %42 : vector<16x16xf32> to vector<16x16x1xf32>
    %44 = vector.broadcast %43 : vector<16x16x1xf32> to vector<16x16x16xf32>
    %45 = arith.subf %41, %44 : vector<16x16x16xf32>
    %46 = math.exp %45 : vector<16x16x16xf32>
    %cst_21 = arith.constant dense<0.000000e+00> : vector<16x16xf32>
    %47 = vector.multi_reduction <add>, %46, %cst_21 [2] : vector<16x16x16xf32> to vector<16x16xf32>
    %48 = vector.shape_cast %47 : vector<16x16xf32> to vector<16x16x1xf32>
    %49 = vector.broadcast %48 : vector<16x16x1xf32> to vector<16x16x16xf32>
    %50 = arith.divf %46, %49 : vector<16x16x16xf32>
    "tpu.trace_start"() <{level = 10 : i32, message = "bnm,bmd->bnd"}> : () -> ()
    %cst_22 = arith.constant dense<0.000000e+00> : vector<16x16x32xf32>
    %51 = tpu.matmul %50, %36, %cst_22 {dimension_numbers = #tpu.dot_dimension_numbers<[2], [1], [1], [2], [0, 0, 0, 1, 1, 2], [0], [0]>} : vector<16x16x16xf32>, vector<16x16x32xf32>, vector<16x16x32xf32> -> vector<16x16x32xf32>
    "tpu.trace_stop"() : () -> ()
    %52 = vector.extract_strided_slice %13 {offsets = [0, 0, 64], sizes = [16, 16, 32], strides = [1, 1, 1]} : vector<16x16x128xf32> to vector<16x16x32xf32>
    %53 = vector.extract_strided_slice %14 {offsets = [0, 0, 64], sizes = [16, 16, 32], strides = [1, 1, 1]} : vector<16x16x128xf32> to vector<16x16x32xf32>
    %54 = vector.extract_strided_slice %15 {offsets = [0, 0, 64], sizes = [16, 16, 32], strides = [1, 1, 1]} : vector<16x16x128xf32> to vector<16x16x32xf32>
    "tpu.trace_start"() <{level = 10 : i32, message = "bnd,bmd->bnm"}> : () -> ()
    %cst_23 = arith.constant dense<0.000000e+00> : vector<16x16x16xf32>
    %55 = tpu.matmul %52, %53, %cst_23 {dimension_numbers = #tpu.dot_dimension_numbers<[2], [2], [1], [1], [0, 0, 0, 1, 1, 1], [0], [0]>} : vector<16x16x32xf32>, vector<16x16x32xf32>, vector<16x16x16xf32> -> vector<16x16x16xf32>
    "tpu.trace_stop"() : () -> ()
    %56 = vector.extract_strided_slice %5 {offsets = [0, 2, 0, 0], sizes = [1, 1, 16, 16], strides = [1, 1, 1, 1]} : vector<1x4x16x16xf32> to vector<1x1x16x16xf32>
    %57 = vector.shape_cast %56 : vector<1x1x16x16xf32> to vector<1x16x16xf32>
    %58 = vector.broadcast %57 : vector<1x16x16xf32> to vector<16x16x16xf32>
    %59 = arith.addf %55, %58 : vector<16x16x16xf32>
    %cst_24 = arith.constant dense<0xFF800000> : vector<16x16xf32>
    %60 = vector.multi_reduction <maximumf>, %59, %cst_24 [2] : vector<16x16x16xf32> to vector<16x16xf32>
    %61 = vector.shape_cast %60 : vector<16x16xf32> to vector<16x16x1xf32>
    %62 = vector.broadcast %61 : vector<16x16x1xf32> to vector<16x16x16xf32>
    %63 = arith.subf %59, %62 : vector<16x16x16xf32>
    %64 = math.exp %63 : vector<16x16x16xf32>
    %cst_25 = arith.constant dense<0.000000e+00> : vector<16x16xf32>
    %65 = vector.multi_reduction <add>, %64, %cst_25 [2] : vector<16x16x16xf32> to vector<16x16xf32>
    %66 = vector.shape_cast %65 : vector<16x16xf32> to vector<16x16x1xf32>
    %67 = vector.broadcast %66 : vector<16x16x1xf32> to vector<16x16x16xf32>
    %68 = arith.divf %64, %67 : vector<16x16x16xf32>
    "tpu.trace_start"() <{level = 10 : i32, message = "bnm,bmd->bnd"}> : () -> ()
    %cst_26 = arith.constant dense<0.000000e+00> : vector<16x16x32xf32>
    %69 = tpu.matmul %68, %54, %cst_26 {dimension_numbers = #tpu.dot_dimension_numbers<[2], [1], [1], [2], [0, 0, 0, 1, 1, 2], [0], [0]>} : vector<16x16x16xf32>, vector<16x16x32xf32>, vector<16x16x32xf32> -> vector<16x16x32xf32>
    "tpu.trace_stop"() : () -> ()
    %70 = vector.extract_strided_slice %13 {offsets = [0, 0, 96], sizes = [16, 16, 32], strides = [1, 1, 1]} : vector<16x16x128xf32> to vector<16x16x32xf32>
    %71 = vector.extract_strided_slice %14 {offsets = [0, 0, 96], sizes = [16, 16, 32], strides = [1, 1, 1]} : vector<16x16x128xf32> to vector<16x16x32xf32>
    %72 = vector.extract_strided_slice %15 {offsets = [0, 0, 96], sizes = [16, 16, 32], strides = [1, 1, 1]} : vector<16x16x128xf32> to vector<16x16x32xf32>
    "tpu.trace_start"() <{level = 10 : i32, message = "bnd,bmd->bnm"}> : () -> ()
    %cst_27 = arith.constant dense<0.000000e+00> : vector<16x16x16xf32>
    %73 = tpu.matmul %70, %71, %cst_27 {dimension_numbers = #tpu.dot_dimension_numbers<[2], [2], [1], [1], [0, 0, 0, 1, 1, 1], [0], [0]>} : vector<16x16x32xf32>, vector<16x16x32xf32>, vector<16x16x16xf32> -> vector<16x16x16xf32>
    "tpu.trace_stop"() : () -> ()
    %74 = vector.extract_strided_slice %5 {offsets = [0, 3, 0, 0], sizes = [1, 1, 16, 16], strides = [1, 1, 1, 1]} : vector<1x4x16x16xf32> to vector<1x1x16x16xf32>
    %75 = vector.shape_cast %74 : vector<1x1x16x16xf32> to vector<1x16x16xf32>
    %76 = vector.broadcast %75 : vector<1x16x16xf32> to vector<16x16x16xf32>
    %77 = arith.addf %73, %76 : vector<16x16x16xf32>
    %cst_28 = arith.constant dense<0xFF800000> : vector<16x16xf32>
    %78 = vector.multi_reduction <maximumf>, %77, %cst_28 [2] : vector<16x16x16xf32> to vector<16x16xf32>
    %79 = vector.shape_cast %78 : vector<16x16xf32> to vector<16x16x1xf32>
    %80 = vector.broadcast %79 : vector<16x16x1xf32> to vector<16x16x16xf32>
    %81 = arith.subf %77, %80 : vector<16x16x16xf32>
    %82 = math.exp %81 : vector<16x16x16xf32>
    %cst_29 = arith.constant dense<0.000000e+00> : vector<16x16xf32>
    %83 = vector.multi_reduction <add>, %82, %cst_29 [2] : vector<16x16x16xf32> to vector<16x16xf32>
    %84 = vector.shape_cast %83 : vector<16x16xf32> to vector<16x16x1xf32>
    %85 = vector.broadcast %84 : vector<16x16x1xf32> to vector<16x16x16xf32>
    %86 = arith.divf %82, %85 : vector<16x16x16xf32>
    "tpu.trace_start"() <{level = 10 : i32, message = "bnm,bmd->bnd"}> : () -> ()
    %cst_30 = arith.constant dense<0.000000e+00> : vector<16x16x32xf32>
    %87 = tpu.matmul %86, %72, %cst_30 {dimension_numbers = #tpu.dot_dimension_numbers<[2], [1], [1], [2], [0, 0, 0, 1, 1, 2], [0], [0]>} : vector<16x16x16xf32>, vector<16x16x32xf32>, vector<16x16x32xf32> -> vector<16x16x32xf32>
    "tpu.trace_stop"() : () -> ()
    %88 = tpu.concatenate %33, %51, %69, %87 in 2 : vector<16x16x32xf32>, vector<16x16x32xf32>, vector<16x16x32xf32>, vector<16x16x32xf32> -> vector<16x16x128xf32>
    %89 = vector.shape_cast %88 : vector<16x16x128xf32> to vector<256x128xf32>
    %cst_31 = arith.constant dense<0.000000e+00> : vector<256x128xf32>
    %90 = tpu.matmul %89, %3, %cst_31 {dimension_numbers = #tpu.dot_dimension_numbers<[1], [0], [0], [1], [0, 0, 1, 1], [], []>} : vector<256x128xf32>, vector<128x128xf32>, vector<256x128xf32> -> vector<256x128xf32>
    %91 = vector.broadcast %4 : vector<1x128xf32> to vector<256x128xf32>
    %92 = arith.addf %90, %91 : vector<256x128xf32>
    %93 = vector.shape_cast %92 : vector<256x128xf32> to vector<16x16x128xf32>
    %c0_32 = arith.constant 0 : index
    %c0_33 = arith.constant 0 : index
    %c0_34 = arith.constant 0 : index
    %94 = vector.load %arg7[%c0_32, %c0_33, %c0_34] : memref<16x16x128xf32, #tpu.memory_space<vmem>>, vector<16x16x128xf32>
    tpu.vector_store %arg7[%c0_32, %c0_33, %c0_34], %93 {strides = array<i32>} : memref<16x16x128xf32, #tpu.memory_space<vmem>>, vector<16x16x128xf32>,
    return
  }
  func.func @transform_0(%arg0: i32) -> (i32, i32, i32) {
    %c0_i32 = arith.constant 0 : i32
    %c0_i32_0 = arith.constant 0 : i32
    %c0_i32_1 = arith.constant 0 : i32
    return %arg0, %c0_i32, %c0_i32_0 : i32, i32, i32
  }
  func.func @transform_1(%arg0: i32) -> (i32, i32) {
    %c0_i32 = arith.constant 0 : i32
    %c0_i32_0 = arith.constant 0 : i32
    %c0_i32_1 = arith.constant 0 : i32
    return %c0_i32, %c0_i32_0 : i32, i32
  }
  func.func @transform_2(%arg0: i32) -> (i32, i32) {
    %c0_i32 = arith.constant 0 : i32
    %c0_i32_0 = arith.constant 0 : i32
    %c0_i32_1 = arith.constant 0 : i32
    return %c0_i32, %c0_i32_0 : i32, i32
  }
  func.func @transform_3(%arg0: i32) -> (i32, i32) {
    %c0_i32 = arith.constant 0 : i32
    %c0_i32_0 = arith.constant 0 : i32
    %c0_i32_1 = arith.constant 0 : i32
    return %c0_i32, %c0_i32_0 : i32, i32
  }
  func.func @transform_4(%arg0: i32) -> (i32, i32) {
    %c0_i32 = arith.constant 0 : i32
    %c0_i32_0 = arith.constant 0 : i32
    %c0_i32_1 = arith.constant 0 : i32
    return %c0_i32, %c0_i32_0 : i32, i32
  }
  func.func @transform_5(%arg0: i32) -> (i32, i32, i32, i32) {
    %c0_i32 = arith.constant 0 : i32
    %c0_i32_0 = arith.constant 0 : i32
    %c0_i32_1 = arith.constant 0 : i32
    %c0_i32_2 = arith.constant 0 : i32
    %c0_i32_3 = arith.constant 0 : i32
    return %c0_i32, %c0_i32_0, %c0_i32_1, %c0_i32_2 : i32, i32, i32, i32
  }
  func.func @transform_6(%arg0: i32) -> (i32, i32, i32) {
    %c0_i32 = arith.constant 0 : i32
    %c0_i32_0 = arith.constant 0 : i32
    %c0_i32_1 = arith.constant 0 : i32
    return %arg0, %c0_i32, %c0_i32_0 : i32, i32, i32
  }
}

</mosaic_0001>

<bundles_post_ra>
// kernel: tpu_custom_call.1
= control target key start
LH: loop header
LB: loop body
LE: loop exit
PB: predicated region body
PF: predicated region fallthrough
CT: control target
= control target key end

     0   :  { %s23078_s0 = inlined_call_operand.hbm [shape: f32[32,16,128], index: 0, kind: input, shape index: {}]   ;;  %s23079_s1 = inlined_call_operand.hbm [shape: f32[128,384], index: 1, kind: input, shape index: {}]   ;;  %s23080_s2 = inlined_call_operand.vmem [shape: f32[1,384], index: 2, kind: input, shape index: {}]   ;;  %s23081_s3 = inlined_call_operand.hbm [shape: f32[128,128], index: 3, kind: input, shape index: {}]   ;;  %s23082_s4 = inlined_call_operand.vmem [shape: f32[1,128], index: 4, kind: input, shape index: {}]   ;;  %s23083_s5 = inlined_call_operand.hbm [shape: f32[1,4,16,16], index: 5, kind: input, shape index: {}]   ;;  %s23084_s6 = inlined_call_operand.hbm [shape: f32[32,16,128], index: 6, kind: output, shape index: {}]  }
   0x1   :  { %23298 = sst [smem:[#allocation138_spill]] %s23079_s1 }
   0x2   :  { %11 = vsyncpa [#allocation3], 0 }
   0x3   :  { %13 = vsyncpa [#allocation3 + $0x1], 0 }
   0x4   :  { %14 = vsyncpa [#allocation6], 0 }
   0x5   :  { %15 = vsyncpa [#allocation9], 0 }
   0x6   :  { %16 = vsyncpa [#allocation4], 0 }
   0x7   :  { %18 = vsyncpa [#allocation4 + $0x1], 0  ;;  %s18875_s21 = smov 0   ;;  %s18877_s22 = smov 0  }
   0x8   :  { %s18879_s23 = smov 0   ;;  %s18881_s24 = smov 0  }
   0x9 LB: > { %s18896_s25 = sadd.s32 4294967295, %s18823_s24   ;;  %s14489_s26 = sadd.s32 4294967294, %s18823_s24   ;;  %s18823_s24 = sphi %s18881_s24, %s23870_s24   ;;  %s18819_s23 = sphi %s18879_s23, %s23869_s23   ;;  %s18815_s22 = sphi %s18877_s22, %s23868_s22   ;;  %s18811_s21 = sphi %s18875_s21, %s23867_s21  }
   0xa   : > { %p44_p0 = scmp.ne.s32.totalorder %s18815_s22, %s18811_s21  ;;  %p23085_p1 = scmp.eq.s32.totalorder %s18896_s25, 0 }
   0xb   : > { %p179_p3 = scmp.eq.s32.totalorder %s14489_s26, 1  ;;  %p14490_p5 = scmp.ge.s32.totalorder %s18823_s24, 1 }
   0xc   : > { %p18905_p4 = por %p23085_p1, %p44_p0  ;;  %p186_p7 = scmp.lt.s32.totalorder %s18823_s24, 3 }
   0xd   : > { %p18910_p6 = por %p179_p3, %p44_p0  ;;  %s18825_s30 = smov [#allocation5]  }
   0xe   : > { %s23299_s27 = scalar_select %p18905_p4, 1, 0 }
   0xf   : > { %s23300_s28 = scalar_select %p18910_p6, 1, 0 }
  0x10   : > { %p18915_p8 = pnand %p14490_p5, %p186_p7  ;;  %s198_s7 = sshll.u32 %s18825_s30, 4  ;;  %s18919_s7 = int_to_ptr.vmem [resolvable:$true] %s198_s7 }
  0x11   : > { %s18826_s9 = smov [#allocation7]   ;;  %s23303_s1 = sld [smem:[#allocation138_spill]] }
  0x12   : > { %s23301_s29 = scalar_select %p18915_p8, 1, 0 }
  0x13   : > { %p17332_p9 = pneg %p18915_p8  ;;  %s214_s10 = sshll.u32 %s18826_s9, 4  ;;  %s18930_s10 = int_to_ptr.vmem [resolvable:$true] %s214_s10 }
  0x15   : > { %p18926_p11 = pnand %p17332_p9, %p23085_p1 }
  0x17   : > { %s18635_s13 = scalar_lea.hbm %s23303_s1, 6144  ;;  %p18940_p13 = pneg %p18926_p11 }
  0x18   : > { %p18636_p12 = scmp.ne.s32.totalorder %s23303_s1, %s18635_s13  ;;  %p18642_p5 = scmp.lt.u32.totalorder %s18635_s13, %s23303_s1 }
  0x1a   : > { %p18638_p0 = pnand %p18940_p13, %p18636_p12 }
  0x1c   : > { %p18639_p3 = pneg %p18638_p0 }
  0x1e   : > { %p18644_p7 = pnand %p18642_p5, %p18639_p3 }
  0x20   : > { %18647 = shalt.err (!%p18644_p7)
}
  0x21   : > { %s18648_s19 = scalar_lea.vmem %s18919_s7, 6144  ;;  %p18656_p2 = scmp.lt.s32.totalorder %s18919_s7, %s18919_s7 }
  0x22   : > { %p18649_p9 = scmp.ne.s32.totalorder %s18919_s7, %s18648_s19  ;;  %p18657_p6 = scmp.lt.s32.totalorder %s18648_s19, %s18648_s19 }
  0x24   : > { %p18651_p10 = pnand %p18649_p9, %p18940_p13  ;;  %p18658_p12 = por %p18657_p6, %p18656_p2 }
  0x26   : > { %p18652_p1 = pneg %p18651_p10 }
  0x28   : > { %p18659_p0 = pnand %p18658_p12, %p18652_p1 }
  0x2a   : > { %18662 = shalt.err (!%p18659_p0)
}
  0x2b   : > { %s18827_s20 = smov 384   ;;  %s18828_s26 = smov 24  }
  0x2c   : > { %17335 = dma.hbm_to_vmem [thread:$0]  (!%p18926_p11), %s23303_s1, 6144, %s18919_s7, [#allocation6], %s18827_s20, %s18827_s20, %s18828_s26  }
  0x2d   : > { %s18663_s13 = scalar_lea.hbm %s23081_s3, 2048 }
  0x2e   : > { %p18664_p2 = scmp.ne.s32.totalorder %s23081_s3, %s18663_s13  ;;  %p18670_p10 = scmp.lt.u32.totalorder %s18663_s13, %s23081_s3 }
  0x30   : > { %p18666_p1 = pnand %p18664_p2, %p18940_p13 }
  0x32   : > { %p18667_p6 = pneg %p18666_p1 }
  0x34   : > { %p18672_p3 = pnand %p18670_p10, %p18667_p6 }
  0x36   : > { %18675 = shalt.err (!%p18672_p3)
}
  0x37   : > { %s18676_s7 = scalar_lea.vmem %s18930_s10, 2048  ;;  %p18684_p12 = scmp.lt.s32.totalorder %s18930_s10, %s18930_s10 }
  0x38   : > { %p18677_p5 = scmp.ne.s32.totalorder %s18930_s10, %s18676_s7  ;;  %p18685_p0 = scmp.lt.s32.totalorder %s18676_s7, %s18676_s7 }
  0x3a   : > { %p18679_p7 = pnand %p18677_p5, %p18940_p13  ;;  %p18686_p2 = por %p18685_p0, %p18684_p12 }
  0x3c   : > { %p18680_p9 = pneg %p18679_p7 }
  0x3e   : > { %p18687_p1 = pnand %p18686_p2, %p18680_p9 }
  0x40   : > { %18690 = shalt.err (!%p18687_p1)
}
  0x41   : > { %s18829_s19 = smov 128   ;;  %s18830_s20 = smov 8  }
  0x42   : > { %17338 = dma.hbm_to_vmem [thread:$0]  (!%p18926_p11), %s23081_s3, 2048, %s18930_s10, [#allocation6], %s18829_s19, %s18829_s19, %s18830_s20  }
  0x43   : > { %s18831_s9 = smov [#allocation8]   ;;  %s18988_s12 = sadd.s32 1, %s18823_s24  }
  0x44   : > { %s230_s11 = sshll.u32 %s18831_s9, 4  ;;  %s18691_s15 = scalar_lea.hbm %s23083_s5, 1024  ;;  %s231_s11 = int_to_ptr.vmem [resolvable:$true] %s230_s11 }
  0x45   : > { %p18692_p6 = scmp.ne.s32.totalorder %s23083_s5, %s18691_s15  ;;  %p18698_p5 = scmp.lt.u32.totalorder %s18691_s15, %s23083_s5 }
  0x47   : > { %p18694_p10 = pnand %p18692_p6, %p18940_p13 }
  0x49   : > { %p18695_p3 = pneg %p18694_p10 }
  0x4b   : > { %p18700_p7 = pnand %p18698_p5, %p18695_p3 }
  0x4d   : > { %18703 = shalt.err (!%p18700_p7)
}
  0x4e   : > { %s18704_s10 = scalar_lea.vmem %s231_s11, 1024  ;;  %p18712_p2 = scmp.lt.s32.totalorder %s231_s11, %s231_s11 }
  0x4f   : > { %p18705_p9 = scmp.ne.s32.totalorder %s231_s11, %s18704_s10  ;;  %p18713_p1 = scmp.lt.s32.totalorder %s18704_s10, %s18704_s10 }
  0x51   : > { %p18707_p12 = pnand %p18705_p9, %p18940_p13  ;;  %p18714_p4 = por %p18713_p1, %p18712_p2 }
  0x53   : > { %p18708_p0 = pneg %p18707_p12 }
  0x55   : > { %p18715_p8 = pnand %p18714_p4, %p18708_p0 }
  0x57   : > { %18718 = shalt.err (!%p18715_p8)
}
  0x58   : > { %17341 = dma.hbm_to_vmem [thread:$0]  (!%p18926_p11), %s23083_s5, 1024, %s231_s11, [#allocation9], %s18829_s19, %s18829_s19, %s18830_s20  }
  0x59   : > { %s28_s16 = ssub.s32 %s18823_s24, %s18988_s12  ;;  %s31_s8 = sadd.s32 1, %s18819_s23 }
  0x5a   : > { %p29_p4 = scmp.eq.s32.totalorder %s28_s16, 0  ;;  %p38_p8 = scmp.ne.s32.totalorder %s18819_s23, %s18815_s22 }
  0x5b   : > { %p39_p13 = scmp.eq.s32.totalorder %s18823_s24, 0  ;;  %p17353_p6 = scmp.lt.s32.totalorder %s18823_s24, 2 }
  0x5c   : > { %s19019_s30 = scalar_select %p29_p4, %s18819_s23, %s31_s8  }
  0x5d   : > { %p40_p10 = por %p39_p13, %p38_p8  ;;  %p23305_p3 = scmp.eq.s32.totalorder %s18896_s25, 1 }
  0x5e   : > { %s244_s13 = sand.u32 1, %s18819_s23   ;;  %s14897_s14 = sshll.u32 %s18823_s24, 12 }
  0x5f   : > { %p19023_p5 = por %p23305_p3, %p38_p8  ;;  %s14495_s15 = sshll.u32 %s244_s13, 8 }
  0x60   : > { %s19032_s11 = scalar_lea.hbm %s23078_s0, %s14897_s14  ;;  %s248_s7 = scalar_lea.vmem [#allocation2], %s14495_s15 }
  0x61   : > { %s256_s10 = sshll.u32 %s248_s7, 4  ;;  %p19034_p11 = pnand %p17353_p6, %p40_p10  ;;  %s19038_s10 = int_to_ptr.vmem [resolvable:$true] %s256_s10 }
  0x62   : > { %s19040_s26 = scalar_lea.sflag [#allocation3], %s244_s13  ;;  %s18719_s16 = scalar_lea.hbm %s19032_s11, 4096 }
  0x63   : > { %p18720_p7 = scmp.ne.s32.totalorder %s19032_s11, %s18719_s16  ;;  %p18721_p9 = pneg %p19034_p11 }
  0x64   : > { %s18724_s15 = scalar_lea.hbm %s23078_s0, 8192  ;;  %p18725_p2 = scmp.lt.u32.totalorder %s19032_s11, %s23078_s0 }
  0x65   : > { %p18722_p12 = pnand %p18721_p9, %p18720_p7  ;;  %p18726_p1 = scmp.lt.u32.totalorder %s18724_s15, %s18719_s16 }
  0x66   : > { %p18728_p8 = scmp.lt.u32.totalorder %s18719_s16, %s19032_s11 }
  0x67   : > { %p18723_p0 = pneg %p18722_p12  ;;  %p18727_p4 = por %p18726_p1, %p18725_p2 }
  0x69   : > { %p18729_p13 = por %p18728_p8, %p18727_p4 }
  0x6b   : > { %p18730_p6 = pnand %p18729_p13, %p18723_p0 }
  0x6d   : > { %18733 = shalt.err (!%p18730_p6)
}
  0x6e   : > { %s18734_s13 = scalar_lea.vmem %s19038_s10, 4096  ;;  %s18832_s7 = smov [#allocation2]  }
  0x6f   : > { %p18735_p10 = scmp.ne.s32.totalorder %s19038_s10, %s18734_s13  ;;  %s18739_s8 = sshll.u32 %s18832_s7, 4  ;;  %s18740_s8 = int_to_ptr.vmem [resolvable:$false] %s18739_s8 }
  0x70   : > { %s18741_s14 = scalar_lea.vmem %s18740_s8, 8192  ;;  %p18742_p12 = scmp.lt.s32.totalorder %s19038_s10, %s18740_s8 }
  0x71   : > { %p18737_p3 = pnand %p18735_p10, %p18721_p9  ;;  %p18743_p2 = scmp.lt.s32.totalorder %s18741_s14, %s18734_s13 }
  0x73   : > { %p18738_p7 = pneg %p18737_p3  ;;  %p18744_p1 = por %p18743_p2, %p18742_p12 }
  0x75   : > { %p18745_p4 = pnand %p18744_p1, %p18738_p7 }
  0x77   : > { %18748 = shalt.err (!%p18745_p4)
}
  0x78   : > { %17345 = dma.hbm_to_vmem [thread:$0]  (!%p19034_p11), %s19032_s11, 4096, %s19038_s10, %s19040_s26, %s18829_s19, %s18829_s19, %s18830_s20  }
  0x79   : > { %p23308_p9 = scmp.ne.s32.totalorder %s23301_s29, 0 }
  0x7b   : > { %268 = sbr.rel (%p23308_p9) target bundleno = 3455 (0xd7f), region = 44 }
  0x82   : > { %s19074_s16 = sand.u32 1, %s18815_s22   ;;  %p23309_p0 = scmp.ne.s32.totalorder %s23299_s27, 0 }
  0x83   : > { %s14500_s15 = sshll.u32 %s19074_s16, 8  ;;  %s271_s17 = scalar_lea.sflag [#allocation3], %s19074_s16 }
  0x84   : > { %s19080_s1 = scalar_lea.vmem [#allocation2], %s14500_s15 }
  0x85   : > { %18794 = dma.done.wait (%p23309_p0), %s271_s17, 4096  }
  0x86   : > { %18796 = vsyncadd (%p23309_p0), %s271_s17, 4294963200  ;;  %p23310_p11 = scmp.eq.s32.totalorder %s18896_s25, 0 }
  0x88   : > { %18798 = dma.done.wait (%p23310_p11), [#allocation6], 8192   ;;  %p23311_p8 = pmov %p23310_p11 }
  0x8a   : > { %18800 = vsyncadd (%p23311_p8), [#allocation6], 4294959104  ;;  %p23312_p13 = pmov %p23311_p8 }
  0x8b   : > { %p23313_p6 = pmov %p23311_p8 }
  0x8c   : > { %18802 = dma.done.wait (%p23312_p13), [#allocation9], 1024  }
  0x8d   : > { %18804 = vsyncadd (%p23313_p6), [#allocation9], 4294966272  ;;  %v18833_v0 = vmov 0.0   ;;  %v350_v1 = vld [vmem:[#allocation5 + $0x8] sm:$0xff]  ;;  %v353_v2 = vld [vmem:[#allocation5 + $0x20] sm:$0xff]  ;;  %vm953_vm0 = vcmask 261120  }
  0x8e   : > { %503 = vmatprep.mubr.f32.mxu0 %v18833_v0  ;;  %629 = vmatprep.mubr.f32.mxu1 %v18833_v0  ;;  %v349_v3 = vld [vmem:[#allocation5] sm:$0xff]  ;;  %v16564_v4 = vpack.c.bf16 %v353_v2, %v350_v1  ;;  %v352_v5 = vld [vmem:[#allocation5 + $0x18] sm:$0xff]  ;;  %v359_v7 = vld [vmem:[#allocation5 + $0x50] sm:$0xff]  ;;  %s18834_s19 = smov 96   ;;  %vm2346_vm2 = vcmask 130048   ;;  %s18835_s20 = smov 64  }
  0x8f   : > { %v356_v6 = vld [vmem:[#allocation5 + $0x38] sm:$0xff]  ;;  %v16566_v8 = vpack.c.bf16 %v352_v5, %v349_v3  ;;  %v355_v10 = vld [vmem:[#allocation5 + $0x30] sm:$0xff]  ;;  %v358_v11 = vld [vmem:[#allocation5 + $0x48] sm:$0xff]  ;;  %s18836_s11 = smov 32   ;;  %vm14043_vm3 = vcmask 523264   ;;  %vm14076_vm4 = vcmask 785408  }
  0x90   : > { %v16568_v9 = vpack.c.bf16 %v359_v7, %v356_v6  ;;  %v362_v12 = vld [vmem:[#allocation5 + $0x68] sm:$0xff]  ;;  %16565 = vmatprep.subr.bf16.mxu0 %v16564_v4  ;;  %v365_v13 = vld [vmem:[#allocation5 + $0x80] sm:$0xff]  ;;  %17300 = vmatprep.subr.bf16.mxu1 %v16564_v4  ;;  %v16570_v14 = vpack.c.bf16 %v358_v11, %v355_v10  ;;  %v364_v17 = vld [vmem:[#allocation5 + $0x78] sm:$0xff]  ;;  %s22963_s18 = scalar_lea.vmem [#allocation10], %s14500_s15  ;;  %s14899_s13 = sshll.u32 %s18896_s25, 12 }
  0x91   : > { %16567 = vmatpush1.bf16.msra.mxu0 %v16566_v8  ;;  %17308 = vmatpush1.bf16.msra.mxu1 %v16566_v8  ;;  %v16572_v15 = vpack.c.bf16 %v365_v13, %v362_v12  ;;  %v361_v16 = vld [vmem:[#allocation5 + $0x60] sm:$0xff]  ;;  %v368_v18 = vld [vmem:[#allocation5 + $0x98] sm:$0xff]  ;;  %v371_v19 = vld [vmem:[#allocation5 + $0xb0] sm:$0xff]  ;;  %s14387_s7 = sshll.u32 %s22963_s18, 4  ;;  %s23029_s15 = scalar_lea.hbm %s23084_s6, %s14899_s13  ;;  %s23031_s7 = int_to_ptr.vmem [resolvable:$true] %s14387_s7 }
  0x92   : > { %16569 = vmatprep.subr.bf16.mxu0 %v16568_v9  ;;  %17301 = vmatprep.subr.bf16.mxu1 %v16568_v9  ;;  %v16574_v20 = vpack.c.bf16 %v364_v17, %v361_v16  ;;  %v16576_v21 = vpack.c.bf16 %v371_v19, %v368_v18  ;;  %v367_v22 = vld [vmem:[#allocation5 + $0x90] sm:$0xff]  ;;  %v370_v23 = vld [vmem:[#allocation5 + $0xa8] sm:$0xff]  ;;  %v377_v25 = vld [vmem:[#allocation5 + $0xe0] sm:$0xff]  ;;  %s14373_s25 = scalar_lea.sflag [#allocation4], %s19074_s16  ;;  %s18749_s17 = scalar_lea.vmem %s23031_s7, 4096 }
  0x93   : > { %v374_v24 = vld [vmem:[#allocation5 + $0xc8] sm:$0xff]  ;;  %v16578_v26 = vpack.c.bf16 %v370_v23, %v367_v22  ;;  %v373_v28 = vld [vmem:[#allocation5 + $0xc0] sm:$0xff]  ;;  %v376_v29 = vld [vmem:[#allocation5 + $0xd8] sm:$0xff]  ;;  %p18750_p10 = scmp.ne.s32.totalorder %s23031_s7, %s18749_s17 }
  0x94   : > { %v16580_v27 = vpack.c.bf16 %v377_v25, %v374_v24  ;;  %v380_v30 = vld [vmem:[#allocation5 + $0xf8] sm:$0xff]  ;;  %v383_v31 = vld [vmem:[#allocation5 + $0x110] sm:$0xff]  ;;  %v16582_v32 = vpack.c.bf16 %v376_v29, %v373_v28  ;;  %v382_v35 = vld [vmem:[#allocation5 + $0x108] sm:$0xff] }
  0x95   : > { %16571 = vmatpush1.bf16.msra.mxu0 %v16570_v14  ;;  %17309 = vmatpush1.bf16.msra.mxu1 %v16570_v14  ;;  %v16584_v33 = vpack.c.bf16 %v383_v31, %v380_v30  ;;  %v379_v34 = vld [vmem:[#allocation5 + $0xf0] sm:$0xff]  ;;  %v386_v36 = vld [vmem:[#allocation5 + $0x128] sm:$0xff]  ;;  %v389_v37 = vld [vmem:[#allocation5 + $0x140] sm:$0xff]  ;;  %p18751_p3 = pnand %p18750_p10, %p19023_p5 }
  0x96   : > { %16573 = vmatprep.subr.bf16.mxu0 %v16572_v15  ;;  %17302 = vmatprep.subr.bf16.mxu1 %v16572_v15  ;;  %v16586_v38 = vpack.c.bf16 %v382_v35, %v379_v34  ;;  %v16588_v39 = vpack.c.bf16 %v389_v37, %v386_v36  ;;  %v385_v40 = vld [vmem:[#allocation5 + $0x120] sm:$0xff]  ;;  %v388_v41 = vld [vmem:[#allocation5 + $0x138] sm:$0xff]  ;;  %v395_v43 = vld [vmem:[#allocation5 + $0x170] sm:$0xff] }
  0x97   : > { %v392_v42 = vld [vmem:[#allocation5 + $0x158] sm:$0xff]  ;;  %v16590_v44 = vpack.c.bf16 %v388_v41, %v385_v40  ;;  %v391_v46 = vld [vmem:[#allocation5 + $0x150] sm:$0xff]  ;;  %v394_v47 = vld [vmem:[#allocation5 + $0x168] sm:$0xff]  ;;  %p18752_p7 = pneg %p18751_p3 }
  0x98   : > { %v16592_v45 = vpack.c.bf16 %v395_v43, %v392_v42  ;;  %v351_v48 = vld [vmem:[#allocation5 + $0x10] sm:$0xff]  ;;  %v354_v49 = vld [vmem:[#allocation5 + $0x28] sm:$0xff]  ;;  %v16594_v50 = vpack.c.bf16 %v394_v47, %v391_v46  ;;  %v357_v52 = vld [vmem:[#allocation5 + $0x40] sm:$0xff] }
  0x99   : > { %16575 = vmatpush1.bf16.msra.mxu0 %v16574_v20  ;;  %17310 = vmatpush1.bf16.msra.mxu1 %v16574_v20  ;;  %v16596_v51 = vpack.c.bf16 %v354_v49, %v351_v48  ;;  %v360_v53 = vld [vmem:[#allocation5 + $0x58] sm:$0xff]  ;;  %v19097_v54 = vld [vmem:[%s19080_s1] sm:$0xff]  ;;  %v19100_v55 = vld [vmem:[%s19080_s1 + $0xa8] sm:$0xff] }
  0x9a   : > { %16577 = vmatprep.subr.bf16.mxu0 %v16576_v21  ;;  %17303 = vmatprep.subr.bf16.mxu1 %v16576_v21  ;;  %v16600_v56 = vpack.c.bf16 %v360_v53, %v357_v52  ;;  %v363_v57 = vld [vmem:[#allocation5 + $0x70] sm:$0xff]  ;;  %v366_v58 = vld [vmem:[#allocation5 + $0x88] sm:$0xff]  ;;  %v369_v62 = vld [vmem:[#allocation5 + $0xa0] sm:$0xff] }
  0x9b   : > { %v19106_v59 = vld [vmem:[%s19080_s1 + $0x8] sm:$0xff]  ;;  %v19110_v60 = vld [vmem:[%s19080_s1 + $0xb0] sm:$0xff]  ;;  %v16604_v61 = vpack.c.bf16 %v366_v58, %v363_v57  ;;  %v372_v63 = vld [vmem:[#allocation5 + $0xb8] sm:$0xff] }
  0x9c   : > { %v19116_v1 = vld [vmem:[%s19080_s1 + $0x10] sm:$0xff]  ;;  %v19120_v2 = vld [vmem:[%s19080_s1 + $0xb8] sm:$0xff]  ;;  %v16608_v3 = vpack.c.bf16 %v372_v63, %v369_v62  ;;  %v378_v5 = vld [vmem:[#allocation5 + $0xe8] sm:$0xff] }
  0x9d   : > { %16579 = vmatpush1.bf16.msra.mxu0 %v16578_v26  ;;  %17311 = vmatpush1.bf16.msra.mxu1 %v16578_v26  ;;  %v375_v4 = vld [vmem:[#allocation5 + $0xd0] sm:$0xff]  ;;  %v19126_v6 = vld [vmem:[%s19080_s1 + $0x18] sm:$0xff]  ;;  %v19130_v7 = vld [vmem:[%s19080_s1 + $0xc0] sm:$0xff] }
  0x9e   : > { %16581 = vmatprep.subr.bf16.mxu0 %v16580_v27  ;;  %17304 = vmatprep.subr.bf16.mxu1 %v16580_v27  ;;  %v16612_v8 = vpack.c.bf16 %v378_v5, %v375_v4  ;;  %v381_v9 = vld [vmem:[#allocation5 + $0x100] sm:$0xff]  ;;  %v384_v10 = vld [vmem:[#allocation5 + $0x118] sm:$0xff]  ;;  %v19140_v12 = vld [vmem:[%s19080_s1 + $0xc8] sm:$0xff] }
  0x9f   : > { %v19136_v11 = vld [vmem:[%s19080_s1 + $0x20] sm:$0xff]  ;;  %v16616_v13 = vpack.c.bf16 %v384_v10, %v381_v9  ;;  %v387_v14 = vld [vmem:[#allocation5 + $0x130] sm:$0xff]  ;;  %v390_v15 = vld [vmem:[#allocation5 + $0x148] sm:$0xff] }
  0xa0   : > { %v322_v16 = vld [vmem:[%s19080_s1 + $0x28] sm:$0xff]  ;;  %v19148_v17 = vld [vmem:[%s19080_s1 + $0xd0] sm:$0xff]  ;;  %v16620_v18 = vpack.c.bf16 %v390_v15, %v387_v14  ;;  %v393_v19 = vld [vmem:[#allocation5 + $0x160] sm:$0xff] }
  0xa1   : > { %16583 = vmatpush1.bf16.msra.mxu0 %v16582_v32  ;;  %17312 = vmatpush1.bf16.msra.mxu1 %v16582_v32  ;;  %v396_v20 = vld [vmem:[#allocation5 + $0x178] sm:$0xff]  ;;  %v323_v21 = vld [vmem:[%s19080_s1 + $0x30] sm:$0xff]  ;;  %v19162_v25 = vld [vmem:[%s19080_s1 + $0xe0] sm:$0xff] }
  0xa2   : > { %16585 = vmatprep.subr.bf16.mxu0 %v16584_v33  ;;  %17305 = vmatprep.subr.bf16.mxu1 %v16584_v33  ;;  %v19155_v22 = vld [vmem:[%s19080_s1 + $0xd8] sm:$0xff]  ;;  %v16624_v23 = vpack.c.bf16 %v396_v20, %v393_v19  ;;  %v325_v26 = vld [vmem:[%s19080_s1 + $0x40] sm:$0xff]  ;;  %v19169_v27 = vld [vmem:[%s19080_s1 + $0xe8] sm:$0xff] }
  0xa3   : > { %v324_v24 = vld [vmem:[%s19080_s1 + $0x38] sm:$0xff]  ;;  %v326_v28 = vld [vmem:[%s19080_s1 + $0x48] sm:$0xff]  ;;  %v19176_v29 = vld [vmem:[%s19080_s1 + $0xf0] sm:$0xff] }
  0xa4   : > { %v327_v30 = vld [vmem:[%s19080_s1 + $0x50] sm:$0xff]  ;;  %v19183_v31 = vld [vmem:[%s19080_s1 + $0xf8] sm:$0xff]  ;;  %v329_v33 = vld [vmem:[%s19080_s1 + $0x60] sm:$0xff] }
  0xa5   : > { %16587 = vmatpush1.bf16.msra.mxu0 %v16586_v38  ;;  %17313 = vmatpush1.bf16.msra.mxu1 %v16586_v38  ;;  %v328_v32 = vld [vmem:[%s19080_s1 + $0x58] sm:$0xff]  ;;  %v330_v34 = vld [vmem:[%s19080_s1 + $0x68] sm:$0xff]  ;;  %v331_v35 = vld [vmem:[%s19080_s1 + $0x70] sm:$0xff] }
  0xa6   : > { %16589 = vmatprep.subr.bf16.mxu0 %v16588_v39  ;;  %17306 = vmatprep.subr.bf16.mxu1 %v16588_v39  ;;  %v332_v36 = vld [vmem:[%s19080_s1 + $0x78] sm:$0xff]  ;;  %v333_v37 = vld [vmem:[%s19080_s1 + $0x80] sm:$0xff]  ;;  %v334_v38 = vld [vmem:[%s19080_s1 + $0x88] sm:$0xff] }
  0xa7   : > { %v335_v39 = vld [vmem:[%s19080_s1 + $0x90] sm:$0xff]  ;;  %v336_v40 = vld [vmem:[%s19080_s1 + $0x98] sm:$0xff]  ;;  %v337_v41 = vld [vmem:[%s19080_s1 + $0xa0] sm:$0xff]  ;;  %s18837_s1 = smov [#allocation10]  }
  0xa8   : > { %vm19255_vm1 = vmpackc.low %vm953_vm0, %vm953_vm0  ;;  %s18753_s27 = sshll.u32 %s18837_s1, 4  ;;  %s18754_s27 = int_to_ptr.vmem [resolvable:$false] %s18753_s27 }
  0xa9   : > { %16591 = vmatpush1.bf16.msra.mxu0 %v16590_v44  ;;  %17314 = vmatpush1.bf16.msra.mxu1 %v16590_v44  ;;  %v19228_v44 = vld [vmem:[%s23080_s2] sm:$0x7]  ;;  %s18755_s29 = scalar_lea.vmem %s18754_s27, 8192  ;;  %p18756_p12 = scmp.lt.s32.totalorder %s23031_s7, %s18754_s27 }
  0xaa   : > { %16593 = vmatprep.subr.bf16.mxu0 %v16592_v45  ;;  %17307 = vmatprep.subr.bf16.mxu1 %v16592_v45  ;;  %p18757_p2 = scmp.lt.s32.totalorder %s18755_s29, %s18749_s17 }
  0xac   : > { %p18758_p1 = por %p18757_p2, %p18756_p12 }
  0xad   : > { %16595 = vmatpush1.bf16.msra.mxu0 %v16594_v50  ;;  %17315 = vmatpush1.bf16.msra.mxu1 %v16594_v50 }
  0xae   : > { %16597 = vmatprep.subr.bf16.mxu1 %v16596_v51  ;;  %p18759_p4 = pnand %p18758_p1, %p18752_p7 }
  0xb0   : > { %504 = vmatmul.mubr.f32.vlgmr.msra.gmra.mrb[0].mxu0 %v19097_v54  ;;  %630 = vmatmul.mubr.f32.vlgmr.msra.gmra.mrb[0].mxu1 %v19100_v55 }
  0xb1   : > { %509 = vmatprep.mubr.f32.mxu0 %v18833_v0  ;;  %635 = vmatprep.mubr.f32.mxu1 %v18833_v0 }
  0xb2   : > { %16599 = vmatpush3.bf16.msra.mxu1 %v16596_v51 }
  0xb3   : > { %16601 = vmatprep.subr.bf16.mxu1 %v16600_v56 }
  0xb4   : > { %510 = vmatmul.mubr.f32.gmra.mrb[2].mxu0 %v19106_v59  ;;  %636 = vmatmul.mubr.f32.gmra.mrb[2].mxu1 %v19110_v60 }
  0xb5   : > { %515 = vmatprep.mubr.f32.mxu0 %v18833_v0  ;;  %641 = vmatprep.mubr.f32.mxu1 %v18833_v0 }
  0xb6   : > { %16603 = vmatpush3.bf16.msra.mxu1 %v16600_v56 }
  0xb7   : > { %16605 = vmatprep.subr.bf16.mxu1 %v16604_v61 }
  0xb8   : > { %516 = vmatmul.mubr.f32.gmra.mrb[4].mxu0 %v19116_v1  ;;  %642 = vmatmul.mubr.f32.gmra.mrb[4].mxu1 %v19120_v2 }
  0xb9   : > { %521 = vmatprep.mubr.f32.mxu0 %v18833_v0  ;;  %647 = vmatprep.mubr.f32.mxu1 %v18833_v0 }
  0xba   : > { %16607 = vmatpush3.bf16.msra.mxu1 %v16604_v61  ;;  %v23315_v61 = vmov 0 }
  0xbb   : > { %16609 = vmatprep.subr.bf16.mxu1 %v16608_v3  ;;  %v23316_v61 = vsel %vm19255_vm1, 4294967295, %v23315_v61 }
  0xbc   : > { %522 = vmatmul.mubr.f32.gmra.mrb[6].mxu0 %v19126_v6  ;;  %648 = vmatmul.mubr.f32.gmra.mrb[6].mxu1 %v19130_v7  ;;  %23317 = vst [vmem:[#allocation16_spill] sm:$0xff] %v23316_v61 }
  0xbd   : > { %527 = vmatprep.mubr.f32.mxu0 %v18833_v0  ;;  %653 = vmatprep.mubr.f32.mxu1 %v18833_v0 }
  0xbe   : > { %16611 = vmatpush3.bf16.msra.mxu1 %v16608_v3 }
  0xbf   : > { %16613 = vmatprep.subr.bf16.mxu1 %v16612_v8 }
  0xc0   : > { %528 = vmatmul.mubr.f32.gmra.mrb[8].mxu0 %v19136_v11  ;;  %654 = vmatmul.mubr.f32.gmra.mrb[8].mxu1 %v19140_v12 }
  0xc1   : > { %533 = vmatprep.mubr.f32.mxu0 %v18833_v0  ;;  %659 = vmatprep.mubr.f32.mxu1 %v18833_v0 }
  0xc2   : > { %16615 = vmatpush3.bf16.msra.mxu1 %v16612_v8 }
  0xc3   : > { %16617 = vmatprep.subr.bf16.mxu1 %v16616_v13 }
  0xc4   : > { %534 = vmatmul.mubr.f32.gmra.mrb[10].mxu0 %v322_v16  ;;  %660 = vmatmul.mubr.f32.gmra.mrb[10].mxu1 %v19148_v17 }
  0xc5   : > { %539 = vmatprep.mubr.f32.mxu0 %v18833_v0  ;;  %665 = vmatprep.mubr.f32.mxu1 %v18833_v0 }
  0xc6   : > { %16619 = vmatpush3.bf16.msra.mxu1 %v16616_v13 }
  0xc7   : > { %16621 = vmatprep.subr.bf16.mxu1 %v16620_v18 }
  0xc8   : > { %540 = vmatmul.mubr.f32.gmra.mrb[12].mxu0 %v323_v21  ;;  %666 = vmatmul.mubr.f32.gmra.mrb[12].mxu1 %v19155_v22 }
  0xc9   : > { %545 = vmatprep.mubr.f32.mxu0 %v18833_v0  ;;  %671 = vmatprep.mubr.f32.mxu1 %v18833_v0 }
  0xca   : > { %16623 = vmatpush3.bf16.msra.mxu1 %v16620_v18 }
  0xcb   : > { %16625 = vmatprep.subr.bf16.mxu1 %v16624_v23 }
  0xcc   : > { %546 = vmatmul.mubr.f32.gmra.mrb[14].mxu0 %v324_v24  ;;  %672 = vmatmul.mubr.f32.gmra.mrb[14].mxu1 %v19162_v25 }
  0xcd   : > { %551 = vmatprep.mubr.f32.mxu0 %v18833_v0  ;;  %677 = vmatprep.mubr.f32.mxu1 %v18833_v0 }
  0xce   : > { %16627 = vmatpush3.bf16.msra.mxu1 %v16624_v23 }
  0xd0   : > { %552 = vmatmul.mubr.f32.gmra.mrb[16].mxu0 %v325_v26  ;;  %678 = vmatmul.mubr.f32.gmra.mrb[16].mxu1 %v19169_v27 }
  0xd1   : > { %557 = vmatprep.mubr.f32.mxu0 %v18833_v0  ;;  %683 = vmatprep.mubr.f32.mxu1 %v18833_v0 }
  0xd4   : > { %558 = vmatmul.mubr.f32.gmra.mrb[18].mxu0 %v326_v28  ;;  %684 = vmatmul.mubr.f32.gmra.mrb[18].mxu1 %v19176_v29 }
  0xd5   : > { %563 = vmatprep.mubr.f32.mxu0 %v18833_v0  ;;  %689 = vmatprep.mubr.f32.mxu1 %v18833_v0 }
  0xd8   : > { %564 = vmatmul.mubr.f32.gmra.mrb[20].mxu0 %v327_v30  ;;  %690 = vmatmul.mubr.f32.gmra.mrb[20].mxu1 %v19183_v31 }
  0xd9   : > { %569 = vmatprep.mubr.f32.mxu0 %v18833_v0  ;;  %15540 = vmatprep.mubr.f32.mxu1 %v19097_v54 }
  0xdc   : > { %570 = vmatmul.mubr.f32.gmra.mrb[22].mxu0 %v328_v32  ;;  %15541 = vmatmul.mubr.f32.vlgmr.msra.gmra.mrb[22].mxu1 %v19106_v59 }
  0xdd   : > { %575 = vmatprep.mubr.f32.mxu0 %v18833_v0  ;;  %15543 = vmatprep.mubr.f32.mxu1 %v19116_v1 }
  0xe0   : > { %576 = vmatmul.mubr.f32.gmra.mrb[24].mxu0 %v329_v33  ;;  %15544 = vmatmul.mubr.f32.gmra.mrb[24].mxu1 %v19126_v6 }
  0xe1   : > { %581 = vmatprep.mubr.f32.mxu0 %v18833_v0  ;;  %15546 = vmatprep.mubr.f32.mxu1 %v19136_v11 }
  0xe4   : > { %582 = vmatmul.mubr.f32.gmra.mrb[26].mxu0 %v330_v34  ;;  %15547 = vmatmul.mubr.f32.gmra.mrb[26].mxu1 %v322_v16 }
  0xe5   : > { %587 = vmatprep.mubr.f32.mxu0 %v18833_v0  ;;  %15549 = vmatprep.mubr.f32.mxu1 %v323_v21 }
  0xe8   : > { %588 = vmatmul.mubr.f32.gmra.mrb[28].mxu0 %v331_v35  ;;  %15550 = vmatmul.mubr.f32.gmra.mrb[28].mxu1 %v324_v24 }
  0xe9   : > { %593 = vmatprep.mubr.f32.mxu0 %v18833_v0  ;;  %15552 = vmatprep.mubr.f32.mxu1 %v325_v26 }
  0xec   : > { %594 = vmatmul.mubr.f32.gmra.mrb[30].mxu0 %v332_v36  ;;  %15553 = vmatmul.mubr.f32.gmra.mrb[30].mxu1 %v326_v28 }
  0xed   : > { %599 = vmatprep.mubr.f32.mxu0 %v18833_v0  ;;  %15555 = vmatprep.mubr.f32.mxu1 %v327_v30 }
  0xf0   : > { %600 = vmatmul.mubr.f32.gmra.mrb[32].mxu0 %v333_v37  ;;  %15556 = vmatmul.mubr.f32.gmra.mrb[32].mxu1 %v328_v32 }
  0xf1   : > { %605 = vmatprep.mubr.f32.mxu0 %v18833_v0  ;;  %15558 = vmatprep.mubr.f32.mxu1 %v329_v33 }
  0xf4   : > { %606 = vmatmul.mubr.f32.gmra.mrb[34].mxu0 %v334_v38  ;;  %15559 = vmatmul.mubr.f32.gmra.mrb[34].mxu1 %v330_v34 }
  0xf5   : > { %611 = vmatprep.mubr.f32.mxu0 %v18833_v0  ;;  %15561 = vmatprep.mubr.f32.mxu1 %v331_v35 }
  0xf8   : > { %612 = vmatmul.mubr.f32.gmra.mrb[36].mxu0 %v335_v39  ;;  %15562 = vmatmul.mubr.f32.gmra.mrb[36].mxu1 %v332_v36 }
  0xf9   : > { %617 = vmatprep.mubr.f32.mxu0 %v18833_v0  ;;  %15564 = vmatprep.mubr.f32.mxu1 %v333_v37 }
  0xfc   : > { %618 = vmatmul.mubr.f32.gmra.mrb[38].mxu0 %v336_v40  ;;  %15565 = vmatmul.mubr.f32.gmra.mrb[38].mxu1 %v334_v38 }
  0xfd   : > { %623 = vmatprep.mubr.f32.mxu0 %v18833_v0  ;;  %15567 = vmatprep.mubr.f32.mxu1 %v335_v39  ;;  %v424_v0 = vlaneseq }
  0xff   : > { %v19222_v42 = vshrl.u32 %v424_v0, 7 }
 0x100   : > { %624 = vmatmul.mubr.f32.gmra.mrb[40].mxu0 %v337_v41  ;;  %15568 = vmatmul.mubr.f32.gmra.mrb[40].mxu1 %v336_v40 }
 0x101   : > { %15570 = vmatprep.mubr.f32.mxu1 %v337_v41  ;;  %v426_v43 = vsub.s32 0, %v19222_v42  ;;  %v430_v46 = vsub.s32 1, %v19222_v42 }
 0x103   : > { %v19231_v45 = vrot.slane %v19228_v44, %v426_v43  ;;  %v19240_v52 = vrot.slane %v19228_v44, %v430_v46 }
 0x104   : > { %15571 = vmatmul.mubr.f32.gmra.mrb[42].mxu1 %v19100_v55 }
 0x105   : > { %15573 = vmatprep.mubr.f32.mxu1 %v19110_v60 }
 0x108   : > { %15574 = vmatmul.mubr.f32.gmra.mrb[44].mxu1 %v19120_v2 }
 0x109   : > { %15576 = vmatprep.mubr.f32.mxu1 %v19130_v7 }
 0x10c   : > { %15577 = vmatmul.mubr.f32.gmra.mrb[46].mxu1 %v19140_v12 }
 0x10d   : > { %15579 = vmatprep.mubr.f32.mxu1 %v19148_v17 }
 0x110   : > { %15580 = vmatmul.mubr.f32.gmra.mrb[48].mxu1 %v19155_v22 }
 0x111   : > { %15582 = vmatprep.mubr.f32.mxu1 %v19162_v25 }
 0x114   : > { %15583 = vmatmul.mubr.f32.gmra.mrb[50].mxu1 %v19169_v27 }
 0x115   : > { %15585 = vmatprep.mubr.f32.mxu1 %v19176_v29 }
 0x118   : > { %15586 = vmatmul.mubr.f32.gmra.mrb[52].mxu1 %v19183_v31 }
 0x183   : > { %v505_v47 = vpop.f32.mrb[0].mxu0  ;;  %v19234_v48 = vpop.f32.mrb[0].mxu1 }
 0x184   : > { %v506_v49 = vadd.f32 %v505_v47, %v19231_v45  ;;  %v507_v50 = vpop.f32.mrb[1].mxu0  ;;  %v19237_v51 = vpop.f32.mrb[1].mxu1 }
 0x185   : > { %v508_v58 = vadd.f32 %v507_v50, %v19240_v52 }
 0x186   : > { %v19242_v53 = vmul.f32 0.17677669, %v506_v49 }
 0x187   : > { %v511_v54 = vpop.f32.mrb[2].mxu0  ;;  %v19244_v55 = vpop.f32.mrb[2].mxu1 }
 0x188   : > { %23314 = vst [vmem:[#allocation15_spill] sm:$0xff] %v19242_v53  ;;  %v513_v56 = vpop.f32.mrb[3].mxu0  ;;  %3995 = vrot.lane.b32.xlu1 %v19242_v53, %s18834_s19  ;;  %15592 = vmatprep.mubr.msk.f32.mxu1 %vm953_vm0, %v19242_v53  ;;  %v639_v57 = vpop.f32.mrb[3].mxu1  ;;  %v512_v60 = vadd.f32 %v511_v54, %v19231_v45 }
 0x189   : > { %v514_v59 = vadd.f32 %v513_v56, %v19240_v52  ;;  %v640_v62 = vadd.f32 %v639_v57, %v19240_v52 }
 0x18a   : > { %v19269_v7 = vmul.f32 0.17677669, %v512_v60 }
 0x18b   : > { %v517_v63 = vpop.f32.mrb[4].mxu0  ;;  %v19260_v1 = vpack.i.bf16 %v514_v59, %v508_v58  ;;  %v16628_v2 = vpack.c.bf16 %v514_v59, %v508_v58  ;;  %v19262_v3 = vpop.f32.mrb[4].mxu1 }
 0x18c   : > { %v519_v4 = vpop.f32.mrb[5].mxu0  ;;  %v645_v5 = vpop.f32.mrb[5].mxu1  ;;  %23319 = vst [vmem:[#allocation18_spill] sm:$0xff] %v19269_v7  ;;  %v518_v8 = vadd.f32 %v517_v63, %v19231_v45 }
 0x18d   : > { %23318 = vst [vmem:[#allocation17_spill] sm:$0xff] %v19260_v1  ;;  %17404 = vrot.lane.b32.xlu0 %v19260_v1, %s18834_s19  ;;  %16630 = vmatprep.subr.msk.bf16.mxu1 %vm19255_vm1, %v16628_v2  ;;  %v646_v6 = vadd.f32 %v645_v5, %v19240_v52  ;;  %v520_v15 = vadd.f32 %v519_v4, %v19240_v52 }
 0x18e   : > { %16633 = vmatpush3.bf16.xpose.msk.msra.mxu1 %vm19255_vm1, %v16628_v2  ;;  %v19284_v17 = vmul.f32 0.17677669, %v518_v8 }
 0x18f   : > { %v523_v9 = vpop.f32.mrb[6].mxu0  ;;  %v19274_v10 = vpop.f32.mrb[6].mxu1  ;;  %v19276_v11 = vpack.c.bf16 %v646_v6, %v640_v62  ;;  %v19278_v12 = vpack.i.bf16 %v646_v6, %v640_v62 }
 0x190   : > { %v525_v13 = vpop.f32.mrb[7].mxu0  ;;  %v651_v14 = vpop.f32.mrb[7].mxu1  ;;  %23321 = vst [vmem:[#allocation20_spill] sm:$0xff] %v19284_v17  ;;  %v524_v23 = vadd.f32 %v523_v9, %v19231_v45 }
 0x191   : > { %23320 = vst [vmem:[#allocation19_spill] sm:$0xff] %v19278_v12  ;;  %v526_v16 = vadd.f32 %v525_v13, %v19240_v52  ;;  %3997 = vrot.lane.b32.xlu0 %v19269_v7, %s18834_s19  ;;  %v652_v18 = vadd.f32 %v651_v14, %v19240_v52 }
 0x192   : > { %v19311_v31 = vmul.f32 0.17677669, %v524_v23 }
 0x193   : > { %v529_v19 = vpop.f32.mrb[8].mxu0  ;;  %v16634_v20 = vpack.c.bf16 %v526_v16, %v520_v15  ;;  %v19287_v21 = vpack.i.bf16 %v526_v16, %v520_v15  ;;  %v19289_v22 = vpop.f32.mrb[8].mxu1 }
 0x194   : > { %v531_v24 = vpop.f32.mrb[9].mxu0  ;;  %v657_v25 = vpop.f32.mrb[9].mxu1  ;;  %23324 = vst [vmem:[#allocation23_spill] sm:$0xff] %v19311_v31  ;;  %v530_v32 = vadd.f32 %v529_v19, %v19231_v45 }
 0x195   : > { %23322 = vst [vmem:[#allocation21_spill] sm:$0xff] %v19287_v21  ;;  %4086 = vrot.lane.b32.xlu0 %v19284_v17, %s18834_s19  ;;  %16636 = vmatprep.subr.msk.bf16.mxu1 %vm19255_vm1, %v16634_v20  ;;  %v658_v26 = vadd.f32 %v657_v25, %v19240_v52  ;;  %v532_v36 = vadd.f32 %v531_v24, %v19240_v52 }
 0x196   : > { %17409 = vrot.lane.b32.xlu1 %v19287_v21, %s18834_s19  ;;  %15593 = vmatmul.mubr.msk.f32.vlgmr.msra.gmra.mrb[54].mxu1 %vm953_vm0, %v19269_v7  ;;  %v19326_v46 = vmul.f32 0.17677669, %v530_v32 }
 0x197   : > { %16639 = vmatpush3.bf16.xpose.msk.msra.mxu1 %vm19255_vm1, %v16634_v20  ;;  %15599 = vmatprep.mubr.msk.f32.mxu1 %vm953_vm0, %v19284_v17  ;;  %v535_v27 = vpop.f32.mrb[10].mxu0  ;;  %v19305_v28 = vpop.f32.mrb[10].mxu1  ;;  %v19307_v29 = vpack.c.bf16 %v658_v26, %v652_v18  ;;  %v19309_v30 = vpack.i.bf16 %v658_v26, %v652_v18 }
 0x198   : > { %v536_v33 = vadd.f32 %v535_v27, %v19231_v45  ;;  %v537_v34 = vpop.f32.mrb[11].mxu0  ;;  %v663_v35 = vpop.f32.mrb[11].mxu1  ;;  %23327 = vst [vmem:[#allocation26_spill] sm:$0xff] %v19326_v46 }
 0x199   : > { %23323 = vst [vmem:[#allocation22_spill] sm:$0xff] %v19309_v30  ;;  %v538_v37 = vadd.f32 %v537_v34, %v19240_v52  ;;  %v664_v39 = vadd.f32 %v663_v35, %v19240_v52 }
 0x19a   : > { %v19317_v38 = vmul.f32 0.17677669, %v536_v33  ;;  %4088 = vrot.lane.b32.xlu1 %v19311_v31, %s18834_s19 }
 0x19b   : > { %v541_v40 = vpop.f32.mrb[12].mxu0  ;;  %v16640_v41 = vpack.c.bf16 %v538_v37, %v532_v36  ;;  %v19322_v0 = vpack.i.bf16 %v538_v37, %v532_v36  ;;  %v19324_v43 = vpop.f32.mrb[12].mxu1 }
 0x19c   : > { %23325 = vst [vmem:[#allocation24_spill] sm:$0xff] %v19317_v38  ;;  %v542_v47 = vadd.f32 %v541_v40, %v19231_v45  ;;  %v543_v49 = vpop.f32.mrb[13].mxu0  ;;  %4179 = vrot.lane.b32.xlu0 %v19317_v38, %s18834_s19  ;;  %v669_v50 = vpop.f32.mrb[13].mxu1 }
 0x19d   : > { %23326 = vst [vmem:[#allocation25_spill] sm:$0xff] %v19322_v0  ;;  %16642 = vmatprep.subr.msk.bf16.mxu1 %vm19255_vm1, %v16640_v41  ;;  %v670_v54 = vadd.f32 %v669_v50, %v19240_v52  ;;  %v544_v2 = vadd.f32 %v543_v49, %v19240_v52  ;;  %v434_v49 = vsub.s32 2, %v19222_v42 }
 0x19e   : > { %v19334_v56 = vmul.f32 0.17677669, %v542_v47  ;;  %4177 = vrot.lane.b32.xlu1 %v19326_v46, %s18834_s19  ;;  %15600 = vmatmul.mubr.msk.f32.vlgmr.msra.gmra.mrb[56].mxu1 %vm953_vm0, %v19311_v31 }
 0x19f   : > { %16645 = vmatpush3.bf16.xpose.msk.msra.mxu1 %vm19255_vm1, %v16640_v41  ;;  %15606 = vmatprep.mubr.msk.f32.mxu1 %vm953_vm0, %v19326_v46  ;;  %v547_v57 = vpop.f32.mrb[14].mxu0  ;;  %v19344_v58 = vpop.f32.mrb[14].mxu1  ;;  %v19346_v59 = vpack.c.bf16 %v670_v54, %v664_v39  ;;  %v19348_v60 = vpack.i.bf16 %v670_v54, %v664_v39 }
 0x1a0   : > { %23328 = vst [vmem:[#allocation27_spill] sm:$0xff] %v19334_v56  ;;  %v549_v62 = vpop.f32.mrb[15].mxu0  ;;  %4268 = vrot.lane.b32.xlu0 %v19334_v56, %s18834_s19  ;;  %v675_v63 = vpop.f32.mrb[15].mxu1  ;;  %v548_v14 = vadd.f32 %v547_v57, %v19231_v45 }
 0x1a1   : > { %23329 = vst [vmem:[#allocation28_spill] sm:$0xff] %v19348_v60  ;;  %v550_v4 = vadd.f32 %v549_v62, %v19240_v52  ;;  %v676_v5 = vadd.f32 %v675_v63, %v19240_v52 }
 0x1a2   : > { %17414 = vrot.lane.b32.xlu1 %v19322_v0, %s18834_s19  ;;  %v19379_v25 = vmul.f32 0.17677669, %v548_v14 }
 0x1a3   : > { %v553_v6 = vpop.f32.mrb[16].mxu0  ;;  %v19357_v8 = vpack.i.bf16 %v550_v4, %v544_v2  ;;  %v16646_v9 = vpack.c.bf16 %v550_v4, %v544_v2  ;;  %v19359_v13 = vpop.f32.mrb[16].mxu1 }
 0x1a4   : > { %v555_v15 = vpop.f32.mrb[17].mxu0  ;;  %v681_v16 = vpop.f32.mrb[17].mxu1  ;;  %23332 = vst [vmem:[#allocation31_spill] sm:$0xff] %v19379_v25  ;;  %v554_v32 = vadd.f32 %v553_v6, %v19231_v45 }
 0x1a5   : > { %23330 = vst [vmem:[#allocation29_spill] sm:$0xff] %v19357_v8  ;;  %16648 = vmatprep.subr.msk.bf16.mxu1 %vm19255_vm1, %v16646_v9  ;;  %v682_v18 = vadd.f32 %v681_v16, %v19240_v52  ;;  %v556_v33 = vadd.f32 %v555_v15, %v19240_v52 }
 0x1a6   : > { %17419 = vrot.lane.b32.xlu1 %v19357_v8, %s18834_s19  ;;  %15607 = vmatmul.mubr.msk.f32.vlgmr.msra.gmra.mrb[58].mxu1 %vm953_vm0, %v19317_v38  ;;  %v19392_v50 = vmul.f32 0.17677669, %v554_v32 }
 0x1a7   : > { %16651 = vmatpush3.bf16.xpose.msk.msra.mxu1 %vm19255_vm1, %v16646_v9  ;;  %15613 = vmatprep.mubr.msk.f32.mxu1 %vm953_vm0, %v19334_v56  ;;  %v559_v19 = vpop.f32.mrb[18].mxu0  ;;  %v19373_v20 = vpop.f32.mrb[18].mxu1  ;;  %v19375_v23 = vpack.c.bf16 %v682_v18, %v676_v5  ;;  %v19377_v24 = vpack.i.bf16 %v682_v18, %v676_v5  ;;  %v19411_v5 = vrot.slane %v19228_v44, %v434_v49 }
 0x1a8   : > { %v561_v26 = vpop.f32.mrb[19].mxu0  ;;  %v687_v27 = vpop.f32.mrb[19].mxu1  ;;  %23334 = vst [vmem:[#allocation33_spill] sm:$0xff] %v19392_v50  ;;  %v560_v2 = vadd.f32 %v559_v19, %v19231_v45 }
 0x1a9   : > { %23331 = vst [vmem:[#allocation30_spill] sm:$0xff] %v19377_v24  ;;  %v562_v34 = vadd.f32 %v561_v26, %v19240_v52  ;;  %v688_v35 = vadd.f32 %v687_v27, %v19240_v52 }
 0x1aa   : > { %4270 = vrot.lane.b32.xlu1 %v19379_v25, %s18834_s19  ;;  %v19418_v32 = vmul.f32 0.17677669, %v560_v2 }
 0x1ab   : > { %v565_v36 = vpop.f32.mrb[20].mxu0  ;;  %v19387_v37 = vpack.i.bf16 %v562_v34, %v556_v33  ;;  %v16652_v39 = vpack.c.bf16 %v562_v34, %v556_v33  ;;  %v19389_v40 = vpop.f32.mrb[20].mxu1 }
 0x1ac   : > { %v567_v41 = vpop.f32.mrb[21].mxu0  ;;  %v693_v47 = vpop.f32.mrb[21].mxu1  ;;  %v566_v9 = vadd.f32 %v565_v36, %v19231_v45 }
 0x1ad   : > { %23333 = vst [vmem:[#allocation32_spill] sm:$0xff] %v19387_v37  ;;  %17424 = vrot.lane.b32.xlu0 %v19387_v37, %s18834_s19  ;;  %16654 = vmatprep.subr.msk.bf16.mxu1 %vm19255_vm1, %v16652_v39  ;;  %v694_v54 = vadd.f32 %v693_v47, %v19240_v52  ;;  %v568_v14 = vadd.f32 %v567_v41, %v19240_v52 }
 0x1ae   : > { %15614 = vmatmul.mubr.msk.f32.vlgmr.msra.gmra.mrb[60].mxu1 %vm953_vm0, %v19379_v25 }
 0x1af   : > { %16657 = vmatpush3.bf16.xpose.msk.msra.mxu1 %vm19255_vm1, %v16652_v39  ;;  %15620 = vmatprep.mubr.msk.f32.mxu1 %vm953_vm0, %v19392_v50  ;;  %v571_v42 = vpop.f32.mrb[22].mxu0  ;;  %v19405_v57 = vpack.c.bf16 %v694_v54, %v688_v35  ;;  %v15542_v62 = vpop.f32.mrb[22].mxu1  ;;  %v19407_v63 = vpack.i.bf16 %v694_v54, %v688_v35  ;;  %v19422_v35 = vmul.f32 0.17677669, %v566_v9 }
 0x1b0   : > { %v573_v4 = vpop.f32.mrb[23].mxu0  ;;  %v762_v6 = vpop.f32.mrb[23].mxu1  ;;  %v768_v19 = vadd.f32 %v15542_v62, %v19411_v5  ;;  %v572_v41 = vadd.f32 %v571_v42, %v19231_v45 }
 0x1b1   : > { %23335 = vst [vmem:[#allocation34_spill] sm:$0xff] %v19407_v63  ;;  %v574_v15 = vadd.f32 %v573_v4, %v19240_v52  ;;  %v763_v44 = vadd.f32 %v762_v6, %v19411_v5 }
 0x1b2   : > { %v19446_v38 = vmul.f32 0.17677669, %v572_v41 }
 0x1b3   : > { %v577_v16 = vpop.f32.mrb[24].mxu0  ;;  %v19416_v18 = vpack.i.bf16 %v574_v15, %v568_v14  ;;  %v16658_v26 = vpack.c.bf16 %v574_v15, %v568_v14  ;;  %v15545_v27 = vpop.f32.mrb[24].mxu1  ;;  %v19437_v2 = vpack.c.bf16 %v768_v19, %v763_v44  ;;  %v19442_v14 = vpack.i.bf16 %v768_v19, %v763_v44 }
 0x1b4   : > { %v579_v33 = vpop.f32.mrb[25].mxu0  ;;  %v772_v34 = vpop.f32.mrb[25].mxu1  ;;  %v778_v49 = vadd.f32 %v15545_v27, %v19411_v5  ;;  %v578_v4 = vadd.f32 %v577_v16, %v19231_v45 }
 0x1b5   : > { %23336 = vst [vmem:[#allocation35_spill] sm:$0xff] %v19416_v18  ;;  %17429 = vrot.lane.b32.xlu1 %v19416_v18, %s18834_s19  ;;  %16660 = vmatprep.subr.msk.bf16.mxu1 %vm19255_vm1, %v16658_v26  ;;  %v773_v54 = vadd.f32 %v772_v34, %v19411_v5  ;;  %v580_v6 = vadd.f32 %v579_v33, %v19240_v52  ;;  %23337 = vst [vmem:[#allocation36_spill] sm:$0xff] %v19442_v14 }
 0x1b6   : > { %15621 = vmatmul.mubr.msk.f32.vlgmr.msra.gmra.mrb[62].mxu1 %vm953_vm0, %v19418_v32  ;;  %v19450_v17 = vmul.f32 0.17677669, %v578_v4 }
 0x1b7   : > { %16663 = vmatpush3.bf16.xpose.msk.msra.mxu1 %vm19255_vm1, %v16658_v26  ;;  %15627 = vmatprep.mubr.msk.f32.mxu1 %vm953_vm0, %v19422_v35  ;;  %v583_v36 = vpop.f32.mrb[26].mxu0  ;;  %v15548_v39 = vpop.f32.mrb[26].mxu1  ;;  %v19448_v37 = vpack.c.bf16 %v778_v49, %v773_v54  ;;  %v19459_v44 = vpack.i.bf16 %v778_v49, %v773_v54 }
 0x1b8   : > { %v585_v47 = vpop.f32.mrb[27].mxu0  ;;  %v782_v62 = vpop.f32.mrb[27].mxu1  ;;  %v788_v16 = vadd.f32 %v15548_v39, %v19411_v5  ;;  %v584_v19 = vadd.f32 %v583_v36, %v19231_v45 }
 0x1b9   : > { %v586_v9 = vadd.f32 %v585_v47, %v19240_v52  ;;  %v783_v33 = vadd.f32 %v782_v62, %v19411_v5  ;;  %23339 = vst [vmem:[#allocation38_spill] sm:$0xff] %v19459_v44 }
 0x1ba   : > { %v19474_v7 = vmul.f32 0.17677669, %v584_v19 }
 0x1bb   : > { %v589_v15 = vpop.f32.mrb[28].mxu0  ;;  %v16664_v26 = vpack.c.bf16 %v586_v9, %v580_v6  ;;  %v15551_v56 = vpop.f32.mrb[28].mxu1  ;;  %v19444_v42 = vpack.i.bf16 %v586_v9, %v580_v6  ;;  %v19476_v53 = vpack.i.bf16 %v788_v16, %v783_v33 }
 0x1bc   : > { %v591_v27 = vpop.f32.mrb[29].mxu0  ;;  %v792_v34 = vpop.f32.mrb[29].mxu1  ;;  %v590_v41 = vadd.f32 %v589_v15, %v19231_v45  ;;  %v798_v36 = vadd.f32 %v15551_v56, %v19411_v5 }
 0x1bd   : > { %23338 = vst [vmem:[#allocation37_spill] sm:$0xff] %v19444_v42  ;;  %16666 = vmatprep.subr.msk.bf16.mxu1 %vm19255_vm1, %v16664_v26  ;;  %v592_v39 = vadd.f32 %v591_v27, %v19240_v52  ;;  %v793_v54 = vadd.f32 %v792_v34, %v19411_v5  ;;  %23341 = vst [vmem:[#allocation40_spill] sm:$0xff] %v19476_v53 }
 0x1be   : > { %15628 = vmatmul.mubr.msk.f32.vlgmr.msra.gmra.mrb[64].mxu1 %vm953_vm0, %v19446_v38  ;;  %v19482_v34 = vmul.f32 0.17677669, %v590_v41 }
 0x1bf   : > { %16669 = vmatpush3.bf16.xpose.msk.msra.mxu1 %vm19255_vm1, %v16664_v26  ;;  %15634 = vmatprep.mubr.msk.f32.mxu1 %vm953_vm0, %v19450_v17  ;;  %v595_v47 = vpop.f32.mrb[30].mxu0  ;;  %v15554_v4 = vpop.f32.mrb[30].mxu1  ;;  %v19472_v26 = vpack.c.bf16 %v788_v16, %v783_v33  ;;  %v19487_v16 = vpack.c.bf16 %v798_v36, %v793_v54 }
 0x1c0   : > { %v597_v62 = vpop.f32.mrb[31].mxu0  ;;  %v808_v6 = vadd.f32 %v15554_v4, %v19411_v5  ;;  %v802_v9 = vpop.f32.mrb[31].mxu1  ;;  %v596_v41 = vadd.f32 %v595_v47, %v19231_v45 }
 0x1c1   : > { %v598_v49 = vadd.f32 %v597_v62, %v19240_v52  ;;  %v803_v15 = vadd.f32 %v802_v9, %v19411_v5  ;;  %23340 = vst [vmem:[#allocation39_spill] sm:$0xff] %v19472_v26  ;;  %23342 = vst [vmem:[#allocation41_spill] sm:$0xff] %v19487_v16 }
 0x1c3   : > { %v601_v0 = vpop.f32.mrb[32].mxu0  ;;  %v16670_v27 = vpack.c.bf16 %v598_v49, %v592_v39  ;;  %v15557_v21 = vpop.f32.mrb[32].mxu1  ;;  %v19478_v1 = vpack.i.bf16 %v598_v49, %v592_v39  ;;  %v19493_v39 = vpack.i.bf16 %v798_v36, %v793_v54  ;;  %v19508_v18 = vpack.i.bf16 %v808_v6, %v803_v15 }
 0x1c4   : > { %v602_v56 = vadd.f32 %v601_v0, %v19231_v45  ;;  %v603_v4 = vpop.f32.mrb[33].mxu0  ;;  %v818_v62 = vadd.f32 %v15557_v21, %v19411_v5  ;;  %v812_v25 = vpop.f32.mrb[33].mxu1 }
 0x1c5   : > { %16672 = vmatprep.subr.msk.bf16.mxu1 %vm19255_vm1, %v16670_v27  ;;  %v813_v19 = vadd.f32 %v812_v25, %v19411_v5  ;;  %23344 = vst [vmem:[#allocation43_spill] sm:$0xff] %v19493_v39  ;;  %v604_v36 = vadd.f32 %v603_v4, %v19240_v52  ;;  %23346 = vst [vmem:[#allocation45_spill] sm:$0xff] %v19508_v18  ;;  %v19512_v39 = vmul.f32 0.17677669, %v596_v41 }
 0x1c6   : > { %v19489_v33 = vmul.f32 0.17677669, %v602_v56  ;;  %15635 = vmatmul.mubr.msk.f32.vlgmr.msra.gmra.mrb[66].mxu1 %vm953_vm0, %v19474_v7  ;;  %v19506_v56 = vpack.c.bf16 %v808_v6, %v803_v15 }
 0x1c7   : > { %16675 = vmatpush3.bf16.xpose.msk.msra.mxu1 %vm19255_vm1, %v16670_v27  ;;  %15641 = vmatprep.mubr.msk.f32.mxu1 %vm953_vm0, %v19482_v34  ;;  %v607_v21 = vpop.f32.mrb[34].mxu0  ;;  %v15560_v0 = vpop.f32.mrb[34].mxu1  ;;  %23347 = vst [vmem:[#allocation46_spill] sm:$0xff] %v19512_v39  ;;  %v19528_v41 = vpack.i.bf16 %v818_v62, %v813_v19 }
 0x1c8   : > { %23343 = vst [vmem:[#allocation42_spill] sm:$0xff] %v19489_v33  ;;  %v609_v25 = vpop.f32.mrb[35].mxu0  ;;  %15648 = vmatprep.mubr.msk.f32.mxu0 %vm953_vm0, %v19489_v33  ;;  %v828_v9 = vadd.f32 %v15560_v0, %v19411_v5  ;;  %v822_v49 = vpop.f32.mrb[35].mxu1  ;;  %23345 = vst [vmem:[#allocation44_spill] sm:$0xff] %v19506_v56 }
 0x1c9   : > { %v610_v54 = vadd.f32 %v609_v25, %v19240_v52  ;;  %v823_v27 = vadd.f32 %v822_v49, %v19411_v5  ;;  %v608_v25 = vadd.f32 %v607_v21, %v19231_v45  ;;  %23350 = vst [vmem:[#allocation49_spill] sm:$0xff] %v19528_v41 }
 0x1cb   : > { %v613_v46 = vpop.f32.mrb[36].mxu0  ;;  %v16676_v31 = vpack.c.bf16 %v610_v54, %v604_v36  ;;  %v15563_v47 = vpop.f32.mrb[36].mxu1  ;;  %v19510_v8 = vpack.i.bf16 %v610_v54, %v604_v36  ;;  %v19538_v44 = vpack.c.bf16 %v828_v9, %v823_v27 }
 0x1cc   : > { %v614_v0 = vadd.f32 %v613_v46, %v19231_v45  ;;  %v615_v53 = vpop.f32.mrb[37].mxu0  ;;  %v838_v4 = vadd.f32 %v15563_v47, %v19411_v5  ;;  %v832_v14 = vpop.f32.mrb[37].mxu1  ;;  %v19526_v46 = vpack.c.bf16 %v818_v62, %v813_v19  ;;  %v19540_v62 = vpack.i.bf16 %v828_v9, %v823_v27 }
 0x1cd   : > { %16678 = vmatprep.subr.msk.bf16.mxu0 %vm19255_vm1, %v16676_v31  ;;  %v833_v6 = vadd.f32 %v832_v14, %v19411_v5  ;;  %v616_v47 = vadd.f32 %v615_v53, %v19240_v52  ;;  %23351 = vst [vmem:[#allocation50_spill] sm:$0xff] %v19538_v44 }
 0x1ce   : > { %v19520_v15 = vmul.f32 0.17677669, %v614_v0  ;;  %15642 = vmatmul.mubr.msk.f32.vlgmr.msra.gmra.mrb[68].mxu1 %vm953_vm0, %v19512_v39  ;;  %16681 = vmatpush3.bf16.xpose.msk.msra.mxu0 %vm19255_vm1, %v16676_v31  ;;  %23349 = vst [vmem:[#allocation48_spill] sm:$0xff] %v19526_v46  ;;  %v19536_v31 = vmul.f32 0.17677669, %v608_v25  ;;  %23352 = vst [vmem:[#allocation51_spill] sm:$0xff] %v19540_v62  ;;  %v634_v25 = vadd.f32 %v19237_v51, %v19240_v52 }
 0x1cf   : > { %v619_v49 = vpop.f32.mrb[38].mxu0  ;;  %v15566_v36 = vpop.f32.mrb[38].mxu1 }
 0x1d0   : > { %23348 = vst [vmem:[#allocation47_spill] sm:$0xff] %v19520_v15  ;;  %v621_v21 = vpop.f32.mrb[39].mxu0  ;;  %15655 = vmatprep.mubr.msk.f32.mxu1 %vm953_vm0, %v19520_v15  ;;  %v848_v14 = vadd.f32 %v15566_v36, %v19411_v5  ;;  %v842_v54 = vpop.f32.mrb[39].mxu1  ;;  %v620_v27 = vadd.f32 %v619_v49, %v19231_v45 }
 0x1d1   : > { %v622_v0 = vadd.f32 %v621_v21, %v19240_v52  ;;  %v843_v18 = vadd.f32 %v842_v54, %v19411_v5 }
 0x1d3   : > { %v625_v19 = vpop.f32.mrb[40].mxu0  ;;  %v16682_v41 = vpack.c.bf16 %v622_v0, %v616_v47  ;;  %v15569_v63 = vpop.f32.mrb[40].mxu1  ;;  %v19542_v46 = vpack.i.bf16 %v622_v0, %v616_v47  ;;  %v19580_v0 = vpack.i.bf16 %v848_v14, %v843_v18 }
 0x1d4   : > { %v626_v36 = vadd.f32 %v625_v19, %v19231_v45  ;;  %v627_v56 = vpop.f32.mrb[41].mxu0  ;;  %v858_v53 = vadd.f32 %v15569_v63, %v19411_v5  ;;  %v852_v24 = vpop.f32.mrb[41].mxu1  ;;  %v19559_v63 = vpack.c.bf16 %v838_v4, %v833_v6  ;;  %v19582_v19 = vmul.f32 0.17677669, %v620_v27 }
 0x1d5   : > { %23353 = vst [vmem:[#allocation52_spill] sm:$0xff] %v19542_v46  ;;  %v628_v21 = vadd.f32 %v627_v56, %v19240_v52  ;;  %15649 = vmatmul.mubr.msk.f32.vlgmr.msra.gmra.mrb[42].mxu0 %vm953_vm0, %v19536_v31  ;;  %16684 = vmatprep.subr.msk.bf16.mxu1 %vm19255_vm1, %v16682_v41  ;;  %v853_v9 = vadd.f32 %v852_v24, %v19411_v5  ;;  %23358 = vst [vmem:[#allocation57_spill] sm:$0xff] %v19580_v0 }
 0x1d6   : > { %v19555_v54 = vmul.f32 0.17677669, %v626_v36  ;;  %16687 = vmatpush3.bf16.xpose.msk.msra.mxu1 %vm19255_vm1, %v16682_v41  ;;  %23355 = vst [vmem:[#allocation54_spill] sm:$0xff] %v19559_v63  ;;  %v19561_v56 = vpack.i.bf16 %v838_v4, %v833_v6  ;;  %v638_v24 = vadd.f32 %v19244_v55, %v19231_v45  ;;  %v19578_v6 = vpack.c.bf16 %v848_v14, %v843_v18 }
 0x1d7   : > { %v16688_v51 = vpack.c.bf16 %v634_v25, %v628_v21  ;;  %16696 = vmatprep.subr.msk.bf16.mxu1 %vm19255_vm1, %v19276_v11  ;;  %v15572_v52 = vpop.f32.mrb[42].mxu1  ;;  %v19566_v47 = vpack.i.bf16 %v634_v25, %v628_v21  ;;  %23359 = vst [vmem:[#allocation58_spill] sm:$0xff] %v19582_v19  ;;  %v632_v55 = vadd.f32 %v19234_v48, %v19231_v45 }
 0x1d8   : > { %23354 = vst [vmem:[#allocation53_spill] sm:$0xff] %v19555_v54  ;;  %23356 = vst [vmem:[#allocation55_spill] sm:$0xff] %v19561_v56  ;;  %15662 = vmatprep.mubr.msk.f32.mxu0 %vm953_vm0, %v19555_v54  ;;  %v868_v41 = vadd.f32 %v15572_v52, %v19411_v5  ;;  %v862_v49 = vpop.f32.mrb[43].mxu1  ;;  %v19589_v21 = vmul.f32 0.17677669, %v638_v24  ;;  %v650_v25 = vadd.f32 %v19274_v10, %v19231_v45 }
 0x1d9   : > { %16690 = vmatprep.subr.msk.bf16.mxu0 %vm19255_vm1, %v16688_v51  ;;  %v863_v4 = vadd.f32 %v862_v49, %v19411_v5  ;;  %23357 = vst [vmem:[#allocation56_spill] sm:$0xff] %v19578_v6  ;;  %v19602_v48 = vpack.i.bf16 %v858_v53, %v853_v9  ;;  %v19604_v14 = vpack.c.bf16 %v858_v53, %v853_v9  ;;  %v19606_v10 = vmul.f32 0.17677669, %v632_v55 }
 0x1da   : > { %16693 = vmatpush3.bf16.xpose.msk.msra.mxu0 %vm19255_vm1, %v16688_v51  ;;  %23360 = vst [vmem:[#allocation59_spill] sm:$0xff] %v19589_v21  ;;  %v644_v27 = vadd.f32 %v19262_v3, %v19231_v45  ;;  %v19613_v49 = vmul.f32 0.17677669, %v650_v25  ;;  %v656_v55 = vadd.f32 %v19289_v22, %v19231_v45  ;;  %v686_v22 = vadd.f32 %v19373_v20, %v19231_v45 }
 0x1db   : > { %16702 = vmatprep.subr.msk.bf16.mxu0 %vm19255_vm1, %v19307_v29  ;;  %v15575_v36 = vpop.f32.mrb[44].mxu1  ;;  %23361 = vst [vmem:[#allocation60_spill] sm:$0xff] %v19602_v48  ;;  %23362 = vst [vmem:[#allocation61_spill] sm:$0xff] %v19604_v14  ;;  %v19626_v3 = vpack.i.bf16 %v868_v41, %v863_v4  ;;  %v19628_v9 = vpack.c.bf16 %v868_v41, %v863_v4 }
 0x1dc   : > { %v878_v51 = vadd.f32 %v15575_v36, %v19411_v5  ;;  %v872_v52 = vpop.f32.mrb[45].mxu1  ;;  %23363 = vst [vmem:[#allocation62_spill] sm:$0xff] %v19606_v10  ;;  %23364 = vst [vmem:[#allocation63_spill] sm:$0xff] %v19613_v49 }
 0x1dd   : > { %15656 = vmatmul.mubr.msk.f32.vlgmr.msra.gmra.mrb[70].mxu1 %vm953_vm0, %v19582_v19  ;;  %v873_v18 = vadd.f32 %v872_v52, %v19411_v5  ;;  %23365 = vst [vmem:[#allocation64_spill] sm:$0xff] %v19626_v3  ;;  %23366 = vst [vmem:[#allocation65_spill] sm:$0xff] %v19628_v9 }
 0x1de   : > { %16699 = vmatpush3.bf16.xpose.msk.msra.mxu1 %vm19255_vm1, %v19276_v11  ;;  %15669 = vmatprep.mubr.msk.f32.mxu1 %vm953_vm0, %v19589_v21  ;;  %v662_v11 = vadd.f32 %v19305_v28, %v19231_v45  ;;  %v19630_v28 = vmul.f32 0.17677669, %v644_v27  ;;  %v19656_v27 = vmul.f32 0.17677669, %v656_v55 }
 0x1df   : > { %16708 = vmatprep.subr.msk.bf16.mxu1 %vm19255_vm1, %v19346_v59  ;;  %v15578_v24 = vpop.f32.mrb[46].mxu1  ;;  %v19652_v4 = vpack.i.bf16 %v878_v51, %v873_v18 }
 0x1e0   : > { %v888_v36 = vadd.f32 %v15578_v24, %v19411_v5  ;;  %v882_v52 = vpop.f32.mrb[47].mxu1  ;;  %23367 = vst [vmem:[#allocation66_spill] sm:$0xff] %v19630_v28  ;;  %v19637_v24 = vmul.f32 0.17677669, %v662_v11  ;;  %23371 = vst [vmem:[#allocation70_spill] sm:$0xff] %v19656_v27  ;;  %v668_v11 = vadd.f32 %v19324_v43, %v19231_v45 }
 0x1e1   : > { %15663 = vmatmul.mubr.msk.f32.vlgmr.msra.gmra.mrb[44].mxu0 %vm953_vm0, %v19606_v10  ;;  %v883_v53 = vadd.f32 %v882_v52, %v19411_v5  ;;  %23369 = vst [vmem:[#allocation68_spill] sm:$0xff] %v19652_v4 }
 0x1e2   : > { %16705 = vmatpush3.bf16.xpose.msk.msra.mxu0 %vm19255_vm1, %v19307_v29  ;;  %15676 = vmatprep.mubr.msk.f32.mxu0 %vm953_vm0, %v19613_v49  ;;  %23368 = vst [vmem:[#allocation67_spill] sm:$0xff] %v19637_v24  ;;  %v674_v29 = vadd.f32 %v19344_v58, %v19231_v45  ;;  %v19654_v58 = vpack.c.bf16 %v878_v51, %v873_v18  ;;  %v19669_v18 = vmul.f32 0.17677669, %v686_v22 }
 0x1e3   : > { %16714 = vmatprep.subr.msk.bf16.mxu0 %vm19255_vm1, %v19375_v23  ;;  %v15581_v25 = vpop.f32.mrb[48].mxu1  ;;  %v19676_v43 = vpack.i.bf16 %v888_v36, %v883_v53  ;;  %v19678_v55 = vpack.c.bf16 %v888_v36, %v883_v53 }
 0x1e4   : > { %v898_v52 = vadd.f32 %v15581_v25, %v19411_v5  ;;  %v892_v3 = vpop.f32.mrb[49].mxu1  ;;  %23370 = vst [vmem:[#allocation69_spill] sm:$0xff] %v19654_v58  ;;  %23373 = vst [vmem:[#allocation72_spill] sm:$0xff] %v19669_v18 }
 0x1e5   : > { %15670 = vmatmul.mubr.msk.f32.vlgmr.msra.gmra.mrb[72].mxu1 %vm953_vm0, %v19630_v28  ;;  %v893_v41 = vadd.f32 %v892_v3, %v19411_v5  ;;  %v19663_v3 = vmul.f32 0.17677669, %v674_v29  ;;  %23374 = vst [vmem:[#allocation73_spill] sm:$0xff] %v19676_v43  ;;  %23375 = vst [vmem:[#allocation74_spill] sm:$0xff] %v19678_v55  ;;  %v19680_v29 = vmul.f32 0.17677669, %v668_v11 }
 0x1e6   : > { %16711 = vmatpush3.bf16.xpose.msk.msra.mxu1 %vm19255_vm1, %v19346_v59  ;;  %15683 = vmatprep.mubr.msk.f32.mxu1 %vm953_vm0, %v19637_v24 }
 0x1e7   : > { %16720 = vmatprep.subr.msk.bf16.mxu1 %vm19255_vm1, %v19405_v57  ;;  %v15584_v20 = vpop.f32.mrb[50].mxu1  ;;  %23372 = vst [vmem:[#allocation71_spill] sm:$0xff] %v19663_v3  ;;  %23376 = vst [vmem:[#allocation75_spill] sm:$0xff] %v19680_v29  ;;  %v19694_v36 = vpack.i.bf16 %v898_v52, %v893_v41 }
 0x1e8   : > { %v908_v59 = vadd.f32 %v15584_v20, %v19411_v5  ;;  %v902_v25 = vpop.f32.mrb[51].mxu1  ;;  %v680_v20 = vadd.f32 %v19359_v13, %v19231_v45  ;;  %v19696_v13 = vpack.c.bf16 %v898_v52, %v893_v41  ;;  %v19723_v41 = vld [vmem:[#allocation8] sm:$0xff] }
 0x1e9   : > { %15677 = vmatmul.mubr.msk.f32.vlgmr.msra.gmra.mrb[46].mxu0 %vm953_vm0, %v19656_v27  ;;  %v903_v51 = vadd.f32 %v902_v25, %v19411_v5  ;;  %23377 = vst [vmem:[#allocation76_spill] sm:$0xff] %v19694_v36 }
 0x1ea   : > { %16717 = vmatpush3.bf16.xpose.msk.msra.mxu0 %vm19255_vm1, %v19375_v23  ;;  %15690 = vmatprep.mubr.msk.f32.mxu0 %vm953_vm0, %v19663_v3  ;;  %23378 = vst [vmem:[#allocation77_spill] sm:$0xff] %v19696_v13  ;;  %v19698_v53 = vmul.f32 0.17677669, %v680_v20 }
 0x1eb   : > { %v15587_v58 = vpop.f32.mrb[52].mxu1  ;;  %16725 = vmatprep.subr.bf16.mxu0 %v19437_v2 }
 0x1ec   : > { %v918_v22 = vadd.f32 %v15587_v58, %v19411_v5  ;;  %v912_v25 = vpop.f32.mrb[53].mxu1  ;;  %23379 = vst [vmem:[#allocation78_spill] sm:$0xff] %v19698_v53  ;;  %v692_v58 = vadd.f32 %v19389_v40, %v19231_v45 }
 0x1ed   : > { %15684 = vmatmul.mubr.msk.f32.vlgmr.msra.gmra.mrb[74].mxu1 %vm953_vm0, %v19680_v29  ;;  %v913_v23 = vadd.f32 %v912_v25, %v19411_v5  ;;  %v19708_v5 = vpack.c.bf16 %v908_v59, %v903_v51 }
 0x1ee   : > { %16723 = vmatpush3.bf16.xpose.msk.msra.mxu1 %vm19255_vm1, %v19405_v57  ;;  %15697 = vmatprep.mubr.msk.f32.mxu1 %vm953_vm0, %v19669_v18  ;;  %v19706_v57 = vpack.i.bf16 %v908_v59, %v903_v51  ;;  %v19710_v11 = vmul.f32 0.17677669, %v692_v58 }
 0x1ef   : > { %16729 = vmatprep.subr.bf16.mxu1 %v19448_v37  ;;  %23381 = vst [vmem:[#allocation80_spill] sm:$0xff] %v19708_v5  ;;  %v19716_v45 = vpack.i.bf16 %v918_v22, %v913_v23  ;;  %v19718_v40 = vpack.c.bf16 %v918_v22, %v913_v23 }
 0x1f0   : > { %23380 = vst [vmem:[#allocation79_spill] sm:$0xff] %v19706_v57  ;;  %23382 = vst [vmem:[#allocation81_spill] sm:$0xff] %v19710_v11 }
 0x1f1   : > { %15691 = vmatmul.mubr.msk.f32.vlgmr.msra.gmra.mrb[48].mxu0 %vm953_vm0, %v19698_v53  ;;  %23383 = vst [vmem:[#allocation82_spill] sm:$0xff] %v19716_v45  ;;  %23384 = vst [vmem:[#allocation83_spill] sm:$0xff] %v19718_v40 }
 0x1f2   : > { %16727 = vmatpush3.bf16.msra.mxu0 %v19437_v2  ;;  %v19721_v2 = vld [vmem:[#allocation8 + $0x8] sm:$0xff] }
 0x1f3   : > { %16733 = vmatprep.subr.bf16.mxu0 %v19472_v26 }
 0x1f5   : > { %15698 = vmatmul.mubr.msk.f32.vlgmr.msra.gmra.mrb[76].mxu1 %vm953_vm0, %v19710_v11 }
 0x1f6   : > { %16731 = vmatpush3.bf16.msra.mxu1 %v19448_v37 }
 0x1f7   : > { %16737 = vmatprep.subr.bf16.mxu1 %v19487_v16 }
 0x1fa   : > { %v19885_v21 = vpop.permute.xlu1 %3995 }
 0x1fb   : > { %23385 = vst [vmem:[#allocation84_spill] sm:$0xff] %v19885_v21 }
 0x269   : > { %v15594_v52 = vpop.f32.mrb[54].mxu1 }
 0x26a   : > { %v19726_v59 = vadd.f32 %v15594_v52, %v19721_v2  ;;  %v1032_v51 = vpop.f32.mrb[55].mxu1 }
 0x26b   : > { %v19729_v20 = vadd.f32 %v1032_v51, %v19723_v41 }
 0x26c   : > { %v2350_v37 = vsel %vm2346_vm2, %v19726_v59, -inf }
 0x26d   : > { %2351 = vmax.xlane.f32.xlu0 %v2350_v37  ;;  %v2347_v22 = vsel %vm2346_vm2, %v19729_v20, -inf }
 0x271   : > { %v15601_v25 = vpop.f32.mrb[56].mxu1  ;;  %2348 = vmax.xlane.f32.xlu0 %v2347_v22 }
 0x272   : > { %v19736_v23 = vadd.f32 %v15601_v25, %v19721_v2  ;;  %v1119_v58 = vpop.f32.mrb[57].mxu1 }
 0x273   : > { %v19739_v52 = vadd.f32 %v1119_v58, %v19723_v41 }
 0x274   : > { %v2356_v51 = vsel %vm2346_vm2, %v19736_v23, -inf }
 0x275   : > { %2357 = vmax.xlane.f32.xlu0 %v2356_v51  ;;  %v2353_v61 = vsel %vm2346_vm2, %v19739_v52, -inf }
 0x276   : > { %2354 = vmax.xlane.f32.xlu1 %v2353_v61 }
 0x279   : > { %v15608_v37 = vpop.f32.mrb[58].mxu1 }
 0x27a   : > { %v19746_v40 = vadd.f32 %v15608_v37, %v19721_v2  ;;  %v1206_v22 = vpop.f32.mrb[59].mxu1 }
 0x27b   : > { %v19749_v25 = vadd.f32 %v1206_v22, %v19723_v41 }
 0x27c   : > { %v2362_v58 = vsel %vm2346_vm2, %v19746_v40, -inf }
 0x27d   : > { %2363 = vmax.xlane.f32.xlu1 %v2362_v58  ;;  %v2359_v5 = vsel %vm2346_vm2, %v19749_v25, -inf }
 0x281   : > { %v15615_v51 = vpop.f32.mrb[60].mxu1  ;;  %2360 = vmax.xlane.f32.xlu1 %v2359_v5 }
 0x282   : > { %v19756_v13 = vadd.f32 %v15615_v51, %v19721_v2  ;;  %v1293_v61 = vpop.f32.mrb[61].mxu1 }
 0x283   : > { %v19759_v37 = vadd.f32 %v1293_v61, %v19723_v41 }
 0x284   : > { %v2368_v22 = vsel %vm2346_vm2, %v19756_v13, -inf }
 0x285   : > { %2369 = vmax.xlane.f32.xlu0 %v2368_v22  ;;  %v2365_v55 = vsel %vm2346_vm2, %v19759_v37, -inf }
 0x289   : > { %v15622_v58 = vpop.f32.mrb[62].mxu1  ;;  %2366 = vmax.xlane.f32.xlu0 %v2365_v55 }
 0x28a   : > { %v19766_v45 = vadd.f32 %v15622_v58, %v19721_v2  ;;  %v1380_v5 = vpop.f32.mrb[63].mxu1 }
 0x28b   : > { %v19769_v51 = vadd.f32 %v1380_v5, %v19723_v41 }
 0x28c   : > { %v2374_v61 = vsel %vm2346_vm2, %v19766_v45, -inf }
 0x28d   : > { %2375 = vmax.xlane.f32.xlu1 %v2374_v61  ;;  %v2371_v36 = vsel %vm2346_vm2, %v19769_v51, -inf }
 0x291   : > { %v15629_v22 = vpop.f32.mrb[64].mxu1  ;;  %2372 = vmax.xlane.f32.xlu1 %v2371_v36 }
 0x292   : > { %v19776_v43 = vadd.f32 %v15629_v22, %v19721_v2  ;;  %v1467_v55 = vpop.f32.mrb[65].mxu1 }
 0x293   : > { %v19779_v58 = vadd.f32 %v1467_v55, %v19723_v41 }
 0x294   : > { %v2380_v5 = vsel %vm2346_vm2, %v19776_v43, -inf }
 0x295   : > { %2381 = vmax.xlane.f32.xlu0 %v2380_v5  ;;  %v2377_v9 = vsel %vm2346_vm2, %v19779_v58, -inf }
 0x299   : > { %v15636_v61 = vpop.f32.mrb[66].mxu1  ;;  %2378 = vmax.xlane.f32.xlu0 %v2377_v9 }
 0x29a   : > { %v19786_v4 = vadd.f32 %v15636_v61, %v19721_v2  ;;  %v1554_v36 = vpop.f32.mrb[67].mxu1 }
 0x29b   : > { %v19789_v22 = vadd.f32 %v1554_v36, %v19723_v41 }
 0x29c   : > { %v2386_v55 = vsel %vm2346_vm2, %v19786_v4, -inf }
 0x29d   : > { %2387 = vmax.xlane.f32.xlu1 %v2386_v55  ;;  %v2383_v14 = vsel %vm2346_vm2, %v19789_v22, -inf }
 0x2a1   : > { %v15643_v5 = vpop.f32.mrb[68].mxu1  ;;  %2384 = vmax.xlane.f32.xlu1 %v2383_v14 }
 0x2a2   : > { %v19796_v48 = vadd.f32 %v15643_v5, %v19721_v2  ;;  %v1641_v9 = vpop.f32.mrb[69].mxu1 }
 0x2a3   : > { %v19799_v61 = vadd.f32 %v1641_v9, %v19723_v41 }
 0x2a4   : > { %v2392_v36 = vsel %vm2346_vm2, %v19796_v48, -inf }
 0x2a5   : > { %2393 = vmax.xlane.f32.xlu0 %v2392_v36  ;;  %v2389_v55 = vsel %vm2346_vm2, %v19799_v61, -inf }
 0x2a8   : > { %v15650_v57 = vpop.f32.mrb[42].mxu0 }
 0x2a9   : > { %v19806_v0 = vadd.f32 %v15650_v57, %v19721_v2  ;;  %2390 = vmax.xlane.f32.xlu0 %v2389_v55  ;;  %v1728_v14 = vpop.f32.mrb[43].mxu0 }
 0x2aa   : > { %v19809_v5 = vadd.f32 %v1728_v14, %v19723_v41 }
 0x2ab   : > { %v2398_v9 = vsel %vm2346_vm2, %v19806_v0, -inf }
 0x2ac   : > { %2399 = vmax.xlane.f32.xlu1 %v2398_v9  ;;  %v2395_v56 = vsel %vm2346_vm2, %v19809_v5, -inf }
 0x2b0   : > { %v15657_v36 = vpop.f32.mrb[70].mxu1  ;;  %2396 = vmax.xlane.f32.xlu1 %v2395_v56 }
 0x2b1   : > { %v19816_v6 = vadd.f32 %v15657_v36, %v19721_v2  ;;  %v1815_v62 = vpop.f32.mrb[71].mxu1 }
 0x2b2   : > { %v19819_v57 = vadd.f32 %v1815_v62, %v19723_v41 }
 0x2b3   : > { %v2404_v55 = vsel %vm2346_vm2, %v19816_v6, -inf }
 0x2b4   : > { %v15664_v14 = vpop.f32.mrb[44].mxu0  ;;  %2405 = vmax.xlane.f32.xlu0 %v2404_v55  ;;  %v2401_v36 = vsel %vm2346_vm2, %v19819_v57, -inf }
 0x2b5   : > { %v19824_v63 = vadd.f32 %v15664_v14, %v19721_v2  ;;  %v1902_v9 = vpop.f32.mrb[45].mxu0 }
 0x2b6   : > { %v19827_v18 = vadd.f32 %v1902_v9, %v19723_v41 }
 0x2b7   : > { %v2410_v56 = vsel %vm2346_vm2, %v19824_v63, -inf }
 0x2b8   : > { %v15671_v62 = vpop.f32.mrb[72].mxu1  ;;  %2411 = vmax.xlane.f32.xlu1 %v2410_v56  ;;  %2402 = vmax.xlane.f32.xlu0 %v2401_v36  ;;  %v2407_v9 = vsel %vm2346_vm2, %v19827_v18, -inf }
 0x2b9   : > { %v19834_v44 = vadd.f32 %v15671_v62, %v19721_v2  ;;  %v1989_v55 = vpop.f32.mrb[73].mxu1 }
 0x2ba   : > { %v19837_v14 = vadd.f32 %v1989_v55, %v19723_v41 }
 0x2bb   : > { %v2416_v11 = vsel %vm2346_vm2, %v19834_v44, -inf }
 0x2bc   : > { %v15678_v3 = vpop.f32.mrb[46].mxu0  ;;  %2408 = vmax.xlane.f32.xlu1 %v2407_v9  ;;  %2417 = vmax.xlane.f32.xlu0 %v2416_v11  ;;  %v2413_v55 = vsel %vm2346_vm2, %v19837_v14, -inf }
 0x2bd   : > { %v19844_v53 = vadd.f32 %v15678_v3, %v19721_v2  ;;  %v2076_v56 = vpop.f32.mrb[47].mxu0 }
 0x2be   : > { %v19847_v36 = vadd.f32 %v2076_v56, %v19723_v41 }
 0x2bf   : > { %v2422_v62 = vsel %vm2346_vm2, %v19844_v53, -inf }
 0x2c0   : > { %v15685_v16 = vpop.f32.mrb[74].mxu1  ;;  %2423 = vmax.xlane.f32.xlu1 %v2422_v62  ;;  %2414 = vmax.xlane.f32.xlu0 %v2413_v55  ;;  %v2419_v11 = vsel %vm2346_vm2, %v19847_v36, -inf }
 0x2c1   : > { %v2163_v29 = vpop.f32.mrb[75].mxu1  ;;  %v19857_v3 = vadd.f32 %v15685_v16, %v19721_v2 }
 0x2c2   : > { %v19854_v9 = vadd.f32 %v2163_v29, %v19723_v41 }
 0x2c3   : > { %v2428_v16 = vsel %vm2346_vm2, %v19857_v3, -inf }
 0x2c4   : > { %v15692_v56 = vpop.f32.mrb[48].mxu0  ;;  %2420 = vmax.xlane.f32.xlu1 %v2419_v11  ;;  %v2425_v27 = vsel %vm2346_vm2, %v19854_v9, -inf }
 0x2c5   : > { %v2250_v24 = vpop.f32.mrb[49].mxu0  ;;  %2426 = vmax.xlane.f32.xlu0 %v2425_v27  ;;  %v19867_v55 = vadd.f32 %v15692_v56, %v19721_v2 }
 0x2c6   : > { %v19864_v62 = vadd.f32 %v2250_v24, %v19723_v41 }
 0x2c7   : > { %v2434_v24 = vsel %vm2346_vm2, %v19867_v55, -inf }
 0x2c8   : > { %v15699_v29 = vpop.f32.mrb[76].mxu1  ;;  %2429 = vmax.xlane.f32.xlu1 %v2428_v16  ;;  %v2431_v49 = vsel %vm2346_vm2, %v19864_v62, -inf }
 0x2c9   : > { %v2337_v11 = vpop.f32.mrb[77].mxu1  ;;  %2432 = vmax.xlane.f32.xlu0 %v2431_v49  ;;  %v19877_v27 = vadd.f32 %v15699_v29, %v19721_v2  ;;  %v19887_v49 = vpop.permute.xlu0 %17404 }
 0x2ca   : > { %v19874_v26 = vadd.f32 %v2337_v11, %v19723_v41  ;;  %23386 = vst [vmem:[#allocation85_spill] sm:$0xff] %v19887_v49  ;;  %v19889_v41 = vpop.permute.xlu1 %17409 }
 0x2cb   : > { %v2440_v16 = vsel %vm2346_vm2, %v19877_v27, -inf  ;;  %23387 = vst [vmem:[#allocation86_spill] sm:$0xff] %v19889_v41 }
 0x2cc   : > { %2435 = vmax.xlane.f32.xlu1 %v2434_v24  ;;  %v2437_v56 = vsel %vm2346_vm2, %v19874_v26, -inf }
 0x2cd   : > { %2438 = vmax.xlane.f32.xlu0 %v2437_v56  ;;  %v19893_v2 = vpop.permute.xlu0 %3997 }
 0x2ce   : > { %23388 = vst [vmem:[#allocation87_spill] sm:$0xff] %v19893_v2  ;;  %v19895_v29 = vpop.permute.xlu1 %4088 }
 0x2cf   : > { %23389 = vst [vmem:[#allocation88_spill] sm:$0xff] %v19895_v29 }
 0x2d0   : > { %2441 = vmax.xlane.f32.xlu1 %v2440_v16 }
 0x2d1   : > { %v19899_v11 = vpop.permute.xlu0 %4086 }
 0x2d2   : > { %23390 = vst [vmem:[#allocation89_spill] sm:$0xff] %v19899_v11  ;;  %v19901_v24 = vpop.permute.xlu1 %4177 }
 0x2d3   : > { %23391 = vst [vmem:[#allocation90_spill] sm:$0xff] %v19901_v24 }
 0x2d5   : > { %v19903_v56 = vpop.permute.xlu0 %4179 }
 0x2d6   : > { %23392 = vst [vmem:[#allocation91_spill] sm:$0xff] %v19903_v56  ;;  %v19905_v16 = vpop.permute.xlu1 %17414 }
 0x2d7   : > { %23393 = vst [vmem:[#allocation92_spill] sm:$0xff] %v19905_v16 }
 0x2d9   : > { %v19907_v21 = vpop.permute.xlu0 %4268 }
 0x2da   : > { %23394 = vst [vmem:[#allocation93_spill] sm:$0xff] %v19907_v21  ;;  %v19909_v41 = vpop.permute.xlu1 %17419 }
 0x2db   : > { %23395 = vst [vmem:[#allocation94_spill] sm:$0xff] %v19909_v41 }
 0x2de   : > { %v19913_v49 = vpop.permute.xlu1 %4270 }
 0x2df   : > { %23397 = vst [vmem:[#allocation96_spill] sm:$0xff] %v19913_v49 }
 0x2e1   : > { %4359 = vrot.lane.b32.xlu1 %v19392_v50, %s18834_s19  ;;  %v19911_v50 = vpop.permute.xlu0 %17424 }
 0x2e2   : > { %23396 = vst [vmem:[#allocation95_spill] sm:$0xff] %v19911_v50  ;;  %v19916_v11 = vpop.permute.xlu1 %17429 }
 0x2e3   : > { %17434 = vrot.lane.b32.xlu0 %v19444_v42, %s18834_s19 }
 0x2fa   : > { %v2352_v2 = vpop.xlane.xlu0 %2351 }
 0x2fb   : > { %v2444_v29 = vsub.f32 %v19726_v59, %v2352_v2 }
 0x2fd   : > { %v2477_v42 = vmul.f32 1.442695, %v2444_v29 }
 0x2fe   : > { %v2349_v28 = vpop.xlane.xlu0 %2348 }
 0x2ff   : > { %18123 = vpow2.f32 %v2477_v42  ;;  %v2443_v56 = vsub.f32 %v19729_v20, %v2349_v28 }
 0x301   : > { %v2475_v24 = vmul.f32 1.442695, %v2443_v56 }
 0x302   : > { %v2358_v16 = vpop.xlane.xlu0 %2357 }
 0x303   : > { %18125 = vpow2.f32 %v2475_v24  ;;  %v2446_v21 = vsub.f32 %v19736_v23, %v2358_v16  ;;  %v2355_v41 = vpop.xlane.xlu1 %2354 }
 0x304   : > { %v2445_v50 = vsub.f32 %v19739_v52, %v2355_v41 }
 0x305   : > { %v2481_v10 = vmul.f32 1.442695, %v2446_v21 }
 0x306   : > { %v2479_v60 = vmul.f32 1.442695, %v2445_v50 }
 0x307   : > { %18127 = vpow2.f32 %v2481_v10 }
 0x308   : > { %18129 = vpow2.f32 %v2479_v60 }
 0x309   : > { %v19921_v49 = vpop.eup %18123 }
 0x30a   : > { %v2364_v59 = vpop.xlane.xlu1 %2363  ;;  %v2542_v42 = vsel %vm2346_vm2, %v19921_v49, 0.0 }
 0x30b   : > { %v2448_v28 = vsub.f32 %v19746_v40, %v2364_v59  ;;  %2543 = vadd.xlane.f32.xlu1 %v2542_v42 }
 0x30d   : > { %v19926_v20 = vpop.eup %18125  ;;  %v2485_v2 = vmul.f32 1.442695, %v2448_v28 }
 0x30e   : > { %v2361_v23 = vpop.xlane.xlu1 %2360  ;;  %v2539_v52 = vsel %vm2346_vm2, %v19926_v20, 0.0 }
 0x30f   : > { %18131 = vpow2.f32 %v2485_v2  ;;  %v2447_v50 = vsub.f32 %v19749_v25, %v2361_v23  ;;  %2540 = vadd.xlane.f32.xlu0 %v2539_v52 }
 0x311   : > { %v19931_v21 = vpop.eup %18127  ;;  %v2483_v60 = vmul.f32 1.442695, %v2447_v50 }
 0x312   : > { %v2370_v10 = vpop.xlane.xlu0 %2369  ;;  %v2548_v41 = vsel %vm2346_vm2, %v19931_v21, 0.0  ;;  %v19935_v40 = vpop.eup %18129 }
 0x313   : > { %18133 = vpow2.f32 %v2483_v60  ;;  %v2450_v29 = vsub.f32 %v19756_v13, %v2370_v10  ;;  %2549 = vadd.xlane.f32.xlu0 %v2548_v41  ;;  %v2545_v16 = vsel %vm2346_vm2, %v19935_v40, 0.0 }
 0x315   : > { %v2489_v24 = vmul.f32 1.442695, %v2450_v29 }
 0x316   : > { %v2367_v56 = vpop.xlane.xlu0 %2366 }
 0x317   : > { %18135 = vpow2.f32 %v2489_v24  ;;  %v2449_v25 = vsub.f32 %v19759_v37, %v2367_v56  ;;  %2546 = vadd.xlane.f32.xlu0 %v2545_v16 }
 0x319   : > { %v19941_v59 = vpop.eup %18131  ;;  %v2487_v42 = vmul.f32 1.442695, %v2449_v25 }
 0x31a   : > { %v2376_v28 = vpop.xlane.xlu1 %2375  ;;  %v2554_v2 = vsel %vm2346_vm2, %v19941_v59, 0.0 }
 0x31b   : > { %18137 = vpow2.f32 %v2487_v42  ;;  %v2452_v13 = vsub.f32 %v19766_v45, %v2376_v28  ;;  %2555 = vadd.xlane.f32.xlu1 %v2554_v2 }
 0x31d   : > { %v19946_v23 = vpop.eup %18133  ;;  %v2493_v52 = vmul.f32 1.442695, %v2452_v13 }
 0x31e   : > { %v2373_v50 = vpop.xlane.xlu1 %2372  ;;  %v2551_v60 = vsel %vm2346_vm2, %v19946_v23, 0.0 }
 0x31f   : > { %18139 = vpow2.f32 %v2493_v52  ;;  %v2451_v37 = vsub.f32 %v19769_v51, %v2373_v50  ;;  %2552 = vadd.xlane.f32.xlu1 %v2551_v60 }
 0x321   : > { %v19951_v10 = vpop.eup %18135  ;;  %v2491_v41 = vmul.f32 1.442695, %v2451_v37 }
 0x322   : > { %v2382_v29 = vpop.xlane.xlu0 %2381  ;;  %v2560_v24 = vsel %vm2346_vm2, %v19951_v10, 0.0 }
 0x323   : > { %18141 = vpow2.f32 %v2491_v41  ;;  %v2454_v45 = vsub.f32 %v19776_v43, %v2382_v29  ;;  %2561 = vadd.xlane.f32.xlu0 %v2560_v24 }
 0x325   : > { %v19956_v56 = vpop.eup %18137  ;;  %v2497_v16 = vmul.f32 1.442695, %v2454_v45 }
 0x326   : > { %v2379_v25 = vpop.xlane.xlu0 %2378  ;;  %v2557_v42 = vsel %vm2346_vm2, %v19956_v56, 0.0 }
 0x327   : > { %18143 = vpow2.f32 %v2497_v16  ;;  %v2453_v51 = vsub.f32 %v19779_v58, %v2379_v25  ;;  %2558 = vadd.xlane.f32.xlu0 %v2557_v42 }
 0x329   : > { %v19961_v28 = vpop.eup %18139  ;;  %v2495_v2 = vmul.f32 1.442695, %v2453_v51 }
 0x32a   : > { %v2388_v13 = vpop.xlane.xlu1 %2387  ;;  %v2566_v52 = vsel %vm2346_vm2, %v19961_v28, 0.0 }
 0x32b   : > { %18145 = vpow2.f32 %v2495_v2  ;;  %v2456_v43 = vsub.f32 %v19786_v4, %v2388_v13  ;;  %2567 = vadd.xlane.f32.xlu1 %v2566_v52 }
 0x32d   : > { %v19966_v50 = vpop.eup %18141  ;;  %v2501_v60 = vmul.f32 1.442695, %v2456_v43 }
 0x32e   : > { %v2385_v37 = vpop.xlane.xlu1 %2384  ;;  %v2563_v41 = vsel %vm2346_vm2, %v19966_v50, 0.0 }
 0x32f   : > { %18147 = vpow2.f32 %v2501_v60  ;;  %v2455_v58 = vsub.f32 %v19789_v22, %v2385_v37  ;;  %2564 = vadd.xlane.f32.xlu1 %v2563_v41 }
 0x331   : > { %v19971_v29 = vpop.eup %18143  ;;  %v2499_v24 = vmul.f32 1.442695, %v2455_v58 }
 0x332   : > { %v2394_v45 = vpop.xlane.xlu0 %2393  ;;  %v2572_v16 = vsel %vm2346_vm2, %v19971_v29, 0.0 }
 0x333   : > { %18149 = vpow2.f32 %v2499_v24  ;;  %v2458_v4 = vsub.f32 %v19796_v48, %v2394_v45  ;;  %2573 = vadd.xlane.f32.xlu0 %v2572_v16 }
 0x335   : > { %v19976_v25 = vpop.eup %18145  ;;  %v2505_v42 = vmul.f32 1.442695, %v2458_v4 }
 0x336   : > { %v2391_v51 = vpop.xlane.xlu0 %2390  ;;  %v2569_v2 = vsel %vm2346_vm2, %v19976_v25, 0.0 }
 0x337   : > { %18151 = vpow2.f32 %v2505_v42  ;;  %v2457_v22 = vsub.f32 %v19799_v61, %v2391_v51  ;;  %2570 = vadd.xlane.f32.xlu0 %v2569_v2 }
 0x339   : > { %v19981_v13 = vpop.eup %18147  ;;  %v2503_v52 = vmul.f32 1.442695, %v2457_v22  ;;  %v2400_v43 = vpop.xlane.xlu1 %2399 }
 0x33a   : > { %v2460_v60 = vsub.f32 %v19806_v0, %v2400_v43  ;;  %v2578_v48 = vsel %vm2346_vm2, %v19981_v13, 0.0 }
 0x33b   : > { %18153 = vpow2.f32 %v2503_v52  ;;  %2579 = vadd.xlane.f32.xlu1 %v2578_v48 }
 0x33c   : > { %v2509_v37 = vmul.f32 1.442695, %v2460_v60 }
 0x33d   : > { %v19986_v41 = vpop.eup %18149  ;;  %v2397_v58 = vpop.xlane.xlu1 %2396 }
 0x33e   : > { %18155 = vpow2.f32 %v2509_v37  ;;  %v2459_v24 = vsub.f32 %v19809_v5, %v2397_v58  ;;  %v2575_v61 = vsel %vm2346_vm2, %v19986_v41, 0.0 }
 0x33f   : > { %2576 = vadd.xlane.f32.xlu1 %v2575_v61 }
 0x340   : > { %v2507_v45 = vmul.f32 1.442695, %v2459_v24 }
 0x341   : > { %v19991_v16 = vpop.eup %18151  ;;  %v2406_v0 = vpop.xlane.xlu0 %2405 }
 0x342   : > { %18157 = vpow2.f32 %v2507_v45  ;;  %v2462_v4 = vsub.f32 %v19816_v6, %v2406_v0  ;;  %v2584_v42 = vsel %vm2346_vm2, %v19991_v16, 0.0 }
 0x343   : > { %2585 = vadd.xlane.f32.xlu0 %v2584_v42 }
 0x344   : > { %v2513_v51 = vmul.f32 1.442695, %v2462_v4 }
 0x345   : > { %v19996_v2 = vpop.eup %18153  ;;  %v2412_v22 = vpop.xlane.xlu1 %2411 }
 0x346   : > { %v2403_v5 = vpop.xlane.xlu0 %2402  ;;  %18159 = vpow2.f32 %v2513_v51  ;;  %v2464_v52 = vsub.f32 %v19824_v63, %v2412_v22  ;;  %v2581_v60 = vsel %vm2346_vm2, %v19996_v2, 0.0 }
 0x347   : > { %v2461_v43 = vsub.f32 %v19819_v57, %v2403_v5  ;;  %2582 = vadd.xlane.f32.xlu0 %v2581_v60 }
 0x348   : > { %v20002_v48 = vpop.eup %18155  ;;  %v2517_v6 = vmul.f32 1.442695, %v2464_v52 }
 0x349   : > { %v2511_v37 = vmul.f32 1.442695, %v2461_v43  ;;  %v2409_v58 = vpop.xlane.xlu1 %2408  ;;  %v2590_v61 = vsel %vm2346_vm2, %v20002_v48, 0.0 }
 0x34a   : > { %v2418_v24 = vpop.xlane.xlu0 %2417  ;;  %18161 = vpow2.f32 %v2517_v6  ;;  %v2463_v45 = vsub.f32 %v19827_v18, %v2409_v58  ;;  %2591 = vadd.xlane.f32.xlu1 %v2590_v61 }
 0x34b   : > { %v2466_v63 = vsub.f32 %v19834_v44, %v2418_v24  ;;  %18163 = vpow2.f32 %v2511_v37 }
 0x34c   : > { %v20008_v57 = vpop.eup %18157  ;;  %v2515_v0 = vmul.f32 1.442695, %v2463_v45 }
 0x34d   : > { %v2521_v4 = vmul.f32 1.442695, %v2466_v63  ;;  %v2424_v42 = vpop.xlane.xlu1 %2423  ;;  %v2587_v22 = vsel %vm2346_vm2, %v20008_v57, 0.0 }
 0x34e   : > { %v2415_v51 = vpop.xlane.xlu0 %2414  ;;  %18165 = vpow2.f32 %v2515_v0  ;;  %v2468_v5 = vsub.f32 %v19844_v53, %v2424_v42  ;;  %2588 = vadd.xlane.f32.xlu1 %v2587_v22 }
 0x34f   : > { %v2465_v52 = vsub.f32 %v19837_v14, %v2415_v51  ;;  %18167 = vpow2.f32 %v2521_v4 }
 0x350   : > { %v20014_v18 = vpop.eup %18159  ;;  %v2525_v44 = vmul.f32 1.442695, %v2468_v5 }
 0x351   : > { %v2519_v43 = vmul.f32 1.442695, %v2465_v52  ;;  %v2421_v60 = vpop.xlane.xlu1 %2420  ;;  %v2596_v6 = vsel %vm2346_vm2, %v20014_v18, 0.0 }
 0x352   : > { %18169 = vpow2.f32 %v2525_v44  ;;  %v2467_v37 = vsub.f32 %v19847_v36, %v2421_v60  ;;  %2597 = vadd.xlane.f32.xlu0 %v2596_v6  ;;  %v2427_v58 = vpop.xlane.xlu0 %2426 }
 0x353   : > { %18171 = vpow2.f32 %v2519_v43  ;;  %v2469_v53 = vsub.f32 %v19854_v9, %v2427_v58 }
 0x354   : > { %v20020_v24 = vpop.eup %18161  ;;  %v2523_v14 = vmul.f32 1.442695, %v2467_v37 }
 0x355   : > { %v20022_v61 = vpop.eup %18163  ;;  %v2527_v45 = vmul.f32 1.442695, %v2469_v53  ;;  %v2430_v63 = vpop.xlane.xlu1 %2429  ;;  %v2602_v0 = vsel %vm2346_vm2, %v20020_v24, 0.0 }
 0x356   : > { %18173 = vpow2.f32 %v2523_v14  ;;  %v2470_v4 = vsub.f32 %v19857_v3, %v2430_v63  ;;  %2603 = vadd.xlane.f32.xlu1 %v2602_v0  ;;  %v2593_v36 = vsel %vm2346_vm2, %v20022_v61, 0.0  ;;  %v2433_v42 = vpop.xlane.xlu0 %2432 }
 0x357   : > { %18175 = vpow2.f32 %v2527_v45  ;;  %2594 = vadd.xlane.f32.xlu0 %v2593_v36  ;;  %v2471_v9 = vsub.f32 %v19864_v62, %v2433_v42 }
 0x358   : > { %v20030_v51 = vpop.eup %18165  ;;  %v2529_v22 = vmul.f32 1.442695, %v2470_v4 }
 0x359   : > { %v20032_v5 = vpop.eup %18167  ;;  %v2531_v52 = vmul.f32 1.442695, %v2471_v9  ;;  %v2436_v44 = vpop.xlane.xlu1 %2435  ;;  %v2599_v43 = vsel %vm2346_vm2, %v20030_v51, 0.0 }
 0x35a   : > { %18177 = vpow2.f32 %v2529_v22  ;;  %v2472_v3 = vsub.f32 %v19867_v55, %v2436_v44  ;;  %2600 = vadd.xlane.f32.xlu1 %v2599_v43  ;;  %v2608_v60 = vsel %vm2346_vm2, %v20032_v5, 0.0  ;;  %v2439_v6 = vpop.xlane.xlu0 %2438 }
 0x35b   : > { %18179 = vpow2.f32 %v2531_v52  ;;  %2609 = vadd.xlane.f32.xlu0 %v2608_v60  ;;  %v2473_v62 = vsub.f32 %v19874_v26, %v2439_v6 }
 0x35c   : > { %v20040_v37 = vpop.eup %18169  ;;  %v2533_v58 = vmul.f32 1.442695, %v2472_v3 }
 0x35d   : > { %v20042_v53 = vpop.eup %18171  ;;  %v2535_v14 = vmul.f32 1.442695, %v2473_v62  ;;  %v2442_v45 = vpop.xlane.xlu1 %2441  ;;  %v2614_v63 = vsel %vm2346_vm2, %v20040_v37, 0.0 }
 0x35e   : > { %18181 = vpow2.f32 %v2533_v58  ;;  %v2474_v55 = vsub.f32 %v19877_v27, %v2442_v45  ;;  %2615 = vadd.xlane.f32.xlu1 %v2614_v63  ;;  %v2605_v0 = vsel %vm2346_vm2, %v20042_v53, 0.0  ;;  %v20105_v45 = vpop.permute.xlu0 %17434 }
 0x35f   : > { %18183 = vpow2.f32 %v2535_v14  ;;  %2606 = vadd.xlane.f32.xlu0 %v2605_v0 }
 0x360   : > { %v20049_v26 = vpop.eup %18173  ;;  %v2537_v4 = vmul.f32 1.442695, %v2474_v55 }
 0x361   : > { %v20051_v36 = vpop.eup %18175  ;;  %v2611_v42 = vsel %vm2346_vm2, %v20049_v26, 0.0  ;;  %v20099_v14 = vpop.permute.xlu1 %4359 }
 0x362   : > { %18185 = vpow2.f32 %v2537_v4  ;;  %2612 = vadd.xlane.f32.xlu1 %v2611_v42  ;;  %v2617_v9 = vsel %vm2346_vm2, %v20051_v36, 0.0  ;;  %v23398_v4 = vld [vmem:[#allocation28_spill] sm:$0xff] }
 0x363   : > { %2618 = vadd.xlane.f32.xlu0 %v2617_v9  ;;  %v23399_v9 = vld [vmem:[#allocation62_spill] sm:$0xff] }
 0x364   : > { %v20057_v27 = vpop.eup %18177 }
 0x365   : > { %v20059_v22 = vpop.eup %18179  ;;  %v2620_v52 = vsel %vm2346_vm2, %v20057_v27, 0.0 }
 0x366   : > { %2621 = vadd.xlane.f32.xlu1 %v2620_v52  ;;  %v2623_v44 = vsel %vm2346_vm2, %v20059_v22, 0.0 }
 0x367   : > { %2624 = vadd.xlane.f32.xlu0 %v2623_v44 }
 0x368   : > { %v20065_v43 = vpop.eup %18181 }
 0x369   : > { %v20067_v3 = vpop.eup %18183  ;;  %v2626_v60 = vsel %vm2346_vm2, %v20065_v43, 0.0 }
 0x36a   : > { %2627 = vadd.xlane.f32.xlu1 %v2626_v60  ;;  %v2629_v6 = vsel %vm2346_vm2, %v20067_v3, 0.0  ;;  %v23400_v60 = vld [vmem:[#allocation66_spill] sm:$0xff] }
 0x36b   : > { %2630 = vadd.xlane.f32.xlu0 %v2629_v6 }
 0x36c   : > { %v20073_v62 = vpop.eup %18185 }
 0x36d   : > { %v2632_v58 = vsel %vm2346_vm2, %v20073_v62, 0.0 }
 0x36e   : > { %2633 = vadd.xlane.f32.xlu1 %v2632_v58 }
 0x37f   : > { %17439 = vrot.lane.b32.xlu1 %v19478_v1, %s18834_s19 }
 0x381   : > { %4361 = vrot.lane.b32.xlu0 %v19418_v32, %s18834_s19 }
 0x383   : > { %4452 = vrot.lane.b32.xlu1 %v19446_v38, %s18834_s19 }
 0x385   : > { %4450 = vrot.lane.b32.xlu0 %v19422_v35, %s18834_s19 }
 0x387   : > { %4541 = vrot.lane.b32.xlu1 %v19450_v17, %s18834_s19 }
 0x389   : > { %17444 = vrot.lane.b32.xlu0 %v19510_v8, %s18834_s19 }
 0x38b   : > { %17449 = vrot.lane.b32.xlu1 %v19542_v46, %s18834_s19 }
 0x38d   : > { %4543 = vrot.lane.b32.xlu0 %v19474_v7, %s18834_s19 }
 0x38f   : > { %4634 = vrot.lane.b32.xlu1 %v19512_v39, %s18834_s19 }
 0x391   : > { %4632 = vrot.lane.b32.xlu0 %v19482_v34, %s18834_s19 }
 0x393   : > { %4723 = vrot.lane.b32.xlu1 %v19489_v33, %s18834_s19 }
 0x395   : > { %17454 = vrot.lane.b32.xlu0 %v19566_v47, %s18834_s19 }
 0x397   : > { %17459 = vrot.lane.b32.xlu1 %v19278_v12, %s18834_s19 }
 0x398   : > { %v2544_v63 = vpop.xlane.xlu1 %2543 }
 0x399   : > { %4725 = vrot.lane.b32.xlu0 %v19536_v31, %s18834_s19  ;;  %18187 = vrcp.f32 %v2544_v63  ;;  %v23401_v63 = vld [vmem:[#allocation59_spill] sm:$0xff] }
 0x39b   : > { %4816 = vrot.lane.b32.xlu1 %v19582_v19, %s18834_s19 }
 0x39c   : > { %v2541_v55 = vpop.xlane.xlu0 %2540 }
 0x39d   : > { %18189 = vrcp.f32 %v2541_v55  ;;  %4814 = vrot.lane.b32.xlu0 %v19520_v15, %s18834_s19 }
 0x39f   : > { %4905 = vrot.lane.b32.xlu1 %v19555_v54, %s18834_s19 }
 0x3a0   : > { %v2550_v0 = vpop.xlane.xlu0 %2549 }
 0x3a1   : > { %17464 = vrot.lane.b32.xlu0 %v19309_v30, %s18834_s19  ;;  %18191 = vrcp.f32 %v2550_v0  ;;  %v23402_v0 = vld [vmem:[#allocation30_spill] sm:$0xff] }
 0x3a3   : > { %17469 = vrot.lane.b32.xlu1 %v23398_v4, %s18834_s19  ;;  %v18188_v52 = vpop.eup %18187 }
 0x3a4   : > { %v2547_v42 = vpop.xlane.xlu0 %2546  ;;  %v2638_v55 = vmul.f32 %v18188_v52, %v19921_v49  ;;  %v23406_v49 = vld [vmem:[#allocation67_spill] sm:$0xff] }
 0x3a5   : > { %18193 = vrcp.f32 %v2547_v42  ;;  %4907 = vrot.lane.b32.xlu0 %v23399_v9, %s18834_s19  ;;  %v23403_v42 = vld [vmem:[#allocation39_spill] sm:$0xff] }
 0x3a7   : > { %v18190_v44 = vpop.eup %18189  ;;  %4998 = vrot.lane.b32.xlu1 %v23400_v60, %s18834_s19  ;;  %v23404_v60 = vld [vmem:[#allocation44_spill] sm:$0xff] }
 0x3a8   : > { %v2556_v6 = vpop.xlane.xlu1 %2555  ;;  %v2636_v58 = vmul.f32 %v18190_v44, %v19926_v20  ;;  %v23405_v20 = vld [vmem:[#allocation63_spill] sm:$0xff] }
 0x3a9   : > { %4996 = vrot.lane.b32.xlu0 %v23401_v63, %s18834_s19  ;;  %18195 = vrcp.f32 %v2556_v6 }
 0x3aa   : > { %15704 = vmatprep.mubr.msk.f32.mxu0 %vm2346_vm2, %v2636_v58 }
 0x3ab   : > { %15705 = vmatmul.mubr.msk.f32.vlgmr.msra.gmra.mrb[50].mxu0 %vm2346_vm2, %v2638_v55  ;;  %17474 = vrot.lane.b32.xlu1 %v23402_v0, %s18834_s19  ;;  %v18192_v44 = vpop.eup %18191  ;;  %v23407_v55 = vld [vmem:[#allocation70_spill] sm:$0xff] }
 0x3ac   : > { %16735 = vmatpush3.bf16.msra.mxu0 %v23403_v42  ;;  %v2553_v4 = vpop.xlane.xlu1 %2552  ;;  %v2642_v6 = vmul.f32 %v18192_v44, %v19931_v21  ;;  %v23409_v42 = vld [vmem:[#allocation41_spill] sm:$0xff]  ;;  %v23412_v21 = vld [vmem:[#allocation78_spill] sm:$0xff] }
 0x3ad   : > { %18197 = vrcp.f32 %v2553_v4  ;;  %16741 = vmatprep.subr.bf16.mxu0 %v23404_v60  ;;  %5087 = vrot.lane.b32.xlu0 %v23405_v20, %s18834_s19  ;;  %v23408_v4 = vld [vmem:[#allocation75_spill] sm:$0xff] }
 0x3af   : > { %v18194_v54 = vpop.eup %18193  ;;  %5178 = vrot.lane.b32.xlu1 %v23406_v49, %s18834_s19  ;;  %v23410_v49 = vld [vmem:[#allocation48_spill] sm:$0xff] }
 0x3b0   : > { %v2562_v52 = vpop.xlane.xlu0 %2561  ;;  %v2640_v58 = vmul.f32 %v18194_v54, %v19935_v40  ;;  %v23411_v54 = vld [vmem:[#allocation34_spill] sm:$0xff] }
 0x3b1   : > { %5089 = vrot.lane.b32.xlu0 %v23407_v55, %s18834_s19  ;;  %18199 = vrcp.f32 %v2562_v52 }
 0x3b2   : > { %15711 = vmatprep.mubr.msk.f32.mxu1 %vm2346_vm2, %v2640_v58 }
 0x3b3   : > { %15712 = vmatmul.mubr.msk.f32.vlgmr.msra.gmra.mrb[78].mxu1 %vm2346_vm2, %v2642_v6  ;;  %5180 = vrot.lane.b32.xlu1 %v23408_v4, %s18834_s19  ;;  %v18196_v40 = vpop.eup %18195  ;;  %v23413_v6 = vld [vmem:[#allocation71_spill] sm:$0xff] }
 0x3b4   : > { %16739 = vmatpush3.bf16.msra.mxu1 %v23409_v42  ;;  %v2559_v0 = vpop.xlane.xlu0 %2558  ;;  %v2646_v52 = vmul.f32 %v18196_v40, %v19941_v59  ;;  %v23417_v59 = vld [vmem:[#allocation38_spill] sm:$0xff] }
 0x3b5   : > { %16745 = vmatprep.subr.bf16.mxu1 %v23410_v49  ;;  %18201 = vrcp.f32 %v2559_v0  ;;  %17479 = vrot.lane.b32.xlu0 %v23411_v54, %s18834_s19  ;;  %v23414_v0 = vld [vmem:[#allocation81_spill] sm:$0xff] }
 0x3b7   : > { %v18198_v19 = vpop.eup %18197  ;;  %5271 = vrot.lane.b32.xlu1 %v23412_v21, %s18834_s19  ;;  %v23415_v21 = vld [vmem:[#allocation50_spill] sm:$0xff] }
 0x3b8   : > { %v2568_v44 = vpop.xlane.xlu1 %2567  ;;  %v2644_v58 = vmul.f32 %v18198_v19, %v19946_v23  ;;  %v23416_v19 = vld [vmem:[#allocation72_spill] sm:$0xff] }
 0x3b9   : > { %5269 = vrot.lane.b32.xlu0 %v23413_v6, %s18834_s19  ;;  %18203 = vrcp.f32 %v2568_v44  ;;  %v23419_v44 = vld [vmem:[#allocation45_spill] sm:$0xff] }
 0x3ba   : > { %15718 = vmatprep.mubr.msk.f32.mxu0 %vm2346_vm2, %v2644_v58 }
 0x3bb   : > { %15719 = vmatmul.mubr.msk.f32.vlgmr.msra.gmra.mrb[52].mxu0 %vm2346_vm2, %v2646_v52  ;;  %5362 = vrot.lane.b32.xlu1 %v23414_v0, %s18834_s19  ;;  %v18200_v23 = vpop.eup %18199  ;;  %v23418_v52 = vld [vmem:[#allocation36_spill] sm:$0xff]  ;;  %v23420_v0 = vld [vmem:[#allocation54_spill] sm:$0xff] }
 0x3bc   : > { %16743 = vmatpush3.bf16.msra.mxu0 %v23404_v60  ;;  %v2565_v42 = vpop.xlane.xlu1 %2564  ;;  %v2650_v60 = vmul.f32 %v18200_v23, %v19951_v10  ;;  %v23422_v10 = vld [vmem:[#allocation49_spill] sm:$0xff] }
 0x3bd   : > { %18205 = vrcp.f32 %v2565_v42  ;;  %16749 = vmatprep.subr.bf16.mxu0 %v23415_v21  ;;  %5360 = vrot.lane.b32.xlu0 %v23416_v19, %s18834_s19 }
 0x3bf   : > { %v18202_v4 = vpop.eup %18201  ;;  %17489 = vrot.lane.b32.xlu1 %v23417_v59, %s18834_s19 }
 0x3c0   : > { %v2574_v40 = vpop.xlane.xlu0 %2573  ;;  %v2648_v58 = vmul.f32 %v18202_v4, %v19956_v56  ;;  %v23421_v56 = vld [vmem:[#allocation40_spill] sm:$0xff] }
 0x3c1   : > { %17484 = vrot.lane.b32.xlu0 %v23418_v52, %s18834_s19  ;;  %18207 = vrcp.f32 %v2574_v40  ;;  %v23424_v40 = vld [vmem:[#allocation51_spill] sm:$0xff] }
 0x3c2   : > { %15725 = vmatprep.mubr.msk.f32.mxu1 %vm2346_vm2, %v2648_v58 }
 0x3c3   : > { %15726 = vmatmul.mubr.msk.f32.vlgmr.msra.gmra.mrb[80].mxu1 %vm2346_vm2, %v2650_v60  ;;  %17504 = vrot.lane.b32.xlu1 %v23419_v44, %s18834_s19  ;;  %v18204_v4 = vpop.eup %18203  ;;  %v23423_v60 = vld [vmem:[#allocation43_spill] sm:$0xff] }
 0x3c4   : > { %16747 = vmatpush3.bf16.msra.mxu1 %v23410_v49  ;;  %v2571_v42 = vpop.xlane.xlu0 %2570  ;;  %v2654_v49 = vmul.f32 %v18204_v4, %v19961_v28  ;;  %v23427_v28 = vld [vmem:[#allocation57_spill] sm:$0xff] }
 0x3c5   : > { %16753 = vmatprep.subr.bf16.mxu1 %v23420_v0  ;;  %18209 = vrcp.f32 %v2571_v42  ;;  %17494 = vrot.lane.b32.xlu0 %v23421_v56, %s18834_s19  ;;  %v23425_v56 = vld [vmem:[#allocation56_spill] sm:$0xff] }
 0x3c7   : > { %v18206_v52 = vpop.eup %18205  ;;  %17509 = vrot.lane.b32.xlu1 %v23422_v10, %s18834_s19 }
 0x3c8   : > { %v2580_v23 = vpop.xlane.xlu1 %2579  ;;  %v2652_v58 = vmul.f32 %v18206_v52, %v19966_v50  ;;  %v23426_v50 = vld [vmem:[#allocation55_spill] sm:$0xff] }
 0x3c9   : > { %17499 = vrot.lane.b32.xlu0 %v23423_v60, %s18834_s19  ;;  %18211 = vrcp.f32 %v2580_v23  ;;  %v23429_v23 = vld [vmem:[#allocation60_spill] sm:$0xff] }
 0x3ca   : > { %15732 = vmatprep.mubr.msk.f32.mxu0 %vm2346_vm2, %v2652_v58 }
 0x3cb   : > { %15733 = vmatmul.mubr.msk.f32.vlgmr.msra.gmra.mrb[54].mxu0 %vm2346_vm2, %v2654_v49  ;;  %17514 = vrot.lane.b32.xlu1 %v23424_v40, %s18834_s19  ;;  %v18208_v52 = vpop.eup %18207  ;;  %v23428_v49 = vld [vmem:[#allocation79_spill] sm:$0xff] }
 0x3cc   : > { %16751 = vmatpush3.bf16.msra.mxu0 %v23415_v21  ;;  %v2577_v42 = vpop.xlane.xlu1 %2576  ;;  %v2658_v21 = vmul.f32 %v18208_v52, %v19971_v29  ;;  %v23432_v52 = vld [vmem:[#allocation64_spill] sm:$0xff] }
 0x3cd   : > { %18213 = vrcp.f32 %v2577_v42  ;;  %16757 = vmatprep.subr.bf16.mxu0 %v23425_v56  ;;  %17519 = vrot.lane.b32.xlu0 %v23426_v50, %s18834_s19  ;;  %v23430_v50 = vld [vmem:[#allocation61_spill] sm:$0xff] }
 0x3cf   : > { %v18210_v60 = vpop.eup %18209  ;;  %17524 = vrot.lane.b32.xlu1 %v23427_v28, %s18834_s19 }
 0x3d0   : > { %v2586_v4 = vpop.xlane.xlu0 %2585  ;;  %v2656_v58 = vmul.f32 %v18210_v60, %v19976_v25  ;;  %v23431_v25 = vld [vmem:[#allocation29_spill] sm:$0xff] }
 0x3d1   : > { %17554 = vrot.lane.b32.xlu0 %v23428_v49, %s18834_s19  ;;  %18215 = vrcp.f32 %v2586_v4  ;;  %v23433_v4 = vld [vmem:[#allocation23_spill] sm:$0xff] }
 0x3d2   : > { %15739 = vmatprep.mubr.msk.f32.mxu1 %vm2346_vm2, %v2656_v58 }
 0x3d3   : > { %15740 = vmatmul.mubr.msk.f32.vlgmr.msra.gmra.mrb[82].mxu1 %vm2346_vm2, %v2658_v21  ;;  %17529 = vrot.lane.b32.xlu1 %v23429_v23, %s18834_s19  ;;  %v18212_v60 = vpop.eup %18211 }
 0x3d4   : > { %16755 = vmatpush3.bf16.msra.mxu1 %v23420_v0  ;;  %v2583_v42 = vpop.xlane.xlu0 %2582  ;;  %v2662_v0 = vmul.f32 %v18212_v60, %v19981_v13  ;;  %v23437_v13 = vld [vmem:[#allocation73_spill] sm:$0xff] }
 0x3d5   : > { %16761 = vmatprep.subr.bf16.mxu1 %v23430_v50  ;;  %18217 = vrcp.f32 %v2583_v42  ;;  %17579 = vrot.lane.b32.xlu0 %v23431_v25, %s18835_s20  ;;  %v23434_v42 = vld [vmem:[#allocation68_spill] sm:$0xff]  ;;  %v23435_v25 = vld [vmem:[#allocation65_spill] sm:$0xff] }
 0x3d7   : > { %v18214_v29 = vpop.eup %18213  ;;  %17534 = vrot.lane.b32.xlu1 %v23432_v52, %s18834_s19  ;;  %v2592_v58 = vpop.xlane.xlu1 %2591 }
 0x3d8   : > { %v2660_v21 = vmul.f32 %v18214_v29, %v19986_v41  ;;  %18219 = vrcp.f32 %v2592_v58  ;;  %v23436_v41 = vld [vmem:[#allocation26_spill] sm:$0xff] }
 0x3d9   : > { %7320 = vrot.lane.b32.xlu0 %v23433_v4, %s18835_s20 }
 0x3da   : > { %15746 = vmatprep.mubr.msk.f32.mxu0 %vm2346_vm2, %v2660_v21  ;;  %v23438_v21 = vld [vmem:[#allocation35_spill] sm:$0xff] }
 0x3db   : > { %15747 = vmatmul.mubr.msk.f32.vlgmr.msra.gmra.mrb[56].mxu0 %vm2346_vm2, %v2662_v0  ;;  %17539 = vrot.lane.b32.xlu1 %v23434_v42, %s18834_s19  ;;  %v2589_v49 = vpop.xlane.xlu1 %2588  ;;  %v18216_v29 = vpop.eup %18215  ;;  %v23440_v42 = vld [vmem:[#allocation69_spill] sm:$0xff] }
 0x3dc   : > { %16759 = vmatpush3.bf16.msra.mxu0 %v23425_v56  ;;  %18221 = vrcp.f32 %v2589_v49  ;;  %v2666_v0 = vmul.f32 %v18216_v29, %v19991_v16  ;;  %v23439_v56 = vld [vmem:[#allocation76_spill] sm:$0xff] }
 0x3dd   : > { %16765 = vmatprep.subr.bf16.mxu0 %v23435_v25  ;;  %7409 = vrot.lane.b32.xlu0 %v23436_v41, %s18835_s20 }
 0x3df   : > { %v18218_v4 = vpop.eup %18217  ;;  %17544 = vrot.lane.b32.xlu1 %v23437_v13, %s18834_s19  ;;  %v2598_v60 = vpop.xlane.xlu0 %2597 }
 0x3e0   : > { %v2664_v58 = vmul.f32 %v18218_v4, %v19996_v2  ;;  %18223 = vrcp.f32 %v2598_v60  ;;  %v23441_v2 = vld [vmem:[#allocation31_spill] sm:$0xff]  ;;  %v23442_v4 = vld [vmem:[#allocation82_spill] sm:$0xff] }
 0x3e1   : > { %17589 = vrot.lane.b32.xlu0 %v23438_v21, %s18835_s20 }
 0x3e2   : > { %15753 = vmatprep.mubr.msk.f32.mxu1 %vm2346_vm2, %v2664_v58  ;;  %v18220_v13 = vpop.eup %18219 }
 0x3e3   : > { %15754 = vmatmul.mubr.msk.f32.vlgmr.msra.gmra.mrb[84].mxu1 %vm2346_vm2, %v2666_v0  ;;  %17549 = vrot.lane.b32.xlu1 %v23439_v56, %s18834_s19  ;;  %v2604_v49 = vpop.xlane.xlu1 %2603 }
 0x3e4   : > { %16763 = vmatpush3.bf16.msra.mxu1 %v23430_v50  ;;  %v2595_v41 = vpop.xlane.xlu0 %2594  ;;  %v2670_v50 = vmul.f32 %v18220_v13, %v20002_v48  ;;  %v23445_v48 = vld [vmem:[#allocation21_spill] sm:$0xff] }
 0x3e5   : > { %16769 = vmatprep.subr.bf16.mxu1 %v23440_v42  ;;  %18225 = vrcp.f32 %v2595_v41  ;;  %7502 = vrot.lane.b32.xlu0 %v23441_v2, %s18835_s20  ;;  %v23443_v41 = vld [vmem:[#allocation17_spill] sm:$0xff] }
 0x3e6   : > { %v18222_v16 = vpop.eup %18221  ;;  %18227 = vrcp.f32 %v2604_v49  ;;  %v23444_v49 = vld [vmem:[#allocation74_spill] sm:$0xff] }
 0x3e7   : > { %17559 = vrot.lane.b32.xlu1 %v23442_v4, %s18834_s19  ;;  %v2601_v29 = vpop.xlane.xlu1 %2600  ;;  %v2668_v58 = vmul.f32 %v18222_v16, %v20008_v57 }
 0x3e8   : > { %18229 = vrcp.f32 %v2601_v29  ;;  %v2610_v60 = vpop.xlane.xlu0 %2609 }
 0x3e9   : > { %15760 = vmatprep.mubr.msk.f32.mxu0 %vm2346_vm2, %v2668_v58  ;;  %18231 = vrcp.f32 %v2610_v60 }
 0x3ea   : > { %15761 = vmatmul.mubr.msk.f32.vlgmr.msra.gmra.mrb[58].mxu0 %vm2346_vm2, %v2670_v50  ;;  %v18224_v57 = vpop.eup %18223 }
 0x3eb   : > { %16767 = vmatpush3.bf16.msra.mxu0 %v23435_v25  ;;  %17564 = vrot.lane.b32.xlu1 %v23443_v41, %s18835_s20  ;;  %v2616_v0 = vpop.xlane.xlu1 %2615  ;;  %v2674_v50 = vmul.f32 %v18224_v57, %v20014_v18 }
 0x3ec   : > { %16773 = vmatprep.subr.bf16.mxu0 %v23444_v49  ;;  %v2607_v2 = vpop.xlane.xlu0 %2606 }
 0x3ed   : > { %18233 = vrcp.f32 %v2607_v2  ;;  %v23446_v2 = vld [vmem:[#allocation25_spill] sm:$0xff] }
 0x3ee   : > { %18235 = vrcp.f32 %v2616_v0 }
 0x3ef   : > { %v18226_v16 = vpop.eup %18225  ;;  %17569 = vrot.lane.b32.xlu1 %v23445_v48, %s18835_s20  ;;  %v2613_v13 = vpop.xlane.xlu1 %2612 }
 0x3f0   : > { %18237 = vrcp.f32 %v2613_v13  ;;  %v2619_v29 = vpop.xlane.xlu0 %2618  ;;  %v2672_v25 = vmul.f32 %v18226_v16, %v20022_v61  ;;  %v18228_v58 = vpop.eup %18227  ;;  %v23447_v16 = vld [vmem:[#allocation77_spill] sm:$0xff] }
 0x3f1   : > { %18239 = vrcp.f32 %v2619_v29  ;;  %v2678_v61 = vmul.f32 %v18228_v58, %v20020_v24  ;;  %v23448_v29 = vld [vmem:[#allocation15_spill] sm:$0xff] }
 0x3f2   : > { %v18230_v60 = vpop.eup %18229  ;;  %15767 = vmatprep.mubr.msk.f32.mxu1 %vm2346_vm2, %v2672_v25 }
 0x3f3   : > { %15768 = vmatmul.mubr.msk.f32.vlgmr.msra.gmra.mrb[86].mxu1 %vm2346_vm2, %v2674_v50  ;;  %17574 = vrot.lane.b32.xlu1 %v23446_v2, %s18835_s20  ;;  %v2622_v0 = vpop.xlane.xlu1 %2621  ;;  %v2676_v21 = vmul.f32 %v18230_v60, %v20030_v51  ;;  %v18232_v18 = vpop.eup %18231  ;;  %v23450_v60 = vld [vmem:[#allocation85_spill] sm:$0xff] }
 0x3f4   : > { %16771 = vmatpush3.bf16.msra.mxu1 %v23440_v42  ;;  %18241 = vrcp.f32 %v2622_v0  ;;  %v2625_v13 = vpop.xlane.xlu0 %2624  ;;  %v23449_v42 = vld [vmem:[#allocation80_spill] sm:$0xff]  ;;  %v17407_v0 = vunpack.i.h.bf16 %v23450_v60 }
 0x3f5   : > { %16777 = vmatprep.subr.bf16.mxu1 %v23447_v16  ;;  %18243 = vrcp.f32 %v2625_v13  ;;  %15774 = vmatprep.mubr.msk.f32.mxu0 %vm2346_vm2, %v2676_v21  ;;  %v2682_v21 = vmul.f32 %v18232_v18, %v20032_v5  ;;  %v17406_v13 = vunpack.i.l.bf16 %v23450_v60 }
 0x3f6   : > { %15775 = vmatmul.mubr.msk.f32.vlgmr.msra.gmra.mrb[60].mxu0 %vm2346_vm2, %v2678_v61  ;;  %v23451_v61 = vld [vmem:[#allocation18_spill] sm:$0xff] }
 0x3f7   : > { %v18234_v57 = vpop.eup %18233  ;;  %16775 = vmatpush3.bf16.msra.mxu0 %v23444_v49  ;;  %7227 = vrot.lane.b32.xlu1 %v23448_v29, %s18835_s20  ;;  %v2628_v51 = vpop.xlane.xlu1 %2627  ;;  %v16788_v29 = vpack.c.bf16 %v17407_v0, %v17406_v13 }
 0x3f8   : > { %18245 = vrcp.f32 %v2628_v51  ;;  %16781 = vmatprep.subr.bf16.mxu0 %v23449_v42  ;;  %v2631_v25 = vpop.xlane.xlu0 %2630  ;;  %v2680_v24 = vmul.f32 %v18234_v57, %v20042_v53  ;;  %v18236_v58 = vpop.eup %18235 }
 0x3f9   : > { %18247 = vrcp.f32 %v2631_v25  ;;  %v2686_v18 = vmul.f32 %v18236_v58, %v20040_v37  ;;  %v23452_v25 = vld [vmem:[#allocation86_spill] sm:$0xff]  ;;  %v23454_v37 = vld [vmem:[#allocation20_spill] sm:$0xff] }
 0x3fa   : > { %v18238_v50 = vpop.eup %18237  ;;  %15781 = vmatprep.mubr.msk.f32.mxu1 %vm2346_vm2, %v2680_v24  ;;  %v17412_v24 = vunpack.i.h.bf16 %v23452_v25  ;;  %v17411_v60 = vunpack.i.l.bf16 %v23452_v25 }
 0x3fb   : > { %v18240_v49 = vpop.eup %18239  ;;  %15782 = vmatmul.mubr.msk.f32.vlgmr.msra.gmra.mrb[88].mxu1 %vm2346_vm2, %v2682_v21  ;;  %7229 = vrot.lane.b32.xlu1 %v23451_v61, %s18835_s20  ;;  %v2634_v51 = vpop.xlane.xlu1 %2633  ;;  %v2684_v53 = vmul.f32 %v18238_v50, %v20049_v26  ;;  %v23453_v21 = vld [vmem:[#allocation83_spill] sm:$0xff] }
 0x3fc   : > { %16779 = vmatpush3.bf16.msra.mxu1 %v23447_v16  ;;  %18249 = vrcp.f32 %v2634_v51  ;;  %v20271_v5 = vpop.permute.xlu0 %4361  ;;  %v2688_v57 = vmul.f32 %v18240_v49, %v20051_v36  ;;  %v16794_v13 = vpack.c.bf16 %v17412_v24, %v17411_v60  ;;  %v23456_v51 = vld [vmem:[#allocation92_spill] sm:$0xff]  ;;  %v23458_v60 = vld [vmem:[#allocation94_spill] sm:$0xff] }
 0x3fd   : > { %16785 = vmatprep.subr.bf16.mxu1 %v23453_v21  ;;  %15788 = vmatprep.mubr.msk.f32.mxu0 %vm2346_vm2, %v2684_v53  ;;  %v17417_v53 = vunpack.i.h.bf16 %v23456_v51 }
 0x3fe   : > { %v18242_v61 = vpop.eup %18241  ;;  %15789 = vmatmul.mubr.msk.f32.vlgmr.msra.gmra.mrb[62].mxu0 %vm2346_vm2, %v2686_v18  ;;  %15795 = vmatprep.mubr.msk.f32.mxu1 %vm2346_vm2, %v2688_v57 }
 0x3ff   : > { %v18244_v26 = vpop.eup %18243  ;;  %16783 = vmatpush3.bf16.msra.mxu0 %v23449_v42  ;;  %7318 = vrot.lane.b32.xlu1 %v23454_v37, %s18835_s20  ;;  %v20284_v36 = vpop.permute.xlu1 %17439  ;;  %v2690_v16 = vmul.f32 %v18242_v61, %v20057_v27  ;;  %v17416_v27 = vunpack.i.l.bf16 %v23456_v51  ;;  %v23457_v61 = vld [vmem:[#allocation32_spill] sm:$0xff] }
 0x400   : > { %16790 = vmatprep.subr.msk.bf16.mxu0 %vm19255_vm1, %v16788_v29  ;;  %v20289_v50 = vpop.permute.xlu0 %4450  ;;  %v2692_v0 = vmul.f32 %v18244_v26, %v20059_v22  ;;  %v17421_v26 = vunpack.i.l.bf16 %v23458_v60  ;;  %v23460_v51 = vld [vmem:[#allocation24_spill] sm:$0xff] }
 0x401   : > { %15796 = vmatmul.mubr.msk.f32.vlgmr.msra.gmra.mrb[90].mxu1 %vm2346_vm2, %v2690_v16  ;;  %v23459_v16 = vld [vmem:[#allocation84_spill] sm:$0xff] }
 0x402   : > { %v18246_v49 = vpop.eup %18245  ;;  %16787 = vmatpush3.bf16.msra.mxu1 %v23453_v21  ;;  %15802 = vmatprep.mubr.msk.f32.mxu0 %vm2346_vm2, %v2692_v0  ;;  %v17422_v21 = vunpack.i.h.bf16 %v23458_v60  ;;  %v16800_v0 = vpack.c.bf16 %v17417_v53, %v17416_v27  ;;  %v23462_v53 = vld [vmem:[#allocation95_spill] sm:$0xff]  ;;  %v17432_v60 = vunpack.i.h.bf16 %v19916_v11 }
 0x403   : > { %v18248_v42 = vpop.eup %18247  ;;  %16796 = vmatprep.subr.msk.bf16.mxu1 %vm19255_vm1, %v16794_v13  ;;  %17584 = vrot.lane.b32.xlu1 %v23457_v61, %s18835_s20  ;;  %v20301_v22 = vpop.permute.xlu1 %4452  ;;  %v2694_v18 = vmul.f32 %v18246_v49, %v20065_v43  ;;  %v17427_v27 = vunpack.i.h.bf16 %v23462_v53 }
 0x404   : > { %v20304_v57 = vpop.permute.xlu0 %17444  ;;  %v2696_v25 = vmul.f32 %v18248_v42, %v20067_v3  ;;  %v16806_v42 = vpack.c.bf16 %v17422_v21, %v17421_v26  ;;  %v17431_v21 = vunpack.i.l.bf16 %v19916_v11  ;;  %v17437_v11 = vunpack.i.h.bf16 %v20105_v45 }
 0x405   : > { %15803 = vmatmul.mubr.msk.f32.vlgmr.msra.gmra.mrb[64].mxu0 %vm2346_vm2, %v2694_v18  ;;  %v23461_v18 = vld [vmem:[#allocation89_spill] sm:$0xff] }
 0x406   : > { %v18250_v24 = vpop.eup %18249  ;;  %15809 = vmatprep.mubr.msk.f32.mxu1 %vm2346_vm2, %v2696_v25  ;;  %15816 = vmatprep.mubr.msk.f32.mxu0 %vm953_vm0, %v23459_v16  ;;  %v17426_v25 = vunpack.i.l.bf16 %v23462_v53  ;;  %v23464_v16 = vld [vmem:[#allocation87_spill] sm:$0xff]  ;;  %v16818_v53 = vpack.c.bf16 %v17432_v60, %v17431_v21  ;;  %v17442_v60 = vunpack.i.h.bf16 %v20284_v36  ;;  %v17441_v21 = vunpack.i.l.bf16 %v20284_v36 }
 0x407   : > { %7411 = vrot.lane.b32.xlu1 %v23460_v51, %s18835_s20  ;;  %v4542_v43 = vpop.permute.xlu1 %4541  ;;  %v2698_v49 = vmul.f32 %v18250_v24, %v20073_v62  ;;  %v23463_v62 = vld [vmem:[#allocation27_spill] sm:$0xff]  ;;  %v23469_v51 = vld [vmem:[#allocation96_spill] sm:$0xff]  ;;  %v17447_v36 = vunpack.i.h.bf16 %v20304_v57 }
 0x408   : > { %16793 = vmatpush3.bf16.xpose.msk.msra.mxu0 %vm19255_vm1, %v16788_v29  ;;  %v20318_v3 = vpop.permute.xlu0 %4543  ;;  %v16812_v26 = vpack.c.bf16 %v17427_v27, %v17426_v25  ;;  %v17436_v27 = vunpack.i.l.bf16 %v20105_v45  ;;  %v23467_v25 = vld [vmem:[#allocation93_spill] sm:$0xff] }
 0x409   : > { %16802 = vmatprep.subr.msk.bf16.mxu0 %vm19255_vm1, %v16800_v0  ;;  %15810 = vmatmul.mubr.msk.f32.vlgmr.msra.gmra.mrb[92].mxu1 %vm2346_vm2, %v2698_v49 }
 0x40a   : > { %15823 = vmatprep.mubr.msk.f32.mxu1 %vm953_vm0, %v23461_v18 }
 0x40b   : > { %16799 = vmatpush3.bf16.xpose.msk.msra.mxu1 %vm19255_vm1, %v16794_v13  ;;  %7500 = vrot.lane.b32.xlu1 %v23463_v62, %s18835_s20  ;;  %v17450_v29 = vpop.permute.xlu1 %17449  ;;  %v23465_v13 = vld [vmem:[#allocation90_spill] sm:$0xff]  ;;  %v23466_v62 = vld [vmem:[#allocation88_spill] sm:$0xff] }
 0x40c   : > { %16808 = vmatprep.subr.msk.bf16.mxu1 %vm19255_vm1, %v16806_v42  ;;  %v4633_v24 = vpop.permute.xlu0 %4632 }
 0x40f   : > { %15817 = vmatmul.mubr.msk.f32.vlgmr.msra.gmra.mrb[66].mxu0 %vm953_vm0, %v23464_v16  ;;  %v4635_v49 = vpop.permute.xlu1 %4634 }
 0x410   : > { %16805 = vmatpush3.bf16.xpose.msk.msra.mxu0 %vm19255_vm1, %v16800_v0  ;;  %15830 = vmatprep.mubr.msk.f32.mxu0 %vm953_vm0, %v23465_v13  ;;  %v17455_v18 = vpop.permute.xlu0 %17454  ;;  %v23468_v13 = vld [vmem:[#allocation91_spill] sm:$0xff] }
 0x411   : > { %16814 = vmatprep.subr.msk.bf16.mxu0 %vm19255_vm1, %v16812_v26 }
 0x412   : > { %15824 = vmatmul.mubr.msk.f32.vlgmr.msra.gmra.mrb[94].mxu1 %vm953_vm0, %v23466_v62  ;;  %v16824_v62 = vpack.c.bf16 %v17437_v11, %v17436_v27  ;;  %v17446_v11 = vunpack.i.l.bf16 %v20304_v57  ;;  %v17452_v27 = vunpack.i.h.bf16 %v17450_v29 }
 0x413   : > { %16811 = vmatpush3.bf16.xpose.msk.msra.mxu1 %vm19255_vm1, %v16806_v42  ;;  %15837 = vmatprep.mubr.msk.f32.mxu1 %vm953_vm0, %v23467_v25  ;;  %v4724_v0 = vpop.permute.xlu1 %4723  ;;  %v16830_v25 = vpack.c.bf16 %v17442_v60, %v17441_v21  ;;  %v17451_v60 = vunpack.i.l.bf16 %v17450_v29  ;;  %v17456_v29 = vunpack.i.l.bf16 %v17455_v18 }
 0x414   : > { %16820 = vmatprep.subr.msk.bf16.mxu1 %vm19255_vm1, %v16818_v53  ;;  %v4726_v16 = vpop.permute.xlu0 %4725  ;;  %v16836_v21 = vpack.c.bf16 %v17447_v36, %v17446_v11 }
 0x417   : > { %15831 = vmatmul.mubr.msk.f32.vlgmr.msra.gmra.mrb[68].mxu0 %vm953_vm0, %v23468_v13  ;;  %v17460_v45 = vpop.permute.xlu1 %17459 }
 0x418   : > { %16817 = vmatpush3.bf16.xpose.msk.msra.mxu0 %vm19255_vm1, %v16812_v26  ;;  %15844 = vmatprep.mubr.msk.f32.mxu0 %vm953_vm0, %v20099_v14  ;;  %v4815_v42 = vpop.permute.xlu0 %4814  ;;  %v17461_v13 = vunpack.i.l.bf16 %v17460_v45 }
 0x419   : > { %16826 = vmatprep.subr.msk.bf16.mxu0 %vm19255_vm1, %v16824_v62 }
 0x41a   : > { %15838 = vmatmul.mubr.msk.f32.vlgmr.msra.gmra.mrb[96].mxu1 %vm953_vm0, %v23469_v51 }
 0x41b   : > { %16823 = vmatpush3.bf16.xpose.msk.msra.mxu1 %vm19255_vm1, %v16818_v53  ;;  %15851 = vmatprep.mubr.msk.f32.mxu1 %vm953_vm0, %v20289_v50  ;;  %v4817_v26 = vpop.permute.xlu1 %4816  ;;  %v16842_v50 = vpack.c.bf16 %v17452_v27, %v17451_v60  ;;  %v17457_v53 = vunpack.i.h.bf16 %v17455_v18 }
 0x41c   : > { %16832 = vmatprep.subr.msk.bf16.mxu1 %vm19255_vm1, %v16830_v25  ;;  %v17465_v14 = vpop.permute.xlu0 %17464 }
 0x41d   : > { %v16848_v36 = vpack.c.bf16 %v17457_v53, %v17456_v29  ;;  %v17467_v18 = vunpack.i.h.bf16 %v17465_v14 }
 0x41f   : > { %15845 = vmatmul.mubr.msk.f32.vlgmr.msra.gmra.mrb[70].mxu0 %vm953_vm0, %v20271_v5  ;;  %v4906_v51 = vpop.permute.xlu1 %4905 }
 0x420   : > { %16829 = vmatpush3.bf16.xpose.msk.msra.mxu0 %vm19255_vm1, %v16824_v62  ;;  %15858 = vmatprep.mubr.msk.f32.mxu0 %vm953_vm0, %v4542_v43  ;;  %v4908_v57 = vpop.permute.xlu0 %4907  ;;  %v17462_v62 = vunpack.i.h.bf16 %v17460_v45 }
 0x421   : > { %16838 = vmatprep.subr.msk.bf16.mxu0 %vm19255_vm1, %v16836_v21 }
 0x422   : > { %15852 = vmatmul.mubr.msk.f32.vlgmr.msra.gmra.mrb[98].mxu1 %vm953_vm0, %v20301_v22 }
 0x423   : > { %16835 = vmatpush3.bf16.xpose.msk.msra.mxu1 %vm19255_vm1, %v16830_v25  ;;  %15865 = vmatprep.mubr.msk.f32.mxu1 %vm953_vm0, %v4633_v24  ;;  %v17470_v5 = vpop.permute.xlu1 %17469  ;;  %v16854_v24 = vpack.c.bf16 %v17462_v62, %v17461_v13  ;;  %v17466_v25 = vunpack.i.l.bf16 %v17465_v14 }
 0x424   : > { %16844 = vmatprep.subr.msk.bf16.mxu1 %vm19255_vm1, %v16842_v50  ;;  %v4997_v43 = vpop.permute.xlu0 %4996  ;;  %v17471_v27 = vunpack.i.l.bf16 %v17470_v5 }
 0x425   : > { %v16860_v60 = vpack.c.bf16 %v17467_v18, %v17466_v25 }
 0x427   : > { %15859 = vmatmul.mubr.msk.f32.vlgmr.msra.gmra.mrb[72].mxu0 %vm953_vm0, %v20318_v3  ;;  %v4999_v11 = vpop.permute.xlu1 %4998 }
 0x428   : > { %16841 = vmatpush3.bf16.xpose.msk.msra.mxu0 %vm19255_vm1, %v16836_v21  ;;  %15872 = vmatprep.mubr.msk.f32.mxu0 %vm953_vm0, %v4724_v0  ;;  %v5088_v22 = vpop.permute.xlu0 %5087  ;;  %v17472_v0 = vunpack.i.h.bf16 %v17470_v5 }
 0x429   : > { %16850 = vmatprep.subr.msk.bf16.mxu0 %vm19255_vm1, %v16848_v36 }
 0x42a   : > { %15866 = vmatmul.mubr.msk.f32.vlgmr.msra.gmra.mrb[100].mxu1 %vm953_vm0, %v4635_v49 }
 0x42b   : > { %16847 = vmatpush3.bf16.xpose.msk.msra.mxu1 %vm19255_vm1, %v16842_v50  ;;  %15879 = vmatprep.mubr.msk.f32.mxu1 %vm953_vm0, %v4815_v42  ;;  %v17475_v3 = vpop.permute.xlu1 %17474  ;;  %v16866_v42 = vpack.c.bf16 %v17472_v0, %v17471_v27 }
 0x42c   : > { %16856 = vmatprep.subr.msk.bf16.mxu1 %vm19255_vm1, %v16854_v24  ;;  %v5090_v45 = vpop.permute.xlu0 %5089  ;;  %v17477_v14 = vunpack.i.h.bf16 %v17475_v3  ;;  %v17476_v50 = vunpack.i.l.bf16 %v17475_v3 }
 0x42e   : > { %v16872_v5 = vpack.c.bf16 %v17477_v14, %v17476_v50 }
 0x42f   : > { %15873 = vmatmul.mubr.msk.f32.vlgmr.msra.gmra.mrb[74].mxu0 %vm953_vm0, %v4726_v16  ;;  %v5179_v21 = vpop.permute.xlu1 %5178 }
 0x430   : > { %16853 = vmatpush3.bf16.xpose.msk.msra.mxu0 %vm19255_vm1, %v16848_v36  ;;  %15886 = vmatprep.mubr.msk.f32.mxu0 %vm953_vm0, %v4906_v51  ;;  %v17480_v49 = vpop.permute.xlu0 %17479 }
 0x431   : > { %16862 = vmatprep.subr.msk.bf16.mxu0 %vm19255_vm1, %v16860_v60  ;;  %v17482_v51 = vunpack.i.h.bf16 %v17480_v49  ;;  %v17481_v29 = vunpack.i.l.bf16 %v17480_v49 }
 0x432   : > { %15880 = vmatmul.mubr.msk.f32.vlgmr.msra.gmra.mrb[102].mxu1 %vm953_vm0, %v4817_v26 }
 0x433   : > { %16859 = vmatpush3.bf16.xpose.msk.msra.mxu1 %vm19255_vm1, %v16854_v24  ;;  %15893 = vmatprep.mubr.msk.f32.mxu1 %vm953_vm0, %v4997_v43  ;;  %v5181_v16 = vpop.permute.xlu1 %5180  ;;  %v16878_v43 = vpack.c.bf16 %v17482_v51, %v17481_v29 }
 0x434   : > { %16868 = vmatprep.subr.msk.bf16.mxu1 %vm19255_vm1, %v16866_v42  ;;  %v5270_v53 = vpop.permute.xlu0 %5269 }
 0x437   : > { %15887 = vmatmul.mubr.msk.f32.vlgmr.msra.gmra.mrb[76].mxu0 %vm953_vm0, %v4908_v57  ;;  %v5272_v62 = vpop.permute.xlu1 %5271 }
 0x438   : > { %16865 = vmatpush3.bf16.xpose.msk.msra.mxu0 %vm19255_vm1, %v16860_v60  ;;  %15900 = vmatprep.mubr.msk.f32.mxu0 %vm953_vm0, %v5088_v22  ;;  %v5361_v26 = vpop.permute.xlu0 %5360 }
 0x439   : > { %16874 = vmatprep.subr.msk.bf16.mxu0 %vm19255_vm1, %v16872_v5 }
 0x43a   : > { %15894 = vmatmul.mubr.msk.f32.vlgmr.msra.gmra.mrb[104].mxu1 %vm953_vm0, %v4999_v11 }
 0x43b   : > { %16871 = vmatpush3.bf16.xpose.msk.msra.mxu1 %vm19255_vm1, %v16866_v42  ;;  %15907 = vmatprep.mubr.msk.f32.mxu1 %vm953_vm0, %v5179_v21  ;;  %v5363_v13 = vpop.permute.xlu1 %5362 }
 0x43c   : > { %16880 = vmatprep.subr.msk.bf16.mxu1 %vm19255_vm1, %v16878_v43  ;;  %v17485_v57 = vpop.permute.xlu0 %17484 }
 0x43d   : > { %v17487_v36 = vunpack.i.h.bf16 %v17485_v57  ;;  %v17486_v24 = vunpack.i.l.bf16 %v17485_v57 }
 0x43f   : > { %15901 = vmatmul.mubr.msk.f32.vlgmr.msra.gmra.mrb[78].mxu0 %vm953_vm0, %v5090_v45  ;;  %v17490_v22 = vpop.permute.xlu1 %17489  ;;  %v16884_v18 = vpack.c.bf16 %v17487_v36, %v17486_v24 }
 0x440   : > { %v17492_v25 = vunpack.i.h.bf16 %v17490_v22  ;;  %v17491_v3 = vunpack.i.l.bf16 %v17490_v22  ;;  %16877 = vmatpush3.bf16.xpose.msk.msra.mxu0 %vm19255_vm1, %v16872_v5  ;;  %15914 = vmatprep.mubr.msk.f32.mxu0 %vm953_vm0, %v5270_v53  ;;  %v17495_v11 = vpop.permute.xlu0 %17494 }
 0x441   : > { %16885 = vmatprep.subr.bf16.mxu0 %v16884_v18  ;;  %v17497_v27 = vunpack.i.h.bf16 %v17495_v11  ;;  %v17496_v60 = vunpack.i.l.bf16 %v17495_v11 }
 0x442   : > { %15908 = vmatmul.mubr.msk.f32.vlgmr.msra.gmra.mrb[106].mxu1 %vm953_vm0, %v5181_v16  ;;  %v16888_v0 = vpack.c.bf16 %v17492_v25, %v17491_v3 }
 0x443   : > { %16883 = vmatpush3.bf16.xpose.msk.msra.mxu1 %vm19255_vm1, %v16878_v43  ;;  %15921 = vmatprep.mubr.msk.f32.mxu1 %vm953_vm0, %v5361_v26  ;;  %v20433_v42 = vpack.c.bf16 %v17497_v27, %v17496_v60  ;;  %v20581_v37 = vpop.permute.xlu1 %17504 }
 0x444   : > { %v17500_v45 = vpop.permute.xlu0 %17499  ;;  %16889 = vmatprep.subr.bf16.mxu1 %v16888_v0  ;;  %23504 = vst [vmem:[#allocation104_spill] sm:$0xff] %v20581_v37 }
 0x445   : > { %v17502_v21 = vunpack.i.h.bf16 %v17500_v45  ;;  %v17501_v49 = vunpack.i.l.bf16 %v17500_v45  ;;  %23470 = vst [vmem:[#allocation39_spill] sm:$0xff] %v20433_v42 }
 0x447   : > { %15915 = vmatmul.mubr.msk.f32.vlgmr.msra.gmra.mrb[80].mxu0 %vm953_vm0, %v5272_v62  ;;  %v20437_v14 = vpack.c.bf16 %v17502_v21, %v17501_v49 }
 0x448   : > { %16887 = vmatpush3.bf16.msra.mxu0 %v16884_v18  ;;  %v20696_v33 = vpop.permute.xlu0 %17519 }
 0x449   : > { %16893 = vmatprep.subr.bf16.mxu0 %v20433_v42  ;;  %23471 = vst [vmem:[#allocation44_spill] sm:$0xff] %v20437_v14  ;;  %23518 = vst [vmem:[#allocation117_spill] sm:$0xff] %v20696_v33 }
 0x44a   : > { %15922 = vmatmul.mubr.msk.f32.vlgmr.msra.gmra.mrb[108].mxu1 %vm953_vm0, %v5363_v13 }
 0x44b   : > { %16891 = vmatpush3.bf16.msra.mxu1 %v16888_v0 }
 0x44c   : > { %16897 = vmatprep.subr.bf16.mxu1 %v20437_v14 }
 0x47e   : > { %v20440_v50 = vpop.f32.mrb[50].mxu0 }
 0x47f   : > { %23472 = vst [vmem:[#allocation41_spill] sm:$0xff] %v20440_v50  ;;  %v20442_v16 = vpop.f32.mrb[51].mxu0 }
 0x480   : > { %23473 = vst [vmem:[#allocation48_spill] sm:$0xff] %v20442_v16 }
 0x486   : > { %v20444_v53 = vpop.f32.mrb[78].mxu1 }
 0x487   : > { %23474 = vst [vmem:[#allocation50_spill] sm:$0xff] %v20444_v53  ;;  %v20446_v51 = vpop.f32.mrb[79].mxu1 }
 0x488   : > { %23475 = vst [vmem:[#allocation54_spill] sm:$0xff] %v20446_v51 }
 0x48e   : > { %v20448_v29 = vpop.f32.mrb[52].mxu0 }
 0x48f   : > { %23476 = vst [vmem:[#allocation56_spill] sm:$0xff] %v20448_v29  ;;  %v20450_v5 = vpop.f32.mrb[53].mxu0 }
 0x490   : > { %23477 = vst [vmem:[#allocation61_spill] sm:$0xff] %v20450_v5 }
 0x496   : > { %v20452_v62 = vpop.f32.mrb[80].mxu1 }
 0x497   : > { %23478 = vst [vmem:[#allocation65_spill] sm:$0xff] %v20452_v62  ;;  %v20454_v26 = vpop.f32.mrb[81].mxu1 }
 0x498   : > { %23479 = vst [vmem:[#allocation69_spill] sm:$0xff] %v20454_v26 }
 0x49e   : > { %v20456_v43 = vpop.f32.mrb[54].mxu0 }
 0x49f   : > { %23480 = vst [vmem:[#allocation74_spill] sm:$0xff] %v20456_v43  ;;  %v20458_v13 = vpop.f32.mrb[55].mxu0 }
 0x4a0   : > { %23481 = vst [vmem:[#allocation77_spill] sm:$0xff] %v20458_v13 }
 0x4a6   : > { %v20460_v57 = vpop.f32.mrb[82].mxu1 }
 0x4a7   : > { %23482 = vst [vmem:[#allocation80_spill] sm:$0xff] %v20460_v57  ;;  %v20462_v36 = vpop.f32.mrb[83].mxu1 }
 0x4a8   : > { %23483 = vst [vmem:[#allocation85_spill] sm:$0xff] %v20462_v36 }
 0x4ae   : > { %v20464_v24 = vpop.f32.mrb[56].mxu0 }
 0x4af   : > { %23484 = vst [vmem:[#allocation86_spill] sm:$0xff] %v20464_v24  ;;  %v20466_v22 = vpop.f32.mrb[57].mxu0 }
 0x4b0   : > { %23485 = vst [vmem:[#allocation83_spill] sm:$0xff] %v20466_v22 }
 0x4b6   : > { %v20468_v18 = vpop.f32.mrb[84].mxu1 }
 0x4b7   : > { %23486 = vst [vmem:[#allocation92_spill] sm:$0xff] %v20468_v18  ;;  %v20470_v25 = vpop.f32.mrb[85].mxu1 }
 0x4b8   : > { %23487 = vst [vmem:[#allocation94_spill] sm:$0xff] %v20470_v25 }
 0x4bd   : > { %v20472_v3 = vpop.f32.mrb[58].mxu0 }
 0x4be   : > { %23488 = vst [vmem:[#allocation84_spill] sm:$0xff] %v20472_v3  ;;  %v20474_v11 = vpop.f32.mrb[59].mxu0 }
 0x4bf   : > { %23489 = vst [vmem:[#allocation89_spill] sm:$0xff] %v20474_v11 }
 0x4c6   : > { %v20476_v0 = vpop.f32.mrb[86].mxu1 }
 0x4c7   : > { %23490 = vst [vmem:[#allocation95_spill] sm:$0xff] %v20476_v0  ;;  %v20478_v27 = vpop.f32.mrb[87].mxu1 }
 0x4c8   : > { %23491 = vst [vmem:[#allocation87_spill] sm:$0xff] %v20478_v27 }
 0x4c9   : > { %v20480_v60 = vpop.f32.mrb[60].mxu0 }
 0x4ca   : > { %23492 = vst [vmem:[#allocation90_spill] sm:$0xff] %v20480_v60  ;;  %v20482_v45 = vpop.f32.mrb[61].mxu0 }
 0x4cb   : > { %23493 = vst [vmem:[#allocation88_spill] sm:$0xff] %v20482_v45  ;;  %v20504_v45 = vld [vmem:[#allocation8 + $0x18] sm:$0xff] }
 0x4ce   : > { %v20484_v21 = vpop.f32.mrb[88].mxu1 }
 0x4cf   : > { %23494 = vst [vmem:[#allocation93_spill] sm:$0xff] %v20484_v21  ;;  %v20486_v49 = vpop.f32.mrb[89].mxu1  ;;  %v20506_v21 = vld [vmem:[#allocation8 + $0x10] sm:$0xff] }
 0x4d0   : > { %23495 = vst [vmem:[#allocation91_spill] sm:$0xff] %v20486_v49 }
 0x4d1   : > { %v20488_v24 = vpop.f32.mrb[62].mxu0 }
 0x4d2   : > { %23496 = vst [vmem:[#allocation96_spill] sm:$0xff] %v20488_v24  ;;  %v20490_v18 = vpop.f32.mrb[63].mxu0 }
 0x4d3   : > { %23497 = vst [vmem:[#allocation97_spill] sm:$0xff] %v20490_v18 }
 0x4d4   : > { %v20492_v25 = vpop.f32.mrb[90].mxu1 }
 0x4d5   : > { %23498 = vst [vmem:[#allocation98_spill] sm:$0xff] %v20492_v25  ;;  %v20494_v3 = vpop.f32.mrb[91].mxu1 }
 0x4d6   : > { %23499 = vst [vmem:[#allocation99_spill] sm:$0xff] %v20494_v3 }
 0x4d8   : > { %v20496_v11 = vpop.f32.mrb[64].mxu0 }
 0x4d9   : > { %23500 = vst [vmem:[#allocation100_spill] sm:$0xff] %v20496_v11  ;;  %v20498_v0 = vpop.f32.mrb[65].mxu0 }
 0x4da   : > { %23501 = vst [vmem:[#allocation101_spill] sm:$0xff] %v20498_v0 }
 0x4dc   : > { %v20500_v27 = vpop.f32.mrb[92].mxu1 }
 0x4dd   : > { %23502 = vst [vmem:[#allocation102_spill] sm:$0xff] %v20500_v27  ;;  %v20502_v60 = vpop.f32.mrb[93].mxu1 }
 0x4de   : > { %23503 = vst [vmem:[#allocation103_spill] sm:$0xff] %v20502_v60 }
 0x4e2   : > { %v15818_v49 = vpop.f32.mrb[66].mxu0 }
 0x4e3   : > { %v20509_v24 = vadd.f32 %v15818_v49, %v20504_v45  ;;  %v4077_v18 = vpop.f32.mrb[67].mxu0 }
 0x4e4   : > { %v20512_v25 = vadd.f32 %v4077_v18, %v20506_v21 }
 0x4e5   : > { %v15825_v3 = vpop.f32.mrb[94].mxu1  ;;  %v5454_v11 = vsel %vm2346_vm2, %v20509_v24, -inf }
 0x4e6   : > { %v20517_v27 = vadd.f32 %v15825_v3, %v20504_v45  ;;  %5455 = vmax.xlane.f32.xlu1 %v5454_v11  ;;  %v4168_v60 = vpop.f32.mrb[95].mxu1  ;;  %v5451_v0 = vsel %vm2346_vm2, %v20512_v25, -inf }
 0x4e7   : > { %5452 = vmax.xlane.f32.xlu0 %v5451_v0  ;;  %v20522_v49 = vadd.f32 %v4168_v60, %v20506_v21 }
 0x4e8   : > { %v5460_v18 = vsel %vm2346_vm2, %v20517_v27, -inf }
 0x4e9   : > { %v5457_v60 = vsel %vm2346_vm2, %v20522_v49, -inf }
 0x4ea   : > { %v15832_v22 = vpop.f32.mrb[68].mxu0 }
 0x4eb   : > { %v20527_v57 = vadd.f32 %v15832_v22, %v20504_v45  ;;  %v4259_v36 = vpop.f32.mrb[69].mxu0  ;;  %5461 = vmax.xlane.f32.xlu0 %v5460_v18 }
 0x4ec   : > { %v20532_v43 = vadd.f32 %v4259_v36, %v20506_v21 }
 0x4ed   : > { %v15839_v3 = vpop.f32.mrb[96].mxu1  ;;  %v5466_v11 = vsel %vm2346_vm2, %v20527_v57, -inf }
 0x4ee   : > { %5467 = vmax.xlane.f32.xlu1 %v5466_v11  ;;  %v4350_v0 = vpop.f32.mrb[97].mxu1  ;;  %v20537_v13 = vadd.f32 %v15839_v3, %v20504_v45  ;;  %v5463_v18 = vsel %vm2346_vm2, %v20532_v43, -inf }
 0x4ef   : > { %5458 = vmax.xlane.f32.xlu0 %v5457_v60  ;;  %v20550_v60 = vadd.f32 %v4350_v0, %v20506_v21 }
 0x4f0   : > { %v5472_v5 = vsel %vm2346_vm2, %v20537_v13, -inf }
 0x4f1   : > { %v5469_v53 = vsel %vm2346_vm2, %v20550_v60, -inf }
 0x4f2   : > { %v15846_v22 = vpop.f32.mrb[70].mxu0 }
 0x4f3   : > { %v20542_v62 = vadd.f32 %v15846_v22, %v20504_v45  ;;  %5464 = vmax.xlane.f32.xlu0 %v5463_v18  ;;  %v4441_v26 = vpop.f32.mrb[71].mxu0 }
 0x4f4   : > { %v20545_v36 = vadd.f32 %v4441_v26, %v20506_v21 }
 0x4f5   : > { %v15853_v11 = vpop.f32.mrb[98].mxu1  ;;  %v5478_v29 = vsel %vm2346_vm2, %v20542_v62, -inf }
 0x4f6   : > { %5479 = vmax.xlane.f32.xlu1 %v5478_v29  ;;  %v4532_v3 = vpop.f32.mrb[99].mxu1  ;;  %v5475_v22 = vsel %vm2346_vm2, %v20545_v36, -inf  ;;  %v20557_v18 = vadd.f32 %v15853_v11, %v20504_v45 }
 0x4f7   : > { %5473 = vmax.xlane.f32.xlu0 %v5472_v5  ;;  %v20570_v11 = vadd.f32 %v4532_v3, %v20506_v21 }
 0x4f8   : > { %v5484_v50 = vsel %vm2346_vm2, %v20557_v18, -inf }
 0x4f9   : > { %v5481_v61 = vsel %vm2346_vm2, %v20570_v11, -inf }
 0x4fa   : > { %5476 = vmax.xlane.f32.xlu1 %v5475_v22  ;;  %v15860_v26 = vpop.f32.mrb[72].mxu0 }
 0x4fb   : > { %v20562_v0 = vadd.f32 %v15860_v26, %v20504_v45  ;;  %5470 = vmax.xlane.f32.xlu0 %v5469_v53  ;;  %v4623_v29 = vpop.f32.mrb[73].mxu0 }
 0x4fc   : > { %v20565_v51 = vadd.f32 %v4623_v29, %v20506_v21 }
 0x4fd   : > { %v15867_v5 = vpop.f32.mrb[100].mxu1  ;;  %v5490_v16 = vsel %vm2346_vm2, %v20562_v0, -inf }
 0x4fe   : > { %v4714_v22 = vpop.f32.mrb[101].mxu1  ;;  %5491 = vmax.xlane.f32.xlu1 %v5490_v16  ;;  %v5487_v53 = vsel %vm2346_vm2, %v20565_v51, -inf  ;;  %v20577_v26 = vadd.f32 %v15867_v5, %v20504_v45 }
 0x4ff   : > { %5485 = vmax.xlane.f32.xlu0 %v5484_v50  ;;  %v20592_v2 = vadd.f32 %v4714_v22, %v20506_v21 }
 0x500   : > { %v5496_v48 = vsel %vm2346_vm2, %v20577_v26, -inf }
 0x501   : > { %v5493_v22 = vsel %vm2346_vm2, %v20592_v2, -inf }
 0x502   : > { %v15874_v29 = vpop.f32.mrb[74].mxu0  ;;  %5488 = vmax.xlane.f32.xlu1 %v5487_v53 }
 0x503   : > { %v20584_v3 = vadd.f32 %v15874_v29, %v20504_v45  ;;  %5482 = vmax.xlane.f32.xlu0 %v5481_v61  ;;  %v4805_v16 = vpop.f32.mrb[75].mxu0  ;;  %v20596_v29 = vpop.permute.xlu1 %17509 }
 0x504   : > { %v20587_v50 = vadd.f32 %v4805_v16, %v20506_v21  ;;  %23505 = vst [vmem:[#allocation105_spill] sm:$0xff] %v20596_v29 }
 0x505   : > { %v15881_v58 = vpop.f32.mrb[102].mxu1  ;;  %v5502_v5 = vsel %vm2346_vm2, %v20584_v3, -inf }
 0x506   : > { %v4896_v53 = vpop.f32.mrb[103].mxu1  ;;  %5503 = vmax.xlane.f32.xlu1 %v5502_v5  ;;  %v5499_v61 = vsel %vm2346_vm2, %v20587_v50, -inf  ;;  %v20601_v16 = vadd.f32 %v15881_v58, %v20504_v45 }
 0x507   : > { %5497 = vmax.xlane.f32.xlu0 %v5496_v48  ;;  %v20614_v58 = vadd.f32 %v4896_v53, %v20506_v21  ;;  %v20618_v28 = vpop.permute.xlu1 %17514 }
 0x508   : > { %23506 = vst [vmem:[#allocation106_spill] sm:$0xff] %v20618_v28 }
 0x509   : > { %v5505_v53 = vsel %vm2346_vm2, %v20614_v58, -inf }
 0x50a   : > { %v15888_v41 = vpop.f32.mrb[76].mxu0  ;;  %5500 = vmax.xlane.f32.xlu1 %v5499_v61  ;;  %v5508_v61 = vsel %vm2346_vm2, %v20601_v16, -inf }
 0x50b   : > { %v20606_v4 = vadd.f32 %v15888_v41, %v20504_v45  ;;  %5494 = vmax.xlane.f32.xlu0 %v5493_v22  ;;  %v4987_v5 = vpop.f32.mrb[77].mxu0  ;;  %v20630_v40 = vpop.permute.xlu1 %17524 }
 0x50c   : > { %v20609_v48 = vadd.f32 %v4987_v5, %v20506_v21  ;;  %23507 = vst [vmem:[#allocation107_spill] sm:$0xff] %v20630_v40 }
 0x50d   : > { %v15895_v56 = vpop.f32.mrb[104].mxu1  ;;  %v5514_v52 = vsel %vm2346_vm2, %v20606_v4, -inf }
 0x50e   : > { %v5078_v23 = vpop.f32.mrb[105].mxu1  ;;  %5515 = vmax.xlane.f32.xlu1 %v5514_v52  ;;  %v5511_v41 = vsel %vm2346_vm2, %v20609_v48, -inf  ;;  %v20623_v22 = vadd.f32 %v15895_v56, %v20504_v45 }
 0x50f   : > { %5509 = vmax.xlane.f32.xlu0 %v5508_v61  ;;  %v20638_v29 = vadd.f32 %v5078_v23, %v20506_v21  ;;  %v20652_v42 = vpop.permute.xlu1 %17529 }
 0x510   : > { %23508 = vst [vmem:[#allocation108_spill] sm:$0xff] %v20652_v42 }
 0x511   : > { %v5517_v23 = vsel %vm2346_vm2, %v20638_v29, -inf }
 0x512   : > { %v15902_v5 = vpop.f32.mrb[78].mxu0  ;;  %5512 = vmax.xlane.f32.xlu1 %v5511_v41 }
 0x513   : > { %v20628_v14 = vadd.f32 %v15902_v5, %v20504_v45  ;;  %5506 = vmax.xlane.f32.xlu0 %v5505_v53  ;;  %v5169_v52 = vpop.f32.mrb[79].mxu0  ;;  %v5520_v5 = vsel %vm2346_vm2, %v20623_v22, -inf }
 0x514   : > { %v20633_v61 = vadd.f32 %v5169_v52, %v20506_v21 }
 0x515   : > { %v15909_v28 = vpop.f32.mrb[106].mxu1  ;;  %v5526_v56 = vsel %vm2346_vm2, %v20628_v14, -inf }
 0x516   : > { %v5260_v41 = vpop.f32.mrb[107].mxu1  ;;  %5527 = vmax.xlane.f32.xlu1 %v5526_v56  ;;  %v20643_v53 = vadd.f32 %v15909_v28, %v20504_v45  ;;  %v5523_v52 = vsel %vm2346_vm2, %v20633_v61, -inf }
 0x517   : > { %5521 = vmax.xlane.f32.xlu0 %v5520_v5  ;;  %v20648_v40 = vadd.f32 %v5260_v41, %v20506_v21 }
 0x518   : > { %v5532_v12 = vsel %vm2346_vm2, %v20643_v53, -inf }
 0x519   : > { %v5529_v42 = vsel %vm2346_vm2, %v20648_v40, -inf }
 0x51a   : > { %v15916_v10 = vpop.f32.mrb[80].mxu0  ;;  %5524 = vmax.xlane.f32.xlu1 %v5523_v52 }
 0x51b   : > { %5518 = vmax.xlane.f32.xlu0 %v5517_v23  ;;  %v5351_v56 = vpop.f32.mrb[81].mxu0  ;;  %v20655_v5 = vadd.f32 %v15916_v10, %v20504_v45  ;;  %v20670_v10 = vpop.permute.xlu1 %17534 }
 0x51c   : > { %v20660_v44 = vadd.f32 %v5351_v56, %v20506_v21  ;;  %23509 = vst [vmem:[#allocation109_spill] sm:$0xff] %v20670_v10 }
 0x51d   : > { %v15923_v28 = vpop.f32.mrb[108].mxu1  ;;  %v5538_v37 = vsel %vm2346_vm2, %v20655_v5, -inf }
 0x51e   : > { %v20663_v41 = vadd.f32 %v15923_v28, %v20504_v45  ;;  %v5442_v52 = vpop.f32.mrb[109].mxu1  ;;  %5533 = vmax.xlane.f32.xlu1 %v5532_v12  ;;  %v5535_v56 = vsel %vm2346_vm2, %v20660_v44, -inf }
 0x51f   : > { %v20668_v23 = vadd.f32 %v5442_v52, %v20506_v21  ;;  %5530 = vmax.xlane.f32.xlu0 %v5529_v42  ;;  %v20680_v21 = vpop.permute.xlu1 %17539 }
 0x520   : > { %v5544_v12 = vsel %vm2346_vm2, %v20663_v41, -inf  ;;  %23510 = vst [vmem:[#allocation110_spill] sm:$0xff] %v20680_v21 }
 0x521   : > { %v5541_v45 = vsel %vm2346_vm2, %v20668_v23, -inf }
 0x522   : > { %5539 = vmax.xlane.f32.xlu1 %v5538_v37  ;;  %v23513_v37 = vld [vmem:[#allocation37_spill] sm:$0xff] }
 0x523   : > { %5536 = vmax.xlane.f32.xlu0 %v5535_v56  ;;  %v20682_v42 = vpop.permute.xlu1 %17544 }
 0x524   : > { %23511 = vst [vmem:[#allocation111_spill] sm:$0xff] %v20682_v42 }
 0x526   : > { %5545 = vmax.xlane.f32.xlu1 %v5544_v12 }
 0x527   : > { %5542 = vmax.xlane.f32.xlu0 %v5541_v45  ;;  %v20684_v28 = vpop.permute.xlu1 %17549  ;;  %v20700_v45 = vpop.permute.xlu0 %17554 }
 0x528   : > { %23512 = vst [vmem:[#allocation112_spill] sm:$0xff] %v20684_v28  ;;  %23520 = vst [vmem:[#allocation119_spill] sm:$0xff] %v20700_v45 }
 0x52b   : > { %v20688_v52 = vpop.permute.xlu1 %17559  ;;  %v20704_v28 = vpop.permute.xlu0 %17579 }
 0x52c   : > { %23514 = vst [vmem:[#allocation113_spill] sm:$0xff] %v20688_v52  ;;  %23522 = vst [vmem:[#allocation121_spill] sm:$0xff] %v20704_v28 }
 0x52f   : > { %v20690_v56 = vpop.permute.xlu1 %17564 }
 0x530   : > { %23515 = vst [vmem:[#allocation114_spill] sm:$0xff] %v20690_v56 }
 0x533   : > { %v20692_v10 = vpop.permute.xlu1 %17569 }
 0x534   : > { %23516 = vst [vmem:[#allocation115_spill] sm:$0xff] %v20692_v10 }
 0x537   : > { %17594 = vrot.lane.b32.xlu1 %v23513_v37, %s18835_s20  ;;  %v20694_v12 = vpop.permute.xlu1 %17574  ;;  %v20708_v37 = vpop.permute.xlu0 %7320 }
 0x538   : > { %23517 = vst [vmem:[#allocation116_spill] sm:$0xff] %v20694_v12  ;;  %23524 = vst [vmem:[#allocation123_spill] sm:$0xff] %v20708_v37 }
 0x53b   : > { %v20698_v59 = vpop.permute.xlu1 %7227  ;;  %v20712_v56 = vpop.permute.xlu0 %7409 }
 0x53c   : > { %23519 = vst [vmem:[#allocation118_spill] sm:$0xff] %v20698_v59  ;;  %23526 = vst [vmem:[#allocation125_spill] sm:$0xff] %v20712_v56 }
 0x53f   : > { %v20702_v42 = vpop.permute.xlu1 %7229  ;;  %v20716_v12 = vpop.permute.xlu0 %17589 }
 0x540   : > { %23521 = vst [vmem:[#allocation120_spill] sm:$0xff] %v20702_v42  ;;  %23528 = vst [vmem:[#allocation127_spill] sm:$0xff] %v20716_v12 }
 0x543   : > { %v20706_v21 = vpop.permute.xlu1 %7318  ;;  %v20720_v59 = vpop.permute.xlu0 %7502 }
 0x544   : > { %23523 = vst [vmem:[#allocation122_spill] sm:$0xff] %v20706_v21  ;;  %23530 = vst [vmem:[#allocation129_spill] sm:$0xff] %v20720_v59 }
 0x547   : > { %v20710_v52 = vpop.permute.xlu1 %17584 }
 0x548   : > { %23525 = vst [vmem:[#allocation124_spill] sm:$0xff] %v20710_v52 }
 0x54b   : > { %v20714_v10 = vpop.permute.xlu1 %7411 }
 0x54c   : > { %23527 = vst [vmem:[#allocation126_spill] sm:$0xff] %v20714_v10 }
 0x54f   : > { %v20718_v33 = vpop.permute.xlu1 %7500 }
 0x550   : > { %23529 = vst [vmem:[#allocation128_spill] sm:$0xff] %v20718_v33 }
 0x573   : > { %v5456_v45 = vpop.xlane.xlu1 %5455 }
 0x574   : > { %v5548_v42 = vsub.f32 %v20509_v24, %v5456_v45  ;;  %v5453_v28 = vpop.xlane.xlu0 %5452 }
 0x575   : > { %v5547_v21 = vsub.f32 %v20512_v25, %v5453_v28 }
 0x576   : > { %v5581_v39 = vmul.f32 1.442695, %v5548_v42 }
 0x577   : > { %v5579_v37 = vmul.f32 1.442695, %v5547_v21 }
 0x578   : > { %18251 = vpow2.f32 %v5581_v39  ;;  %v5462_v52 = vpop.xlane.xlu0 %5461 }
 0x579   : > { %18253 = vpow2.f32 %v5579_v37  ;;  %v5550_v56 = vsub.f32 %v20517_v27, %v5462_v52 }
 0x57b   : > { %v5585_v10 = vmul.f32 1.442695, %v5550_v56  ;;  %v5468_v19 = vpop.xlane.xlu1 %5467 }
 0x57c   : > { %v5552_v12 = vsub.f32 %v20527_v57, %v5468_v19  ;;  %v5459_v33 = vpop.xlane.xlu0 %5458 }
 0x57d   : > { %18255 = vpow2.f32 %v5585_v10  ;;  %v5549_v59 = vsub.f32 %v20522_v49, %v5459_v33 }
 0x57e   : > { %v5589_v46 = vmul.f32 1.442695, %v5552_v12 }
 0x57f   : > { %v5583_v24 = vmul.f32 1.442695, %v5549_v59 }
 0x580   : > { %18257 = vpow2.f32 %v5589_v46  ;;  %v5465_v45 = vpop.xlane.xlu0 %5464 }
 0x581   : > { %18259 = vpow2.f32 %v5583_v24  ;;  %v5551_v25 = vsub.f32 %v20532_v43, %v5465_v45 }
 0x582   : > { %v20728_v39 = vpop.eup %18251 }
 0x583   : > { %v20730_v21 = vpop.eup %18253  ;;  %v5587_v27 = vmul.f32 1.442695, %v5551_v25  ;;  %v5480_v42 = vpop.xlane.xlu1 %5479  ;;  %v5646_v19 = vsel %vm2346_vm2, %v20728_v39, 0.0 }
 0x584   : > { %v5556_v57 = vsub.f32 %v20542_v62, %v5480_v42  ;;  %v5474_v10 = vpop.xlane.xlu0 %5473  ;;  %5647 = vadd.xlane.f32.xlu1 %v5646_v19  ;;  %v5643_v33 = vsel %vm2346_vm2, %v20730_v21, 0.0 }
 0x585   : > { %18261 = vpow2.f32 %v5587_v27  ;;  %v5554_v46 = vsub.f32 %v20537_v13, %v5474_v10  ;;  %5644 = vadd.xlane.f32.xlu0 %v5643_v33 }
 0x586   : > { %v5597_v59 = vmul.f32 1.442695, %v5556_v57 }
 0x587   : > { %v20738_v43 = vpop.eup %18255  ;;  %v5593_v49 = vmul.f32 1.442695, %v5554_v46  ;;  %v5477_v28 = vpop.xlane.xlu1 %5476 }
 0x588   : > { %18263 = vpow2.f32 %v5597_v59  ;;  %v5555_v37 = vsub.f32 %v20545_v36, %v5477_v28  ;;  %v5471_v52 = vpop.xlane.xlu0 %5470  ;;  %v5652_v62 = vsel %vm2346_vm2, %v20738_v43, 0.0 }
 0x589   : > { %18265 = vpow2.f32 %v5593_v49  ;;  %v5553_v56 = vsub.f32 %v20550_v60, %v5471_v52  ;;  %5653 = vadd.xlane.f32.xlu0 %v5652_v62 }
 0x58a   : > { %v20744_v12 = vpop.eup %18257  ;;  %v5595_v13 = vmul.f32 1.442695, %v5555_v37 }
 0x58b   : > { %v20746_v24 = vpop.eup %18259  ;;  %v5591_v45 = vmul.f32 1.442695, %v5553_v56  ;;  %v5492_v25 = vpop.xlane.xlu1 %5491  ;;  %v5658_v27 = vsel %vm2346_vm2, %v20744_v12, 0.0 }
 0x58c   : > { %18267 = vpow2.f32 %v5595_v13  ;;  %v5560_v36 = vsub.f32 %v20562_v0, %v5492_v25  ;;  %v5486_v42 = vpop.xlane.xlu0 %5485  ;;  %5659 = vadd.xlane.f32.xlu1 %v5658_v27  ;;  %v5649_v19 = vsel %vm2346_vm2, %v20746_v24, 0.0 }
 0x58d   : > { %18269 = vpow2.f32 %v5591_v45  ;;  %v5558_v60 = vsub.f32 %v20557_v18, %v5486_v42  ;;  %5650 = vadd.xlane.f32.xlu0 %v5649_v19 }
 0x58e   : > { %v5605_v57 = vmul.f32 1.442695, %v5560_v36 }
 0x58f   : > { %v20754_v10 = vpop.eup %18261  ;;  %v5601_v33 = vmul.f32 1.442695, %v5558_v60  ;;  %v5489_v46 = vpop.xlane.xlu1 %5488 }
 0x590   : > { %18271 = vpow2.f32 %v5605_v57  ;;  %v5559_v59 = vsub.f32 %v20565_v51, %v5489_v46  ;;  %v5483_v49 = vpop.xlane.xlu0 %5482  ;;  %v5655_v0 = vsel %vm2346_vm2, %v20754_v10, 0.0 }
 0x591   : > { %18273 = vpow2.f32 %v5601_v33  ;;  %v5557_v28 = vsub.f32 %v20570_v11, %v5483_v49  ;;  %5656 = vadd.xlane.f32.xlu1 %v5655_v0 }
 0x592   : > { %v20760_v37 = vpop.eup %18263  ;;  %v5603_v18 = vmul.f32 1.442695, %v5559_v59 }
 0x593   : > { %v20762_v52 = vpop.eup %18265  ;;  %v5599_v62 = vmul.f32 1.442695, %v5557_v28  ;;  %v5504_v56 = vpop.xlane.xlu1 %5503  ;;  %v5670_v13 = vsel %vm2346_vm2, %v20760_v37, 0.0 }
 0x594   : > { %18275 = vpow2.f32 %v5603_v18  ;;  %v5564_v51 = vsub.f32 %v20584_v3, %v5504_v56  ;;  %v5498_v45 = vpop.xlane.xlu0 %5497  ;;  %v5664_v25 = vsel %vm2346_vm2, %v20762_v52, 0.0 }
 0x595   : > { %18277 = vpow2.f32 %v5599_v62  ;;  %v5562_v11 = vsub.f32 %v20577_v26, %v5498_v45  ;;  %5665 = vadd.xlane.f32.xlu0 %v5664_v25  ;;  %5671 = vadd.xlane.f32.xlu1 %v5670_v13 }
 0x596   : > { %v20770_v27 = vpop.eup %18267  ;;  %v5613_v36 = vmul.f32 1.442695, %v5564_v51 }
 0x597   : > { %v20772_v42 = vpop.eup %18269  ;;  %v5609_v19 = vmul.f32 1.442695, %v5562_v11  ;;  %v5501_v60 = vpop.xlane.xlu1 %5500  ;;  %v5667_v57 = vsel %vm2346_vm2, %v20770_v27, 0.0 }
 0x598   : > { %18279 = vpow2.f32 %v5613_v36  ;;  %v5563_v3 = vsub.f32 %v20587_v50, %v5501_v60  ;;  %v5495_v33 = vpop.xlane.xlu0 %5494  ;;  %v5661_v46 = vsel %vm2346_vm2, %v20772_v42, 0.0 }
 0x599   : > { %18281 = vpow2.f32 %v5609_v19  ;;  %v5561_v26 = vsub.f32 %v20592_v2, %v5495_v33  ;;  %5662 = vadd.xlane.f32.xlu0 %v5661_v46  ;;  %5668 = vadd.xlane.f32.xlu1 %v5667_v57 }
 0x59a   : > { %v20780_v59 = vpop.eup %18271  ;;  %v5611_v49 = vmul.f32 1.442695, %v5563_v3 }
 0x59b   : > { %v20782_v0 = vpop.eup %18273  ;;  %v5607_v28 = vmul.f32 1.442695, %v5561_v26  ;;  %v5516_v18 = vpop.xlane.xlu1 %5515  ;;  %v5682_v62 = vsel %vm2346_vm2, %v20780_v59, 0.0 }
 0x59c   : > { %18283 = vpow2.f32 %v5611_v49  ;;  %v5568_v50 = vsub.f32 %v20606_v4, %v5516_v18  ;;  %v5510_v56 = vpop.xlane.xlu0 %5509  ;;  %v5676_v13 = vsel %vm2346_vm2, %v20782_v0, 0.0 }
 0x59d   : > { %18285 = vpow2.f32 %v5607_v28  ;;  %v5566_v2 = vsub.f32 %v20601_v16, %v5510_v56  ;;  %5677 = vadd.xlane.f32.xlu0 %v5676_v13  ;;  %5683 = vadd.xlane.f32.xlu1 %v5682_v62 }
 0x59e   : > { %v20790_v51 = vpop.eup %18275  ;;  %v5621_v45 = vmul.f32 1.442695, %v5568_v50 }
 0x59f   : > { %v20792_v25 = vpop.eup %18277  ;;  %v5617_v11 = vmul.f32 1.442695, %v5566_v2  ;;  %v5513_v36 = vpop.xlane.xlu1 %5512  ;;  %v5679_v19 = vsel %vm2346_vm2, %v20790_v51, 0.0 }
 0x5a0   : > { %18287 = vpow2.f32 %v5621_v45  ;;  %v5567_v4 = vsub.f32 %v20609_v48, %v5513_v36  ;;  %v5507_v60 = vpop.xlane.xlu0 %5506  ;;  %v5673_v57 = vsel %vm2346_vm2, %v20792_v25, 0.0 }
 0x5a1   : > { %18289 = vpow2.f32 %v5617_v11  ;;  %v5565_v16 = vsub.f32 %v20614_v58, %v5507_v60  ;;  %5674 = vadd.xlane.f32.xlu0 %v5673_v57  ;;  %5680 = vadd.xlane.f32.xlu1 %v5679_v19 }
 0x5a2   : > { %v20800_v3 = vpop.eup %18279  ;;  %v5619_v33 = vmul.f32 1.442695, %v5567_v4 }
 0x5a3   : > { %v20802_v46 = vpop.eup %18281  ;;  %v5615_v26 = vmul.f32 1.442695, %v5565_v16  ;;  %v5528_v49 = vpop.xlane.xlu1 %5527  ;;  %v5694_v28 = vsel %vm2346_vm2, %v20800_v3, 0.0 }
 0x5a4   : > { %18291 = vpow2.f32 %v5619_v33  ;;  %v5522_v48 = vpop.xlane.xlu0 %5521  ;;  %v5688_v18 = vsel %vm2346_vm2, %v20802_v46, 0.0  ;;  %v5572_v56 = vsub.f32 %v20628_v14, %v5528_v49 }
 0x5a5   : > { %18293 = vpow2.f32 %v5615_v26  ;;  %v5570_v58 = vsub.f32 %v20623_v22, %v5522_v48  ;;  %5689 = vadd.xlane.f32.xlu0 %v5688_v18  ;;  %5695 = vadd.xlane.f32.xlu1 %v5694_v28 }
 0x5a6   : > { %v20809_v62 = vpop.eup %18283  ;;  %v5629_v60 = vmul.f32 1.442695, %v5572_v56 }
 0x5a7   : > { %v20811_v50 = vpop.eup %18285  ;;  %v5625_v13 = vmul.f32 1.442695, %v5570_v58  ;;  %v5525_v2 = vpop.xlane.xlu1 %5524  ;;  %v5691_v45 = vsel %vm2346_vm2, %v20809_v62, 0.0 }
 0x5a8   : > { %v5519_v11 = vpop.xlane.xlu0 %5518  ;;  %v5685_v36 = vsel %vm2346_vm2, %v20811_v50, 0.0  ;;  %v5571_v14 = vsub.f32 %v20633_v61, %v5525_v2 }
 0x5a9   : > { %18295 = vpow2.f32 %v5625_v13  ;;  %v5569_v22 = vsub.f32 %v20638_v29, %v5519_v11  ;;  %5686 = vadd.xlane.f32.xlu0 %v5685_v36  ;;  %5692 = vadd.xlane.f32.xlu1 %v5691_v45 }
 0x5aa   : > { %v20819_v19 = vpop.eup %18287  ;;  %v5627_v28 = vmul.f32 1.442695, %v5571_v14 }
 0x5ab   : > { %v20821_v4 = vpop.eup %18289  ;;  %v5623_v57 = vmul.f32 1.442695, %v5569_v22  ;;  %v5534_v16 = vpop.xlane.xlu1 %5533  ;;  %v5706_v33 = vsel %vm2346_vm2, %v20819_v19, 0.0 }
 0x5ac   : > { %v5700_v26 = vsel %vm2346_vm2, %v20821_v4, 0.0  ;;  %v5574_v48 = vsub.f32 %v20643_v53, %v5534_v16 }
 0x5ad   : > { %18297 = vpow2.f32 %v5623_v57  ;;  %5701 = vadd.xlane.f32.xlu0 %v5700_v26  ;;  %5707 = vadd.xlane.f32.xlu1 %v5706_v33  ;;  %v23531_v26 = vld [vmem:[#allocation33_spill] sm:$0xff] }
 0x5ae   : > { %v20828_v29 = vpop.eup %18291  ;;  %18299 = vpow2.f32 %v5629_v60  ;;  %v5633_v13 = vmul.f32 1.442695, %v5574_v48  ;;  %v5531_v48 = vpop.xlane.xlu0 %5530 }
 0x5af   : > { %v20830_v49 = vpop.eup %18293  ;;  %v5703_v61 = vsel %vm2346_vm2, %v20828_v29, 0.0  ;;  %v5540_v18 = vpop.xlane.xlu1 %5539  ;;  %18301 = vpow2.f32 %v5627_v28 }
 0x5b0   : > { %v5697_v58 = vsel %vm2346_vm2, %v20830_v49, 0.0  ;;  %v5576_v2 = vsub.f32 %v20655_v5, %v5540_v18  ;;  %18303 = vpow2.f32 %v5633_v13 }
 0x5b1   : > { %5698 = vadd.xlane.f32.xlu0 %v5697_v58  ;;  %5704 = vadd.xlane.f32.xlu1 %v5703_v61  ;;  %v5573_v61 = vsub.f32 %v20648_v40, %v5531_v48 }
 0x5b2   : > { %v5637_v11 = vmul.f32 1.442695, %v5576_v2  ;;  %v5537_v18 = vpop.xlane.xlu0 %5536 }
 0x5b3   : > { %v20837_v56 = vpop.eup %18295  ;;  %v5631_v58 = vmul.f32 1.442695, %v5573_v61  ;;  %v5575_v13 = vsub.f32 %v20660_v44, %v5537_v18  ;;  %v5546_v2 = vpop.xlane.xlu1 %5545 }
 0x5b4   : > { %v5712_v45 = vsel %vm2346_vm2, %v20837_v56, 0.0  ;;  %18305 = vpow2.f32 %v5637_v11  ;;  %v5578_v11 = vsub.f32 %v20663_v41, %v5546_v2 }
 0x5b5   : > { %5713 = vadd.xlane.f32.xlu1 %v5712_v45  ;;  %18307 = vpow2.f32 %v5631_v58  ;;  %v5635_v45 = vmul.f32 1.442695, %v5575_v13 }
 0x5b7   : > { %v20842_v53 = vpop.eup %18297  ;;  %18309 = vpow2.f32 %v5635_v45  ;;  %v20914_v58 = vpop.permute.xlu1 %17594  ;;  %v23532_v45 = vld [vmem:[#allocation52_spill] sm:$0xff] }
 0x5b8   : > { %v5709_v36 = vsel %vm2346_vm2, %v20842_v53, 0.0  ;;  %v20846_v22 = vpop.eup %18299 }
 0x5b9   : > { %5710 = vadd.xlane.f32.xlu1 %v5709_v36  ;;  %v5718_v60 = vsel %vm2346_vm2, %v20846_v22, 0.0  ;;  %v20850_v14 = vpop.eup %18301  ;;  %v5543_v36 = vpop.xlane.xlu0 %5542 }
 0x5ba   : > { %v5715_v5 = vsel %vm2346_vm2, %v20850_v14, 0.0  ;;  %v20854_v57 = vpop.eup %18303 }
 0x5bb   : > { %v5724_v16 = vsel %vm2346_vm2, %v20854_v57, 0.0 }
 0x5bd   : > { %5719 = vadd.xlane.f32.xlu1 %v5718_v60  ;;  %v5641_v60 = vmul.f32 1.442695, %v5578_v11 }
 0x5be   : > { %v20858_v33 = vpop.eup %18305 }
 0x5bf   : > { %v5730_v28 = vsel %vm2346_vm2, %v20858_v33, 0.0  ;;  %18311 = vpow2.f32 %v5641_v60  ;;  %v23534_v60 = vld [vmem:[#allocation46_spill] sm:$0xff] }
 0x5c1   : > { %5716 = vadd.xlane.f32.xlu1 %v5715_v5  ;;  %v5577_v5 = vsub.f32 %v20668_v23, %v5543_v36  ;;  %v23533_v36 = vld [vmem:[#allocation72_spill] sm:$0xff] }
 0x5c3   : > { %v5639_v40 = vmul.f32 1.442695, %v5577_v5 }
 0x5c5   : > { %5725 = vadd.xlane.f32.xlu1 %v5724_v16  ;;  %v20872_v16 = vpop.eup %18307  ;;  %18313 = vpow2.f32 %v5639_v40 }
 0x5c6   : > { %v5721_v44 = vsel %vm2346_vm2, %v20872_v16, 0.0  ;;  %v20878_v41 = vpop.eup %18309 }
 0x5c7   : > { %7591 = vrot.lane.b32.xlu0 %v23531_v26, %s18835_s20  ;;  %v5727_v23 = vsel %vm2346_vm2, %v20878_v41, 0.0 }
 0x5c9   : > { %5731 = vadd.xlane.f32.xlu1 %v5730_v28  ;;  %v20884_v28 = vpop.eup %18311 }
 0x5ca   : > { %v5736_v48 = vsel %vm2346_vm2, %v20884_v28, 0.0 }
 0x5cf   : > { %v20890_v61 = vpop.eup %18313 }
 0x5d0   : > { %v5733_v18 = vsel %vm2346_vm2, %v20890_v61, 0.0 }
 0x5da   : > { %7593 = vrot.lane.b32.xlu1 %v19418_v32, %s18835_s20 }
 0x5de   : > { %7682 = vrot.lane.b32.xlu1 %v19422_v35, %s18835_s20 }
 0x5e2   : > { %17604 = vrot.lane.b32.xlu1 %v19510_v8, %s18835_s20 }
 0x5e6   : > { %5722 = vadd.xlane.f32.xlu0 %v5721_v44  ;;  %7775 = vrot.lane.b32.xlu1 %v19474_v7, %s18835_s20  ;;  %v23535_v44 = vld [vmem:[#allocation38_spill] sm:$0xff] }
 0x5ea   : > { %5728 = vadd.xlane.f32.xlu0 %v5727_v23  ;;  %7864 = vrot.lane.b32.xlu1 %v19482_v34, %s18835_s20 }
 0x5ee   : > { %17614 = vrot.lane.b32.xlu1 %v19566_v47, %s18835_s20  ;;  %5737 = vadd.xlane.f32.xlu0 %v5736_v48  ;;  %v23536_v48 = vld [vmem:[#allocation42_spill] sm:$0xff] }
 0x5f2   : > { %7957 = vrot.lane.b32.xlu1 %v19536_v31, %s18835_s20  ;;  %5734 = vadd.xlane.f32.xlu0 %v5733_v18 }
 0x5f6   : > { %8046 = vrot.lane.b32.xlu1 %v19520_v15, %s18835_s20  ;;  %v23547_v15 = vld [vmem:[#allocation44_spill] sm:$0xff] }
 0x5fa   : > { %17624 = vrot.lane.b32.xlu1 %v19309_v30, %s18835_s20 }
 0x5fe   : > { %8139 = vrot.lane.b32.xlu1 %v23399_v9, %s18835_s20  ;;  %v23545_v9 = vld [vmem:[#allocation53_spill] sm:$0xff] }
 0x602   : > { %8228 = vrot.lane.b32.xlu1 %v23401_v63, %s18835_s20  ;;  %v23540_v63 = vld [vmem:[#allocation39_spill] sm:$0xff] }
 0x606   : > { %8319 = vrot.lane.b32.xlu1 %v23405_v20, %s18835_s20 }
 0x608   : > { %17599 = vrot.lane.b32.xlu0 %v19478_v1, %s18835_s20 }
 0x60a   : > { %8321 = vrot.lane.b32.xlu1 %v23407_v55, %s18835_s20 }
 0x60c   : > { %7684 = vrot.lane.b32.xlu0 %v19446_v38, %s18835_s20 }
 0x60e   : > { %17639 = vrot.lane.b32.xlu1 %v23411_v54, %s18835_s20 }
 0x610   : > { %7773 = vrot.lane.b32.xlu0 %v19450_v17, %s18835_s20 }
 0x611   : > { %v5648_v13 = vpop.xlane.xlu1 %5647 }
 0x612   : > { %18315 = vrcp.f32 %v5648_v13  ;;  %v5645_v2 = vpop.xlane.xlu0 %5644  ;;  %8501 = vrot.lane.b32.xlu1 %v23413_v6, %s18835_s20  ;;  %v23537_v13 = vld [vmem:[#allocation104_spill] sm:$0xff] }
 0x613   : > { %18317 = vrcp.f32 %v5645_v2  ;;  %v17507_v2 = vunpack.i.h.bf16 %v23537_v13  ;;  %v17506_v6 = vunpack.i.l.bf16 %v23537_v13  ;;  %v23541_v13 = vld [vmem:[#allocation49_spill] sm:$0xff] }
 0x614   : > { %17609 = vrot.lane.b32.xlu0 %v23532_v45, %s18835_s20 }
 0x615   : > { %v16900_v54 = vpack.c.bf16 %v17507_v2, %v17506_v6 }
 0x616   : > { %v5654_v11 = vpop.xlane.xlu0 %5653  ;;  %8592 = vrot.lane.b32.xlu1 %v23533_v36, %s18835_s20  ;;  %v23538_v36 = vld [vmem:[#allocation45_spill] sm:$0xff] }
 0x617   : > { %18319 = vrcp.f32 %v5654_v11 }
 0x618   : > { %7866 = vrot.lane.b32.xlu0 %v23534_v60, %s18835_s20 }
 0x619   : > { %v5660_v5 = vpop.xlane.xlu1 %5659 }
 0x61a   : > { %v5651_v40 = vpop.xlane.xlu0 %5650  ;;  %17649 = vrot.lane.b32.xlu1 %v23535_v44, %s18835_s20 }
 0x61b   : > { %18321 = vrcp.f32 %v5651_v40  ;;  %v23539_v40 = vld [vmem:[#allocation19_spill] sm:$0xff] }
 0x61c   : > { %v18316_v23 = vpop.eup %18315  ;;  %7955 = vrot.lane.b32.xlu0 %v23536_v48, %s18835_s20  ;;  %18323 = vrcp.f32 %v5660_v5 }
 0x61d   : > { %v18318_v18 = vpop.eup %18317  ;;  %v5742_v44 = vmul.f32 %v18316_v23, %v20728_v39  ;;  %v23543_v23 = vld [vmem:[#allocation105_spill] sm:$0xff] }
 0x61e   : > { %17664 = vrot.lane.b32.xlu1 %v23538_v36, %s18835_s20  ;;  %v5657_v55 = vpop.xlane.xlu1 %5656  ;;  %v5740_v11 = vmul.f32 %v18318_v18, %v20730_v21  ;;  %v17512_v18 = vunpack.i.h.bf16 %v23543_v23 }
 0x61f   : > { %18325 = vrcp.f32 %v5657_v55  ;;  %v23542_v55 = vld [vmem:[#allocation58_spill] sm:$0xff] }
 0x620   : > { %15928 = vmatprep.mubr.msk.f32.mxu0 %vm2346_vm2, %v5740_v11  ;;  %17619 = vrot.lane.b32.xlu0 %v23539_v40, %s18835_s20  ;;  %v17511_v11 = vunpack.i.l.bf16 %v23543_v23 }
 0x621   : > { %15929 = vmatmul.mubr.msk.f32.vlgmr.msra.gmra.mrb[82].mxu0 %vm2346_vm2, %v5742_v44  ;;  %v18320_v21 = vpop.eup %18319 }
 0x622   : > { %16895 = vmatpush3.bf16.msra.mxu0 %v23540_v63  ;;  %v5666_v5 = vpop.xlane.xlu0 %5665  ;;  %17669 = vrot.lane.b32.xlu1 %v23541_v13, %s18835_s20  ;;  %v5672_v36 = vpop.xlane.xlu1 %5671  ;;  %v23544_v63 = vld [vmem:[#allocation51_spill] sm:$0xff]  ;;  %v5746_v13 = vmul.f32 %v18320_v21, %v20738_v43  ;;  %v23548_v43 = vld [vmem:[#allocation57_spill] sm:$0xff] }
 0x623   : > { %16901 = vmatprep.subr.bf16.mxu0 %v16900_v54  ;;  %18327 = vrcp.f32 %v5666_v5  ;;  %v23546_v5 = vld [vmem:[#allocation106_spill] sm:$0xff] }
 0x624   : > { %8048 = vrot.lane.b32.xlu0 %v23542_v55, %s18835_s20  ;;  %18329 = vrcp.f32 %v5672_v36  ;;  %v17517_v36 = vunpack.i.h.bf16 %v23546_v5  ;;  %v17516_v30 = vunpack.i.l.bf16 %v23546_v5 }
 0x625   : > { %v18322_v39 = vpop.eup %18321 }
 0x626   : > { %v5663_v6 = vpop.xlane.xlu0 %5662  ;;  %17674 = vrot.lane.b32.xlu1 %v23544_v63, %s18835_s20  ;;  %v5669_v44 = vpop.xlane.xlu1 %5668  ;;  %v5744_v2 = vmul.f32 %v18322_v39, %v20746_v24  ;;  %v16904_v63 = vpack.c.bf16 %v17512_v18, %v17511_v11  ;;  %v23550_v18 = vld [vmem:[#allocation60_spill] sm:$0xff] }
 0x627   : > { %18331 = vrcp.f32 %v5663_v6  ;;  %v18324_v20 = vpop.eup %18323 }
 0x628   : > { %18333 = vrcp.f32 %v5669_v44  ;;  %15935 = vmatprep.mubr.msk.f32.mxu1 %vm2346_vm2, %v5744_v2  ;;  %8137 = vrot.lane.b32.xlu0 %v23545_v9, %s18835_s20  ;;  %v5750_v6 = vmul.f32 %v18324_v20, %v20744_v12  ;;  %v23549_v44 = vld [vmem:[#allocation28_spill] sm:$0xff]  ;;  %v23551_v12 = vld [vmem:[#allocation66_spill] sm:$0xff] }
 0x629   : > { %v18326_v23 = vpop.eup %18325  ;;  %15936 = vmatmul.mubr.msk.f32.vlgmr.msra.gmra.mrb[110].mxu1 %vm2346_vm2, %v5746_v13  ;;  %v16908_v13 = vpack.c.bf16 %v17517_v36, %v17516_v30 }
 0x62a   : > { %16899 = vmatpush3.bf16.msra.mxu1 %v23547_v15  ;;  %v5678_v24 = vpop.xlane.xlu0 %5677  ;;  %17684 = vrot.lane.b32.xlu1 %v23548_v43, %s18835_s20  ;;  %v5684_v21 = vpop.xlane.xlu1 %5683  ;;  %v5748_v39 = vmul.f32 %v18326_v23, %v20754_v10  ;;  %v23552_v23 = vld [vmem:[#allocation117_spill] sm:$0xff] }
 0x62b   : > { %16905 = vmatprep.subr.bf16.mxu1 %v16904_v63  ;;  %18335 = vrcp.f32 %v5678_v24  ;;  %v17522_v5 = vunpack.i.h.bf16 %v23552_v23  ;;  %v17521_v30 = vunpack.i.l.bf16 %v23552_v23  ;;  %v23555_v23 = vld [vmem:[#allocation30_spill] sm:$0xff] }
 0x62c   : > { %17629 = vrot.lane.b32.xlu0 %v23549_v44, %s18835_s20  ;;  %15942 = vmatprep.mubr.msk.f32.mxu0 %vm2346_vm2, %v5748_v39  ;;  %18337 = vrcp.f32 %v5684_v21 }
 0x62d   : > { %15943 = vmatmul.mubr.msk.f32.vlgmr.msra.gmra.mrb[84].mxu0 %vm2346_vm2, %v5750_v6  ;;  %v18328_v10 = vpop.eup %18327  ;;  %v23554_v6 = vld [vmem:[#allocation64_spill] sm:$0xff] }
 0x62e   : > { %16903 = vmatpush3.bf16.msra.mxu0 %v16900_v54  ;;  %v5675_v15 = vpop.xlane.xlu0 %5674  ;;  %17689 = vrot.lane.b32.xlu1 %v23550_v18, %s18835_s20  ;;  %v5681_v11 = vpop.xlane.xlu1 %5680  ;;  %v23553_v54 = vld [vmem:[#allocation107_spill] sm:$0xff]  ;;  %v5754_v43 = vmul.f32 %v18328_v10, %v20762_v52 }
 0x62f   : > { %18339 = vrcp.f32 %v5675_v15  ;;  %16909 = vmatprep.subr.bf16.mxu0 %v16908_v13  ;;  %v18330_v20 = vpop.eup %18329  ;;  %v17527_v24 = vunpack.i.h.bf16 %v23553_v54  ;;  %v17526_v21 = vunpack.i.l.bf16 %v23553_v54  ;;  %v16912_v54 = vpack.c.bf16 %v17522_v5, %v17521_v30 }
 0x630   : > { %18341 = vrcp.f32 %v5681_v11  ;;  %8230 = vrot.lane.b32.xlu0 %v23551_v12, %s18835_s20  ;;  %v5758_v12 = vmul.f32 %v18330_v20, %v20760_v37  ;;  %v23556_v37 = vld [vmem:[#allocation68_spill] sm:$0xff] }
 0x631   : > { %v18332_v2 = vpop.eup %18331 }
 0x632   : > { %v18334_v36 = vpop.eup %18333  ;;  %v5690_v39 = vpop.xlane.xlu0 %5689  ;;  %17694 = vrot.lane.b32.xlu1 %v23554_v6, %s18835_s20  ;;  %v5752_v11 = vmul.f32 %v18332_v2, %v20772_v42  ;;  %v16916_v42 = vpack.c.bf16 %v17527_v24, %v17526_v21  ;;  %v23559_v24 = vld [vmem:[#allocation109_spill] sm:$0xff] }
 0x633   : > { %v5696_v15 = vpop.xlane.xlu1 %5695  ;;  %v5756_v18 = vmul.f32 %v18334_v36, %v20770_v27  ;;  %18343 = vrcp.f32 %v5690_v39  ;;  %v17537_v21 = vunpack.i.h.bf16 %v23559_v24  ;;  %v17536_v39 = vunpack.i.l.bf16 %v23559_v24  ;;  %v23565_v24 = vld [vmem:[#allocation111_spill] sm:$0xff] }
 0x634   : > { %15949 = vmatprep.mubr.msk.f32.mxu1 %vm2346_vm2, %v5752_v11  ;;  %17634 = vrot.lane.b32.xlu0 %v23555_v23, %s18835_s20  ;;  %18345 = vrcp.f32 %v5696_v15  ;;  %v23560_v11 = vld [vmem:[#allocation73_spill] sm:$0xff] }
 0x635   : > { %15956 = vmatprep.mubr.msk.f32.mxu0 %vm2346_vm2, %v5756_v18  ;;  %15950 = vmatmul.mubr.msk.f32.vlgmr.msra.gmra.mrb[112].mxu1 %vm2346_vm2, %v5754_v43  ;;  %v18336_v10 = vpop.eup %18335  ;;  %v23557_v43 = vld [vmem:[#allocation67_spill] sm:$0xff] }
 0x636   : > { %15957 = vmatmul.mubr.msk.f32.vlgmr.msra.gmra.mrb[86].mxu0 %vm2346_vm2, %v5758_v12  ;;  %16907 = vmatpush3.bf16.msra.mxu1 %v16904_v63  ;;  %v5687_v27 = vpop.xlane.xlu0 %5686  ;;  %v18338_v2 = vpop.eup %18337  ;;  %v23558_v12 = vld [vmem:[#allocation108_spill] sm:$0xff] }
 0x637   : > { %v5693_v52 = vpop.xlane.xlu1 %5692  ;;  %16911 = vmatpush3.bf16.msra.mxu0 %v16908_v13  ;;  %16913 = vmatprep.subr.bf16.mxu1 %v16912_v54  ;;  %18347 = vrcp.f32 %v5687_v27  ;;  %v17532_v63 = vunpack.i.h.bf16 %v23558_v12  ;;  %v17531_v5 = vunpack.i.l.bf16 %v23558_v12  ;;  %v5762_v27 = vmul.f32 %v18336_v10, %v20782_v0  ;;  %v23561_v12 = vld [vmem:[#allocation75_spill] sm:$0xff]  ;;  %v23562_v10 = vld [vmem:[#allocation76_spill] sm:$0xff] }
 0x638   : > { %17699 = vrot.lane.b32.xlu1 %v23556_v37, %s18835_s20  ;;  %16917 = vmatprep.subr.bf16.mxu0 %v16916_v42  ;;  %18349 = vrcp.f32 %v5693_v52  ;;  %v5766_v52 = vmul.f32 %v18338_v2, %v20780_v59  ;;  %v16924_v0 = vpack.c.bf16 %v17537_v21, %v17536_v39  ;;  %v17547_v21 = vunpack.i.h.bf16 %v23565_v24 }
 0x639   : > { %v18340_v18 = vpop.eup %18339  ;;  %8410 = vrot.lane.b32.xlu0 %v23557_v43, %s18835_s20  ;;  %v17546_v39 = vunpack.i.l.bf16 %v23565_v24 }
 0x63a   : > { %v18342_v20 = vpop.eup %18341  ;;  %v5702_v30 = vpop.xlane.xlu0 %5701  ;;  %v5760_v13 = vmul.f32 %v18340_v18, %v20792_v25 }
 0x63b   : > { %v5708_v36 = vpop.xlane.xlu1 %5707  ;;  %v5764_v15 = vmul.f32 %v18342_v20, %v20790_v51  ;;  %18351 = vrcp.f32 %v5702_v30  ;;  %v16920_v51 = vpack.c.bf16 %v17532_v63, %v17531_v5  ;;  %v23563_v30 = vld [vmem:[#allocation78_spill] sm:$0xff] }
 0x63c   : > { %17704 = vrot.lane.b32.xlu1 %v23560_v11, %s18835_s20  ;;  %15963 = vmatprep.mubr.msk.f32.mxu1 %vm2346_vm2, %v5760_v13  ;;  %18353 = vrcp.f32 %v5708_v36  ;;  %v23564_v63 = vld [vmem:[#allocation110_spill] sm:$0xff] }
 0x63d   : > { %8412 = vrot.lane.b32.xlu0 %v23561_v12, %s18835_s20  ;;  %15970 = vmatprep.mubr.msk.f32.mxu0 %vm2346_vm2, %v5764_v15  ;;  %v18344_v20 = vpop.eup %18343  ;;  %v17542_v5 = vunpack.i.h.bf16 %v23564_v63  ;;  %v17541_v13 = vunpack.i.l.bf16 %v23564_v63 }
 0x63e   : > { %15964 = vmatmul.mubr.msk.f32.vlgmr.msra.gmra.mrb[114].mxu1 %vm2346_vm2, %v5762_v27  ;;  %15971 = vmatmul.mubr.msk.f32.vlgmr.msra.gmra.mrb[88].mxu0 %vm2346_vm2, %v5766_v52  ;;  %v5699_v25 = vpop.xlane.xlu0 %5698  ;;  %v18346_v59 = vpop.eup %18345  ;;  %v23566_v27 = vld [vmem:[#allocation82_spill] sm:$0xff]  ;;  %v5770_v52 = vmul.f32 %v18344_v20, %v20802_v46 }
 0x63f   : > { %v5705_v18 = vpop.xlane.xlu1 %5704  ;;  %16915 = vmatpush3.bf16.msra.mxu1 %v16912_v54  ;;  %16919 = vmatpush3.bf16.msra.mxu0 %v16916_v42  ;;  %18355 = vrcp.f32 %v5699_v25  ;;  %v5774_v25 = vmul.f32 %v18346_v59, %v20800_v3  ;;  %v23568_v3 = vld [vmem:[#allocation17_spill] sm:$0xff]  ;;  %v23569_v59 = vld [vmem:[#allocation36_spill] sm:$0xff] }
 0x640   : > { %16921 = vmatprep.subr.bf16.mxu1 %v16920_v51  ;;  %17709 = vrot.lane.b32.xlu1 %v23562_v10, %s18835_s20  ;;  %18357 = vrcp.f32 %v5705_v18  ;;  %v23567_v18 = vld [vmem:[#allocation81_spill] sm:$0xff] }
 0x641   : > { %v18348_v2 = vpop.eup %18347  ;;  %16925 = vmatprep.subr.bf16.mxu0 %v16924_v0  ;;  %8503 = vrot.lane.b32.xlu0 %v23563_v30, %s18835_s20 }
 0x642   : > { %v18350_v36 = vpop.eup %18349  ;;  %v5768_v42 = vmul.f32 %v18348_v2, %v20811_v50 }
 0x643   : > { %v5714_v54 = vpop.xlane.xlu1 %5713  ;;  %v5772_v15 = vmul.f32 %v18350_v36, %v20809_v62  ;;  %v16928_v62 = vpack.c.bf16 %v17542_v5, %v17541_v13  ;;  %v16932_v36 = vpack.c.bf16 %v17547_v21, %v17546_v39 }
 0x644   : > { %17719 = vrot.lane.b32.xlu1 %v23566_v27, %s18835_s20  ;;  %15977 = vmatprep.mubr.msk.f32.mxu1 %vm2346_vm2, %v5768_v42  ;;  %18359 = vrcp.f32 %v5714_v54  ;;  %v23570_v54 = vld [vmem:[#allocation112_spill] sm:$0xff]  ;;  %v23571_v42 = vld [vmem:[#allocation119_spill] sm:$0xff] }
 0x645   : > { %8594 = vrot.lane.b32.xlu0 %v23567_v18, %s18835_s20  ;;  %15984 = vmatprep.mubr.msk.f32.mxu0 %vm2346_vm2, %v5772_v15  ;;  %v18352_v2 = vpop.eup %18351  ;;  %v17552_v5 = vunpack.i.h.bf16 %v23570_v54  ;;  %v17551_v13 = vunpack.i.l.bf16 %v23570_v54  ;;  %v17557_v24 = vunpack.i.h.bf16 %v23571_v42  ;;  %v17556_v21 = vunpack.i.l.bf16 %v23571_v42  ;;  %v23572_v15 = vld [vmem:[#allocation21_spill] sm:$0xff]  ;;  %v23576_v54 = vld [vmem:[#allocation43_spill] sm:$0xff] }
 0x646   : > { %15978 = vmatmul.mubr.msk.f32.vlgmr.msra.gmra.mrb[116].mxu1 %vm2346_vm2, %v5770_v52  ;;  %15985 = vmatmul.mubr.msk.f32.vlgmr.msra.gmra.mrb[90].mxu0 %vm2346_vm2, %v5774_v25  ;;  %v18354_v46 = vpop.eup %18353  ;;  %v5778_v52 = vmul.f32 %v18352_v2, %v20821_v4  ;;  %v23575_v2 = vld [vmem:[#allocation113_spill] sm:$0xff] }
 0x647   : > { %v5711_v50 = vpop.xlane.xlu1 %5710  ;;  %16923 = vmatpush3.bf16.msra.mxu1 %v16920_v51  ;;  %16927 = vmatpush3.bf16.msra.mxu0 %v16924_v0  ;;  %v5782_v25 = vmul.f32 %v18354_v46, %v20819_v19  ;;  %v23574_v19 = vld [vmem:[#allocation25_spill] sm:$0xff]  ;;  %v17562_v46 = vunpack.i.h.bf16 %v23575_v2 }
 0x648   : > { %18361 = vrcp.f32 %v5711_v50  ;;  %16929 = vmatprep.subr.bf16.mxu1 %v16928_v62  ;;  %17724 = vrot.lane.b32.xlu1 %v23568_v3, %s18836_s11  ;;  %v23573_v50 = vld [vmem:[#allocation40_spill] sm:$0xff]  ;;  %v16940_v3 = vpack.c.bf16 %v17557_v24, %v17556_v21  ;;  %v23579_v24 = vld [vmem:[#allocation29_spill] sm:$0xff]  ;;  %v23580_v21 = vld [vmem:[#allocation114_spill] sm:$0xff] }
 0x649   : > { %v18356_v20 = vpop.eup %18355  ;;  %16933 = vmatprep.subr.bf16.mxu0 %v16932_v36  ;;  %17644 = vrot.lane.b32.xlu0 %v23569_v59, %s18835_s20 }
 0x64a   : > { %v18358_v63 = vpop.eup %18357  ;;  %v5776_v0 = vmul.f32 %v18356_v20, %v20830_v49 }
 0x64b   : > { %v5720_v51 = vpop.xlane.xlu1 %5719  ;;  %v5780_v39 = vmul.f32 %v18358_v63, %v20828_v29  ;;  %v16936_v29 = vpack.c.bf16 %v17552_v5, %v17551_v13  ;;  %v17561_v63 = vunpack.i.l.bf16 %v23575_v2  ;;  %v23577_v13 = vld [vmem:[#allocation15_spill] sm:$0xff] }
 0x64c   : > { %17729 = vrot.lane.b32.xlu1 %v23572_v15, %s18836_s11  ;;  %15991 = vmatprep.mubr.msk.f32.mxu1 %vm2346_vm2, %v5776_v0  ;;  %18363 = vrcp.f32 %v5720_v51  ;;  %v23578_v51 = vld [vmem:[#allocation55_spill] sm:$0xff] }
 0x64d   : > { %17654 = vrot.lane.b32.xlu0 %v23573_v50, %s18835_s20  ;;  %15998 = vmatprep.mubr.msk.f32.mxu0 %vm2346_vm2, %v5780_v39  ;;  %v16944_v0 = vpack.c.bf16 %v17562_v46, %v17561_v63  ;;  %v17566_v39 = vunpack.i.l.bf16 %v23580_v21  ;;  %v23587_v46 = vld [vmem:[#allocation35_spill] sm:$0xff] }
 0x64e   : > { %15992 = vmatmul.mubr.msk.f32.vlgmr.msra.gmra.mrb[118].mxu1 %vm2346_vm2, %v5778_v52  ;;  %15999 = vmatmul.mubr.msk.f32.vlgmr.msra.gmra.mrb[92].mxu0 %vm2346_vm2, %v5782_v25  ;;  %v18360_v20 = vpop.eup %18359  ;;  %v23581_v52 = vld [vmem:[#allocation79_spill] sm:$0xff] }
 0x64f   : > { %v5717_v49 = vpop.xlane.xlu1 %5716  ;;  %16931 = vmatpush3.bf16.msra.mxu1 %v16928_v62  ;;  %16935 = vmatpush3.bf16.msra.mxu0 %v16932_v36  ;;  %v5786_v36 = vmul.f32 %v18360_v20, %v20837_v56  ;;  %v17567_v56 = vunpack.i.h.bf16 %v23580_v21 }
 0x650   : > { %18365 = vrcp.f32 %v5717_v49  ;;  %16937 = vmatprep.subr.bf16.mxu1 %v16936_v29  ;;  %17734 = vrot.lane.b32.xlu1 %v23574_v19, %s18836_s11  ;;  %v23583_v19 = vld [vmem:[#allocation18_spill] sm:$0xff] }
 0x651   : > { %16941 = vmatprep.subr.bf16.mxu0 %v16940_v3  ;;  %17659 = vrot.lane.b32.xlu0 %v23576_v54, %s18835_s20  ;;  %v16948_v20 = vpack.c.bf16 %v17567_v56, %v17566_v39 }
 0x652   : > { %v18362_v4 = vpop.eup %18361 }
 0x653   : > { %v5784_v5 = vmul.f32 %v18362_v4, %v20842_v53  ;;  %v5726_v62 = vpop.xlane.xlu1 %5725 }
 0x654   : > { %10427 = vrot.lane.b32.xlu1 %v23577_v13, %s18836_s11  ;;  %18367 = vrcp.f32 %v5726_v62 }
 0x655   : > { %16005 = vmatprep.mubr.msk.f32.mxu1 %vm2346_vm2, %v5784_v5  ;;  %17679 = vrot.lane.b32.xlu0 %v23578_v51, %s18835_s20  ;;  %v23588_v5 = vld [vmem:[#allocation32_spill] sm:$0xff] }
 0x656   : > { %16006 = vmatmul.mubr.msk.f32.vlgmr.msra.gmra.mrb[120].mxu1 %vm2346_vm2, %v5786_v36  ;;  %v18364_v42 = vpop.eup %18363  ;;  %v23590_v36 = vld [vmem:[#allocation24_spill] sm:$0xff] }
 0x657   : > { %16939 = vmatpush3.bf16.msra.mxu1 %v16936_v29  ;;  %v5732_v15 = vpop.xlane.xlu1 %5731  ;;  %v5790_v49 = vmul.f32 %v18364_v42, %v20846_v22  ;;  %v23582_v29 = vld [vmem:[#allocation23_spill] sm:$0xff]  ;;  %v23586_v22 = vld [vmem:[#allocation20_spill] sm:$0xff] }
 0x658   : > { %16945 = vmatprep.subr.bf16.mxu1 %v16944_v0  ;;  %17739 = vrot.lane.b32.xlu1 %v23579_v24, %s18836_s11  ;;  %v23591_v42 = vld [vmem:[#allocation27_spill] sm:$0xff]  ;;  %v21098_v24 = vpop.permute.xlu0 %7591 }
 0x659   : > { %17714 = vrot.lane.b32.xlu0 %v23581_v52, %s18835_s20 }
 0x65a   : > { %v18366_v53 = vpop.eup %18365 }
 0x65b   : > { %v5788_v25 = vmul.f32 %v18366_v53, %v20850_v14  ;;  %v21076_v4 = vpop.permute.xlu1 %7593  ;;  %v23585_v14 = vld [vmem:[#allocation26_spill] sm:$0xff] }
 0x65c   : > { %10520 = vrot.lane.b32.xlu1 %v23582_v29, %s18836_s11 }
 0x65d   : > { %16012 = vmatprep.mubr.msk.f32.mxu0 %vm2346_vm2, %v5788_v25  ;;  %10429 = vrot.lane.b32.xlu0 %v23583_v19, %s18836_s11 }
 0x65e   : > { %16013 = vmatmul.mubr.msk.f32.vlgmr.msra.gmra.mrb[94].mxu0 %vm2346_vm2, %v5790_v49  ;;  %v18368_v49 = vpop.eup %18367 }
 0x65f   : > { %16943 = vmatpush3.bf16.msra.mxu0 %v16940_v3  ;;  %v21086_v63 = vpop.permute.xlu1 %7682  ;;  %v23589_v3 = vld [vmem:[#allocation31_spill] sm:$0xff] }
 0x660   : > { %16950 = vmatprep.subr.msk.bf16.mxu0 %vm19255_vm1, %v16948_v20  ;;  %10609 = vrot.lane.b32.xlu1 %v23585_v14, %s18836_s11  ;;  %v23592_v14 = vld [vmem:[#allocation115_spill] sm:$0xff] }
 0x661   : > { %10518 = vrot.lane.b32.xlu0 %v23586_v22, %s18836_s11  ;;  %v17572_v22 = vunpack.i.h.bf16 %v23592_v14 }
 0x663   : > { %v21094_v13 = vpop.permute.xlu1 %17604 }
 0x664   : > { %17749 = vrot.lane.b32.xlu1 %v23587_v46, %s18836_s11  ;;  %v17571_v46 = vunpack.i.l.bf16 %v23592_v14  ;;  %v23594_v14 = vld [vmem:[#allocation118_spill] sm:$0xff] }
 0x665   : > { %17744 = vrot.lane.b32.xlu0 %v23588_v5, %s18836_s11 }
 0x667   : > { %v21100_v53 = vpop.permute.xlu1 %7775 }
 0x668   : > { %10702 = vrot.lane.b32.xlu1 %v23589_v3, %s18836_s11 }
 0x669   : > { %10611 = vrot.lane.b32.xlu0 %v23590_v36, %s18836_s11 }
 0x66b   : > { %v21102_v56 = vpop.permute.xlu1 %7864 }
 0x66d   : > { %10700 = vrot.lane.b32.xlu0 %v23591_v42, %s18836_s11  ;;  %v16954_v42 = vpack.c.bf16 %v17572_v22, %v17571_v46  ;;  %v23595_v22 = vld [vmem:[#allocation121_spill] sm:$0xff] }
 0x66e   : > { %v17582_v46 = vunpack.i.h.bf16 %v23595_v22 }
 0x66f   : > { %v21104_v29 = vpop.permute.xlu1 %17614 }
 0x673   : > { %v5723_v21 = vpop.xlane.xlu0 %5722  ;;  %v21114_v27 = vpop.permute.xlu1 %7957 }
 0x674   : > { %18369 = vrcp.f32 %v5723_v21  ;;  %v23593_v21 = vld [vmem:[#allocation116_spill] sm:$0xff] }
 0x675   : > { %18371 = vrcp.f32 %v5732_v15  ;;  %v5794_v15 = vmul.f32 %v18368_v49, %v20854_v57  ;;  %v17576_v52 = vunpack.i.l.bf16 %v23593_v21 }
 0x677   : > { %v5729_v39 = vpop.xlane.xlu0 %5728 }
 0x678   : > { %18373 = vrcp.f32 %v5729_v39  ;;  %v17577_v39 = vunpack.i.h.bf16 %v23593_v21  ;;  %v23597_v21 = vld [vmem:[#allocation120_spill] sm:$0xff] }
 0x67a   : > { %v16960_v49 = vpack.c.bf16 %v17577_v39, %v17576_v52  ;;  %v17581_v52 = vunpack.i.l.bf16 %v23595_v22  ;;  %v17597_v22 = vunpack.i.h.bf16 %v20914_v58 }
 0x67b   : > { %v5738_v25 = vpop.xlane.xlu0 %5737 }
 0x67c   : > { %18375 = vrcp.f32 %v5738_v25  ;;  %v16966_v39 = vpack.c.bf16 %v17582_v46, %v17581_v52 }
 0x67e   : > { %v18370_v19 = vpop.eup %18369 }
 0x67f   : > { %v5735_v5 = vpop.xlane.xlu0 %5734  ;;  %v5792_v62 = vmul.f32 %v18370_v19, %v20872_v16  ;;  %v18372_v3 = vpop.eup %18371 }
 0x680   : > { %18377 = vrcp.f32 %v5735_v5  ;;  %v5798_v57 = vmul.f32 %v18372_v3, %v20858_v33  ;;  %v23596_v5 = vld [vmem:[#allocation124_spill] sm:$0xff] }
 0x681   : > { %16019 = vmatprep.mubr.msk.f32.mxu1 %vm2346_vm2, %v5792_v62  ;;  %v17587_v62 = vunpack.i.h.bf16 %v23596_v5 }
 0x682   : > { %v18374_v36 = vpop.eup %18373  ;;  %16020 = vmatmul.mubr.msk.f32.vlgmr.msra.gmra.mrb[122].mxu1 %vm2346_vm2, %v5794_v15 }
 0x683   : > { %16947 = vmatpush3.bf16.msra.mxu1 %v16944_v0  ;;  %v17600_v25 = vpop.permute.xlu0 %17599  ;;  %v5796_v16 = vmul.f32 %v18374_v36, %v20878_v41  ;;  %v21130_v0 = vpop.permute.xlu1 %8046 }
 0x684   : > { %16956 = vmatprep.subr.msk.bf16.mxu1 %vm19255_vm1, %v16954_v42 }
 0x685   : > { %16026 = vmatprep.mubr.msk.f32.mxu0 %vm2346_vm2, %v5796_v16 }
 0x686   : > { %16027 = vmatmul.mubr.msk.f32.vlgmr.msra.gmra.mrb[96].mxu0 %vm2346_vm2, %v5798_v57  ;;  %v18376_v41 = vpop.eup %18375 }
 0x687   : > { %16953 = vmatpush3.bf16.xpose.msk.msra.mxu0 %vm19255_vm1, %v16948_v20  ;;  %v21124_v19 = vpop.permute.xlu0 %7684  ;;  %16040 = vmatprep.mubr.msk.f32.mxu0 %vm953_vm0, %v23594_v14  ;;  %v17586_v20 = vunpack.i.l.bf16 %v23596_v5  ;;  %v5802_v36 = vmul.f32 %v18376_v41, %v20884_v28  ;;  %v21142_v57 = vpop.permute.xlu1 %17624  ;;  %v23598_v14 = vld [vmem:[#allocation125_spill] sm:$0xff]  ;;  %v23599_v28 = vld [vmem:[#allocation122_spill] sm:$0xff]  ;;  %v23600_v41 = vld [vmem:[#allocation127_spill] sm:$0xff] }
 0x688   : > { %16962 = vmatprep.subr.msk.bf16.mxu0 %vm19255_vm1, %v16960_v49  ;;  %v23601_v5 = vld [vmem:[#allocation123_spill] sm:$0xff] }
 0x689   : > { %v16972_v16 = vpack.c.bf16 %v17587_v62, %v17586_v20  ;;  %v23602_v62 = vld [vmem:[#allocation126_spill] sm:$0xff] }
 0x68a   : > { %v18378_v33 = vpop.eup %18377 }
 0x68b   : > { %v7774_v15 = vpop.permute.xlu0 %7773  ;;  %v5800_v3 = vmul.f32 %v18378_v33, %v20890_v61  ;;  %v17592_v33 = vunpack.i.h.bf16 %v23600_v41  ;;  %v21160_v52 = vpop.permute.xlu1 %8139 }
 0x68d   : > { %16033 = vmatprep.mubr.msk.f32.mxu1 %vm2346_vm2, %v5800_v3 }
 0x68e   : > { %16041 = vmatmul.mubr.msk.f32.vlgmr.msra.gmra.mrb[98].mxu0 %vm953_vm0, %v23597_v21  ;;  %16034 = vmatmul.mubr.msk.f32.vlgmr.msra.gmra.mrb[124].mxu1 %vm2346_vm2, %v5802_v36  ;;  %v23603_v36 = vld [vmem:[#allocation128_spill] sm:$0xff] }
 0x68f   : > { %16959 = vmatpush3.bf16.xpose.msk.msra.mxu1 %vm19255_vm1, %v16954_v42  ;;  %16965 = vmatpush3.bf16.xpose.msk.msra.mxu0 %vm19255_vm1, %v16960_v49  ;;  %v17610_v61 = vpop.permute.xlu0 %17609  ;;  %v17591_v42 = vunpack.i.l.bf16 %v23600_v41  ;;  %v17596_v49 = vunpack.i.l.bf16 %v20914_v58  ;;  %v8229_v58 = vpop.permute.xlu1 %8228  ;;  %v17607_v41 = vunpack.i.h.bf16 %v21094_v13 }
 0x690   : > { %16054 = vmatprep.mubr.msk.f32.mxu0 %vm953_vm0, %v23598_v14  ;;  %16047 = vmatprep.mubr.msk.f32.mxu1 %vm953_vm0, %v23599_v28  ;;  %v17602_v14 = vunpack.i.h.bf16 %v17600_v25  ;;  %v17601_v28 = vunpack.i.l.bf16 %v17600_v25 }
 0x691   : > { %16968 = vmatprep.subr.msk.bf16.mxu1 %vm19255_vm1, %v16966_v39  ;;  %16974 = vmatprep.subr.msk.bf16.mxu0 %vm19255_vm1, %v16972_v16  ;;  %v16978_v20 = vpack.c.bf16 %v17592_v33, %v17591_v42  ;;  %v16984_v3 = vpack.c.bf16 %v17597_v22, %v17596_v49  ;;  %v17606_v33 = vunpack.i.l.bf16 %v21094_v13  ;;  %v23604_v42 = vld [vmem:[#allocation129_spill] sm:$0xff]  ;;  %v17612_v13 = vunpack.i.h.bf16 %v17610_v61 }
 0x692   : > { %v17611_v49 = vunpack.i.l.bf16 %v17610_v61 }
 0x693   : > { %v7867_v46 = vpop.permute.xlu0 %7866  ;;  %v16996_v22 = vpack.c.bf16 %v17607_v41, %v17606_v33  ;;  %v8320_v25 = vpop.permute.xlu1 %8319 }
 0x696   : > { %16048 = vmatmul.mubr.msk.f32.vlgmr.msra.gmra.mrb[126].mxu1 %vm953_vm0, %v23601_v5  ;;  %16055 = vmatmul.mubr.msk.f32.vlgmr.msra.gmra.mrb[100].mxu0 %vm953_vm0, %v23602_v62  ;;  %v17617_v5 = vunpack.i.h.bf16 %v21104_v29  ;;  %v17616_v62 = vunpack.i.l.bf16 %v21104_v29 }
 0x697   : > { %16971 = vmatpush3.bf16.xpose.msk.msra.mxu1 %vm19255_vm1, %v16966_v39  ;;  %16061 = vmatprep.mubr.msk.f32.mxu1 %vm953_vm0, %v23603_v36  ;;  %v7956_v21 = vpop.permute.xlu0 %7955  ;;  %v17626_v36 = vunpack.i.l.bf16 %v21142_v57 }
 0x698   : > { %16977 = vmatpush3.bf16.xpose.msk.msra.mxu0 %vm19255_vm1, %v16972_v16  ;;  %16068 = vmatprep.mubr.msk.f32.mxu0 %vm953_vm0, %v21098_v24  ;;  %v16990_v16 = vpack.c.bf16 %v17602_v14, %v17601_v28 }
 0x699   : > { %16980 = vmatprep.subr.msk.bf16.mxu1 %vm19255_vm1, %v16978_v20  ;;  %16986 = vmatprep.subr.msk.bf16.mxu0 %vm19255_vm1, %v16984_v3 }
 0x69b   : > { %v17620_v39 = vpop.permute.xlu0 %17619 }
 0x69c   : > { %v17622_v29 = vunpack.i.h.bf16 %v17620_v39 }
 0x69e   : > { %16062 = vmatmul.mubr.msk.f32.vlgmr.msra.gmra.mrb[128].mxu1 %vm953_vm0, %v23604_v42 }
 0x69f   : > { %16069 = vmatmul.mubr.msk.f32.vlgmr.msra.gmra.mrb[102].mxu0 %vm953_vm0, %v21076_v4  ;;  %16983 = vmatpush3.bf16.xpose.msk.msra.mxu1 %vm19255_vm1, %v16978_v20  ;;  %v8049_v24 = vpop.permute.xlu0 %8048  ;;  %v17008_v20 = vpack.c.bf16 %v17617_v5, %v17616_v62 }
 0x6a0   : > { %16075 = vmatprep.mubr.msk.f32.mxu1 %vm953_vm0, %v21086_v63  ;;  %16082 = vmatprep.mubr.msk.f32.mxu0 %vm953_vm0, %v7774_v15  ;;  %v17002_v63 = vpack.c.bf16 %v17612_v13, %v17611_v49  ;;  %v8322_v15 = vpop.permute.xlu1 %8321 }
 0x6a1   : > { %16989 = vmatpush3.bf16.xpose.msk.msra.mxu0 %vm19255_vm1, %v16984_v3  ;;  %16992 = vmatprep.subr.msk.bf16.mxu1 %vm19255_vm1, %v16990_v16 }
 0x6a2   : > { %16998 = vmatprep.subr.msk.bf16.mxu0 %vm19255_vm1, %v16996_v22 }
 0x6a3   : > { %v8138_v4 = vpop.permute.xlu0 %8137 }
 0x6a4   : > { %v17640_v14 = vpop.permute.xlu1 %17639 }
 0x6a5   : > { %v17641_v13 = vunpack.i.l.bf16 %v17640_v14 }
 0x6a6   : > { %16076 = vmatmul.mubr.msk.f32.vlgmr.msra.gmra.mrb[130].mxu1 %vm953_vm0, %v21124_v19  ;;  %v17621_v19 = vunpack.i.l.bf16 %v17620_v39 }
 0x6a7   : > { %16995 = vmatpush3.bf16.xpose.msk.msra.mxu1 %vm19255_vm1, %v16990_v16  ;;  %16089 = vmatprep.mubr.msk.f32.mxu1 %vm953_vm0, %v21102_v56  ;;  %v17630_v61 = vpop.permute.xlu0 %17629  ;;  %v17627_v56 = vunpack.i.h.bf16 %v21142_v57 }
 0x6a8   : > { %16083 = vmatmul.mubr.msk.f32.vlgmr.msra.gmra.mrb[104].mxu0 %vm953_vm0, %v21100_v53  ;;  %17004 = vmatprep.subr.msk.bf16.mxu1 %vm19255_vm1, %v17002_v63  ;;  %v17014_v53 = vpack.c.bf16 %v17622_v29, %v17621_v19  ;;  %v17632_v57 = vunpack.i.h.bf16 %v17630_v61  ;;  %v8502_v39 = vpop.permute.xlu1 %8501 }
 0x6a9   : > { %17001 = vmatpush3.bf16.xpose.msk.msra.mxu0 %vm19255_vm1, %v16996_v22  ;;  %16096 = vmatprep.mubr.msk.f32.mxu0 %vm953_vm0, %v7956_v21  ;;  %v17020_v28 = vpack.c.bf16 %v17627_v56, %v17626_v36 }
 0x6aa   : > { %17010 = vmatprep.subr.msk.bf16.mxu0 %vm19255_vm1, %v17008_v20 }
 0x6ab   : > { %v8231_v3 = vpop.permute.xlu0 %8230 }
 0x6ac   : > { %v8593_v22 = vpop.permute.xlu1 %8592 }
 0x6ae   : > { %16090 = vmatmul.mubr.msk.f32.vlgmr.msra.gmra.mrb[132].mxu1 %vm953_vm0, %v7867_v46  ;;  %v17631_v46 = vunpack.i.l.bf16 %v17630_v61 }
 0x6af   : > { %17007 = vmatpush3.bf16.xpose.msk.msra.mxu1 %vm19255_vm1, %v17002_v63  ;;  %16103 = vmatprep.mubr.msk.f32.mxu1 %vm953_vm0, %v21130_v0  ;;  %v17635_v21 = vpop.permute.xlu0 %17634 }
 0x6b0   : > { %16097 = vmatmul.mubr.msk.f32.vlgmr.msra.gmra.mrb[106].mxu0 %vm953_vm0, %v21114_v27  ;;  %17016 = vmatprep.subr.msk.bf16.mxu1 %vm19255_vm1, %v17014_v53  ;;  %v17637_v41 = vunpack.i.h.bf16 %v17635_v21  ;;  %v17636_v33 = vunpack.i.l.bf16 %v17635_v21  ;;  %v17026_v42 = vpack.c.bf16 %v17632_v57, %v17631_v46 }
 0x6b1   : > { %17013 = vmatpush3.bf16.xpose.msk.msra.mxu0 %vm19255_vm1, %v17008_v20  ;;  %16110 = vmatprep.mubr.msk.f32.mxu0 %vm953_vm0, %v8138_v4  ;;  %v17650_v4 = vpop.permute.xlu1 %17649 }
 0x6b2   : > { %17022 = vmatprep.subr.msk.bf16.mxu0 %vm19255_vm1, %v17020_v28  ;;  %v17032_v16 = vpack.c.bf16 %v17637_v41, %v17636_v33  ;;  %v17651_v5 = vunpack.i.l.bf16 %v17650_v4 }
 0x6b3   : > { %v8411_v0 = vpop.permute.xlu0 %8410 }
 0x6b6   : > { %16104 = vmatmul.mubr.msk.f32.vlgmr.msra.gmra.mrb[134].mxu1 %vm953_vm0, %v8049_v24  ;;  %v17642_v24 = vunpack.i.h.bf16 %v17640_v14 }
 0x6b7   : > { %17019 = vmatpush3.bf16.xpose.msk.msra.mxu1 %vm19255_vm1, %v17014_v53  ;;  %16117 = vmatprep.mubr.msk.f32.mxu1 %vm953_vm0, %v8229_v58  ;;  %v8413_v27 = vpop.permute.xlu0 %8412 }
 0x6b8   : > { %16111 = vmatmul.mubr.msk.f32.vlgmr.msra.gmra.mrb[108].mxu0 %vm953_vm0, %v21160_v52  ;;  %17028 = vmatprep.subr.msk.bf16.mxu1 %vm19255_vm1, %v17026_v42  ;;  %v17038_v49 = vpack.c.bf16 %v17642_v24, %v17641_v13 }
 0x6b9   : > { %17025 = vmatpush3.bf16.xpose.msk.msra.mxu0 %vm19255_vm1, %v17020_v28  ;;  %16124 = vmatprep.mubr.msk.f32.mxu0 %vm953_vm0, %v8320_v25  ;;  %v17652_v25 = vunpack.i.h.bf16 %v17650_v4 }
 0x6ba   : > { %17034 = vmatprep.subr.msk.bf16.mxu0 %vm19255_vm1, %v17032_v16 }
 0x6bb   : > { %v8504_v58 = vpop.permute.xlu0 %8503  ;;  %v17048_v20 = vpack.c.bf16 %v17652_v25, %v17651_v5 }
 0x6be   : > { %16118 = vmatmul.mubr.msk.f32.vlgmr.msra.gmra.mrb[136].mxu1 %vm953_vm0, %v8231_v3 }
 0x6bf   : > { %17031 = vmatpush3.bf16.xpose.msk.msra.mxu1 %vm19255_vm1, %v17026_v42  ;;  %16131 = vmatprep.mubr.msk.f32.mxu1 %vm953_vm0, %v8411_v0  ;;  %v8595_v52 = vpop.permute.xlu0 %8594 }
 0x6c0   : > { %16125 = vmatmul.mubr.msk.f32.vlgmr.msra.gmra.mrb[110].mxu0 %vm953_vm0, %v8322_v15  ;;  %17040 = vmatprep.subr.msk.bf16.mxu1 %vm19255_vm1, %v17038_v49 }
 0x6c1   : > { %17037 = vmatpush3.bf16.xpose.msk.msra.mxu0 %vm19255_vm1, %v17032_v16  ;;  %16138 = vmatprep.mubr.msk.f32.mxu0 %vm953_vm0, %v8502_v39 }
 0x6c3   : > { %v17645_v62 = vpop.permute.xlu0 %17644 }
 0x6c4   : > { %v17647_v63 = vunpack.i.h.bf16 %v17645_v62  ;;  %v17646_v61 = vunpack.i.l.bf16 %v17645_v62 }
 0x6c6   : > { %16132 = vmatmul.mubr.msk.f32.vlgmr.msra.gmra.mrb[138].mxu1 %vm953_vm0, %v8413_v27  ;;  %v17044_v29 = vpack.c.bf16 %v17647_v63, %v17646_v61 }
 0x6c7   : > { %16145 = vmatprep.mubr.msk.f32.mxu1 %vm953_vm0, %v8593_v22  ;;  %17043 = vmatpush3.bf16.xpose.msk.msra.mxu1 %vm19255_vm1, %v17038_v49  ;;  %v17655_v15 = vpop.permute.xlu0 %17654 }
 0x6c8   : > { %16139 = vmatmul.mubr.msk.f32.vlgmr.msra.gmra.mrb[112].mxu0 %vm953_vm0, %v8504_v58  ;;  %v17657_v19 = vunpack.i.h.bf16 %v17655_v15  ;;  %v17656_v3 = vunpack.i.l.bf16 %v17655_v15  ;;  %17049 = vmatprep.subr.bf16.mxu1 %v17048_v20 }
 0x6c9   : > { %17045 = vmatprep.subr.bf16.mxu0 %v17044_v29 }
 0x6ca   : > { %17047 = vmatpush3.bf16.msra.mxu0 %v17044_v29  ;;  %v21256_v56 = vpack.c.bf16 %v17657_v19, %v17656_v3 }
 0x6cb   : > { %v17660_v36 = vpop.permute.xlu0 %17659 }
 0x6cc   : > { %23605 = vst [vmem:[#allocation33_spill] sm:$0xff] %v21256_v56  ;;  %v17662_v14 = vunpack.i.h.bf16 %v17660_v36  ;;  %v17661_v53 = vunpack.i.l.bf16 %v17660_v36  ;;  %17053 = vmatprep.subr.bf16.mxu0 %v21256_v56 }
 0x6ce   : > { %16146 = vmatmul.mubr.msk.f32.vlgmr.msra.gmra.mrb[140].mxu1 %vm953_vm0, %v8595_v52  ;;  %v21260_v21 = vpack.c.bf16 %v17662_v14, %v17661_v53 }
 0x6cf   : > { %17051 = vmatpush3.bf16.msra.mxu1 %v17048_v20 }
 0x6d0   : > { %23606 = vst [vmem:[#allocation52_spill] sm:$0xff] %v21260_v21  ;;  %17057 = vmatprep.subr.bf16.mxu1 %v21260_v21 }
 0x6f4   : > { %v21263_v28 = vpop.f32.mrb[82].mxu0 }
 0x6f5   : > { %23607 = vst [vmem:[#allocation46_spill] sm:$0xff] %v21263_v28  ;;  %v21265_v57 = vpop.f32.mrb[83].mxu0 }
 0x6f6   : > { %23608 = vst [vmem:[#allocation42_spill] sm:$0xff] %v21265_v57 }
 0x6fc   : > { %v21269_v39 = vpop.f32.mrb[110].mxu1 }
 0x6fd   : > { %23609 = vst [vmem:[#allocation104_spill] sm:$0xff] %v21269_v39  ;;  %v21271_v0 = vpop.f32.mrb[111].mxu1 }
 0x6fe   : > { %23610 = vst [vmem:[#allocation19_spill] sm:$0xff] %v21271_v0 }
 0x700   : > { %v21275_v33 = vpop.f32.mrb[84].mxu0 }
 0x701   : > { %23611 = vst [vmem:[#allocation39_spill] sm:$0xff] %v21275_v33  ;;  %v21277_v42 = vpop.f32.mrb[85].mxu0 }
 0x702   : > { %23612 = vst [vmem:[#allocation58_spill] sm:$0xff] %v21277_v42 }
 0x708   : > { %v21281_v16 = vpop.f32.mrb[112].mxu1 }
 0x709   : > { %23613 = vst [vmem:[#allocation105_spill] sm:$0xff] %v21281_v16  ;;  %v21283_v22 = vpop.f32.mrb[86].mxu0  ;;  %v21285_v24 = vpop.f32.mrb[113].mxu1 }
 0x70a   : > { %23614 = vst [vmem:[#allocation53_spill] sm:$0xff] %v21283_v22  ;;  %23615 = vst [vmem:[#allocation106_spill] sm:$0xff] %v21285_v24  ;;  %v21289_v58 = vpop.f32.mrb[87].mxu0 }
 0x70b   : > { %23616 = vst [vmem:[#allocation44_spill] sm:$0xff] %v21289_v58 }
 0x711   : > { %v21293_v4 = vpop.f32.mrb[114].mxu1  ;;  %v21295_v52 = vpop.f32.mrb[88].mxu0 }
 0x712   : > { %23617 = vst [vmem:[#allocation28_spill] sm:$0xff] %v21293_v4  ;;  %23618 = vst [vmem:[#allocation117_spill] sm:$0xff] %v21295_v52  ;;  %v21297_v25 = vpop.f32.mrb[115].mxu1  ;;  %v21299_v5 = vpop.f32.mrb[89].mxu0 }
 0x713   : > { %23619 = vst [vmem:[#allocation107_spill] sm:$0xff] %v21297_v25  ;;  %23620 = vst [vmem:[#allocation30_spill] sm:$0xff] %v21299_v5 }
 0x719   : > { %v21305_v61 = vpop.f32.mrb[116].mxu1  ;;  %v21307_v20 = vpop.f32.mrb[90].mxu0 }
 0x71a   : > { %23621 = vst [vmem:[#allocation108_spill] sm:$0xff] %v21305_v61  ;;  %23622 = vst [vmem:[#allocation109_spill] sm:$0xff] %v21307_v20  ;;  %v21309_v29 = vpop.f32.mrb[117].mxu1  ;;  %v21311_v15 = vpop.f32.mrb[91].mxu0 }
 0x71b   : > { %23623 = vst [vmem:[#allocation110_spill] sm:$0xff] %v21309_v29  ;;  %23624 = vst [vmem:[#allocation111_spill] sm:$0xff] %v21311_v15 }
 0x721   : > { %v21317_v36 = vpop.f32.mrb[118].mxu1  ;;  %v21319_v14 = vpop.f32.mrb[92].mxu0 }
 0x722   : > { %23625 = vst [vmem:[#allocation17_spill] sm:$0xff] %v21317_v36  ;;  %23626 = vst [vmem:[#allocation112_spill] sm:$0xff] %v21319_v14  ;;  %v21321_v53 = vpop.f32.mrb[119].mxu1  ;;  %v21323_v62 = vpop.f32.mrb[93].mxu0 }
 0x723   : > { %23627 = vst [vmem:[#allocation119_spill] sm:$0xff] %v21321_v53  ;;  %23628 = vst [vmem:[#allocation21_spill] sm:$0xff] %v21323_v62 }
 0x729   : > { %v21329_v63 = vpop.f32.mrb[120].mxu1 }
 0x72a   : > { %23629 = vst [vmem:[#allocation25_spill] sm:$0xff] %v21329_v63  ;;  %v21331_v19 = vpop.f32.mrb[121].mxu1  ;;  %v21355_v63 = vld [vmem:[#allocation8 + $0x20] sm:$0xff] }
 0x72b   : > { %23630 = vst [vmem:[#allocation113_spill] sm:$0xff] %v21331_v19  ;;  %v21353_v19 = vld [vmem:[#allocation8 + $0x28] sm:$0xff] }
 0x731   : > { %v21335_v46 = vpop.f32.mrb[94].mxu0 }
 0x732   : > { %23631 = vst [vmem:[#allocation15_spill] sm:$0xff] %v21335_v46  ;;  %v21337_v49 = vpop.f32.mrb[95].mxu0 }
 0x733   : > { %23632 = vst [vmem:[#allocation29_spill] sm:$0xff] %v21337_v49 }
 0x755   : > { %v21341_v29 = vpop.f32.mrb[122].mxu1 }
 0x756   : > { %23633 = vst [vmem:[#allocation114_spill] sm:$0xff] %v21341_v29  ;;  %v21343_v13 = vpop.f32.mrb[123].mxu1 }
 0x757   : > { %23634 = vst [vmem:[#allocation23_spill] sm:$0xff] %v21343_v13 }
 0x759   : > { %v21347_v62 = vpop.f32.mrb[96].mxu0 }
 0x75a   : > { %23635 = vst [vmem:[#allocation18_spill] sm:$0xff] %v21347_v62  ;;  %v21349_v14 = vpop.f32.mrb[97].mxu0 }
 0x75b   : > { %23636 = vst [vmem:[#allocation26_spill] sm:$0xff] %v21349_v14 }
 0x761   : > { %v16042_v53 = vpop.f32.mrb[98].mxu0  ;;  %v21357_v27 = vpop.f32.mrb[124].mxu1 }
 0x762   : > { %23637 = vst [vmem:[#allocation20_spill] sm:$0xff] %v21357_v27  ;;  %v21360_v49 = vadd.f32 %v16042_v53, %v21353_v19  ;;  %v7309_v46 = vpop.f32.mrb[99].mxu0  ;;  %v21362_v36 = vpop.f32.mrb[125].mxu1 }
 0x763   : > { %23638 = vst [vmem:[#allocation35_spill] sm:$0xff] %v21362_v36  ;;  %v21365_v41 = vadd.f32 %v7309_v46, %v21355_v63 }
 0x764   : > { %v8686_v3 = vsel %vm2346_vm2, %v21360_v49, -inf }
 0x765   : > { %8687 = vmax.xlane.f32.xlu0 %v8686_v3  ;;  %v8683_v14 = vsel %vm2346_vm2, %v21365_v41, -inf }
 0x766   : > { %8684 = vmax.xlane.f32.xlu1 %v8683_v14 }
 0x769   : > { %v16049_v62 = vpop.f32.mrb[126].mxu1  ;;  %v16056_v53 = vpop.f32.mrb[100].mxu0 }
 0x76a   : > { %v21374_v29 = vadd.f32 %v16049_v62, %v21353_v19  ;;  %v21377_v61 = vadd.f32 %v16056_v53, %v21353_v19  ;;  %v7400_v46 = vpop.f32.mrb[127].mxu1  ;;  %v7491_v25 = vpop.f32.mrb[101].mxu0 }
 0x76b   : > { %v21380_v13 = vadd.f32 %v7400_v46, %v21355_v63  ;;  %v21383_v36 = vadd.f32 %v7491_v25, %v21355_v63 }
 0x76c   : > { %v8692_v3 = vsel %vm2346_vm2, %v21374_v29, -inf  ;;  %v8698_v14 = vsel %vm2346_vm2, %v21377_v61, -inf }
 0x76d   : > { %8693 = vmax.xlane.f32.xlu0 %v8692_v3  ;;  %8699 = vmax.xlane.f32.xlu1 %v8698_v14  ;;  %v8689_v62 = vsel %vm2346_vm2, %v21380_v13, -inf  ;;  %v8695_v53 = vsel %vm2346_vm2, %v21383_v36, -inf }
 0x771   : > { %v16063_v27 = vpop.f32.mrb[128].mxu1  ;;  %8690 = vmax.xlane.f32.xlu0 %v8689_v62  ;;  %8696 = vmax.xlane.f32.xlu1 %v8695_v53 }
 0x772   : > { %v21394_v25 = vadd.f32 %v16063_v27, %v21353_v19  ;;  %v16070_v46 = vpop.f32.mrb[102].mxu0  ;;  %v7582_v4 = vpop.f32.mrb[129].mxu1 }
 0x773   : > { %v21397_v24 = vadd.f32 %v16070_v46, %v21353_v19  ;;  %v7673_v16 = vpop.f32.mrb[103].mxu0  ;;  %v21400_v3 = vadd.f32 %v7582_v4, %v21355_v63 }
 0x774   : > { %v8704_v14 = vsel %vm2346_vm2, %v21394_v25, -inf  ;;  %v21405_v15 = vadd.f32 %v7673_v16, %v21355_v63 }
 0x775   : > { %8705 = vmax.xlane.f32.xlu0 %v8704_v14  ;;  %v8710_v27 = vsel %vm2346_vm2, %v21397_v24, -inf  ;;  %v8701_v62 = vsel %vm2346_vm2, %v21400_v3, -inf }
 0x776   : > { %8711 = vmax.xlane.f32.xlu1 %v8710_v27  ;;  %v8707_v53 = vsel %vm2346_vm2, %v21405_v15, -inf }
 0x779   : > { %8702 = vmax.xlane.f32.xlu0 %v8701_v62  ;;  %v16077_v4 = vpop.f32.mrb[130].mxu1 }
 0x77a   : > { %8708 = vmax.xlane.f32.xlu1 %v8707_v53  ;;  %v21414_v46 = vadd.f32 %v16077_v4, %v21353_v19  ;;  %v7764_v20 = vpop.f32.mrb[131].mxu1 }
 0x77b   : > { %v16084_v16 = vpop.f32.mrb[104].mxu0  ;;  %v21420_v0 = vadd.f32 %v7764_v20, %v21355_v63 }
 0x77c   : > { %v21417_v14 = vadd.f32 %v16084_v16, %v21353_v19  ;;  %v7855_v27 = vpop.f32.mrb[105].mxu0  ;;  %v8716_v62 = vsel %vm2346_vm2, %v21414_v46, -inf }
 0x77d   : > { %8717 = vmax.xlane.f32.xlu0 %v8716_v62  ;;  %v21425_v39 = vadd.f32 %v7855_v27, %v21355_v63  ;;  %v8713_v4 = vsel %vm2346_vm2, %v21420_v0, -inf  ;;  %v21436_v62 = vpop.permute.xlu1 %17664 }
 0x77e   : > { %v8722_v53 = vsel %vm2346_vm2, %v21417_v14, -inf  ;;  %23639 = vst [vmem:[#allocation32_spill] sm:$0xff] %v21436_v62 }
 0x77f   : > { %8723 = vmax.xlane.f32.xlu1 %v8722_v53  ;;  %v8719_v5 = vsel %vm2346_vm2, %v21425_v39, -inf }
 0x781   : > { %8714 = vmax.xlane.f32.xlu0 %v8713_v4  ;;  %v16091_v16 = vpop.f32.mrb[132].mxu1 }
 0x782   : > { %v21432_v20 = vadd.f32 %v16091_v16, %v21353_v19  ;;  %v7946_v52 = vpop.f32.mrb[133].mxu1 }
 0x783   : > { %v16098_v27 = vpop.f32.mrb[106].mxu0  ;;  %8720 = vmax.xlane.f32.xlu1 %v8719_v5  ;;  %v21442_v53 = vadd.f32 %v7946_v52, %v21355_v63 }
 0x784   : > { %v21439_v57 = vadd.f32 %v16098_v27, %v21353_v19  ;;  %v8037_v28 = vpop.f32.mrb[107].mxu0  ;;  %v8728_v4 = vsel %vm2346_vm2, %v21432_v20, -inf  ;;  %v21453_v27 = vpop.permute.xlu1 %17669 }
 0x785   : > { %8729 = vmax.xlane.f32.xlu0 %v8728_v4  ;;  %v21447_v16 = vadd.f32 %v8037_v28, %v21355_v63  ;;  %v8725_v5 = vsel %vm2346_vm2, %v21442_v53, -inf  ;;  %23640 = vst [vmem:[#allocation31_spill] sm:$0xff] %v21453_v27 }
 0x786   : > { %v8734_v58 = vsel %vm2346_vm2, %v21439_v57, -inf }
 0x787   : > { %8735 = vmax.xlane.f32.xlu1 %v8734_v58  ;;  %v8731_v4 = vsel %vm2346_vm2, %v21447_v16, -inf }
 0x788   : > { %v21473_v37 = vpop.permute.xlu1 %17674 }
 0x789   : > { %8726 = vmax.xlane.f32.xlu0 %v8725_v5  ;;  %v16105_v52 = vpop.f32.mrb[134].mxu1  ;;  %23641 = vst [vmem:[#allocation24_spill] sm:$0xff] %v21473_v37 }
 0x78a   : > { %v21456_v22 = vadd.f32 %v16105_v52, %v21353_v19  ;;  %v8128_v42 = vpop.f32.mrb[135].mxu1 }
 0x78b   : > { %v16112_v28 = vpop.f32.mrb[108].mxu0  ;;  %8732 = vmax.xlane.f32.xlu1 %v8731_v4  ;;  %v21464_v58 = vadd.f32 %v8128_v42, %v21355_v63 }
 0x78c   : > { %v21461_v33 = vadd.f32 %v16112_v28, %v21353_v19  ;;  %v8219_v10 = vpop.f32.mrb[109].mxu0  ;;  %v8740_v5 = vsel %vm2346_vm2, %v21456_v22, -inf  ;;  %v21490_v51 = vpop.permute.xlu1 %17684 }
 0x78d   : > { %8741 = vmax.xlane.f32.xlu0 %v8740_v5  ;;  %v21469_v52 = vadd.f32 %v8219_v10, %v21355_v63  ;;  %v8737_v4 = vsel %vm2346_vm2, %v21464_v58, -inf  ;;  %23642 = vst [vmem:[#allocation27_spill] sm:$0xff] %v21490_v51 }
 0x78e   : > { %v8746_v11 = vsel %vm2346_vm2, %v21461_v33, -inf }
 0x78f   : > { %8747 = vmax.xlane.f32.xlu1 %v8746_v11  ;;  %v8743_v5 = vsel %vm2346_vm2, %v21469_v52, -inf }
 0x791   : > { %8738 = vmax.xlane.f32.xlu0 %v8737_v4  ;;  %v16119_v42 = vpop.f32.mrb[136].mxu1 }
 0x792   : > { %v21478_v28 = vadd.f32 %v16119_v42, %v21353_v19  ;;  %v8310_v6 = vpop.f32.mrb[137].mxu1 }
 0x793   : > { %v16126_v10 = vpop.f32.mrb[110].mxu0  ;;  %8744 = vmax.xlane.f32.xlu1 %v8743_v5  ;;  %v21486_v21 = vadd.f32 %v8310_v6, %v21355_v63 }
 0x794   : > { %v21483_v2 = vadd.f32 %v16126_v10, %v21353_v19  ;;  %v8401_v11 = vpop.f32.mrb[111].mxu0  ;;  %v8752_v4 = vsel %vm2346_vm2, %v21478_v28, -inf }
 0x795   : > { %8753 = vmax.xlane.f32.xlu0 %v8752_v4  ;;  %v21493_v42 = vadd.f32 %v8401_v11, %v21355_v63  ;;  %v8749_v5 = vsel %vm2346_vm2, %v21486_v21, -inf  ;;  %v21504_v4 = vpop.permute.xlu1 %17689 }
 0x796   : > { %v8758_v37 = vsel %vm2346_vm2, %v21483_v2, -inf  ;;  %23643 = vst [vmem:[#allocation115_spill] sm:$0xff] %v21504_v4 }
 0x797   : > { %8759 = vmax.xlane.f32.xlu1 %v8758_v37  ;;  %v8755_v27 = vsel %vm2346_vm2, %v21493_v42, -inf }
 0x799   : > { %v16133_v10 = vpop.f32.mrb[138].mxu1  ;;  %8750 = vmax.xlane.f32.xlu0 %v8749_v5  ;;  %v21519_v4 = vpop.permute.xlu1 %17694 }
 0x79a   : > { %v21500_v6 = vadd.f32 %v16133_v10, %v21353_v19  ;;  %v8492_v51 = vpop.f32.mrb[139].mxu1  ;;  %23644 = vst [vmem:[#allocation116_spill] sm:$0xff] %v21519_v4 }
 0x79b   : > { %v16140_v11 = vpop.f32.mrb[112].mxu0  ;;  %8756 = vmax.xlane.f32.xlu1 %v8755_v27  ;;  %v21507_v54 = vadd.f32 %v8492_v51, %v21355_v63 }
 0x79c   : > { %v8583_v37 = vpop.f32.mrb[113].mxu0  ;;  %v8764_v56 = vsel %vm2346_vm2, %v21500_v6, -inf  ;;  %v21517_v50 = vadd.f32 %v16140_v11, %v21353_v19 }
 0x79d   : > { %v21512_v5 = vadd.f32 %v8583_v37, %v21355_v63  ;;  %v8761_v10 = vsel %vm2346_vm2, %v21507_v54, -inf  ;;  %v21535_v4 = vpop.permute.xlu1 %17699 }
 0x79e   : > { %8762 = vmax.xlane.f32.xlu0 %v8761_v10  ;;  %v8770_v37 = vsel %vm2346_vm2, %v21517_v50, -inf  ;;  %23645 = vst [vmem:[#allocation118_spill] sm:$0xff] %v21535_v4 }
 0x79f   : > { %8765 = vmax.xlane.f32.xlu1 %v8764_v56  ;;  %v8767_v51 = vsel %vm2346_vm2, %v21512_v5, -inf }
 0x7a1   : > { %v16147_v27 = vpop.f32.mrb[140].mxu1 }
 0x7a2   : > { %v21524_v62 = vadd.f32 %v16147_v27, %v21353_v19  ;;  %v8674_v59 = vpop.f32.mrb[141].mxu1  ;;  %8768 = vmax.xlane.f32.xlu0 %v8767_v51  ;;  %v21537_v19 = vpop.permute.xlu1 %17704 }
 0x7a3   : > { %8771 = vmax.xlane.f32.xlu1 %v8770_v37  ;;  %v21529_v11 = vadd.f32 %v8674_v59, %v21355_v63  ;;  %23646 = vst [vmem:[#allocation121_spill] sm:$0xff] %v21537_v19  ;;  %v23649_v59 = vld [vmem:[#allocation37_spill] sm:$0xff] }
 0x7a4   : > { %v8776_v56 = vsel %vm2346_vm2, %v21524_v62, -inf }
 0x7a5   : > { %v8773_v10 = vsel %vm2346_vm2, %v21529_v11, -inf }
 0x7a6   : > { %8774 = vmax.xlane.f32.xlu0 %v8773_v10  ;;  %v21539_v27 = vpop.permute.xlu1 %17709  ;;  %v21551_v10 = vpop.permute.xlu0 %17679 }
 0x7a7   : > { %8777 = vmax.xlane.f32.xlu1 %v8776_v56  ;;  %23647 = vst [vmem:[#allocation124_spill] sm:$0xff] %v21539_v27  ;;  %23652 = vst [vmem:[#allocation127_spill] sm:$0xff] %v21551_v10 }
 0x7aa   : > { %v21543_v51 = vpop.permute.xlu1 %17719  ;;  %v21555_v56 = vpop.permute.xlu0 %17714 }
 0x7ab   : > { %23648 = vst [vmem:[#allocation120_spill] sm:$0xff] %v21543_v51  ;;  %23654 = vst [vmem:[#allocation126_spill] sm:$0xff] %v21555_v56 }
 0x7ae   : > { %v21547_v63 = vpop.permute.xlu1 %17724  ;;  %v21559_v27 = vpop.permute.xlu0 %10429 }
 0x7af   : > { %23650 = vst [vmem:[#allocation125_spill] sm:$0xff] %v21547_v63  ;;  %23656 = vst [vmem:[#allocation129_spill] sm:$0xff] %v21559_v27 }
 0x7b2   : > { %v21549_v37 = vpop.permute.xlu1 %17729  ;;  %v21563_v51 = vpop.permute.xlu0 %10518 }
 0x7b3   : > { %23651 = vst [vmem:[#allocation122_spill] sm:$0xff] %v21549_v37  ;;  %23658 = vst [vmem:[#allocation130_spill] sm:$0xff] %v21563_v51 }
 0x7b6   : > { %v21553_v4 = vpop.permute.xlu1 %17734 }
 0x7b7   : > { %23653 = vst [vmem:[#allocation123_spill] sm:$0xff] %v21553_v4 }
 0x7b8   : > { %10791 = vrot.lane.b32.xlu1 %v23531_v26, %s18836_s11 }
 0x7ba   : > { %v21557_v19 = vpop.permute.xlu1 %10427 }
 0x7bb   : > { %23655 = vst [vmem:[#allocation128_spill] sm:$0xff] %v21557_v19 }
 0x7bc   : > { %17754 = vrot.lane.b32.xlu0 %v23649_v59, %s18836_s11  ;;  %v21567_v59 = vpop.permute.xlu0 %17744 }
 0x7bd   : > { %23660 = vst [vmem:[#allocation132_spill] sm:$0xff] %v21567_v59 }
 0x7be   : > { %v21561_v26 = vpop.permute.xlu1 %17739 }
 0x7bf   : > { %23657 = vst [vmem:[#allocation37_spill] sm:$0xff] %v21561_v26 }
 0x7c0   : > { %v21571_v37 = vpop.permute.xlu0 %10611 }
 0x7c1   : > { %23662 = vst [vmem:[#allocation134_spill] sm:$0xff] %v21571_v37 }
 0x7c2   : > { %v21565_v18 = vpop.permute.xlu1 %10520 }
 0x7c3   : > { %23659 = vst [vmem:[#allocation131_spill] sm:$0xff] %v21565_v18 }
 0x7c4   : > { %v21575_v4 = vpop.permute.xlu0 %10700 }
 0x7c5   : > { %23664 = vst [vmem:[#allocation136_spill] sm:$0xff] %v21575_v4 }
 0x7c6   : > { %v21569_v63 = vpop.permute.xlu1 %10609 }
 0x7c7   : > { %23661 = vst [vmem:[#allocation133_spill] sm:$0xff] %v21569_v63 }
 0x7ca   : > { %v21573_v10 = vpop.permute.xlu1 %17749 }
 0x7cb   : > { %23663 = vst [vmem:[#allocation135_spill] sm:$0xff] %v21573_v10 }
 0x7ce   : > { %v21577_v56 = vpop.permute.xlu1 %10702 }
 0x7cf   : > { %23665 = vst [vmem:[#allocation137_spill] sm:$0xff] %v21577_v56 }
 0x7f2   : > { %v8688_v19 = vpop.xlane.xlu0 %8687 }
 0x7f3   : > { %v8780_v27 = vsub.f32 %v21360_v49, %v8688_v19  ;;  %v8685_v26 = vpop.xlane.xlu1 %8684 }
 0x7f4   : > { %v8779_v51 = vsub.f32 %v21365_v41, %v8685_v26 }
 0x7f5   : > { %v8813_v43 = vmul.f32 1.442695, %v8780_v27 }
 0x7f6   : > { %v8811_v18 = vmul.f32 1.442695, %v8779_v51 }
 0x7f7   : > { %18379 = vpow2.f32 %v8813_v43 }
 0x7f8   : > { %18381 = vpow2.f32 %v8811_v18 }
 0x7fa   : > { %v8694_v59 = vpop.xlane.xlu0 %8693  ;;  %v8700_v63 = vpop.xlane.xlu1 %8699 }
 0x7fb   : > { %v8782_v37 = vsub.f32 %v21374_v29, %v8694_v59  ;;  %v8784_v10 = vsub.f32 %v21377_v61, %v8700_v63 }
 0x7fd   : > { %v8817_v30 = vmul.f32 1.442695, %v8782_v37  ;;  %v8821_v4 = vmul.f32 1.442695, %v8784_v10 }
 0x7fe   : > { %v8691_v12 = vpop.xlane.xlu0 %8690  ;;  %v8697_v56 = vpop.xlane.xlu1 %8696 }
 0x7ff   : > { %18383 = vpow2.f32 %v8817_v30  ;;  %v8781_v49 = vsub.f32 %v21380_v13, %v8691_v12  ;;  %v8783_v19 = vsub.f32 %v21383_v36, %v8697_v56 }
 0x800   : > { %18385 = vpow2.f32 %v8821_v4 }
 0x801   : > { %v21585_v41 = vpop.eup %18379  ;;  %v8815_v43 = vmul.f32 1.442695, %v8781_v49  ;;  %v8819_v18 = vmul.f32 1.442695, %v8783_v19 }
 0x802   : > { %v21587_v27 = vpop.eup %18381  ;;  %v8706_v51 = vpop.xlane.xlu0 %8705  ;;  %v8878_v61 = vsel %vm2346_vm2, %v21585_v41, 0.0 }
 0x803   : > { %18387 = vpow2.f32 %v8815_v43  ;;  %v8786_v29 = vsub.f32 %v21394_v25, %v8706_v51  ;;  %v8712_v63 = vpop.xlane.xlu1 %8711  ;;  %8879 = vadd.xlane.f32.xlu1 %v8878_v61  ;;  %v8875_v12 = vsel %vm2346_vm2, %v21587_v27, 0.0 }
 0x804   : > { %18389 = vpow2.f32 %v8819_v18  ;;  %v8788_v30 = vsub.f32 %v21397_v24, %v8712_v63  ;;  %8876 = vadd.xlane.f32.xlu0 %v8875_v12 }
 0x805   : > { %v8825_v13 = vmul.f32 1.442695, %v8786_v29 }
 0x806   : > { %v8829_v36 = vmul.f32 1.442695, %v8788_v30  ;;  %v8703_v4 = vpop.xlane.xlu0 %8702 }
 0x807   : > { %18391 = vpow2.f32 %v8825_v13  ;;  %v8785_v37 = vsub.f32 %v21400_v3, %v8703_v4  ;;  %v8709_v10 = vpop.xlane.xlu1 %8708 }
 0x808   : > { %18393 = vpow2.f32 %v8829_v36  ;;  %v8787_v56 = vsub.f32 %v21405_v15, %v8709_v10 }
 0x809   : > { %v21597_v25 = vpop.eup %18383  ;;  %v8823_v26 = vmul.f32 1.442695, %v8785_v37 }
 0x80a   : > { %v21599_v59 = vpop.eup %18385  ;;  %v8827_v49 = vmul.f32 1.442695, %v8787_v56  ;;  %v8718_v19 = vpop.xlane.xlu0 %8717  ;;  %v8884_v24 = vsel %vm2346_vm2, %v21597_v25, 0.0 }
 0x80b   : > { %18395 = vpow2.f32 %v8823_v26  ;;  %v8790_v43 = vsub.f32 %v21414_v46, %v8718_v19  ;;  %8885 = vadd.xlane.f32.xlu0 %v8884_v24  ;;  %v8890_v3 = vsel %vm2346_vm2, %v21599_v59, 0.0 }
 0x80c   : > { %18397 = vpow2.f32 %v8827_v49  ;;  %v8724_v18 = vpop.xlane.xlu1 %8723  ;;  %8891 = vadd.xlane.f32.xlu1 %v8890_v3 }
 0x80d   : > { %v21606_v15 = vpop.eup %18387  ;;  %v8833_v51 = vmul.f32 1.442695, %v8790_v43  ;;  %v8792_v61 = vsub.f32 %v21417_v14, %v8724_v18 }
 0x80e   : > { %v21609_v29 = vpop.eup %18389  ;;  %v8715_v63 = vpop.xlane.xlu0 %8714  ;;  %v8881_v12 = vsel %vm2346_vm2, %v21606_v15, 0.0 }
 0x80f   : > { %18399 = vpow2.f32 %v8833_v51  ;;  %v8837_v46 = vmul.f32 1.442695, %v8792_v61  ;;  %v8789_v30 = vsub.f32 %v21420_v0, %v8715_v63  ;;  %8882 = vadd.xlane.f32.xlu0 %v8881_v12  ;;  %v8887_v13 = vsel %vm2346_vm2, %v21609_v29, 0.0 }
 0x810   : > { %v8721_v36 = vpop.xlane.xlu1 %8720  ;;  %8888 = vadd.xlane.f32.xlu1 %v8887_v13 }
 0x811   : > { %v21616_v4 = vpop.eup %18391  ;;  %18401 = vpow2.f32 %v8837_v46  ;;  %v8831_v14 = vmul.f32 1.442695, %v8789_v30  ;;  %v8791_v37 = vsub.f32 %v21425_v39, %v8721_v36 }
 0x812   : > { %v21619_v10 = vpop.eup %18393  ;;  %v8730_v56 = vpop.xlane.xlu0 %8729  ;;  %v8896_v26 = vsel %vm2346_vm2, %v21616_v4, 0.0 }
 0x813   : > { %18403 = vpow2.f32 %v8831_v14  ;;  %v8835_v0 = vmul.f32 1.442695, %v8791_v37  ;;  %v8794_v49 = vsub.f32 %v21432_v20, %v8730_v56  ;;  %8897 = vadd.xlane.f32.xlu0 %v8896_v26  ;;  %v8902_v19 = vsel %vm2346_vm2, %v21619_v10, 0.0 }
 0x814   : > { %v8736_v24 = vpop.xlane.xlu1 %8735  ;;  %8903 = vadd.xlane.f32.xlu1 %v8902_v19 }
 0x815   : > { %v21626_v43 = vpop.eup %18395  ;;  %18405 = vpow2.f32 %v8835_v0  ;;  %v8841_v39 = vmul.f32 1.442695, %v8794_v49  ;;  %v8796_v3 = vsub.f32 %v21439_v57, %v8736_v24 }
 0x816   : > { %v21629_v18 = vpop.eup %18397  ;;  %v8727_v51 = vpop.xlane.xlu0 %8726  ;;  %v8893_v61 = vsel %vm2346_vm2, %v21626_v43, 0.0 }
 0x817   : > { %18407 = vpow2.f32 %v8841_v39  ;;  %v8845_v20 = vmul.f32 1.442695, %v8796_v3  ;;  %v8793_v63 = vsub.f32 %v21442_v53, %v8727_v51  ;;  %8894 = vadd.xlane.f32.xlu0 %v8893_v61  ;;  %v8899_v12 = vsel %vm2346_vm2, %v21629_v18, 0.0 }
 0x818   : > { %v8733_v46 = vpop.xlane.xlu1 %8732  ;;  %8900 = vadd.xlane.f32.xlu1 %v8899_v12 }
 0x819   : > { %v21636_v30 = vpop.eup %18399  ;;  %18409 = vpow2.f32 %v8845_v20  ;;  %v8839_v57 = vmul.f32 1.442695, %v8793_v63  ;;  %v8795_v13 = vsub.f32 %v21447_v16, %v8733_v46 }
 0x81a   : > { %v8742_v36 = vpop.xlane.xlu0 %8741  ;;  %v8908_v14 = vsel %vm2346_vm2, %v21636_v30, 0.0 }
 0x81b   : > { %v21641_v37 = vpop.eup %18401  ;;  %18411 = vpow2.f32 %v8839_v57  ;;  %v8843_v53 = vmul.f32 1.442695, %v8795_v13  ;;  %v8798_v56 = vsub.f32 %v21456_v22, %v8742_v36  ;;  %8909 = vadd.xlane.f32.xlu0 %v8908_v14 }
 0x81c   : > { %v8748_v26 = vpop.xlane.xlu1 %8747  ;;  %v8914_v0 = vsel %vm2346_vm2, %v21641_v37, 0.0 }
 0x81d   : > { %v21646_v49 = vpop.eup %18403  ;;  %18413 = vpow2.f32 %v8843_v53  ;;  %v8849_v19 = vmul.f32 1.442695, %v8798_v56  ;;  %v8800_v16 = vsub.f32 %v21461_v33, %v8748_v26  ;;  %8915 = vadd.xlane.f32.xlu1 %v8914_v0 }
 0x81e   : > { %v8739_v24 = vpop.xlane.xlu0 %8738  ;;  %v8905_v39 = vsel %vm2346_vm2, %v21646_v49, 0.0 }
 0x81f   : > { %v21651_v3 = vpop.eup %18405  ;;  %18415 = vpow2.f32 %v8849_v19  ;;  %v8853_v22 = vmul.f32 1.442695, %v8800_v16  ;;  %v8797_v51 = vsub.f32 %v21464_v58, %v8739_v24  ;;  %8906 = vadd.xlane.f32.xlu0 %v8905_v39 }
 0x820   : > { %v8745_v61 = vpop.xlane.xlu1 %8744  ;;  %v8911_v20 = vsel %vm2346_vm2, %v21651_v3, 0.0 }
 0x821   : > { %v21656_v63 = vpop.eup %18407  ;;  %18417 = vpow2.f32 %v8853_v22  ;;  %v8847_v33 = vmul.f32 1.442695, %v8797_v51  ;;  %v8799_v12 = vsub.f32 %v21469_v52, %v8745_v61  ;;  %8912 = vadd.xlane.f32.xlu1 %v8911_v20 }
 0x822   : > { %v8754_v46 = vpop.xlane.xlu0 %8753  ;;  %v8920_v57 = vsel %vm2346_vm2, %v21656_v63, 0.0 }
 0x823   : > { %v21661_v13 = vpop.eup %18409  ;;  %18419 = vpow2.f32 %v8847_v33  ;;  %v8851_v58 = vmul.f32 1.442695, %v8799_v12  ;;  %v8802_v36 = vsub.f32 %v21478_v28, %v8754_v46  ;;  %8921 = vadd.xlane.f32.xlu0 %v8920_v57 }
 0x824   : > { %v8760_v14 = vpop.xlane.xlu1 %8759  ;;  %v8926_v53 = vsel %vm2346_vm2, %v21661_v13, 0.0 }
 0x825   : > { %v21666_v56 = vpop.eup %18411  ;;  %18421 = vpow2.f32 %v8851_v58  ;;  %v8857_v52 = vmul.f32 1.442695, %v8802_v36  ;;  %8927 = vadd.xlane.f32.xlu1 %v8926_v53  ;;  %v8804_v16 = vsub.f32 %v21483_v2, %v8760_v14 }
 0x826   : > { %v8751_v26 = vpop.xlane.xlu0 %8750  ;;  %v8917_v0 = vsel %vm2346_vm2, %v21666_v56, 0.0 }
 0x827   : > { %v21670_v19 = vpop.eup %18413  ;;  %18423 = vpow2.f32 %v8857_v52  ;;  %v8801_v28 = vsub.f32 %v21486_v21, %v8751_v26  ;;  %8918 = vadd.xlane.f32.xlu0 %v8917_v0  ;;  %v8861_v33 = vmul.f32 1.442695, %v8804_v16 }
 0x828   : > { %v8757_v24 = vpop.xlane.xlu1 %8756  ;;  %v8923_v39 = vsel %vm2346_vm2, %v21670_v19, 0.0 }
 0x829   : > { %v21676_v22 = vpop.eup %18415  ;;  %v8855_v51 = vmul.f32 1.442695, %v8801_v28  ;;  %8924 = vadd.xlane.f32.xlu1 %v8923_v39  ;;  %v8803_v2 = vsub.f32 %v21493_v42, %v8757_v24 }
 0x82a   : > { %v8932_v61 = vsel %vm2346_vm2, %v21676_v22, 0.0 }
 0x82b   : > { %v21680_v20 = vpop.eup %18417  ;;  %18425 = vpow2.f32 %v8855_v51  ;;  %v8763_v12 = vpop.xlane.xlu0 %8762  ;;  %8933 = vadd.xlane.f32.xlu0 %v8932_v61  ;;  %v8859_v52 = vmul.f32 1.442695, %v8803_v2 }
 0x82c   : > { %v8766_v21 = vpop.xlane.xlu1 %8765  ;;  %v8805_v46 = vsub.f32 %v21507_v54, %v8763_v12  ;;  %v8938_v57 = vsel %vm2346_vm2, %v21680_v20, 0.0  ;;  %18427 = vpow2.f32 %v8861_v33 }
 0x82d   : > { %v21686_v58 = vpop.eup %18419  ;;  %8939 = vadd.xlane.f32.xlu1 %v8938_v57  ;;  %v8806_v42 = vsub.f32 %v21500_v6, %v8766_v21 }
 0x82e   : > { %v8863_v36 = vmul.f32 1.442695, %v8805_v46  ;;  %v8929_v14 = vsel %vm2346_vm2, %v21686_v58, 0.0 }
 0x82f   : > { %v21690_v53 = vpop.eup %18421  ;;  %8930 = vadd.xlane.f32.xlu0 %v8929_v14  ;;  %v8769_v26 = vpop.xlane.xlu0 %8768  ;;  %v8865_v6 = vmul.f32 1.442695, %v8806_v42 }
 0x830   : > { %18429 = vpow2.f32 %v8863_v36  ;;  %v8772_v54 = vpop.xlane.xlu1 %8771  ;;  %v8807_v0 = vsub.f32 %v21512_v5, %v8769_v26  ;;  %v8935_v16 = vsel %vm2346_vm2, %v21690_v53, 0.0 }
 0x831   : > { %v21696_v28 = vpop.eup %18423  ;;  %8936 = vadd.xlane.f32.xlu1 %v8935_v16  ;;  %v8808_v24 = vsub.f32 %v21517_v50, %v8772_v54  ;;  %18431 = vpow2.f32 %v8859_v52 }
 0x832   : > { %v8867_v39 = vmul.f32 1.442695, %v8807_v0  ;;  %v8944_v51 = vsel %vm2346_vm2, %v21696_v28, 0.0 }
 0x833   : > { %v8775_v61 = vpop.xlane.xlu0 %8774  ;;  %v8869_v21 = vmul.f32 1.442695, %v8808_v24 }
 0x834   : > { %18433 = vpow2.f32 %v8867_v39  ;;  %v8778_v33 = vpop.xlane.xlu1 %8777  ;;  %v8809_v2 = vsub.f32 %v21529_v11, %v8775_v61 }
 0x835   : > { %v21702_v5 = vpop.eup %18425  ;;  %v8810_v12 = vsub.f32 %v21524_v62, %v8778_v33  ;;  %8945 = vadd.xlane.f32.xlu1 %v8944_v51  ;;  %18435 = vpow2.f32 %v8865_v6 }
 0x836   : > { %v8941_v50 = vsel %vm2346_vm2, %v21702_v5, 0.0  ;;  %v8871_v57 = vmul.f32 1.442695, %v8809_v2  ;;  %v21707_v36 = vpop.eup %18427 }
 0x837   : > { %v8873_v46 = vmul.f32 1.442695, %v8810_v12  ;;  %v8950_v62 = vsel %vm2346_vm2, %v21707_v36, 0.0  ;;  %v23679_v12 = vld [vmem:[#allocation36_spill] sm:$0xff] }
 0x839   : > { %18437 = vpow2.f32 %v8873_v46  ;;  %8942 = vadd.xlane.f32.xlu1 %v8941_v50  ;;  %v23680_v50 = vld [vmem:[#allocation72_spill] sm:$0xff] }
 0x83a   : > { %v21709_v14 = vpop.eup %18429  ;;  %18439 = vpow2.f32 %v8869_v21 }
 0x83b   : > { %18441 = vpow2.f32 %v8871_v57  ;;  %v8953_v11 = vsel %vm2346_vm2, %v21709_v14, 0.0  ;;  %v21715_v52 = vpop.eup %18431  ;;  %v23681_v57 = vld [vmem:[#allocation32_spill] sm:$0xff] }
 0x83c   : > { %8954 = vadd.xlane.f32.xlu0 %v8953_v11  ;;  %v8947_v54 = vsel %vm2346_vm2, %v21715_v52, 0.0  ;;  %v17667_v11 = vunpack.i.h.bf16 %v23681_v57 }
 0x83d   : > { %8951 = vadd.xlane.f32.xlu1 %v8950_v62  ;;  %v17666_v62 = vunpack.i.l.bf16 %v23681_v57  ;;  %v23691_v57 = vld [vmem:[#allocation55_spill] sm:$0xff] }
 0x83e   : > { %v21717_v42 = vpop.eup %18433 }
 0x83f   : > { %v8959_v26 = vsel %vm2346_vm2, %v21717_v42, 0.0  ;;  %v21723_v0 = vpop.eup %18435 }
 0x840   : > { %8960 = vadd.xlane.f32.xlu0 %v8959_v26  ;;  %v8956_v39 = vsel %vm2346_vm2, %v21723_v0, 0.0 }
 0x841   : > { %8948 = vadd.xlane.f32.xlu1 %v8947_v54 }
 0x843   : > { %v21725_v16 = vpop.eup %18437 }
 0x844   : > { %v21727_v24 = vpop.eup %18439  ;;  %v8968_v51 = vsel %vm2346_vm2, %v21725_v16, 0.0 }
 0x845   : > { %v21733_v6 = vpop.eup %18441  ;;  %8957 = vadd.xlane.f32.xlu1 %v8956_v39  ;;  %8969 = vadd.xlane.f32.xlu0 %v8968_v51  ;;  %v8962_v61 = vsel %vm2346_vm2, %v21727_v24, 0.0  ;;  %v23682_v51 = vld [vmem:[#allocation40_spill] sm:$0xff] }
 0x846   : > { %v8965_v33 = vsel %vm2346_vm2, %v21733_v6, 0.0 }
 0x849   : > { %8963 = vadd.xlane.f32.xlu1 %v8962_v61  ;;  %8966 = vadd.xlane.f32.xlu0 %v8965_v33  ;;  %v23683_v33 = vld [vmem:[#allocation38_spill] sm:$0xff] }
 0x85a   : > { %17759 = vrot.lane.b32.xlu1 %v19478_v1, %s18836_s11  ;;  %v23666_v1 = vld [vmem:[#allocation47_spill] sm:$0xff] }
 0x85e   : > { %10884 = vrot.lane.b32.xlu1 %v19446_v38, %s18836_s11  ;;  %v23669_v38 = vld [vmem:[#allocation62_spill] sm:$0xff] }
 0x85f   : > { %10793 = vrot.lane.b32.xlu0 %v19418_v32, %s18836_s11  ;;  %v23671_v32 = vld [vmem:[#allocation59_spill] sm:$0xff] }
 0x862   : > { %10973 = vrot.lane.b32.xlu1 %v19450_v17, %s18836_s11  ;;  %v23668_v17 = vld [vmem:[#allocation66_spill] sm:$0xff] }
 0x863   : > { %10882 = vrot.lane.b32.xlu0 %v19422_v35, %s18836_s11  ;;  %v23672_v35 = vld [vmem:[#allocation34_spill] sm:$0xff] }
 0x866   : > { %17769 = vrot.lane.b32.xlu1 %v23532_v45, %s18836_s11 }
 0x867   : > { %17764 = vrot.lane.b32.xlu0 %v19510_v8, %s18836_s11  ;;  %v23670_v8 = vld [vmem:[#allocation63_spill] sm:$0xff] }
 0x86a   : > { %11066 = vrot.lane.b32.xlu1 %v23534_v60, %s18836_s11 }
 0x86b   : > { %10975 = vrot.lane.b32.xlu0 %v19474_v7, %s18836_s11  ;;  %v23667_v7 = vld [vmem:[#allocation22_spill] sm:$0xff] }
 0x86e   : > { %11155 = vrot.lane.b32.xlu1 %v23536_v48, %s18836_s11  ;;  %v23675_v48 = vld [vmem:[#allocation78_spill] sm:$0xff] }
 0x86f   : > { %11064 = vrot.lane.b32.xlu0 %v19482_v34, %s18836_s11  ;;  %v21789_v34 = vpop.permute.xlu1 %10791 }
 0x872   : > { %17779 = vrot.lane.b32.xlu1 %v23539_v40, %s18836_s11  ;;  %v23676_v40 = vld [vmem:[#allocation67_spill] sm:$0xff] }
 0x873   : > { %17774 = vrot.lane.b32.xlu0 %v19566_v47, %s18836_s11  ;;  %v23673_v47 = vld [vmem:[#allocation75_spill] sm:$0xff] }
 0x876   : > { %11248 = vrot.lane.b32.xlu1 %v23542_v55, %s18836_s11  ;;  %v23677_v55 = vld [vmem:[#allocation81_spill] sm:$0xff] }
 0x877   : > { %11157 = vrot.lane.b32.xlu0 %v19536_v31, %s18836_s11  ;;  %v21791_v31 = vpop.permute.xlu0 %17754 }
 0x87a   : > { %11337 = vrot.lane.b32.xlu1 %v23545_v9, %s18836_s11  ;;  %v23674_v9 = vld [vmem:[#allocation70_spill] sm:$0xff] }
 0x87b   : > { %11246 = vrot.lane.b32.xlu0 %v23666_v1, %s18836_s11 }
 0x87e   : > { %17789 = vrot.lane.b32.xlu1 %v23549_v44, %s18836_s11  ;;  %v23678_v44 = vld [vmem:[#allocation71_spill] sm:$0xff] }
 0x87f   : > { %17784 = vrot.lane.b32.xlu0 %v23667_v7, %s18836_s11  ;;  %v17060_v7 = vpack.c.bf16 %v17667_v11, %v17666_v62 }
 0x882   : > { %11430 = vrot.lane.b32.xlu1 %v23668_v17, %s18836_s11  ;;  %v23684_v17 = vld [vmem:[#allocation33_spill] sm:$0xff] }
 0x883   : > { %11339 = vrot.lane.b32.xlu0 %v23669_v38, %s18836_s11 }
 0x886   : > { %11519 = vrot.lane.b32.xlu1 %v23670_v8, %s18836_s11  ;;  %v23686_v8 = vld [vmem:[#allocation45_spill] sm:$0xff] }
 0x887   : > { %11428 = vrot.lane.b32.xlu0 %v23671_v32, %s18836_s11 }
 0x88a   : > { %17799 = vrot.lane.b32.xlu1 %v23672_v35, %s18836_s11 }
 0x88b   : > { %17794 = vrot.lane.b32.xlu0 %v23555_v23, %s18836_s11 }
 0x88e   : > { %11612 = vrot.lane.b32.xlu1 %v23673_v47, %s18836_s11 }
 0x88f   : > { %11521 = vrot.lane.b32.xlu0 %v23674_v9, %s18836_s11  ;;  %v23687_v9 = vld [vmem:[#allocation49_spill] sm:$0xff] }
 0x890   : > { %v8880_v45 = vpop.xlane.xlu1 %8879 }
 0x891   : > { %18443 = vrcp.f32 %v8880_v45  ;;  %v8877_v60 = vpop.xlane.xlu0 %8876 }
 0x892   : > { %11703 = vrot.lane.b32.xlu1 %v23675_v48, %s18836_s11  ;;  %18445 = vrcp.f32 %v8877_v60  ;;  %v23688_v60 = vld [vmem:[#allocation31_spill] sm:$0xff] }
 0x893   : > { %11610 = vrot.lane.b32.xlu0 %v23676_v40, %s18836_s11  ;;  %v17672_v48 = vunpack.i.h.bf16 %v23688_v60  ;;  %v23689_v40 = vld [vmem:[#allocation51_spill] sm:$0xff] }
 0x896   : > { %11794 = vrot.lane.b32.xlu1 %v23677_v55, %s18836_s11 }
 0x897   : > { %11701 = vrot.lane.b32.xlu0 %v23678_v44, %s18836_s11  ;;  %v17671_v44 = vunpack.i.l.bf16 %v23688_v60 }
 0x898   : > { %v8886_v23 = vpop.xlane.xlu0 %8885 }
 0x899   : > { %v8892_v2 = vpop.xlane.xlu1 %8891  ;;  %18447 = vrcp.f32 %v8886_v23  ;;  %v23690_v23 = vld [vmem:[#allocation24_spill] sm:$0xff] }
 0x89a   : > { %17804 = vrot.lane.b32.xlu1 %v23679_v12, %s18836_s11  ;;  %18449 = vrcp.f32 %v8892_v2  ;;  %v17677_v2 = vunpack.i.h.bf16 %v23690_v23  ;;  %v17676_v12 = vunpack.i.l.bf16 %v23690_v23 }
 0x89b   : > { %v18444_v21 = vpop.eup %18443  ;;  %11792 = vrot.lane.b32.xlu0 %v23680_v50, %s18836_s11 }
 0x89c   : > { %v18446_v46 = vpop.eup %18445  ;;  %v8883_v26 = vpop.xlane.xlu0 %8882  ;;  %v8974_v61 = vmul.f32 %v18444_v21, %v21585_v41 }
 0x89d   : > { %18451 = vrcp.f32 %v8883_v26  ;;  %v8889_v54 = vpop.xlane.xlu1 %8888  ;;  %v8972_v39 = vmul.f32 %v18446_v46, %v21587_v27  ;;  %v23685_v27 = vld [vmem:[#allocation43_spill] sm:$0xff] }
 0x89e   : > { %17814 = vrot.lane.b32.xlu1 %v23682_v51, %s18836_s11  ;;  %18453 = vrcp.f32 %v8889_v54  ;;  %v23692_v54 = vld [vmem:[#allocation57_spill] sm:$0xff] }
 0x89f   : > { %17809 = vrot.lane.b32.xlu0 %v23683_v33, %s18836_s11  ;;  %16152 = vmatprep.mubr.msk.f32.mxu0 %vm2346_vm2, %v8972_v39  ;;  %v17068_v39 = vpack.c.bf16 %v17677_v2, %v17676_v12 }
 0x8a0   : > { %v8898_v1 = vpop.xlane.xlu0 %8897  ;;  %16153 = vmatmul.mubr.msk.f32.vlgmr.msra.gmra.mrb[114].mxu0 %vm2346_vm2, %v8974_v61  ;;  %v23693_v61 = vld [vmem:[#allocation52_spill] sm:$0xff] }
 0x8a1   : > { %17055 = vmatpush3.bf16.msra.mxu0 %v23684_v17  ;;  %v8904_v38 = vpop.xlane.xlu1 %8903  ;;  %18455 = vrcp.f32 %v8898_v1  ;;  %v23694_v1 = vld [vmem:[#allocation127_spill] sm:$0xff] }
 0x8a2   : > { %17819 = vrot.lane.b32.xlu1 %v23685_v27, %s18836_s11  ;;  %17061 = vmatprep.subr.bf16.mxu0 %v17060_v7  ;;  %18457 = vrcp.f32 %v8904_v38  ;;  %v17682_v17 = vunpack.i.h.bf16 %v23694_v1  ;;  %v17681_v38 = vunpack.i.l.bf16 %v23694_v1 }
 0x8a3   : > { %17824 = vrot.lane.b32.xlu0 %v23686_v8, %s18836_s11  ;;  %v18448_v32 = vpop.eup %18447  ;;  %v23695_v8 = vld [vmem:[#allocation27_spill] sm:$0xff] }
 0x8a4   : > { %v8895_v41 = vpop.xlane.xlu0 %8894  ;;  %v18450_v47 = vpop.eup %18449  ;;  %v8978_v62 = vmul.f32 %v18448_v32, %v21597_v25  ;;  %v17686_v32 = vunpack.i.l.bf16 %v23695_v8 }
 0x8a5   : > { %18459 = vrcp.f32 %v8895_v41  ;;  %v8901_v35 = vpop.xlane.xlu1 %8900  ;;  %v8982_v26 = vmul.f32 %v18450_v47, %v21599_v59  ;;  %v17687_v41 = vunpack.i.h.bf16 %v23695_v8 }
 0x8a6   : > { %17829 = vrot.lane.b32.xlu1 %v23687_v9, %s18836_s11  ;;  %18461 = vrcp.f32 %v8901_v35 }
 0x8a7   : > { %v18452_v45 = vpop.eup %18451  ;;  %17834 = vrot.lane.b32.xlu0 %v23689_v40, %s18836_s11 }
 0x8a8   : > { %v18454_v55 = vpop.eup %18453  ;;  %v8910_v21 = vpop.xlane.xlu0 %8909  ;;  %v8976_v50 = vmul.f32 %v18452_v45, %v21606_v15  ;;  %v17064_v15 = vpack.c.bf16 %v17672_v48, %v17671_v44  ;;  %v17072_v48 = vpack.c.bf16 %v17682_v17, %v17681_v38  ;;  %v23699_v17 = vld [vmem:[#allocation121_spill] sm:$0xff] }
 0x8a9   : > { %v8980_v46 = vmul.f32 %v18454_v55, %v21609_v29  ;;  %18463 = vrcp.f32 %v8910_v21  ;;  %v17707_v38 = vunpack.i.h.bf16 %v23699_v17 }
 0x8aa   : > { %17839 = vrot.lane.b32.xlu1 %v23691_v57, %s18836_s11  ;;  %v8916_v11 = vpop.xlane.xlu1 %8915  ;;  %16159 = vmatprep.mubr.msk.f32.mxu1 %vm2346_vm2, %v8976_v50 }
 0x8ab   : > { %17844 = vrot.lane.b32.xlu0 %v23692_v54, %s18836_s11  ;;  %16166 = vmatprep.mubr.msk.f32.mxu0 %vm2346_vm2, %v8980_v46  ;;  %v18456_v51 = vpop.eup %18455  ;;  %v23697_v46 = vld [vmem:[#allocation116_spill] sm:$0xff] }
 0x8ac   : > { %16160 = vmatmul.mubr.msk.f32.vlgmr.msra.gmra.mrb[142].mxu1 %vm2346_vm2, %v8978_v62  ;;  %16167 = vmatmul.mubr.msk.f32.vlgmr.msra.gmra.mrb[116].mxu0 %vm2346_vm2, %v8982_v26  ;;  %v8907_v29 = vpop.xlane.xlu0 %8906  ;;  %v18458_v25 = vpop.eup %18457  ;;  %v8986_v9 = vmul.f32 %v18456_v51, %v21616_v4  ;;  %v17697_v57 = vunpack.i.h.bf16 %v23697_v46 }
 0x8ad   : > { %17059 = vmatpush3.bf16.msra.mxu1 %v23693_v61  ;;  %17063 = vmatpush3.bf16.msra.mxu0 %v17060_v7  ;;  %18465 = vrcp.f32 %v8907_v29  ;;  %v8990_v60 = vmul.f32 %v18458_v25, %v21619_v10  ;;  %v23696_v10 = vld [vmem:[#allocation115_spill] sm:$0xff]  ;;  %v23698_v61 = vld [vmem:[#allocation118_spill] sm:$0xff] }
 0x8ae   : > { %18467 = vrcp.f32 %v8916_v11  ;;  %17065 = vmatprep.subr.bf16.mxu1 %v17064_v15  ;;  %17069 = vmatprep.subr.bf16.mxu0 %v17068_v39  ;;  %v8913_v59 = vpop.xlane.xlu1 %8912  ;;  %v17692_v44 = vunpack.i.h.bf16 %v23696_v10  ;;  %v17691_v23 = vunpack.i.l.bf16 %v23696_v10  ;;  %v17696_v11 = vunpack.i.l.bf16 %v23697_v46  ;;  %v23702_v46 = vld [vmem:[#allocation120_spill] sm:$0xff] }
 0x8af   : > { %v18460_v33 = vpop.eup %18459  ;;  %18469 = vrcp.f32 %v8913_v59  ;;  %v17702_v25 = vunpack.i.h.bf16 %v23698_v61 }
 0x8b0   : > { %v18462_v27 = vpop.eup %18461  ;;  %v8922_v35 = vpop.xlane.xlu0 %8921  ;;  %v8984_v7 = vmul.f32 %v18460_v33, %v21626_v43  ;;  %v17076_v43 = vpack.c.bf16 %v17687_v41, %v17686_v32  ;;  %v17080_v29 = vpack.c.bf16 %v17692_v44, %v17691_v23 }
 0x8b1   : > { %v8988_v47 = vmul.f32 %v18462_v27, %v21629_v18  ;;  %18471 = vrcp.f32 %v8922_v35  ;;  %v17706_v27 = vunpack.i.l.bf16 %v23699_v17  ;;  %v23704_v17 = vld [vmem:[#allocation122_spill] sm:$0xff] }
 0x8b2   : > { %v8928_v45 = vpop.xlane.xlu1 %8927  ;;  %16173 = vmatprep.mubr.msk.f32.mxu1 %vm2346_vm2, %v8984_v7 }
 0x8b3   : > { %16180 = vmatprep.mubr.msk.f32.mxu0 %vm2346_vm2, %v8988_v47  ;;  %16174 = vmatmul.mubr.msk.f32.vlgmr.msra.gmra.mrb[144].mxu1 %vm2346_vm2, %v8986_v9  ;;  %v18464_v4 = vpop.eup %18463 }
 0x8b4   : > { %16181 = vmatmul.mubr.msk.f32.vlgmr.msra.gmra.mrb[118].mxu0 %vm2346_vm2, %v8990_v60  ;;  %17067 = vmatpush3.bf16.msra.mxu1 %v17064_v15  ;;  %v8919_v40 = vpop.xlane.xlu0 %8918  ;;  %v8994_v62 = vmul.f32 %v18464_v4, %v21636_v30  ;;  %v17084_v30 = vpack.c.bf16 %v17697_v57, %v17696_v11  ;;  %v17722_v57 = vunpack.i.h.bf16 %v23702_v46 }
 0x8b5   : > { %17071 = vmatpush3.bf16.msra.mxu0 %v17068_v39  ;;  %17073 = vmatprep.subr.bf16.mxu1 %v17072_v48  ;;  %18473 = vrcp.f32 %v8919_v40 }
 0x8b6   : > { %18475 = vrcp.f32 %v8928_v45  ;;  %17077 = vmatprep.subr.bf16.mxu0 %v17076_v43  ;;  %v8925_v18 = vpop.xlane.xlu1 %8924  ;;  %v23700_v45 = vld [vmem:[#allocation124_spill] sm:$0xff] }
 0x8b7   : > { %v18466_v55 = vpop.eup %18465  ;;  %18477 = vrcp.f32 %v8925_v18  ;;  %v17712_v60 = vunpack.i.h.bf16 %v23700_v45 }
 0x8b8   : > { %v18468_v2 = vpop.eup %18467  ;;  %v8934_v12 = vpop.xlane.xlu0 %8933  ;;  %v8992_v21 = vmul.f32 %v18466_v55, %v21646_v49 }
 0x8b9   : > { %v18470_v50 = vpop.eup %18469  ;;  %v8998_v15 = vmul.f32 %v18468_v2, %v21641_v37  ;;  %18479 = vrcp.f32 %v8934_v12  ;;  %v17701_v37 = vunpack.i.l.bf16 %v23698_v61 }
 0x8ba   : > { %v8940_v26 = vpop.xlane.xlu1 %8939  ;;  %16187 = vmatprep.mubr.msk.f32.mxu1 %vm2346_vm2, %v8992_v21  ;;  %v8996_v54 = vmul.f32 %v18470_v50, %v21651_v3 }
 0x8bb   : > { %16188 = vmatmul.mubr.msk.f32.vlgmr.msra.gmra.mrb[146].mxu1 %vm2346_vm2, %v8994_v62  ;;  %v18472_v39 = vpop.eup %18471  ;;  %v17088_v7 = vpack.c.bf16 %v17702_v25, %v17701_v37 }
 0x8bc   : > { %16194 = vmatprep.mubr.msk.f32.mxu0 %vm2346_vm2, %v8996_v54  ;;  %17075 = vmatpush3.bf16.msra.mxu1 %v17072_v48  ;;  %v8931_v49 = vpop.xlane.xlu0 %8930  ;;  %v9002_v8 = vmul.f32 %v18472_v39, %v21656_v63 }
 0x8bd   : > { %16195 = vmatmul.mubr.msk.f32.vlgmr.msra.gmra.mrb[120].mxu0 %vm2346_vm2, %v8998_v15  ;;  %17081 = vmatprep.subr.bf16.mxu1 %v17080_v29  ;;  %18481 = vrcp.f32 %v8931_v49 }
 0x8be   : > { %18483 = vrcp.f32 %v8940_v26  ;;  %17079 = vmatpush3.bf16.msra.mxu0 %v17076_v43  ;;  %v8937_v51 = vpop.xlane.xlu1 %8936  ;;  %v23701_v43 = vld [vmem:[#allocation126_spill] sm:$0xff] }
 0x8bf   : > { %v18474_v3 = vpop.eup %18473  ;;  %17085 = vmatprep.subr.bf16.mxu0 %v17084_v30  ;;  %18485 = vrcp.f32 %v8937_v51  ;;  %v17717_v4 = vunpack.i.h.bf16 %v23701_v43  ;;  %v17716_v18 = vunpack.i.l.bf16 %v23701_v43 }
 0x8c0   : > { %v18476_v59 = vpop.eup %18475  ;;  %v9000_v33 = vmul.f32 %v18474_v3, %v21666_v56  ;;  %v17092_v56 = vpack.c.bf16 %v17707_v38, %v17706_v27  ;;  %v23703_v3 = vld [vmem:[#allocation125_spill] sm:$0xff]  ;;  %v17732_v38 = vunpack.i.h.bf16 %v23704_v17  ;;  %v17731_v27 = vunpack.i.l.bf16 %v23704_v17 }
 0x8c1   : > { %v18478_v1 = vpop.eup %18477  ;;  %v9006_v35 = vmul.f32 %v18476_v59, %v21661_v13  ;;  %v17727_v61 = vunpack.i.h.bf16 %v23703_v3  ;;  %v17726_v25 = vunpack.i.l.bf16 %v23703_v3 }
 0x8c2   : > { %v8946_v41 = vpop.xlane.xlu1 %8945  ;;  %16201 = vmatprep.mubr.msk.f32.mxu1 %vm2346_vm2, %v9000_v33  ;;  %v9004_v32 = vmul.f32 %v18478_v1, %v21670_v19  ;;  %v17711_v19 = vunpack.i.l.bf16 %v23700_v45 }
 0x8c3   : > { %16202 = vmatmul.mubr.msk.f32.vlgmr.msra.gmra.mrb[148].mxu1 %vm2346_vm2, %v9002_v8  ;;  %v18480_v47 = vpop.eup %18479  ;;  %18487 = vrcp.f32 %v8946_v41  ;;  %v17108_v41 = vpack.c.bf16 %v17727_v61, %v17726_v25  ;;  %v23717_v25 = vld [vmem:[#allocation137_spill] sm:$0xff] }
 0x8c4   : > { %16208 = vmatprep.mubr.msk.f32.mxu0 %vm2346_vm2, %v9004_v32  ;;  %17083 = vmatpush3.bf16.msra.mxu1 %v17080_v29  ;;  %v9010_v10 = vmul.f32 %v18480_v47, %v21676_v22  ;;  %v17096_v12 = vpack.c.bf16 %v17712_v60, %v17711_v19 }
 0x8c5   : > { %16209 = vmatmul.mubr.msk.f32.vlgmr.msra.gmra.mrb[122].mxu0 %vm2346_vm2, %v9006_v35  ;;  %17089 = vmatprep.subr.bf16.mxu1 %v17088_v7 }
 0x8c6   : > { %17087 = vmatpush3.bf16.msra.mxu0 %v17084_v30  ;;  %v8943_v63 = vpop.xlane.xlu1 %8942 }
 0x8c7   : > { %v18482_v9 = vpop.eup %18481  ;;  %17093 = vmatprep.subr.bf16.mxu0 %v17092_v56  ;;  %18489 = vrcp.f32 %v8943_v63  ;;  %v23706_v63 = vld [vmem:[#allocation123_spill] sm:$0xff] }
 0x8c8   : > { %v18484_v13 = vpop.eup %18483  ;;  %v9008_v48 = vmul.f32 %v18482_v9, %v21686_v58  ;;  %v17100_v58 = vpack.c.bf16 %v17717_v4, %v17716_v18  ;;  %v17737_v9 = vunpack.i.h.bf16 %v23706_v63  ;;  %v17736_v45 = vunpack.i.l.bf16 %v23706_v63  ;;  %v23708_v18 = vld [vmem:[#allocation128_spill] sm:$0xff] }
 0x8c9   : > { %v18486_v40 = vpop.eup %18485  ;;  %v8955_v55 = vpop.xlane.xlu0 %8954  ;;  %v9014_v2 = vmul.f32 %v18484_v13, %v21680_v20  ;;  %v17721_v20 = vunpack.i.l.bf16 %v23702_v46  ;;  %v23712_v46 = vld [vmem:[#allocation129_spill] sm:$0xff] }
 0x8ca   : > { %v8952_v44 = vpop.xlane.xlu1 %8951  ;;  %18491 = vrcp.f32 %v8955_v55  ;;  %16215 = vmatprep.mubr.msk.f32.mxu1 %vm2346_vm2, %v9008_v48  ;;  %v9012_v23 = vmul.f32 %v18486_v40, %v21690_v53  ;;  %v23707_v40 = vld [vmem:[#allocation37_spill] sm:$0xff]  ;;  %v17120_v55 = vpack.c.bf16 %v17737_v9, %v17736_v45 }
 0x8cb   : > { %16216 = vmatmul.mubr.msk.f32.vlgmr.msra.gmra.mrb[150].mxu1 %vm2346_vm2, %v9010_v10  ;;  %18493 = vrcp.f32 %v8952_v44  ;;  %v17104_v29 = vpack.c.bf16 %v17722_v57, %v17721_v20  ;;  %v17742_v43 = vunpack.i.h.bf16 %v23707_v40  ;;  %v17741_v4 = vunpack.i.l.bf16 %v23707_v40  ;;  %v23710_v44 = vld [vmem:[#allocation132_spill] sm:$0xff] }
 0x8cc   : > { %16222 = vmatprep.mubr.msk.f32.mxu0 %vm2346_vm2, %v9012_v23  ;;  %17091 = vmatpush3.bf16.msra.mxu1 %v17088_v7  ;;  %v17114_v7 = vpack.c.bf16 %v17732_v38, %v17731_v27  ;;  %v17747_v23 = vunpack.i.h.bf16 %v23710_v44 }
 0x8cd   : > { %16223 = vmatmul.mubr.msk.f32.vlgmr.msra.gmra.mrb[124].mxu0 %vm2346_vm2, %v9014_v2  ;;  %17097 = vmatprep.subr.bf16.mxu1 %v17096_v12  ;;  %v8961_v22 = vpop.xlane.xlu0 %8960  ;;  %v18488_v53 = vpop.eup %18487  ;;  %v17746_v2 = vunpack.i.l.bf16 %v23710_v44 }
 0x8ce   : > { %17095 = vmatpush3.bf16.msra.mxu0 %v17092_v56  ;;  %v8949_v21 = vpop.xlane.xlu1 %8948  ;;  %18495 = vrcp.f32 %v8961_v22  ;;  %v9018_v54 = vmul.f32 %v18488_v53, %v21696_v28  ;;  %v23711_v22 = vld [vmem:[#allocation135_spill] sm:$0xff] }
 0x8cf   : > { %17101 = vmatprep.subr.bf16.mxu0 %v17100_v58  ;;  %18497 = vrcp.f32 %v8949_v21  ;;  %v17752_v21 = vunpack.i.h.bf16 %v23711_v22  ;;  %v17751_v53 = vunpack.i.l.bf16 %v23711_v22 }
 0x8d1   : > { %v18490_v50 = vpop.eup %18489 }
 0x8d2   : > { %v8958_v11 = vpop.xlane.xlu1 %8957  ;;  %v8970_v62 = vpop.xlane.xlu0 %8969  ;;  %v9016_v26 = vmul.f32 %v18490_v50, %v21702_v5  ;;  %v17132_v50 = vpack.c.bf16 %v17747_v23, %v17746_v2 }
 0x8d3   : > { %18499 = vrcp.f32 %v8958_v11  ;;  %v23713_v11 = vld [vmem:[#allocation133_spill] sm:$0xff] }
 0x8d4   : > { %v18492_v15 = vpop.eup %18491  ;;  %16229 = vmatprep.mubr.msk.f32.mxu1 %vm2346_vm2, %v9016_v26  ;;  %18501 = vrcp.f32 %v8970_v62  ;;  %v17138_v62 = vpack.c.bf16 %v17752_v21, %v17751_v53  ;;  %v23714_v26 = vld [vmem:[#allocation131_spill] sm:$0xff] }
 0x8d5   : > { %16230 = vmatmul.mubr.msk.f32.vlgmr.msra.gmra.mrb[152].mxu1 %vm2346_vm2, %v9018_v54  ;;  %v9024_v49 = vmul.f32 %v18492_v15, %v21709_v14  ;;  %v18494_v51 = vpop.eup %18493  ;;  %v17757_v54 = vunpack.i.h.bf16 %v21791_v31  ;;  %v17756_v15 = vunpack.i.l.bf16 %v21791_v31 }
 0x8d6   : > { %17099 = vmatpush3.bf16.msra.mxu1 %v17096_v12  ;;  %v8964_v30 = vpop.xlane.xlu1 %8963  ;;  %v8967_v39 = vpop.xlane.xlu0 %8966  ;;  %v9022_v1 = vmul.f32 %v18494_v51, %v21707_v36 }
 0x8d7   : > { %17105 = vmatprep.subr.bf16.mxu1 %v17104_v29  ;;  %18503 = vrcp.f32 %v8964_v30  ;;  %16243 = vmatprep.mubr.msk.f32.mxu1 %vm2346_vm2, %v9024_v49 }
 0x8d8   : > { %v18496_v5 = vpop.eup %18495  ;;  %18505 = vrcp.f32 %v8967_v39 }
 0x8d9   : > { %v18498_v28 = vpop.eup %18497  ;;  %v9028_v33 = vmul.f32 %v18496_v5, %v21717_v42  ;;  %v17144_v5 = vpack.c.bf16 %v17757_v54, %v17756_v15 }
 0x8da   : > { %v21903_v37 = vpop.permute.xlu1 %17759  ;;  %v21905_v59 = vpop.permute.xlu0 %10793  ;;  %v9020_v14 = vmul.f32 %v18498_v28, %v21715_v52  ;;  %v23716_v28 = vld [vmem:[#allocation134_spill] sm:$0xff] }
 0x8db   : > { %v17762_v39 = vunpack.i.h.bf16 %v21903_v37  ;;  %v17761_v51 = vunpack.i.l.bf16 %v21903_v37 }
 0x8dc   : > { %16236 = vmatprep.mubr.msk.f32.mxu0 %vm2346_vm2, %v9020_v14 }
 0x8dd   : > { %v18500_v8 = vpop.eup %18499  ;;  %16237 = vmatmul.mubr.msk.f32.vlgmr.msra.gmra.mrb[126].mxu0 %vm2346_vm2, %v9022_v1  ;;  %v17150_v61 = vpack.c.bf16 %v17762_v39, %v17761_v51 }
 0x8de   : > { %17103 = vmatpush3.bf16.msra.mxu0 %v17100_v58  ;;  %16250 = vmatprep.mubr.msk.f32.mxu0 %vm2346_vm2, %v9028_v33  ;;  %v21915_v32 = vpop.permute.xlu1 %10884  ;;  %v21917_v52 = vpop.permute.xlu0 %10882  ;;  %v9026_v42 = vmul.f32 %v18500_v8, %v21723_v0 }
 0x8df   : > { %17110 = vmatprep.subr.msk.bf16.mxu0 %vm19255_vm1, %v17108_v41  ;;  %v18502_v35 = vpop.eup %18501 }
 0x8e0   : > { %16244 = vmatmul.mubr.msk.f32.vlgmr.msra.gmra.mrb[154].mxu1 %vm2346_vm2, %v9026_v42  ;;  %v9034_v48 = vmul.f32 %v18502_v35, %v21725_v16  ;;  %v17126_v16 = vpack.c.bf16 %v17742_v43, %v17741_v4 }
 0x8e1   : > { %v18504_v56 = vpop.eup %18503  ;;  %17107 = vmatpush3.bf16.msra.mxu1 %v17104_v29  ;;  %v23715_v29 = vld [vmem:[#allocation136_spill] sm:$0xff] }
 0x8e2   : > { %v18506_v47 = vpop.eup %18505  ;;  %17116 = vmatprep.subr.msk.bf16.mxu1 %vm19255_vm1, %v17114_v7  ;;  %v21927_v60 = vpop.permute.xlu1 %10973  ;;  %v9030_v19 = vmul.f32 %v18504_v56, %v21727_v24 }
 0x8e3   : > { %v17765_v0 = vpop.permute.xlu0 %17764  ;;  %v9032_v13 = vmul.f32 %v18506_v47, %v21733_v6  ;;  %v23709_v6 = vld [vmem:[#allocation130_spill] sm:$0xff] }
 0x8e4   : > { %16251 = vmatmul.mubr.msk.f32.vlgmr.msra.gmra.mrb[128].mxu0 %vm2346_vm2, %v9030_v19  ;;  %v17767_v37 = vunpack.i.h.bf16 %v17765_v0  ;;  %v17766_v14 = vunpack.i.l.bf16 %v17765_v0 }
 0x8e5   : > { %16257 = vmatprep.mubr.msk.f32.mxu1 %vm2346_vm2, %v9032_v13  ;;  %16264 = vmatprep.mubr.msk.f32.mxu0 %vm953_vm0, %v23708_v18 }
 0x8e6   : > { %16258 = vmatmul.mubr.msk.f32.vlgmr.msra.gmra.mrb[156].mxu1 %vm2346_vm2, %v9034_v48  ;;  %v17770_v10 = vpop.permute.xlu1 %17769  ;;  %v17156_v38 = vpack.c.bf16 %v17767_v37, %v17766_v14 }
 0x8e7   : > { %v21939_v24 = vpop.permute.xlu0 %10975  ;;  %17113 = vmatpush3.bf16.xpose.msk.msra.mxu0 %vm19255_vm1, %v17108_v41  ;;  %16271 = vmatprep.mubr.msk.f32.mxu1 %vm953_vm0, %v23709_v6  ;;  %v17771_v17 = vunpack.i.l.bf16 %v17770_v10 }
 0x8e8   : > { %17122 = vmatprep.subr.msk.bf16.mxu0 %vm19255_vm1, %v17120_v55 }
 0x8ea   : > { %17119 = vmatpush3.bf16.xpose.msk.msra.mxu1 %vm19255_vm1, %v17114_v7  ;;  %v21951_v12 = vpop.permute.xlu1 %11066 }
 0x8eb   : > { %v11065_v58 = vpop.permute.xlu0 %11064  ;;  %17128 = vmatprep.subr.msk.bf16.mxu1 %vm19255_vm1, %v17126_v16 }
 0x8ee   : > { %16265 = vmatmul.mubr.msk.f32.vlgmr.msra.gmra.mrb[130].mxu0 %vm953_vm0, %v23712_v46  ;;  %v11156_v57 = vpop.permute.xlu1 %11155 }
 0x8ef   : > { %v17775_v20 = vpop.permute.xlu0 %17774  ;;  %17125 = vmatpush3.bf16.xpose.msk.msra.mxu0 %vm19255_vm1, %v17120_v55  ;;  %16278 = vmatprep.mubr.msk.f32.mxu0 %vm953_vm0, %v23713_v11 }
 0x8f0   : > { %17134 = vmatprep.subr.msk.bf16.mxu0 %vm19255_vm1, %v17132_v50  ;;  %v17776_v42 = vunpack.i.l.bf16 %v17775_v20 }
 0x8f1   : > { %16272 = vmatmul.mubr.msk.f32.vlgmr.msra.gmra.mrb[158].mxu1 %vm953_vm0, %v23714_v26 }
 0x8f2   : > { %17131 = vmatpush3.bf16.xpose.msk.msra.mxu1 %vm19255_vm1, %v17126_v16  ;;  %16285 = vmatprep.mubr.msk.f32.mxu1 %vm953_vm0, %v23715_v29  ;;  %v17780_v49 = vpop.permute.xlu1 %17779 }
 0x8f3   : > { %v11158_v30 = vpop.permute.xlu0 %11157  ;;  %17140 = vmatprep.subr.msk.bf16.mxu1 %vm19255_vm1, %v17138_v62  ;;  %v17782_v7 = vunpack.i.h.bf16 %v17780_v49  ;;  %v17781_v56 = vunpack.i.l.bf16 %v17780_v49 }
 0x8f5   : > { %v17174_v9 = vpack.c.bf16 %v17782_v7, %v17781_v56 }
 0x8f6   : > { %16279 = vmatmul.mubr.msk.f32.vlgmr.msra.gmra.mrb[132].mxu0 %vm953_vm0, %v23716_v28  ;;  %v11249_v31 = vpop.permute.xlu1 %11248 }
 0x8f7   : > { %v11247_v3 = vpop.permute.xlu0 %11246  ;;  %17137 = vmatpush3.bf16.xpose.msk.msra.mxu0 %vm19255_vm1, %v17132_v50  ;;  %16292 = vmatprep.mubr.msk.f32.mxu0 %vm953_vm0, %v21789_v34  ;;  %v17772_v34 = vunpack.i.h.bf16 %v17770_v10 }
 0x8f8   : > { %17146 = vmatprep.subr.msk.bf16.mxu0 %vm19255_vm1, %v17144_v5 }
 0x8f9   : > { %16286 = vmatmul.mubr.msk.f32.vlgmr.msra.gmra.mrb[160].mxu1 %vm953_vm0, %v23717_v25  ;;  %v17162_v41 = vpack.c.bf16 %v17772_v34, %v17771_v17 }
 0x8fa   : > { %17143 = vmatpush3.bf16.xpose.msk.msra.mxu1 %vm19255_vm1, %v17138_v62  ;;  %16299 = vmatprep.mubr.msk.f32.mxu1 %vm953_vm0, %v21917_v52  ;;  %v11338_v33 = vpop.permute.xlu1 %11337  ;;  %v17777_v52 = vunpack.i.h.bf16 %v17775_v20 }
 0x8fb   : > { %v17785_v1 = vpop.permute.xlu0 %17784  ;;  %17152 = vmatprep.subr.msk.bf16.mxu1 %vm19255_vm1, %v17150_v61 }
 0x8fc   : > { %v17168_v47 = vpack.c.bf16 %v17777_v52, %v17776_v42  ;;  %v17787_v45 = vunpack.i.h.bf16 %v17785_v1 }
 0x8fe   : > { %16293 = vmatmul.mubr.msk.f32.vlgmr.msra.gmra.mrb[134].mxu0 %vm953_vm0, %v21905_v59  ;;  %v17790_v27 = vpop.permute.xlu1 %17789 }
 0x8ff   : > { %v11340_v8 = vpop.permute.xlu0 %11339  ;;  %17149 = vmatpush3.bf16.xpose.msk.msra.mxu0 %vm19255_vm1, %v17144_v5  ;;  %16306 = vmatprep.mubr.msk.f32.mxu0 %vm953_vm0, %v21927_v60  ;;  %v17786_v60 = vunpack.i.l.bf16 %v17785_v1  ;;  %v17792_v13 = vunpack.i.h.bf16 %v17790_v27  ;;  %v17791_v48 = vunpack.i.l.bf16 %v17790_v27 }
 0x900   : > { %17158 = vmatprep.subr.msk.bf16.mxu0 %vm19255_vm1, %v17156_v38 }
 0x901   : > { %16300 = vmatmul.mubr.msk.f32.vlgmr.msra.gmra.mrb[162].mxu1 %vm953_vm0, %v21915_v32  ;;  %v17180_v40 = vpack.c.bf16 %v17787_v45, %v17786_v60  ;;  %v17186_v18 = vpack.c.bf16 %v17792_v13, %v17791_v48 }
 0x902   : > { %17155 = vmatpush3.bf16.xpose.msk.msra.mxu1 %vm19255_vm1, %v17150_v61  ;;  %16313 = vmatprep.mubr.msk.f32.mxu1 %vm953_vm0, %v11065_v58  ;;  %v11431_v59 = vpop.permute.xlu1 %11430 }
 0x903   : > { %v11429_v35 = vpop.permute.xlu0 %11428  ;;  %17164 = vmatprep.subr.msk.bf16.mxu1 %vm19255_vm1, %v17162_v41 }
 0x906   : > { %16307 = vmatmul.mubr.msk.f32.vlgmr.msra.gmra.mrb[136].mxu0 %vm953_vm0, %v21939_v24  ;;  %v11520_v63 = vpop.permute.xlu1 %11519 }
 0x907   : > { %v17795_v32 = vpop.permute.xlu0 %17794  ;;  %17161 = vmatpush3.bf16.xpose.msk.msra.mxu0 %vm19255_vm1, %v17156_v38  ;;  %16320 = vmatprep.mubr.msk.f32.mxu0 %vm953_vm0, %v11156_v57 }
 0x908   : > { %17170 = vmatprep.subr.msk.bf16.mxu0 %vm19255_vm1, %v17168_v47  ;;  %v17797_v55 = vunpack.i.h.bf16 %v17795_v32  ;;  %v17796_v10 = vunpack.i.l.bf16 %v17795_v32 }
 0x909   : > { %16314 = vmatmul.mubr.msk.f32.vlgmr.msra.gmra.mrb[164].mxu1 %vm953_vm0, %v21951_v12 }
 0x90a   : > { %17167 = vmatpush3.bf16.xpose.msk.msra.mxu1 %vm19255_vm1, %v17162_v41  ;;  %16327 = vmatprep.mubr.msk.f32.mxu1 %vm953_vm0, %v11247_v3  ;;  %v17800_v0 = vpop.permute.xlu1 %17799  ;;  %v17192_v23 = vpack.c.bf16 %v17797_v55, %v17796_v10 }
 0x90b   : > { %v11522_v19 = vpop.permute.xlu0 %11521  ;;  %17176 = vmatprep.subr.msk.bf16.mxu1 %vm19255_vm1, %v17174_v9  ;;  %v17802_v16 = vunpack.i.h.bf16 %v17800_v0  ;;  %v17801_v44 = vunpack.i.l.bf16 %v17800_v0 }
 0x90d   : > { %v17198_v58 = vpack.c.bf16 %v17802_v16, %v17801_v44 }
 0x90e   : > { %16321 = vmatmul.mubr.msk.f32.vlgmr.msra.gmra.mrb[138].mxu0 %vm953_vm0, %v11158_v30  ;;  %v11613_v43 = vpop.permute.xlu1 %11612 }
 0x90f   : > { %v11611_v4 = vpop.permute.xlu0 %11610  ;;  %17173 = vmatpush3.bf16.xpose.msk.msra.mxu0 %vm19255_vm1, %v17168_v47  ;;  %16334 = vmatprep.mubr.msk.f32.mxu0 %vm953_vm0, %v11338_v33 }
 0x910   : > { %17182 = vmatprep.subr.msk.bf16.mxu0 %vm19255_vm1, %v17180_v40 }
 0x911   : > { %16328 = vmatmul.mubr.msk.f32.vlgmr.msra.gmra.mrb[166].mxu1 %vm953_vm0, %v11249_v31 }
 0x912   : > { %17179 = vmatpush3.bf16.xpose.msk.msra.mxu1 %vm19255_vm1, %v17174_v9  ;;  %16341 = vmatprep.mubr.msk.f32.mxu1 %vm953_vm0, %v11429_v35  ;;  %v11704_v24 = vpop.permute.xlu1 %11703 }
 0x913   : > { %v11702_v6 = vpop.permute.xlu0 %11701  ;;  %17188 = vmatprep.subr.msk.bf16.mxu1 %vm19255_vm1, %v17186_v18 }
 0x916   : > { %16335 = vmatmul.mubr.msk.f32.vlgmr.msra.gmra.mrb[140].mxu0 %vm953_vm0, %v11340_v8  ;;  %v11795_v2 = vpop.permute.xlu1 %11794 }
 0x917   : > { %v11793_v12 = vpop.permute.xlu0 %11792  ;;  %17185 = vmatpush3.bf16.xpose.msk.msra.mxu0 %vm19255_vm1, %v17180_v40  ;;  %16348 = vmatprep.mubr.msk.f32.mxu0 %vm953_vm0, %v11520_v63 }
 0x918   : > { %17194 = vmatprep.subr.msk.bf16.mxu0 %vm19255_vm1, %v17192_v23 }
 0x919   : > { %16342 = vmatmul.mubr.msk.f32.vlgmr.msra.gmra.mrb[168].mxu1 %vm953_vm0, %v11431_v59 }
 0x91a   : > { %17191 = vmatpush3.bf16.xpose.msk.msra.mxu1 %vm19255_vm1, %v17186_v18  ;;  %16355 = vmatprep.mubr.msk.f32.mxu1 %vm953_vm0, %v11611_v4  ;;  %v17805_v22 = vpop.permute.xlu1 %17804 }
 0x91b   : > { %v17810_v21 = vpop.permute.xlu0 %17809  ;;  %v17807_v53 = vunpack.i.h.bf16 %v17805_v22  ;;  %v17806_v50 = vunpack.i.l.bf16 %v17805_v22  ;;  %17200 = vmatprep.subr.msk.bf16.mxu1 %vm19255_vm1, %v17198_v58  ;;  %v22158_v22 = vld [vmem:[#allocation8 + $0x38] sm:$0xff] }
 0x91c   : > { %v17812_v46 = vunpack.i.h.bf16 %v17810_v21  ;;  %v17811_v57 = vunpack.i.l.bf16 %v17810_v21  ;;  %v22160_v21 = vld [vmem:[#allocation8 + $0x30] sm:$0xff] }
 0x91d   : > { %v17204_v20 = vpack.c.bf16 %v17807_v53, %v17806_v50 }
 0x91e   : > { %16349 = vmatmul.mubr.msk.f32.vlgmr.msra.gmra.mrb[142].mxu0 %vm953_vm0, %v11522_v19  ;;  %v17815_v11 = vpop.permute.xlu1 %17814  ;;  %v17208_v62 = vpack.c.bf16 %v17812_v46, %v17811_v57 }
 0x91f   : > { %17197 = vmatpush3.bf16.xpose.msk.msra.mxu0 %vm19255_vm1, %v17192_v23  ;;  %16362 = vmatprep.mubr.msk.f32.mxu0 %vm953_vm0, %v11702_v6  ;;  %v17817_v26 = vunpack.i.h.bf16 %v17815_v11  ;;  %v17816_v54 = vunpack.i.l.bf16 %v17815_v11 }
 0x920   : > { %17205 = vmatprep.subr.bf16.mxu0 %v17204_v20 }
 0x921   : > { %16356 = vmatmul.mubr.msk.f32.vlgmr.msra.gmra.mrb[170].mxu1 %vm953_vm0, %v11613_v43  ;;  %v22055_v30 = vpack.c.bf16 %v17817_v26, %v17816_v54 }
 0x922   : > { %17203 = vmatpush3.bf16.xpose.msk.msra.mxu1 %vm19255_vm1, %v17198_v58  ;;  %16369 = vmatprep.mubr.msk.f32.mxu1 %vm953_vm0, %v11793_v12  ;;  %v17820_v15 = vpop.permute.xlu1 %17819 }
 0x923   : > { %17209 = vmatprep.subr.bf16.mxu1 %v17208_v62  ;;  %v17822_v29 = vunpack.i.h.bf16 %v17820_v15  ;;  %v17821_v49 = vunpack.i.l.bf16 %v17820_v15  ;;  %23718 = vst [vmem:[#allocation47_spill] sm:$0xff] %v22055_v30 }
 0x925   : > { %v22059_v39 = vpack.c.bf16 %v17822_v29, %v17821_v49 }
 0x926   : > { %16363 = vmatmul.mubr.msk.f32.vlgmr.msra.gmra.mrb[144].mxu0 %vm953_vm0, %v11704_v24 }
 0x927   : > { %17207 = vmatpush3.bf16.msra.mxu0 %v17204_v20  ;;  %23719 = vst [vmem:[#allocation22_spill] sm:$0xff] %v22059_v39 }
 0x928   : > { %17213 = vmatprep.subr.bf16.mxu0 %v22055_v30 }
 0x929   : > { %16370 = vmatmul.mubr.msk.f32.vlgmr.msra.gmra.mrb[172].mxu1 %vm953_vm0, %v11795_v2 }
 0x92a   : > { %17211 = vmatpush3.bf16.msra.mxu1 %v17208_v62 }
 0x92b   : > { %17217 = vmatprep.subr.bf16.mxu1 %v22059_v39 }
 0x973   : > { %v22062_v36 = vpop.f32.mrb[114].mxu0 }
 0x974   : > { %v22064_v51 = vpop.f32.mrb[115].mxu0 }
 0x97f   : > { %v22068_v28 = vpop.f32.mrb[142].mxu1  ;;  %v22070_v31 = vpop.f32.mrb[116].mxu0 }
 0x980   : > { %v22072_v3 = vpop.f32.mrb[143].mxu1  ;;  %v22074_v61 = vpop.f32.mrb[117].mxu0 }
 0x986   : > { %v22080_v14 = vpop.f32.mrb[144].mxu1 }
 0x987   : > { %v22082_v33 = vpop.f32.mrb[118].mxu0  ;;  %v22084_v1 = vpop.f32.mrb[145].mxu1 }
 0x988   : > { %v22088_v17 = vpop.f32.mrb[119].mxu0 }
 0x98e   : > { %v22092_v27 = vpop.f32.mrb[146].mxu1 }
 0x98f   : > { %v22094_v8 = vpop.f32.mrb[147].mxu1 }
 0x990   : > { %v22096_v41 = vpop.f32.mrb[120].mxu0 }
 0x991   : > { %v22100_v42 = vpop.f32.mrb[121].mxu0 }
 0x996   : > { %v22104_v35 = vpop.f32.mrb[148].mxu1 }
 0x997   : > { %v22106_v7 = vpop.f32.mrb[149].mxu1 }
 0x998   : > { %v22108_v56 = vpop.f32.mrb[122].mxu0 }
 0x999   : > { %v22112_v63 = vpop.f32.mrb[123].mxu0 }
 0x99a   : > { %23720 = vst [vmem:[#allocation66_spill] sm:$0xff] %v22112_v63 }
 0x99e   : > { %v22116_v9 = vpop.f32.mrb[150].mxu1 }
 0x99f   : > { %23721 = vst [vmem:[#allocation62_spill] sm:$0xff] %v22116_v9  ;;  %v22118_v45 = vpop.f32.mrb[151].mxu1 }
 0x9a0   : > { %23722 = vst [vmem:[#allocation63_spill] sm:$0xff] %v22118_v45  ;;  %v22120_v60 = vpop.f32.mrb[124].mxu0 }
 0x9a1   : > { %23723 = vst [vmem:[#allocation59_spill] sm:$0xff] %v22120_v60  ;;  %v22124_v19 = vpop.f32.mrb[125].mxu0 }
 0x9a2   : > { %23724 = vst [vmem:[#allocation34_spill] sm:$0xff] %v22124_v19 }
 0x9a8   : > { %v22128_v48 = vpop.f32.mrb[152].mxu1 }
 0x9a9   : > { %23725 = vst [vmem:[#allocation75_spill] sm:$0xff] %v22128_v48  ;;  %v22130_v40 = vpop.f32.mrb[153].mxu1 }
 0x9aa   : > { %23726 = vst [vmem:[#allocation70_spill] sm:$0xff] %v22130_v40 }
 0x9b0   : > { %v22134_v4 = vpop.f32.mrb[126].mxu0 }
 0x9b1   : > { %23727 = vst [vmem:[#allocation78_spill] sm:$0xff] %v22134_v4  ;;  %v22136_v18 = vpop.f32.mrb[127].mxu0 }
 0x9b2   : > { %23728 = vst [vmem:[#allocation67_spill] sm:$0xff] %v22136_v18 }
 0x9b3   : > { %v22140_v10 = vpop.f32.mrb[154].mxu1 }
 0x9b4   : > { %23729 = vst [vmem:[#allocation81_spill] sm:$0xff] %v22140_v10  ;;  %v22142_v24 = vpop.f32.mrb[155].mxu1 }
 0x9b5   : > { %23730 = vst [vmem:[#allocation71_spill] sm:$0xff] %v22142_v24 }
 0x9b7   : > { %v22146_v16 = vpop.f32.mrb[128].mxu0 }
 0x9b8   : > { %23731 = vst [vmem:[#allocation36_spill] sm:$0xff] %v22146_v16  ;;  %v22148_v44 = vpop.f32.mrb[129].mxu0 }
 0x9b9   : > { %23732 = vst [vmem:[#allocation72_spill] sm:$0xff] %v22148_v44  ;;  %v22152_v2 = vpop.f32.mrb[156].mxu1 }
 0x9ba   : > { %23733 = vst [vmem:[#allocation32_spill] sm:$0xff] %v22152_v2  ;;  %v22154_v12 = vpop.f32.mrb[157].mxu1 }
 0x9bb   : > { %23734 = vst [vmem:[#allocation40_spill] sm:$0xff] %v22154_v12 }
 0x9c1   : > { %v16266_v53 = vpop.f32.mrb[130].mxu0 }
 0x9c2   : > { %v22163_v50 = vadd.f32 %v16266_v53, %v22158_v22  ;;  %v10509_v46 = vpop.f32.mrb[131].mxu0 }
 0x9c3   : > { %v22166_v57 = vadd.f32 %v10509_v46, %v22160_v21 }
 0x9c4   : > { %v16273_v20 = vpop.f32.mrb[158].mxu1  ;;  %v11886_v11 = vsel %vm2346_vm2, %v22163_v50, -inf }
 0x9c5   : > { %v22171_v62 = vadd.f32 %v16273_v20, %v22158_v22  ;;  %v10600_v26 = vpop.f32.mrb[159].mxu1  ;;  %11887 = vmax.xlane.f32.xlu1 %v11886_v11  ;;  %v11883_v54 = vsel %vm2346_vm2, %v22166_v57, -inf }
 0x9c6   : > { %11884 = vmax.xlane.f32.xlu0 %v11883_v54  ;;  %v22176_v15 = vadd.f32 %v10600_v26, %v22160_v21 }
 0x9c7   : > { %v11892_v49 = vsel %vm2346_vm2, %v22171_v62, -inf }
 0x9c8   : > { %v11889_v26 = vsel %vm2346_vm2, %v22176_v15, -inf }
 0x9c9   : > { %v16280_v29 = vpop.f32.mrb[132].mxu0 }
 0x9ca   : > { %v10691_v53 = vpop.f32.mrb[133].mxu0  ;;  %11893 = vmax.xlane.f32.xlu0 %v11892_v49  ;;  %v22184_v58 = vadd.f32 %v16280_v29, %v22158_v22 }
 0x9cb   : > { %v22181_v46 = vadd.f32 %v10691_v53, %v22160_v21 }
 0x9cc   : > { %v16287_v20 = vpop.f32.mrb[160].mxu1  ;;  %v11898_v6 = vsel %vm2346_vm2, %v22184_v58, -inf }
 0x9cd   : > { %v10782_v11 = vpop.f32.mrb[161].mxu1  ;;  %v11895_v54 = vsel %vm2346_vm2, %v22181_v46, -inf  ;;  %v22196_v53 = vadd.f32 %v16287_v20, %v22158_v22 }
 0x9ce   : > { %v22191_v23 = vadd.f32 %v10782_v11, %v22160_v21  ;;  %11896 = vmax.xlane.f32.xlu1 %v11895_v54  ;;  %11890 = vmax.xlane.f32.xlu0 %v11889_v26 }
 0x9cf   : > { %v11904_v20 = vsel %vm2346_vm2, %v22196_v53, -inf }
 0x9d0   : > { %v11901_v49 = vsel %vm2346_vm2, %v22191_v23, -inf }
 0x9d1   : > { %v16294_v29 = vpop.f32.mrb[134].mxu0 }
 0x9d2   : > { %v10873_v55 = vpop.f32.mrb[135].mxu0  ;;  %11902 = vmax.xlane.f32.xlu1 %v11901_v49  ;;  %11899 = vmax.xlane.f32.xlu0 %v11898_v6  ;;  %v22204_v54 = vadd.f32 %v16294_v29, %v22158_v22 }
 0x9d3   : > { %v22201_v43 = vadd.f32 %v10873_v55, %v22160_v21 }
 0x9d4   : > { %v16301_v11 = vpop.f32.mrb[162].mxu1  ;;  %v11910_v29 = vsel %vm2346_vm2, %v22204_v54, -inf }
 0x9d5   : > { %v10964_v26 = vpop.f32.mrb[163].mxu1  ;;  %v11907_v13 = vsel %vm2346_vm2, %v22201_v43, -inf  ;;  %v22216_v6 = vadd.f32 %v16301_v11, %v22158_v22 }
 0x9d6   : > { %v22211_v0 = vadd.f32 %v10964_v26, %v22160_v21  ;;  %11908 = vmax.xlane.f32.xlu1 %v11907_v13  ;;  %11905 = vmax.xlane.f32.xlu0 %v11904_v20 }
 0x9d7   : > { %v11916_v38 = vsel %vm2346_vm2, %v22216_v6, -inf }
 0x9d8   : > { %v11913_v55 = vsel %vm2346_vm2, %v22211_v0, -inf }
 0x9d9   : > { %v16308_v49 = vpop.f32.mrb[136].mxu0 }
 0x9da   : > { %11911 = vmax.xlane.f32.xlu0 %v11910_v29  ;;  %11914 = vmax.xlane.f32.xlu1 %v11913_v55  ;;  %v11055_v32 = vpop.f32.mrb[137].mxu0  ;;  %v22224_v13 = vadd.f32 %v16308_v49, %v22158_v22 }
 0x9db   : > { %v22221_v59 = vadd.f32 %v11055_v32, %v22160_v21 }
 0x9dc   : > { %v16315_v26 = vpop.f32.mrb[164].mxu1  ;;  %v11922_v29 = vsel %vm2346_vm2, %v22224_v13, -inf }
 0x9dd   : > { %v11146_v20 = vpop.f32.mrb[165].mxu1  ;;  %v11919_v11 = vsel %vm2346_vm2, %v22221_v59, -inf  ;;  %v22236_v55 = vadd.f32 %v16315_v26, %v22158_v22 }
 0x9de   : > { %v22231_v37 = vadd.f32 %v11146_v20, %v22160_v21  ;;  %11917 = vmax.xlane.f32.xlu0 %v11916_v38  ;;  %11920 = vmax.xlane.f32.xlu1 %v11919_v11 }
 0x9df   : > { %v11928_v52 = vsel %vm2346_vm2, %v22236_v55, -inf }
 0x9e0   : > { %v11925_v32 = vsel %vm2346_vm2, %v22231_v37, -inf }
 0x9e1   : > { %v16322_v49 = vpop.f32.mrb[138].mxu0 }
 0x9e2   : > { %11923 = vmax.xlane.f32.xlu0 %v11922_v29  ;;  %v11237_v47 = vpop.f32.mrb[139].mxu0  ;;  %11926 = vmax.xlane.f32.xlu1 %v11925_v32  ;;  %v22244_v38 = vadd.f32 %v16322_v49, %v22158_v22 }
 0x9e3   : > { %v22241_v5 = vadd.f32 %v11237_v47, %v22160_v21 }
 0x9e4   : > { %v16329_v20 = vpop.f32.mrb[166].mxu1  ;;  %v11934_v29 = vsel %vm2346_vm2, %v22244_v38, -inf }
 0x9e5   : > { %v11328_v11 = vpop.f32.mrb[167].mxu1  ;;  %v11931_v26 = vsel %vm2346_vm2, %v22241_v5, -inf  ;;  %v22256_v32 = vadd.f32 %v16329_v20, %v22158_v22 }
 0x9e6   : > { %v22251_v34 = vadd.f32 %v11328_v11, %v22160_v21  ;;  %11929 = vmax.xlane.f32.xlu0 %v11928_v52  ;;  %11932 = vmax.xlane.f32.xlu1 %v11931_v26 }
 0x9e7   : > { %v11940_v2 = vsel %vm2346_vm2, %v22256_v32, -inf }
 0x9e8   : > { %v11937_v47 = vsel %vm2346_vm2, %v22251_v34, -inf }
 0x9e9   : > { %v16336_v49 = vpop.f32.mrb[140].mxu0 }
 0x9ea   : > { %v11419_v25 = vpop.f32.mrb[141].mxu0  ;;  %11935 = vmax.xlane.f32.xlu0 %v11934_v29  ;;  %11938 = vmax.xlane.f32.xlu1 %v11937_v47  ;;  %v22264_v52 = vadd.f32 %v16336_v49, %v22158_v22 }
 0x9eb   : > { %v22261_v12 = vadd.f32 %v11419_v25, %v22160_v21 }
 0x9ec   : > { %v16343_v11 = vpop.f32.mrb[168].mxu1  ;;  %v11946_v29 = vsel %vm2346_vm2, %v22264_v52, -inf }
 0x9ed   : > { %v11510_v26 = vpop.f32.mrb[169].mxu1  ;;  %v11943_v20 = vsel %vm2346_vm2, %v22261_v12, -inf  ;;  %v22276_v47 = vadd.f32 %v16343_v11, %v22158_v22 }
 0x9ee   : > { %v22271_v44 = vadd.f32 %v11510_v26, %v22160_v21  ;;  %11941 = vmax.xlane.f32.xlu0 %v11940_v2  ;;  %11944 = vmax.xlane.f32.xlu1 %v11943_v20 }
 0x9ef   : > { %v11952_v10 = vsel %vm2346_vm2, %v22276_v47, -inf }
 0x9f0   : > { %v11949_v25 = vsel %vm2346_vm2, %v22271_v44, -inf }
 0x9f1   : > { %v16350_v49 = vpop.f32.mrb[142].mxu0 }
 0x9f2   : > { %v11601_v16 = vpop.f32.mrb[143].mxu0  ;;  %11947 = vmax.xlane.f32.xlu0 %v11946_v29  ;;  %11950 = vmax.xlane.f32.xlu1 %v11949_v25  ;;  %v22284_v2 = vadd.f32 %v16350_v49, %v22158_v22 }
 0x9f3   : > { %v22281_v24 = vadd.f32 %v11601_v16, %v22160_v21 }
 0x9f4   : > { %v16357_v26 = vpop.f32.mrb[170].mxu1  ;;  %v11958_v29 = vsel %vm2346_vm2, %v22284_v2, -inf }
 0x9f5   : > { %v11692_v20 = vpop.f32.mrb[171].mxu1  ;;  %v11955_v11 = vsel %vm2346_vm2, %v22281_v24, -inf  ;;  %v22296_v25 = vadd.f32 %v16357_v26, %v22158_v22 }
 0x9f6   : > { %v22291_v18 = vadd.f32 %v11692_v20, %v22160_v21  ;;  %11953 = vmax.xlane.f32.xlu0 %v11952_v10  ;;  %11956 = vmax.xlane.f32.xlu1 %v11955_v11 }
 0x9f7   : > { %v11964_v26 = vsel %vm2346_vm2, %v22296_v25, -inf }
 0x9f8   : > { %v11961_v16 = vsel %vm2346_vm2, %v22291_v18, -inf }
 0x9f9   : > { %v16364_v49 = vpop.f32.mrb[144].mxu0 }
 0x9fa   : > { %v11783_v4 = vpop.f32.mrb[145].mxu0  ;;  %11959 = vmax.xlane.f32.xlu0 %v11958_v29  ;;  %11962 = vmax.xlane.f32.xlu1 %v11961_v16  ;;  %v22304_v10 = vadd.f32 %v16364_v49, %v22158_v22  ;;  %v23735_v49 = vld [vmem:[#allocation60_spill] sm:$0xff] }
 0x9fb   : > { %v22301_v40 = vadd.f32 %v11783_v4, %v22160_v21 }
 0x9fc   : > { %v16371_v20 = vpop.f32.mrb[172].mxu1  ;;  %v11970_v16 = vsel %vm2346_vm2, %v22304_v10, -inf }
 0x9fd   : > { %v22307_v11 = vadd.f32 %v16371_v20, %v22158_v22  ;;  %v11874_v48 = vpop.f32.mrb[173].mxu1  ;;  %v11967_v19 = vsel %vm2346_vm2, %v22301_v40, -inf  ;;  %v23739_v20 = vld [vmem:[#allocation76_spill] sm:$0xff] }
 0x9fe   : > { %v22314_v29 = vadd.f32 %v11874_v48, %v22160_v21  ;;  %11965 = vmax.xlane.f32.xlu0 %v11964_v26  ;;  %11968 = vmax.xlane.f32.xlu1 %v11967_v19  ;;  %v23736_v48 = vld [vmem:[#allocation64_spill] sm:$0xff]  ;;  %v23738_v21 = vld [vmem:[#allocation73_spill] sm:$0xff]  ;;  %v22332_v26 = vpop.permute.xlu0 %17824 }
 0x9ff   : > { %v11976_v22 = vsel %vm2346_vm2, %v22307_v11, -inf  ;;  %v23737_v19 = vld [vmem:[#allocation68_spill] sm:$0xff]  ;;  %23740 = vst [vmem:[#allocation38_spill] sm:$0xff] %v22332_v26 }
 0xa00   : > { %v11973_v4 = vsel %vm2346_vm2, %v22314_v29, -inf }
 0xa02   : > { %11971 = vmax.xlane.f32.xlu0 %v11970_v16  ;;  %11974 = vmax.xlane.f32.xlu1 %v11973_v4  ;;  %v22334_v4 = vpop.permute.xlu1 %17829  ;;  %v22336_v16 = vpop.permute.xlu0 %17834 }
 0xa03   : > { %23741 = vst [vmem:[#allocation33_spill] sm:$0xff] %v22334_v4  ;;  %23742 = vst [vmem:[#allocation43_spill] sm:$0xff] %v22336_v16 }
 0xa06   : > { %11977 = vmax.xlane.f32.xlu0 %v11976_v22  ;;  %v22338_v22 = vpop.permute.xlu1 %17839 }
 0xa07   : > { %23743 = vst [vmem:[#allocation45_spill] sm:$0xff] %v22338_v22 }
 0xa13   : > { %17849 = vrot.lane.b32.xlu1 %v23735_v49, %s18836_s11  ;;  %v22340_v49 = vpop.permute.xlu0 %17844 }
 0xa14   : > { %23744 = vst [vmem:[#allocation49_spill] sm:$0xff] %v22340_v49 }
 0xa1c   : > { %17854 = vrot.lane.b32.xlu0 %v23736_v48, %s18836_s11 }
 0xa20   : > { %17859 = vrot.lane.b32.xlu0 %v23737_v19, %s18836_s11 }
 0xa24   : > { %17864 = vrot.lane.b32.xlu0 %v23738_v21, %s18836_s11 }
 0xa28   : > { %17869 = vrot.lane.b32.xlu0 %v23739_v20, %s18836_s11 }
 0xa52   : > { %v11888_v48 = vpop.xlane.xlu1 %11887 }
 0xa53   : > { %v11980_v60 = vsub.f32 %v22163_v50, %v11888_v48  ;;  %v11885_v19 = vpop.xlane.xlu0 %11884 }
 0xa54   : > { %v11979_v45 = vsub.f32 %v22166_v57, %v11885_v19 }
 0xa55   : > { %v12013_v21 = vmul.f32 1.442695, %v11980_v60 }
 0xa56   : > { %v12011_v9 = vmul.f32 1.442695, %v11979_v45 }
 0xa57   : > { %18507 = vpow2.f32 %v12013_v21  ;;  %v11894_v20 = vpop.xlane.xlu0 %11893 }
 0xa58   : > { %18509 = vpow2.f32 %v12011_v9  ;;  %v11982_v39 = vsub.f32 %v22171_v62, %v11894_v20 }
 0xa5a   : > { %v12017_v4 = vmul.f32 1.442695, %v11982_v39 }
 0xa5b   : > { %v11891_v30 = vpop.xlane.xlu0 %11890  ;;  %v11897_v16 = vpop.xlane.xlu1 %11896 }
 0xa5c   : > { %18511 = vpow2.f32 %v12017_v4  ;;  %v11981_v22 = vsub.f32 %v22176_v15, %v11891_v30  ;;  %v11983_v49 = vsub.f32 %v22181_v46, %v11897_v16 }
 0xa5e   : > { %v12015_v26 = vmul.f32 1.442695, %v11981_v22  ;;  %v12019_v50 = vmul.f32 1.442695, %v11983_v49 }
 0xa5f   : > { %v11900_v48 = vpop.xlane.xlu0 %11899  ;;  %v11903_v63 = vpop.xlane.xlu1 %11902 }
 0xa60   : > { %18513 = vpow2.f32 %v12015_v26  ;;  %v11984_v45 = vsub.f32 %v22184_v58, %v11900_v48  ;;  %v11985_v60 = vsub.f32 %v22191_v23, %v11903_v63 }
 0xa61   : > { %v22349_v9 = vpop.eup %18507  ;;  %18515 = vpow2.f32 %v12019_v50 }
 0xa62   : > { %v22351_v57 = vpop.eup %18509  ;;  %v12021_v39 = vmul.f32 1.442695, %v11984_v45  ;;  %v12023_v62 = vmul.f32 1.442695, %v11985_v60  ;;  %v12078_v30 = vsel %vm2346_vm2, %v22349_v9, 0.0 }
 0xa63   : > { %v11906_v15 = vpop.xlane.xlu0 %11905  ;;  %v11909_v46 = vpop.xlane.xlu1 %11908  ;;  %12079 = vadd.xlane.f32.xlu0 %v12078_v30  ;;  %v12075_v26 = vsel %vm2346_vm2, %v22351_v57, 0.0 }
 0xa64   : > { %18517 = vpow2.f32 %v12021_v39  ;;  %v11986_v58 = vsub.f32 %v22196_v53, %v11906_v15  ;;  %v11987_v63 = vsub.f32 %v22201_v43, %v11909_v46  ;;  %12076 = vadd.xlane.f32.xlu1 %v12075_v26 }
 0xa65   : > { %18519 = vpow2.f32 %v12023_v62 }
 0xa66   : > { %v22359_v23 = vpop.eup %18511  ;;  %v12025_v4 = vmul.f32 1.442695, %v11986_v58  ;;  %v12027_v16 = vmul.f32 1.442695, %v11987_v63 }
 0xa67   : > { %v11912_v22 = vpop.xlane.xlu0 %11911  ;;  %v11915_v49 = vpop.xlane.xlu1 %11914  ;;  %v12084_v19 = vsel %vm2346_vm2, %v22359_v23, 0.0 }
 0xa68   : > { %18521 = vpow2.f32 %v12025_v4  ;;  %v11988_v21 = vsub.f32 %v22204_v54, %v11912_v22  ;;  %v11989_v20 = vsub.f32 %v22211_v0, %v11915_v49  ;;  %12085 = vadd.xlane.f32.xlu0 %v12084_v19 }
 0xa69   : > { %18523 = vpow2.f32 %v12027_v16 }
 0xa6a   : > { %v22365_v53 = vpop.eup %18513  ;;  %v12029_v43 = vmul.f32 1.442695, %v11988_v21  ;;  %v12031_v50 = vmul.f32 1.442695, %v11989_v20 }
 0xa6b   : > { %v11918_v48 = vpop.xlane.xlu0 %11917  ;;  %v11921_v45 = vpop.xlane.xlu1 %11920  ;;  %v12081_v60 = vsel %vm2346_vm2, %v22365_v53, 0.0 }
 0xa6c   : > { %v22369_v39 = vpop.eup %18515  ;;  %18525 = vpow2.f32 %v12029_v43  ;;  %v11990_v62 = vsub.f32 %v22216_v6, %v11918_v48  ;;  %12082 = vadd.xlane.f32.xlu1 %v12081_v60  ;;  %v11991_v30 = vsub.f32 %v22221_v59, %v11921_v45 }
 0xa6d   : > { %18527 = vpow2.f32 %v12031_v50  ;;  %v12087_v58 = vsel %vm2346_vm2, %v22369_v39, 0.0 }
 0xa6e   : > { %v22372_v54 = vpop.eup %18517  ;;  %v12033_v0 = vmul.f32 1.442695, %v11990_v62  ;;  %v12035_v59 = vmul.f32 1.442695, %v11991_v30 }
 0xa6f   : > { %v11924_v15 = vpop.xlane.xlu0 %11923  ;;  %v11927_v46 = vpop.xlane.xlu1 %11926  ;;  %v12090_v26 = vsel %vm2346_vm2, %v22372_v54, 0.0 }
 0xa70   : > { %v22379_v63 = vpop.eup %18519  ;;  %18529 = vpow2.f32 %v12033_v0  ;;  %v11992_v6 = vsub.f32 %v22224_v13, %v11924_v15  ;;  %v11993_v4 = vsub.f32 %v22231_v37, %v11927_v46  ;;  %12091 = vadd.xlane.f32.xlu0 %v12090_v26  ;;  %12088 = vadd.xlane.f32.xlu1 %v12087_v58 }
 0xa71   : > { %v12093_v43 = vsel %vm2346_vm2, %v22379_v63, 0.0 }
 0xa72   : > { %v22383_v16 = vpop.eup %18521  ;;  %v12037_v22 = vmul.f32 1.442695, %v11992_v6  ;;  %v12039_v49 = vmul.f32 1.442695, %v11993_v4 }
 0xa73   : > { %v11930_v19 = vpop.xlane.xlu0 %11929  ;;  %v11933_v21 = vpop.xlane.xlu1 %11932  ;;  %v12096_v20 = vsel %vm2346_vm2, %v22383_v16, 0.0 }
 0xa74   : > { %v22389_v50 = vpop.eup %18523  ;;  %18531 = vpow2.f32 %v12037_v22  ;;  %v11994_v37 = vsub.f32 %v22236_v55, %v11930_v19  ;;  %12097 = vadd.xlane.f32.xlu0 %v12096_v20  ;;  %12094 = vadd.xlane.f32.xlu1 %v12093_v43  ;;  %v11995_v46 = vsub.f32 %v22241_v5, %v11933_v21 }
 0xa75   : > { %18533 = vpow2.f32 %v12039_v49  ;;  %v12099_v0 = vsel %vm2346_vm2, %v22389_v50, 0.0 }
 0xa76   : > { %v22392_v13 = vpop.eup %18525  ;;  %18535 = vpow2.f32 %v12035_v59  ;;  %v12041_v48 = vmul.f32 1.442695, %v11994_v37  ;;  %v12043_v49 = vmul.f32 1.442695, %v11995_v46 }
 0xa77   : > { %v11936_v45 = vpop.xlane.xlu0 %11935  ;;  %v11939_v60 = vpop.xlane.xlu1 %11938  ;;  %v12102_v62 = vsel %vm2346_vm2, %v22392_v13, 0.0 }
 0xa78   : > { %v22398_v30 = vpop.eup %18527  ;;  %v11996_v15 = vsub.f32 %v22244_v38, %v11936_v45  ;;  %12103 = vadd.xlane.f32.xlu0 %v12102_v62  ;;  %12100 = vadd.xlane.f32.xlu1 %v12099_v0  ;;  %18537 = vpow2.f32 %v12041_v48  ;;  %v11997_v19 = vsub.f32 %v22251_v34, %v11939_v60 }
 0xa79   : > { %v12105_v59 = vsel %vm2346_vm2, %v22398_v30, 0.0 }
 0xa7a   : > { %v22401_v55 = vpop.eup %18529  ;;  %v12045_v26 = vmul.f32 1.442695, %v11996_v15  ;;  %v12047_v34 = vmul.f32 1.442695, %v11997_v19 }
 0xa7b   : > { %v11942_v58 = vpop.xlane.xlu0 %11941  ;;  %v11945_v6 = vpop.xlane.xlu1 %11944  ;;  %v12108_v4 = vsel %vm2346_vm2, %v22401_v55, 0.0 }
 0xa7c   : > { %v11998_v22 = vsub.f32 %v22256_v32, %v11942_v58  ;;  %12109 = vadd.xlane.f32.xlu0 %v12108_v4  ;;  %12106 = vadd.xlane.f32.xlu1 %v12105_v59  ;;  %18539 = vpow2.f32 %v12045_v26  ;;  %v11999_v60 = vsub.f32 %v22261_v12, %v11945_v6 }
 0xa7e   : > { %v22409_v38 = vpop.eup %18531  ;;  %v12049_v5 = vmul.f32 1.442695, %v11998_v22  ;;  %v12051_v58 = vmul.f32 1.442695, %v11999_v60 }
 0xa7f   : > { %v22412_v21 = vpop.eup %18533  ;;  %v11948_v20 = vpop.xlane.xlu0 %11947  ;;  %v12114_v37 = vsel %vm2346_vm2, %v22409_v38, 0.0 }
 0xa80   : > { %v11951_v43 = vpop.xlane.xlu1 %11950  ;;  %v22416_v48 = vpop.eup %18535  ;;  %18541 = vpow2.f32 %v12049_v5  ;;  %v12000_v32 = vsub.f32 %v22264_v52, %v11948_v20  ;;  %12115 = vadd.xlane.f32.xlu0 %v12114_v37  ;;  %v12117_v45 = vsel %vm2346_vm2, %v22412_v21, 0.0 }
 0xa81   : > { %12118 = vadd.xlane.f32.xlu1 %v12117_v45  ;;  %18543 = vpow2.f32 %v12043_v49  ;;  %v12111_v46 = vsel %vm2346_vm2, %v22416_v48, 0.0  ;;  %v12001_v4 = vsub.f32 %v22271_v44, %v11951_v43 }
 0xa82   : > { %v12053_v62 = vmul.f32 1.442695, %v12000_v32  ;;  %v22424_v26 = vpop.eup %18537 }
 0xa83   : > { %v11954_v0 = vpop.xlane.xlu0 %11953  ;;  %v12120_v12 = vsel %vm2346_vm2, %v22424_v26, 0.0 }
 0xa84   : > { %v11957_v15 = vpop.xlane.xlu1 %11956  ;;  %18545 = vpow2.f32 %v12053_v62  ;;  %v12002_v52 = vsub.f32 %v22276_v47, %v11954_v0  ;;  %12112 = vadd.xlane.f32.xlu0 %v12111_v46  ;;  %v12055_v47 = vmul.f32 1.442695, %v12001_v4 }
 0xa85   : > { %18547 = vpow2.f32 %v12047_v34  ;;  %v12003_v20 = vsub.f32 %v22281_v24, %v11957_v15 }
 0xa86   : > { %v12057_v59 = vmul.f32 1.442695, %v12002_v52  ;;  %v22430_v6 = vpop.eup %18539 }
 0xa87   : > { %v11960_v22 = vpop.xlane.xlu0 %11959  ;;  %v12126_v43 = vsel %vm2346_vm2, %v22430_v6, 0.0  ;;  %v12059_v24 = vmul.f32 1.442695, %v12003_v20 }
 0xa88   : > { %v11963_v49 = vpop.xlane.xlu1 %11962  ;;  %18549 = vpow2.f32 %v12057_v59  ;;  %v12004_v19 = vsub.f32 %v22284_v2, %v11960_v22  ;;  %12121 = vadd.xlane.f32.xlu0 %v12120_v12 }
 0xa89   : > { %18551 = vpow2.f32 %v12051_v58  ;;  %v12005_v62 = vsub.f32 %v22291_v18, %v11963_v49 }
 0xa8a   : > { %v22433_v5 = vpop.eup %18541  ;;  %v12061_v37 = vmul.f32 1.442695, %v12004_v19 }
 0xa8b   : > { %v11966_v44 = vpop.xlane.xlu0 %11965  ;;  %v12132_v32 = vsel %vm2346_vm2, %v22433_v5, 0.0  ;;  %v22440_v45 = vpop.eup %18543  ;;  %v12063_v59 = vmul.f32 1.442695, %v12005_v62 }
 0xa8c   : > { %18553 = vpow2.f32 %v12061_v37  ;;  %v12006_v2 = vsub.f32 %v22296_v25, %v11966_v44  ;;  %12127 = vadd.xlane.f32.xlu0 %v12126_v43  ;;  %12133 = vadd.xlane.f32.xlu1 %v12132_v32  ;;  %v11969_v34 = vpop.xlane.xlu1 %11968  ;;  %v12123_v52 = vsel %vm2346_vm2, %v22440_v45, 0.0 }
 0xa8d   : > { %18555 = vpow2.f32 %v12055_v47  ;;  %v12007_v18 = vsub.f32 %v22301_v40, %v11969_v34 }
 0xa8e   : > { %v22443_v60 = vpop.eup %18545  ;;  %v12065_v0 = vmul.f32 1.442695, %v12006_v2 }
 0xa8f   : > { %v11972_v15 = vpop.xlane.xlu0 %11971  ;;  %v12138_v46 = vsel %vm2346_vm2, %v22443_v60, 0.0  ;;  %v22450_v58 = vpop.eup %18547  ;;  %v12067_v40 = vmul.f32 1.442695, %v12007_v18 }
 0xa90   : > { %18557 = vpow2.f32 %v12065_v0  ;;  %v12008_v25 = vsub.f32 %v22304_v10, %v11972_v15  ;;  %12139 = vadd.xlane.f32.xlu1 %v12138_v46  ;;  %12124 = vadd.xlane.f32.xlu0 %v12123_v52  ;;  %v11975_v49 = vpop.xlane.xlu1 %11974  ;;  %v12129_v47 = vsel %vm2346_vm2, %v22450_v58, 0.0 }
 0xa91   : > { %18559 = vpow2.f32 %v12059_v24  ;;  %v12009_v44 = vsub.f32 %v22314_v29, %v11975_v49 }
 0xa92   : > { %v22453_v4 = vpop.eup %18549  ;;  %v12069_v22 = vmul.f32 1.442695, %v12008_v25 }
 0xa93   : > { %v11978_v12 = vpop.xlane.xlu0 %11977  ;;  %v12144_v19 = vsel %vm2346_vm2, %v22453_v4, 0.0  ;;  %v22460_v20 = vpop.eup %18551  ;;  %v12071_v24 = vmul.f32 1.442695, %v12009_v44  ;;  %v23747_v44 = vld [vmem:[#allocation39_spill] sm:$0xff] }
 0xa94   : > { %18561 = vpow2.f32 %v12069_v22  ;;  %v12010_v10 = vsub.f32 %v22307_v11, %v11978_v12  ;;  %12145 = vadd.xlane.f32.xlu1 %v12144_v19  ;;  %12130 = vadd.xlane.f32.xlu0 %v12129_v47  ;;  %v12135_v2 = vsel %vm2346_vm2, %v22460_v20, 0.0 }
 0xa95   : > { %18563 = vpow2.f32 %v12063_v59 }
 0xa96   : > { %v22463_v37 = vpop.eup %18553  ;;  %v12073_v43 = vmul.f32 1.442695, %v12010_v10  ;;  %v23745_v10 = vld [vmem:[#allocation82_spill] sm:$0xff] }
 0xa97   : > { %v12150_v32 = vsel %vm2346_vm2, %v22463_v37, 0.0  ;;  %v22470_v34 = vpop.eup %18555 }
 0xa98   : > { %18565 = vpow2.f32 %v12073_v43  ;;  %12151 = vadd.xlane.f32.xlu1 %v12150_v32  ;;  %12136 = vadd.xlane.f32.xlu0 %v12135_v2  ;;  %v12141_v29 = vsel %vm2346_vm2, %v22470_v34, 0.0  ;;  %v23748_v43 = vld [vmem:[#allocation58_spill] sm:$0xff]  ;;  %v23750_v2 = vpack.i.bf16 %v22080_v14, %v22084_v1  ;;  %v23759_v14 = vpack.i.bf16 %v22062_v36, %v22064_v51  ;;  %v23760_v1 = vld [vmem:[#allocation117_spill] sm:$0xff] }
 0xa99   : > { %18567 = vpow2.f32 %v12067_v40  ;;  %v23746_v40 = vpack.i.bf16 %v22068_v28, %v22072_v3  ;;  %v23749_v32 = vpack.i.bf16 %v23747_v44, %v23748_v43  ;;  %v23755_v28 = vld [vmem:[#allocation46_spill] sm:$0xff]  ;;  %v23767_v36 = vpack.i.bf16 %v22070_v31, %v22074_v61  ;;  %v23768_v51 = vld [vmem:[#allocation109_spill] sm:$0xff]  ;;  %v23775_v31 = vld [vmem:[#allocation28_spill] sm:$0xff] }
 0xa9a   : > { %v22472_v11 = vpop.eup %18557  ;;  %18569 = vpow2.f32 %v12071_v24  ;;  %v23751_v24 = vld [vmem:[#allocation79_spill] sm:$0xff]  ;;  %v23756_v3 = vld [vmem:[#allocation42_spill] sm:$0xff]  ;;  %v23771_v43 = vld [vmem:[#allocation105_spill] sm:$0xff] }
 0xa9b   : > { %v12156_v62 = vsel %vm2346_vm2, %v22472_v11, 0.0  ;;  %v22478_v0 = vpop.eup %18559  ;;  %v23776_v61 = vld [vmem:[#allocation107_spill] sm:$0xff] }
 0xa9c   : > { %12157 = vadd.xlane.f32.xlu1 %v12156_v62  ;;  %12142 = vadd.xlane.f32.xlu0 %v12141_v29  ;;  %v12147_v52 = vsel %vm2346_vm2, %v22478_v0, 0.0  ;;  %v23752_v62 = vld [vmem:[#allocation53_spill] sm:$0xff]  ;;  %v23753_v29 = vld [vmem:[#allocation44_spill] sm:$0xff] }
 0xa9e   : > { %v22480_v15 = vpop.eup %18561 }
 0xa9f   : > { %v12162_v46 = vsel %vm2346_vm2, %v22480_v15, 0.0  ;;  %v22486_v25 = vpop.eup %18563 }
 0xaa0   : > { %12163 = vadd.xlane.f32.xlu1 %v12162_v46  ;;  %12148 = vadd.xlane.f32.xlu0 %v12147_v52  ;;  %v12153_v22 = vsel %vm2346_vm2, %v22486_v25, 0.0  ;;  %v23754_v46 = vpack.i.bf16 %v23752_v62, %v23753_v29  ;;  %v23757_v52 = vpack.i.bf16 %v23755_v28, %v23756_v3  ;;  %v23778_v29 = vpack.i.bf16 %v22096_v41, %v22100_v42  ;;  %v23779_v28 = vld [vmem:[#allocation108_spill] sm:$0xff]  ;;  %v23780_v3 = vld [vmem:[#allocation110_spill] sm:$0xff] }
 0xaa2   : > { %v22488_v59 = vpop.eup %18565 }
 0xaa3   : > { %v12168_v18 = vsel %vm2346_vm2, %v22488_v59, 0.0  ;;  %v22494_v49 = vpop.eup %18567 }
 0xaa4   : > { %12169 = vadd.xlane.f32.xlu1 %v12168_v18  ;;  %12154 = vadd.xlane.f32.xlu0 %v12153_v22  ;;  %v12159_v12 = vsel %vm2346_vm2, %v22494_v49, 0.0  ;;  %v22498_v19 = vpop.eup %18569  ;;  %v23758_v18 = vpack.i.bf16 %v22092_v27, %v22094_v8  ;;  %v23761_v22 = vld [vmem:[#allocation30_spill] sm:$0xff]  ;;  %v23766_v27 = vpack.i.bf16 %v22104_v35, %v22106_v7  ;;  %v23769_v8 = vld [vmem:[#allocation111_spill] sm:$0xff]  ;;  %v23774_v35 = vpack.i.bf16 %v22082_v33, %v22088_v17 }
 0xaa5   : > { %v12165_v47 = vsel %vm2346_vm2, %v22498_v19, 0.0  ;;  %v23770_v44 = vpack.i.bf16 %v23768_v51, %v23769_v8  ;;  %v23777_v7 = vpack.i.bf16 %v23775_v31, %v23776_v61  ;;  %v23782_v33 = vld [vmem:[#allocation66_spill] sm:$0xff]  ;;  %v23786_v61 = vld [vmem:[#allocation33_spill] sm:$0xff] }
 0xaa6   : > { %v23783_v17 = vpack.i.bf16 %v22108_v56, %v23782_v33 }
 0xaa8   : > { %12160 = vadd.xlane.f32.xlu0 %v12159_v12  ;;  %v23762_v12 = vpack.i.bf16 %v23760_v1, %v23761_v22 }
 0xaac   : > { %12166 = vadd.xlane.f32.xlu0 %v12165_v47  ;;  %v23763_v47 = vld [vmem:[#allocation104_spill] sm:$0xff] }
 0xab5   : > { %17879 = vrot.lane.b32.xlu1 %v23745_v10, %s18836_s11  ;;  %v23764_v10 = vld [vmem:[#allocation19_spill] sm:$0xff] }
 0xab9   : > { %17899 = vrot.lane.b32.xlu1 %v23746_v40, %s18835_s20  ;;  %v23765_v40 = vpack.i.bf16 %v23763_v47, %v23764_v10  ;;  %v23784_v10 = vld [vmem:[#allocation38_spill] sm:$0xff] }
 0xabd   : > { %17904 = vrot.lane.b32.xlu1 %v23749_v32, %s18836_s11  ;;  %v23772_v32 = vld [vmem:[#allocation106_spill] sm:$0xff] }
 0xac1   : > { %17919 = vrot.lane.b32.xlu1 %v23750_v2, %s18835_s20  ;;  %v23773_v2 = vpack.i.bf16 %v23771_v43, %v23772_v32  ;;  %v23785_v43 = vld [vmem:[#allocation47_spill] sm:$0xff] }
 0xac2   : > { %17874 = vrot.lane.b32.xlu0 %v23751_v24, %s18836_s11  ;;  %v22558_v24 = vpop.permute.xlu0 %17854 }
 0xac5   : > { %17924 = vrot.lane.b32.xlu1 %v23754_v46, %s18836_s11 }
 0xac6   : > { %17884 = vrot.lane.b32.xlu0 %v23757_v52, %s18836_s11  ;;  %v22568_v62 = vpop.permute.xlu0 %17859  ;;  %v23781_v52 = vpack.i.bf16 %v23779_v28, %v23780_v3 }
 0xac9   : > { %17939 = vrot.lane.b32.xlu1 %v23758_v18, %s18835_s20 }
 0xaca   : > { %17889 = vrot.lane.b32.xlu0 %v23759_v14, %s18835_s20  ;;  %v22574_v46 = vpop.permute.xlu0 %17864  ;;  %v22586_v14 = vpop.permute.xlu1 %17849 }
 0xacd   : > { %17944 = vrot.lane.b32.xlu1 %v23762_v12, %s18836_s11 }
 0xace   : > { %17894 = vrot.lane.b32.xlu0 %v23765_v40, %s18836_s11  ;;  %v22584_v18 = vpop.permute.xlu0 %17869  ;;  %v17827_v40 = vunpack.i.h.bf16 %v23784_v10 }
 0xad1   : > { %17959 = vrot.lane.b32.xlu1 %v23766_v27, %s18835_s20  ;;  %v17826_v27 = vunpack.i.l.bf16 %v23784_v10 }
 0xad2   : > { %17909 = vrot.lane.b32.xlu0 %v23767_v36, %s18835_s20 }
 0xad5   : > { %17964 = vrot.lane.b32.xlu1 %v23770_v44, %s18836_s11  ;;  %v17220_v44 = vpack.c.bf16 %v17827_v40, %v17826_v27  ;;  %v23789_v27 = vld [vmem:[#allocation45_spill] sm:$0xff] }
 0xad6   : > { %17914 = vrot.lane.b32.xlu0 %v23773_v2, %s18836_s11 }
 0xada   : > { %17929 = vrot.lane.b32.xlu0 %v23774_v35, %s18835_s20 }
 0xade   : > { %17934 = vrot.lane.b32.xlu0 %v23777_v7, %s18836_s11 }
 0xae2   : > { %17949 = vrot.lane.b32.xlu0 %v23778_v29, %s18835_s20 }
 0xae6   : > { %17954 = vrot.lane.b32.xlu0 %v23781_v52, %s18836_s11 }
 0xaea   : > { %17969 = vrot.lane.b32.xlu0 %v23783_v17, %s18835_s20 }
 0xaf0   : > { %v12080_v1 = vpop.xlane.xlu0 %12079 }
 0xaf1   : > { %18571 = vrcp.f32 %v12080_v1  ;;  %v12077_v41 = vpop.xlane.xlu1 %12076  ;;  %v23787_v1 = vld [vmem:[#allocation43_spill] sm:$0xff] }
 0xaf2   : > { %18573 = vrcp.f32 %v12077_v41  ;;  %v17837_v41 = vunpack.i.h.bf16 %v23787_v1 }
 0xaf5   : > { %v12086_v42 = vpop.xlane.xlu0 %12085 }
 0xaf6   : > { %18575 = vrcp.f32 %v12086_v42  ;;  %v17836_v42 = vunpack.i.l.bf16 %v23787_v1 }
 0xaf9   : > { %v12083_v22 = vpop.xlane.xlu1 %12082 }
 0xafa   : > { %18577 = vrcp.f32 %v12083_v22 }
 0xafb   : > { %v18572_v12 = vpop.eup %18571 }
 0xafc   : > { %v18574_v47 = vpop.eup %18573  ;;  %v12174_v8 = vmul.f32 %v18572_v12, %v22349_v9  ;;  %v17831_v9 = vunpack.i.l.bf16 %v23786_v61  ;;  %v23788_v12 = vld [vmem:[#allocation22_spill] sm:$0xff] }
 0xafd   : > { %v12092_v56 = vpop.xlane.xlu0 %12091  ;;  %v12089_v36 = vpop.xlane.xlu1 %12088  ;;  %v12172_v51 = vmul.f32 %v18574_v47, %v22351_v57  ;;  %v17832_v57 = vunpack.i.h.bf16 %v23786_v61 }
 0xafe   : > { %18579 = vrcp.f32 %v12092_v56  ;;  %v17842_v56 = vunpack.i.h.bf16 %v23789_v27 }
 0xaff   : > { %18581 = vrcp.f32 %v12089_v36  ;;  %16376 = vmatprep.mubr.msk.f32.mxu0 %vm2346_vm2, %v12172_v51  ;;  %v17224_v33 = vpack.c.bf16 %v17832_v57, %v17831_v9  ;;  %v17841_v36 = vunpack.i.l.bf16 %v23789_v27 }
 0xb00   : > { %16377 = vmatmul.mubr.msk.f32.vlgmr.msra.gmra.mrb[146].mxu0 %vm2346_vm2, %v12174_v8  ;;  %v18576_v35 = vpop.eup %18575  ;;  %v17228_v8 = vpack.c.bf16 %v17837_v41, %v17836_v42 }
 0xb01   : > { %17215 = vmatpush3.bf16.msra.mxu0 %v23785_v43  ;;  %v12098_v32 = vpop.xlane.xlu0 %12097  ;;  %v12095_v2 = vpop.xlane.xlu1 %12094  ;;  %v12178_v3 = vmul.f32 %v18576_v35, %v22359_v23 }
 0xb02   : > { %18583 = vrcp.f32 %v12098_v32  ;;  %17221 = vmatprep.subr.bf16.mxu0 %v17220_v44 }
 0xb03   : > { %18585 = vrcp.f32 %v12095_v2  ;;  %v23790_v2 = vld [vmem:[#allocation49_spill] sm:$0xff] }
 0xb04   : > { %v18578_v31 = vpop.eup %18577  ;;  %v17847_v35 = vunpack.i.h.bf16 %v23790_v2  ;;  %v17846_v61 = vunpack.i.l.bf16 %v23790_v2 }
 0xb05   : > { %v12104_v7 = vpop.xlane.xlu0 %12103  ;;  %v12101_v29 = vpop.xlane.xlu1 %12100  ;;  %v12176_v28 = vmul.f32 %v18578_v31, %v22365_v53 }
 0xb06   : > { %18587 = vrcp.f32 %v12104_v7 }
 0xb07   : > { %18589 = vrcp.f32 %v12101_v29  ;;  %16383 = vmatprep.mubr.msk.f32.mxu1 %vm2346_vm2, %v12176_v28  ;;  %v17852_v29 = vunpack.i.h.bf16 %v22586_v14  ;;  %v17851_v28 = vunpack.i.l.bf16 %v22586_v14 }
 0xb08   : > { %v18580_v52 = vpop.eup %18579  ;;  %16384 = vmatmul.mubr.msk.f32.vlgmr.msra.gmra.mrb[174].mxu1 %vm2346_vm2, %v12178_v3 }
 0xb09   : > { %v18582_v17 = vpop.eup %18581  ;;  %v12182_v22 = vmul.f32 %v18580_v52, %v22372_v54  ;;  %17219 = vmatpush3.bf16.msra.mxu1 %v23788_v12  ;;  %v12110_v53 = vpop.xlane.xlu0 %12109  ;;  %v17236_v52 = vpack.c.bf16 %v17847_v35, %v17846_v61  ;;  %v17856_v12 = vunpack.i.l.bf16 %v22558_v24 }
 0xb0a   : > { %v12107_v47 = vpop.xlane.xlu1 %12106  ;;  %18591 = vrcp.f32 %v12110_v53  ;;  %17225 = vmatprep.subr.bf16.mxu1 %v17224_v33  ;;  %v12180_v23 = vmul.f32 %v18582_v17, %v22369_v39  ;;  %v17240_v17 = vpack.c.bf16 %v17852_v29, %v17851_v28 }
 0xb0b   : > { %18593 = vrcp.f32 %v12107_v47 }
 0xb0c   : > { %v18584_v10 = vpop.eup %18583  ;;  %16390 = vmatprep.mubr.msk.f32.mxu0 %vm2346_vm2, %v12180_v23 }
 0xb0d   : > { %v18586_v40 = vpop.eup %18585  ;;  %v12186_v51 = vmul.f32 %v18584_v10, %v22383_v16  ;;  %16391 = vmatmul.mubr.msk.f32.vlgmr.msra.gmra.mrb[148].mxu0 %vm2346_vm2, %v12182_v22  ;;  %v12116_v54 = vpop.xlane.xlu0 %12115  ;;  %v17857_v22 = vunpack.i.h.bf16 %v22558_v24  ;;  %v17862_v10 = vunpack.i.h.bf16 %v22568_v62 }
 0xb0e   : > { %17223 = vmatpush3.bf16.msra.mxu0 %v17220_v44  ;;  %v12119_v43 = vpop.xlane.xlu1 %12118  ;;  %v12184_v32 = vmul.f32 %v18586_v40, %v22379_v63  ;;  %v17232_v44 = vpack.c.bf16 %v17842_v56, %v17841_v36 }
 0xb0f   : > { %17229 = vmatprep.subr.bf16.mxu0 %v17228_v8  ;;  %18595 = vrcp.f32 %v12119_v43  ;;  %v17244_v27 = vpack.c.bf16 %v17857_v22, %v17856_v12 }
 0xb10   : > { %v18588_v39 = vpop.eup %18587  ;;  %16397 = vmatprep.mubr.msk.f32.mxu1 %vm2346_vm2, %v12184_v32  ;;  %18597 = vrcp.f32 %v12116_v54 }
 0xb11   : > { %v18590_v31 = vpop.eup %18589  ;;  %v12190_v16 = vmul.f32 %v18588_v39, %v22392_v13  ;;  %16398 = vmatmul.mubr.msk.f32.vlgmr.msra.gmra.mrb[176].mxu1 %vm2346_vm2, %v12186_v51  ;;  %v12113_v57 = vpop.xlane.xlu0 %12112 }
 0xb12   : > { %17227 = vmatpush3.bf16.msra.mxu1 %v17224_v33  ;;  %18599 = vrcp.f32 %v12113_v57  ;;  %v12188_v63 = vmul.f32 %v18590_v31, %v22389_v50  ;;  %v17871_v57 = vunpack.i.l.bf16 %v22584_v18 }
 0xb13   : > { %17233 = vmatprep.subr.bf16.mxu1 %v17232_v44 }
 0xb14   : > { %v18592_v9 = vpop.eup %18591  ;;  %16404 = vmatprep.mubr.msk.f32.mxu0 %vm2346_vm2, %v12188_v63 }
 0xb15   : > { %v18594_v7 = vpop.eup %18593  ;;  %v12194_v13 = vmul.f32 %v18592_v9, %v22401_v55  ;;  %16405 = vmatmul.mubr.msk.f32.vlgmr.msra.gmra.mrb[150].mxu0 %vm2346_vm2, %v12190_v16  ;;  %v12122_v3 = vpop.xlane.xlu0 %12121  ;;  %v17872_v16 = vunpack.i.h.bf16 %v22584_v18 }
 0xb16   : > { %17231 = vmatpush3.bf16.msra.mxu0 %v17228_v8  ;;  %18601 = vrcp.f32 %v12122_v3  ;;  %v12192_v33 = vmul.f32 %v18594_v7, %v22398_v30  ;;  %v17867_v8 = vunpack.i.h.bf16 %v22574_v46 }
 0xb17   : > { %17237 = vmatprep.subr.bf16.mxu0 %v17236_v52  ;;  %v17256_v7 = vpack.c.bf16 %v17872_v16, %v17871_v57  ;;  %v412_v16 = vld [vmem:[#allocation7 + $0x70] sm:$0xff]  ;;  %v413_v57 = vld [vmem:[#allocation7 + $0x78] sm:$0xff] }
 0xb18   : > { %16411 = vmatprep.mubr.msk.f32.mxu1 %vm2346_vm2, %v12192_v33 }
 0xb19   : > { %v18596_v50 = vpop.eup %18595  ;;  %16412 = vmatmul.mubr.msk.f32.vlgmr.msra.gmra.mrb[178].mxu1 %vm2346_vm2, %v12194_v13  ;;  %v12128_v1 = vpop.xlane.xlu0 %12127 }
 0xb1a   : > { %v12134_v41 = vpop.xlane.xlu1 %12133  ;;  %17235 = vmatpush3.bf16.msra.mxu1 %v17232_v44  ;;  %v12200_v55 = vmul.f32 %v18596_v50, %v22412_v21  ;;  %v18598_v14 = vpop.eup %18597  ;;  %18603 = vrcp.f32 %v12128_v1  ;;  %v17861_v21 = vunpack.i.l.bf16 %v22568_v62 }
 0xb1b   : > { %17241 = vmatprep.subr.bf16.mxu1 %v17240_v17  ;;  %v12198_v23 = vmul.f32 %v18598_v14, %v22409_v38 }
 0xb1c   : > { %v18600_v42 = vpop.eup %18599  ;;  %16425 = vmatprep.mubr.msk.f32.mxu1 %vm2346_vm2, %v12200_v55  ;;  %v17248_v38 = vpack.c.bf16 %v17862_v10, %v17861_v21 }
 0xb1d   : > { %v12125_v30 = vpop.xlane.xlu0 %12124  ;;  %v12196_v47 = vmul.f32 %v18600_v42, %v22416_v48 }
 0xb1e   : > { %v12140_v53 = vpop.xlane.xlu1 %12139  ;;  %18605 = vrcp.f32 %v12125_v30 }
 0xb1f   : > { %16418 = vmatprep.mubr.msk.f32.mxu0 %vm2346_vm2, %v12196_v47  ;;  %18607 = vrcp.f32 %v12134_v41 }
 0xb20   : > { %v18602_v40 = vpop.eup %18601  ;;  %16419 = vmatmul.mubr.msk.f32.vlgmr.msra.gmra.mrb[152].mxu0 %vm2346_vm2, %v12198_v23 }
 0xb21   : > { %v12202_v24 = vmul.f32 %v18602_v40, %v22424_v26  ;;  %17239 = vmatpush3.bf16.msra.mxu0 %v17236_v52  ;;  %v12131_v56 = vpop.xlane.xlu0 %12130  ;;  %v17866_v26 = vunpack.i.l.bf16 %v22574_v46 }
 0xb22   : > { %v12146_v36 = vpop.xlane.xlu1 %12145  ;;  %18609 = vrcp.f32 %v12131_v56  ;;  %17245 = vmatprep.subr.bf16.mxu0 %v17244_v27  ;;  %v400_v56 = vld [vmem:[#allocation7 + $0x10] sm:$0xff] }
 0xb23   : > { %16426 = vmatmul.mubr.msk.f32.vlgmr.msra.gmra.mrb[180].mxu1 %vm2346_vm2, %v12202_v24  ;;  %18611 = vrcp.f32 %v12140_v53  ;;  %v17252_v61 = vpack.c.bf16 %v17867_v8, %v17866_v26  ;;  %v398_v24 = vld [vmem:[#allocation7] sm:$0xff]  ;;  %v407_v26 = vld [vmem:[#allocation7 + $0x48] sm:$0xff] }
 0xb24   : > { %17243 = vmatpush3.bf16.msra.mxu1 %v17240_v17  ;;  %v18604_v51 = vpop.eup %18603  ;;  %v406_v8 = vld [vmem:[#allocation7 + $0x40] sm:$0xff] }
 0xb25   : > { %17249 = vmatprep.subr.bf16.mxu1 %v17248_v38  ;;  %v12137_v48 = vpop.xlane.xlu0 %12136  ;;  %v12206_v2 = vmul.f32 %v18604_v51, %v22430_v6  ;;  %v403_v51 = vld [vmem:[#allocation7 + $0x28] sm:$0xff] }
 0xb26   : > { %v12152_v62 = vpop.xlane.xlu1 %12151  ;;  %18613 = vrcp.f32 %v12137_v48 }
 0xb27   : > { %18615 = vrcp.f32 %v12146_v36 }
 0xb28   : > { %v18606_v54 = vpop.eup %18605 }
 0xb29   : > { %v12143_v43 = vpop.xlane.xlu0 %12142  ;;  %v12204_v39 = vmul.f32 %v18606_v54, %v22440_v45  ;;  %v18608_v35 = vpop.eup %18607 }
 0xb2a   : > { %v12158_v32 = vpop.xlane.xlu1 %12157  ;;  %18617 = vrcp.f32 %v12143_v43  ;;  %v12210_v6 = vmul.f32 %v18608_v35, %v22433_v5  ;;  %v17284_v43 = vpack.c.bf16 %v407_v26, %v406_v8  ;;  %v410_v35 = vld [vmem:[#allocation7 + $0x60] sm:$0xff]  ;;  %v23813_v8 = vld [vmem:[#allocation29_spill] sm:$0xff] }
 0xb2b   : > { %16432 = vmatprep.mubr.msk.f32.mxu0 %vm2346_vm2, %v12204_v39  ;;  %18619 = vrcp.f32 %v12152_v62  ;;  %v402_v62 = vld [vmem:[#allocation7 + $0x20] sm:$0xff]  ;;  %v409_v39 = vld [vmem:[#allocation7 + $0x58] sm:$0xff] }
 0xb2c   : > { %v18610_v31 = vpop.eup %18609  ;;  %16433 = vmatmul.mubr.msk.f32.vlgmr.msra.gmra.mrb[154].mxu0 %vm2346_vm2, %v12206_v2 }
 0xb2d   : > { %17247 = vmatpush3.bf16.msra.mxu0 %v17244_v27  ;;  %v12149_v46 = vpop.xlane.xlu0 %12148  ;;  %v12208_v45 = vmul.f32 %v18610_v31, %v22450_v58  ;;  %v18612_v63 = vpop.eup %18611  ;;  %v411_v31 = vld [vmem:[#allocation7 + $0x68] sm:$0xff] }
 0xb2e   : > { %v12164_v44 = vpop.xlane.xlu1 %12163  ;;  %18621 = vrcp.f32 %v12149_v46  ;;  %17253 = vmatprep.subr.bf16.mxu0 %v17252_v61  ;;  %v12214_v13 = vmul.f32 %v18612_v63, %v22443_v60  ;;  %v17296_v46 = vpack.c.bf16 %v413_v57, %v412_v16 }
 0xb2f   : > { %16439 = vmatprep.mubr.msk.f32.mxu1 %vm2346_vm2, %v12208_v45  ;;  %18623 = vrcp.f32 %v12158_v32  ;;  %v408_v32 = vld [vmem:[#allocation7 + $0x50] sm:$0xff] }
 0xb30   : > { %v18614_v9 = vpop.eup %18613  ;;  %16440 = vmatmul.mubr.msk.f32.vlgmr.msra.gmra.mrb[182].mxu1 %vm2346_vm2, %v12210_v6  ;;  %v17288_v2 = vpack.c.bf16 %v409_v39, %v408_v32 }
 0xb31   : > { %17251 = vmatpush3.bf16.msra.mxu1 %v17248_v38  ;;  %v12155_v18 = vpop.xlane.xlu0 %12154  ;;  %v12212_v28 = vmul.f32 %v18614_v9, %v22460_v20  ;;  %v18616_v5 = vpop.eup %18615  ;;  %v401_v38 = vld [vmem:[#allocation7 + $0x18] sm:$0xff] }
 0xb32   : > { %v12170_v29 = vpop.xlane.xlu1 %12169  ;;  %18625 = vrcp.f32 %v12155_v18  ;;  %17257 = vmatprep.subr.bf16.mxu1 %v17256_v7  ;;  %v12218_v50 = vmul.f32 %v18616_v5, %v22453_v4  ;;  %v17272_v48 = vpack.c.bf16 %v401_v38, %v400_v56  ;;  %v23792_v5 = vld [vmem:[#allocation119_spill] sm:$0xff]  ;;  %v23809_v56 = vld [vmem:[#allocation78_spill] sm:$0xff] }
 0xb33   : > { %16446 = vmatprep.mubr.msk.f32.mxu0 %vm2346_vm2, %v12212_v28 }
 0xb34   : > { %v18618_v58 = vpop.eup %18617  ;;  %16447 = vmatmul.mubr.msk.f32.vlgmr.msra.gmra.mrb[156].mxu0 %vm2346_vm2, %v12214_v13  ;;  %v23791_v13 = vld [vmem:[#allocation17_spill] sm:$0xff] }
 0xb35   : > { %17255 = vmatpush3.bf16.msra.mxu0 %v17252_v61  ;;  %v12161_v3 = vpop.xlane.xlu0 %12160  ;;  %v12216_v33 = vmul.f32 %v18618_v58, %v22470_v34  ;;  %v18620_v1 = vpop.eup %18619  ;;  %v17292_v61 = vpack.c.bf16 %v411_v31, %v410_v35  ;;  %v23793_v58 = vpack.i.bf16 %v23791_v13, %v23792_v5  ;;  %v23816_v35 = vld [vmem:[#allocation23_spill] sm:$0xff] }
 0xb36   : > { %v17880_v52 = vpop.permute.xlu1 %17879  ;;  %18627 = vrcp.f32 %v12161_v3  ;;  %v12222_v34 = vmul.f32 %v18620_v1, %v22463_v37 }
 0xb37   : > { %v17882_v17 = vunpack.i.h.bf16 %v17880_v52  ;;  %v17881_v20 = vunpack.i.l.bf16 %v17880_v52  ;;  %18629 = vrcp.f32 %v12164_v44  ;;  %16453 = vmatprep.mubr.msk.f32.mxu1 %vm2346_vm2, %v12216_v33 }
 0xb38   : > { %v18622_v60 = vpop.eup %18621  ;;  %16454 = vmatmul.mubr.msk.f32.vlgmr.msra.gmra.mrb[184].mxu1 %vm2346_vm2, %v12218_v50  ;;  %18631 = vrcp.f32 %v12170_v29  ;;  %v23794_v50 = vld [vmem:[#allocation62_spill] sm:$0xff] }
 0xb39   : > { %v17264_v41 = vpack.c.bf16 %v17882_v17, %v17881_v20  ;;  %17259 = vmatpush3.bf16.msra.mxu1 %v17256_v7  ;;  %v12167_v55 = vpop.xlane.xlu0 %12166  ;;  %v12220_v14 = vmul.f32 %v18622_v60, %v22478_v0  ;;  %v18624_v4 = vpop.eup %18623  ;;  %v23795_v17 = vld [vmem:[#allocation63_spill] sm:$0xff] }
 0xb3a   : > { %18633 = vrcp.f32 %v12167_v55  ;;  %v12226_v30 = vmul.f32 %v18624_v4, %v22472_v11  ;;  %v23796_v20 = vpack.i.bf16 %v23794_v50, %v23795_v17  ;;  %v23797_v55 = vld [vmem:[#allocation59_spill] sm:$0xff] }
 0xb3b   : > { %17265 = vmatprep.subr.bf16.mxu1 %v17264_v41  ;;  %16460 = vmatprep.mubr.msk.f32.mxu0 %vm2346_vm2, %v12220_v14  ;;  %v23798_v14 = vld [vmem:[#allocation34_spill] sm:$0xff] }
 0xb3c   : > { %v18626_v42 = vpop.eup %18625  ;;  %16461 = vmatmul.mubr.msk.f32.vlgmr.msra.gmra.mrb[158].mxu0 %vm2346_vm2, %v12222_v34  ;;  %v23799_v34 = vpack.i.bf16 %v23797_v55, %v23798_v14  ;;  %v23828_v55 = vld [vmem:[#allocation35_spill] sm:$0xff] }
 0xb3d   : > { %v17875_v22 = vpop.permute.xlu0 %17874  ;;  %v12224_v12 = vmul.f32 %v18626_v42, %v22486_v25 }
 0xb3e   : > { %v17877_v53 = vunpack.i.h.bf16 %v17875_v22  ;;  %v17876_v47 = vunpack.i.l.bf16 %v17875_v22 }
 0xb3f   : > { %16467 = vmatprep.mubr.msk.f32.mxu1 %vm2346_vm2, %v12224_v12  ;;  %v23800_v12 = vld [vmem:[#allocation112_spill] sm:$0xff] }
 0xb40   : > { %v18628_v0 = vpop.eup %18627  ;;  %v17260_v23 = vpack.c.bf16 %v17877_v53, %v17876_v47  ;;  %16468 = vmatmul.mubr.msk.f32.vlgmr.msra.gmra.mrb[186].mxu1 %vm2346_vm2, %v12226_v30  ;;  %v23801_v30 = vld [vmem:[#allocation21_spill] sm:$0xff] }
 0xb41   : > { %v18630_v37 = vpop.eup %18629  ;;  %17267 = vmatpush3.bf16.msra.mxu1 %v17264_v41  ;;  %v12228_v10 = vmul.f32 %v18628_v0, %v22494_v49  ;;  %v399_v49 = vld [vmem:[#allocation7 + $0x8] sm:$0xff]  ;;  %v23802_v53 = vpack.i.bf16 %v23800_v12, %v23801_v30  ;;  %v23803_v0 = vld [vmem:[#allocation25_spill] sm:$0xff] }
 0xb42   : > { %17261 = vmatprep.subr.bf16.mxu0 %v17260_v23  ;;  %v18632_v21 = vpop.eup %18631  ;;  %v12230_v11 = vmul.f32 %v18630_v37, %v22480_v15  ;;  %v17268_v36 = vpack.c.bf16 %v399_v49, %v398_v24  ;;  %v17276_v15 = vpack.c.bf16 %v403_v51, %v402_v62  ;;  %v23807_v24 = vld [vmem:[#allocation70_spill] sm:$0xff]  ;;  %v23830_v12 = vld [vmem:[#allocation32_spill] sm:$0xff] }
 0xb43   : > { %17263 = vmatpush3.bf16.msra.mxu0 %v17260_v23  ;;  %16474 = vmatprep.mubr.msk.f32.mxu0 %vm2346_vm2, %v12228_v10  ;;  %v12234_v27 = vmul.f32 %v18632_v21, %v22488_v59  ;;  %v405_v59 = vld [vmem:[#allocation7 + $0x38] sm:$0xff]  ;;  %v23804_v23 = vld [vmem:[#allocation113_spill] sm:$0xff]  ;;  %v23831_v30 = vld [vmem:[#allocation40_spill] sm:$0xff] }
 0xb44   : > { %v18634_v25 = vpop.eup %18633  ;;  %17269 = vmatprep.subr.bf16.mxu0 %v17268_v36  ;;  %v23805_v37 = vpack.i.bf16 %v23803_v0, %v23804_v23  ;;  %v17900_v0 = vpop.permute.xlu1 %17899 }
 0xb45   : > { %v12232_v40 = vmul.f32 %v18634_v25, %v22498_v19  ;;  %v404_v19 = vld [vmem:[#allocation7 + $0x30] sm:$0xff] }
 0xb46   : > { %16475 = vmatmul.mubr.msk.f32.vlgmr.msra.gmra.mrb[160].mxu0 %vm2346_vm2, %v12230_v11  ;;  %v17280_v54 = vpack.c.bf16 %v405_v59, %v404_v19 }
 0xb47   : > { %16481 = vmatprep.mubr.msk.f32.mxu1 %vm2346_vm2, %v12232_v40  ;;  %17271 = vmatpush3.bf16.msra.mxu0 %v17268_v36  ;;  %v23810_v36 = vld [vmem:[#allocation67_spill] sm:$0xff] }
 0xb48   : > { %16482 = vmatmul.mubr.msk.f32.vlgmr.msra.gmra.mrb[188].mxu1 %vm2346_vm2, %v12234_v27  ;;  %17273 = vmatprep.subr.bf16.mxu0 %v17272_v48  ;;  %v23806_v27 = vld [vmem:[#allocation75_spill] sm:$0xff]  ;;  %v23811_v38 = vpack.i.bf16 %v23809_v56, %v23810_v36 }
 0xb49   : > { %v23808_v49 = vpack.i.bf16 %v23806_v27, %v23807_v24 }
 0xb4b   : > { %17275 = vmatpush3.bf16.msra.mxu0 %v17272_v48 }
 0xb4c   : > { %17277 = vmatprep.subr.bf16.mxu0 %v17276_v15 }
 0xb4f   : > { %17279 = vmatpush3.bf16.msra.mxu0 %v17276_v15 }
 0xb50   : > { %17281 = vmatprep.subr.bf16.mxu0 %v17280_v54 }
 0xb53   : > { %17283 = vmatpush3.bf16.msra.mxu0 %v17280_v54  ;;  %v23812_v54 = vld [vmem:[#allocation15_spill] sm:$0xff] }
 0xb54   : > { %17285 = vmatprep.subr.bf16.mxu0 %v17284_v43  ;;  %v23814_v26 = vpack.i.bf16 %v23812_v54, %v23813_v8  ;;  %v23834_v54 = vld [vmem:[#allocation48_spill] sm:$0xff] }
 0xb57   : > { %17287 = vmatpush3.bf16.msra.mxu0 %v17284_v43 }
 0xb58   : > { %17289 = vmatprep.subr.bf16.mxu0 %v17288_v2 }
 0xb5b   : > { %17291 = vmatpush3.bf16.msra.mxu0 %v17288_v2  ;;  %v23815_v2 = vld [vmem:[#allocation114_spill] sm:$0xff] }
 0xb5c   : > { %17293 = vmatprep.subr.bf16.mxu0 %v17292_v61  ;;  %v23817_v31 = vpack.i.bf16 %v23815_v2, %v23816_v35 }
 0xb5f   : > { %17295 = vmatpush3.bf16.msra.mxu0 %v17292_v61 }
 0xb60   : > { %17297 = vmatprep.subr.bf16.mxu0 %v17296_v46 }
 0xb63   : > { %17299 = vmatpush3.bf16.msra.mxu0 %v17296_v46  ;;  %v17885_v46 = vpop.permute.xlu0 %17884 }
 0xb64   : > { %v17886_v56 = vunpack.i.l.bf16 %v17885_v46 }
 0xb66   : > { %v14011_v8 = vsel %vm953_vm0, %v23834_v54, %v17886_v56 }
 0xbd3   : > { %v16378_v44 = vpop.f32.mrb[146].mxu0 }
 0xbd4   : > { %v12313_v45 = vpop.f32.mrb[147].mxu0 }
 0xbd5   : > { %v17973_v6 = vpack.i.bf16 %v16378_v44, %v12313_v45  ;;  %v23818_v44 = vld [vmem:[#allocation81_spill] sm:$0xff]  ;;  %v23819_v45 = vld [vmem:[#allocation71_spill] sm:$0xff] }
 0xbd7   : > { %17974 = vrot.lane.b32.xlu0 %v17973_v6, %s18834_s19  ;;  %v23820_v6 = vpack.i.bf16 %v23818_v44, %v23819_v45  ;;  %v17902_v44 = vunpack.i.h.bf16 %v17900_v0  ;;  %v17901_v45 = vunpack.i.l.bf16 %v17900_v0 }
 0xbdb   : > { %v16385_v63 = vpop.f32.mrb[174].mxu1 }
 0xbdc   : > { %v12400_v9 = vpop.f32.mrb[175].mxu1 }
 0xbdd   : > { %v17978_v7 = vpack.i.bf16 %v16385_v63, %v12400_v9 }
 0xbdf   : > { %17979 = vrot.lane.b32.xlu0 %v17978_v7, %s18834_s19 }
 0xbe0   : > { %v16392_v18 = vpop.f32.mrb[148].mxu0 }
 0xbe1   : > { %v12487_v29 = vpop.f32.mrb[149].mxu0 }
 0xbe2   : > { %v17988_v28 = vpack.i.bf16 %v16392_v18, %v12487_v29  ;;  %v23821_v18 = vld [vmem:[#allocation36_spill] sm:$0xff] }
 0xbe3   : > { %17984 = vrot.lane.b32.xlu0 %v23793_v58, %s18836_s11  ;;  %v23822_v29 = vld [vmem:[#allocation72_spill] sm:$0xff]  ;;  %v17890_v58 = vpop.permute.xlu0 %17889 }
 0xbe4   : > { %17989 = vrot.lane.b32.xlu1 %v17988_v28, %s18834_s19  ;;  %v16399_v3 = vpop.f32.mrb[176].mxu1  ;;  %v23823_v28 = vpack.i.bf16 %v23821_v18, %v23822_v29 }
 0xbe5   : > { %v12574_v52 = vpop.f32.mrb[177].mxu1 }
 0xbe6   : > { %v17998_v33 = vpack.i.bf16 %v16399_v3, %v12574_v52  ;;  %v23824_v52 = vld [vmem:[#allocation18_spill] sm:$0xff] }
 0xbe8   : > { %17994 = vrot.lane.b32.xlu1 %v23796_v20, %s18835_s20  ;;  %17999 = vrot.lane.b32.xlu0 %v17998_v33, %s18834_s19  ;;  %v16406_v1 = vpop.f32.mrb[150].mxu0  ;;  %v23825_v33 = vld [vmem:[#allocation26_spill] sm:$0xff] }
 0xbe9   : > { %v12661_v60 = vpop.f32.mrb[151].mxu0  ;;  %v23826_v50 = vpack.i.bf16 %v23824_v52, %v23825_v33 }
 0xbea   : > { %v18003_v41 = vpack.i.bf16 %v16406_v1, %v12661_v60  ;;  %v17895_v1 = vpop.permute.xlu0 %17894 }
 0xbec   : > { %18014 = vrot.lane.b32.xlu0 %v23799_v34, %s18835_s20  ;;  %18004 = vrot.lane.b32.xlu1 %v18003_v41, %s18834_s19  ;;  %v16413_v4 = vpop.f32.mrb[178].mxu1  ;;  %v23827_v41 = vld [vmem:[#allocation20_spill] sm:$0xff] }
 0xbed   : > { %v12748_v42 = vpop.f32.mrb[179].mxu1  ;;  %v23829_v14 = vpack.i.bf16 %v23827_v41, %v23828_v55  ;;  %v23837_v41 = vld [vmem:[#allocation61_spill] sm:$0xff] }
 0xbee   : > { %v18018_v22 = vpack.i.bf16 %v16413_v4, %v12748_v42 }
 0xbf0   : > { %18009 = vrot.lane.b32.xlu1 %v23802_v53, %s18836_s11  ;;  %18019 = vrot.lane.b32.xlu0 %v18018_v22, %s18834_s19  ;;  %v22742_v22 = vpop.permute.xlu0 %17909  ;;  %v23832_v53 = vpack.i.bf16 %v23830_v12, %v23831_v30  ;;  %v23839_v30 = vld [vmem:[#allocation69_spill] sm:$0xff] }
 0xbf3   : > { %v16420_v47 = vpop.f32.mrb[152].mxu0 }
 0xbf4   : > { %18024 = vrot.lane.b32.xlu0 %v23805_v37, %s18836_s11  ;;  %v12835_v10 = vpop.f32.mrb[153].mxu0  ;;  %v17905_v37 = vpop.permute.xlu1 %17904 }
 0xbf5   : > { %v18028_v21 = vpack.i.bf16 %v16420_v47, %v12835_v10  ;;  %v22748_v47 = vpop.permute.xlu0 %17914  ;;  %v17907_v18 = vunpack.i.h.bf16 %v17905_v37  ;;  %v17906_v29 = vunpack.i.l.bf16 %v17905_v37 }
 0xbf6   : > { %v16427_v25 = vpop.f32.mrb[180].mxu1  ;;  %v17917_v33 = vunpack.i.h.bf16 %v22748_v47 }
 0xbf7   : > { %18029 = vrot.lane.b32.xlu1 %v18028_v21, %s18834_s19  ;;  %v12922_v11 = vpop.f32.mrb[181].mxu1  ;;  %v14015_v55 = vsel %vm953_vm0, %v23837_v41, %v17906_v29 }
 0xbf8   : > { %v18038_v40 = vpack.i.bf16 %v16427_v25, %v12922_v11  ;;  %v22754_v21 = vpop.permute.xlu1 %17919 }
 0xbf9   : > { %v22750_v23 = vpop.permute.xlu0 %17929  ;;  %v17922_v37 = vunpack.i.h.bf16 %v22754_v21 }
 0xbfa   : > { %18039 = vrot.lane.b32.xlu0 %v18038_v40, %s18834_s19 }
 0xbfb   : > { %18034 = vrot.lane.b32.xlu1 %v23808_v49, %s18835_s20  ;;  %v17887_v49 = vunpack.i.h.bf16 %v17885_v46 }
 0xbfc   : > { %v22758_v11 = vpop.permute.xlu1 %17924 }
 0xbfd   : > { %v22752_v10 = vpop.permute.xlu0 %17934 }
 0xbfe   : > { %18054 = vrot.lane.b32.xlu0 %v23811_v38, %s18835_s20  ;;  %v17892_v38 = vunpack.i.h.bf16 %v17890_v58 }
 0xbff   : > { %v16434_v48 = vpop.f32.mrb[154].mxu0 }
 0xc00   : > { %v13009_v62 = vpop.f32.mrb[155].mxu0  ;;  %v22762_v27 = vpop.permute.xlu1 %17939 }
 0xc01   : > { %v18043_v51 = vpack.i.bf16 %v16434_v48, %v13009_v62  ;;  %v22756_v25 = vpop.permute.xlu0 %17949  ;;  %v17891_v48 = vunpack.i.l.bf16 %v17890_v58  ;;  %v17911_v58 = vunpack.i.l.bf16 %v22742_v22  ;;  %v17942_v29 = vunpack.i.h.bf16 %v22762_v27 }
 0xc02   : > { %v17951_v41 = vunpack.i.l.bf16 %v22756_v25 }
 0xc03   : > { %18044 = vrot.lane.b32.xlu1 %v18043_v51, %s18834_s19  ;;  %v16441_v15 = vpop.f32.mrb[182].mxu1  ;;  %v23833_v51 = vld [vmem:[#allocation41_spill] sm:$0xff] }
 0xc04   : > { %v13096_v19 = vpop.f32.mrb[183].mxu1  ;;  %v22766_v36 = vpop.permute.xlu1 %17944 }
 0xc05   : > { %v18058_v59 = vpack.i.bf16 %v16441_v15, %v13096_v19  ;;  %v22760_v40 = vpop.permute.xlu0 %17954  ;;  %v14012_v15 = vsel %vm953_vm0, %v23833_v51, %v17887_v49  ;;  %v17921_v49 = vunpack.i.l.bf16 %v22754_v21  ;;  %v17937_v21 = vunpack.i.h.bf16 %v22752_v10 }
 0xc07   : > { %18049 = vrot.lane.b32.xlu1 %v23814_v26, %s18836_s11  ;;  %v16448_v43 = vpop.f32.mrb[156].mxu0  ;;  %18059 = vrot.lane.b32.xlu0 %v18058_v59, %s18834_s19  ;;  %v14044_v26 = vsel %vm14043_vm3, %v14011_v8, %v17891_v48  ;;  %v17927_v48 = vunpack.i.h.bf16 %v22758_v11 }
 0xc08   : > { %v13183_v32 = vpop.f32.mrb[157].mxu0  ;;  %v22774_v2 = vpop.permute.xlu1 %17959 }
 0xc09   : > { %v18068_v39 = vpack.i.bf16 %v16448_v43, %v13183_v32  ;;  %v22764_v24 = vpop.permute.xlu0 %17969  ;;  %v14045_v43 = vsel %vm14043_vm3, %v14012_v15, %v17892_v38  ;;  %v17897_v32 = vunpack.i.h.bf16 %v17895_v1 }
 0xc0b   : > { %18069 = vrot.lane.b32.xlu1 %v18068_v39, %s18834_s19  ;;  %18064 = vrot.lane.b32.xlu0 %v23817_v31, %s18836_s11  ;;  %v16455_v61 = vpop.f32.mrb[184].mxu1  ;;  %v17896_v39 = vunpack.i.l.bf16 %v17895_v1 }
 0xc0c   : > { %v13270_v16 = vpop.f32.mrb[185].mxu1 }
 0xc0d   : > { %v18078_v57 = vpack.i.bf16 %v16455_v61, %v13270_v16  ;;  %v23835_v61 = vld [vmem:[#allocation54_spill] sm:$0xff] }
 0xc0e   : > { %v14013_v16 = vsel %vm953_vm0, %v23835_v61, %v17896_v39 }
 0xc0f   : > { %18074 = vrot.lane.b32.xlu1 %v23820_v6, %s18835_s20  ;;  %v16462_v63 = vpop.f32.mrb[158].mxu0  ;;  %18079 = vrot.lane.b32.xlu0 %v18078_v57, %s18834_s19  ;;  %v23836_v57 = vld [vmem:[#allocation50_spill] sm:$0xff] }
 0xc10   : > { %v13357_v9 = vpop.f32.mrb[159].mxu0  ;;  %v14014_v46 = vsel %vm953_vm0, %v23836_v57, %v17897_v32 }
 0xc11   : > { %v18083_v7 = vpack.i.bf16 %v16462_v63, %v13357_v9  ;;  %v22782_v63 = vpop.permute.xlu1 %17964 }
 0xc13   : > { %18084 = vrot.lane.b32.xlu1 %v18083_v7, %s18834_s19  ;;  %18094 = vrot.lane.b32.xlu0 %v23823_v28, %s18835_s20  ;;  %v16469_v13 = vpop.f32.mrb[186].mxu1  ;;  %v14046_v28 = vsel %vm14043_vm3, %v14013_v16, %v17901_v45  ;;  %v23842_v16 = vld [vmem:[#allocation74_spill] sm:$0xff] }
 0xc14   : > { %v13444_v5 = vpop.f32.mrb[187].mxu1  ;;  %v14020_v57 = vsel %vm953_vm0, %v23842_v16, %v17927_v48 }
 0xc15   : > { %v18098_v3 = vpack.i.bf16 %v16469_v13, %v13444_v5  ;;  %v14047_v13 = vsel %vm14043_vm3, %v14014_v46, %v17902_v44  ;;  %v17912_v5 = vunpack.i.h.bf16 %v22742_v22 }
 0xc17   : > { %18089 = vrot.lane.b32.xlu1 %v23826_v50, %s18836_s11  ;;  %18099 = vrot.lane.b32.xlu0 %v18098_v3, %s18834_s19  ;;  %v17916_v50 = vunpack.i.l.bf16 %v22748_v47  ;;  %v23840_v47 = vld [vmem:[#allocation65_spill] sm:$0xff] }
 0xc18   : > { %v14018_v0 = vsel %vm953_vm0, %v23840_v47, %v17917_v33 }
 0xc19   : > { %v16476_v17 = vpop.f32.mrb[160].mxu0  ;;  %v14051_v8 = vsel %vm14043_vm3, %v14018_v0, %v17922_v37  ;;  %v23847_v0 = vld [vmem:[#allocation94_spill] sm:$0xff] }
 0xc1a   : > { %v13531_v20 = vpop.f32.mrb[161].mxu0 }
 0xc1b   : > { %v18108_v60 = vpack.i.bf16 %v16476_v17, %v13531_v20  ;;  %18104 = vrot.lane.b32.xlu0 %v23829_v14, %s18836_s11  ;;  %v16483_v34 = vpop.f32.mrb[188].mxu1  ;;  %v23838_v14 = vld [vmem:[#allocation56_spill] sm:$0xff] }
 0xc1c   : > { %v13618_v4 = vpop.f32.mrb[189].mxu1 }
 0xc1d   : > { %v18118_v42 = vpack.i.bf16 %v16483_v34, %v13618_v4  ;;  %18109 = vrot.lane.b32.xlu1 %v18108_v60, %s18834_s19  ;;  %v14016_v34 = vsel %vm953_vm0, %v23838_v14, %v17907_v18  ;;  %v14048_v4 = vsel %vm14043_vm3, %v14015_v55, %v17911_v58  ;;  %v17956_v55 = vunpack.i.l.bf16 %v22760_v40 }
 0xc1f   : > { %18119 = vrot.lane.b32.xlu0 %v18118_v42, %s18834_s19  ;;  %v14049_v42 = vsel %vm14043_vm3, %v14016_v34, %v17912_v5  ;;  %v17957_v34 = vunpack.i.h.bf16 %v22760_v40  ;;  %v14025_v37 = vsel %vm953_vm0, %v23847_v0, %v17956_v55 }
 0xc21   : > { %18114 = vrot.lane.b32.xlu1 %v23832_v53, %s18835_s20  ;;  %v14017_v53 = vsel %vm953_vm0, %v23839_v30, %v17916_v50 }
 0xc22   : > { %v14050_v54 = vsel %vm14043_vm3, %v14017_v53, %v17921_v49  ;;  %v23846_v53 = vld [vmem:[#allocation86_spill] sm:$0xff]  ;;  %v17961_v49 = vunpack.i.l.bf16 %v22774_v2 }
 0xc49   : > { %v17975_v62 = vpop.permute.xlu0 %17974 }
 0xc4a   : > { %v17977_v19 = vunpack.i.h.bf16 %v17975_v62  ;;  %v17976_v59 = vunpack.i.l.bf16 %v17975_v62  ;;  %v17926_v62 = vunpack.i.l.bf16 %v22758_v11 }
 0xc4c   : > { %v14077_v35 = vsel %vm14076_vm4, %v14044_v26, %v17976_v59  ;;  %v14078_v31 = vsel %vm14076_vm4, %v14045_v43, %v17977_v19  ;;  %v17932_v19 = vunpack.i.h.bf16 %v22750_v23  ;;  %v17931_v59 = vunpack.i.l.bf16 %v22750_v23  ;;  %v23841_v23 = vld [vmem:[#allocation77_spill] sm:$0xff] }
 0xc4d   : > { %16516 = vmatprep.mubr.f32.mxu0 %v14077_v35  ;;  %v17936_v26 = vunpack.i.l.bf16 %v22752_v10  ;;  %v14019_v61 = vsel %vm953_vm0, %v23841_v23, %v17926_v62 }
 0xc4e   : > { %16517 = vmatmul.mubr.f32.vlgmr.msra.gmra.mrb[162].mxu0 %v14078_v31  ;;  %v14052_v46 = vsel %vm14043_vm3, %v14019_v61, %v17931_v59  ;;  %v14053_v10 = vsel %vm14043_vm3, %v14020_v57, %v17932_v19  ;;  %v17962_v59 = vunpack.i.h.bf16 %v22774_v2  ;;  %v17971_v2 = vunpack.i.l.bf16 %v22764_v24  ;;  %v23849_v61 = vld [vmem:[#allocation89_spill] sm:$0xff]  ;;  %v23850_v57 = vld [vmem:[#allocation84_spill] sm:$0xff] }
 0xc51   : > { %v17980_v6 = vpop.permute.xlu0 %17979 }
 0xc52   : > { %v17982_v9 = vunpack.i.h.bf16 %v17980_v6  ;;  %v17981_v7 = vunpack.i.l.bf16 %v17980_v6  ;;  %v23843_v6 = vld [vmem:[#allocation85_spill] sm:$0xff] }
 0xc54   : > { %v14079_v3 = vsel %vm14076_vm4, %v14046_v28, %v17981_v7  ;;  %v14080_v52 = vsel %vm14076_vm4, %v14047_v13, %v17982_v9  ;;  %v14021_v9 = vsel %vm953_vm0, %v23843_v6, %v17936_v26  ;;  %v23844_v7 = vld [vmem:[#allocation80_spill] sm:$0xff]  ;;  %v17941_v28 = vunpack.i.l.bf16 %v22762_v27 }
 0xc55   : > { %v22792_v17 = vpop.permute.xlu0 %17984  ;;  %16519 = vmatprep.mubr.f32.mxu0 %v14079_v3  ;;  %v14022_v18 = vsel %vm953_vm0, %v23844_v7, %v17937_v21  ;;  %v17952_v27 = vunpack.i.h.bf16 %v22756_v25  ;;  %v17967_v26 = vunpack.i.h.bf16 %v22782_v63 }
 0xc56   : > { %v17990_v20 = vpop.permute.xlu1 %17989  ;;  %16520 = vmatmul.mubr.f32.gmra.mrb[164].mxu0 %v14080_v52  ;;  %v14054_v3 = vsel %vm14043_vm3, %v14021_v9, %v17941_v28  ;;  %v14055_v52 = vsel %vm14043_vm3, %v14022_v18, %v17942_v29 }
 0xc57   : > { %v17992_v1 = vunpack.i.h.bf16 %v17990_v20  ;;  %v17991_v60 = vunpack.i.l.bf16 %v17990_v20 }
 0xc59   : > { %v14081_v22 = vsel %vm14076_vm4, %v14048_v4, %v17991_v60  ;;  %v14082_v12 = vsel %vm14076_vm4, %v14049_v42, %v17992_v1  ;;  %v17947_v1 = vunpack.i.h.bf16 %v22766_v36  ;;  %v17946_v60 = vunpack.i.l.bf16 %v22766_v36 }
 0xc5a   : > { %v18000_v56 = vpop.permute.xlu0 %17999  ;;  %v22808_v38 = vpop.permute.xlu1 %17994  ;;  %16522 = vmatprep.mubr.f32.mxu0 %v14081_v22 }
 0xc5b   : > { %v18002_v51 = vunpack.i.h.bf16 %v18000_v56  ;;  %v18001_v15 = vunpack.i.l.bf16 %v18000_v56  ;;  %16523 = vmatmul.mubr.f32.gmra.mrb[166].mxu0 %v14082_v12  ;;  %v23845_v12 = vld [vmem:[#allocation83_spill] sm:$0xff]  ;;  %v14024_v36 = vsel %vm953_vm0, %v23846_v53, %v17947_v1  ;;  %v17997_v6 = vunpack.i.h.bf16 %v22808_v38 }
 0xc5c   : > { %v14023_v30 = vsel %vm953_vm0, %v23845_v12, %v17946_v60  ;;  %v14057_v25 = vsel %vm14043_vm3, %v14024_v36, %v17952_v27  ;;  %v17996_v9 = vunpack.i.l.bf16 %v22808_v38 }
 0xc5d   : > { %v14083_v43 = vsel %vm14076_vm4, %v14050_v54, %v18001_v15  ;;  %v14084_v32 = vsel %vm14076_vm4, %v14051_v8, %v18002_v51  ;;  %v14056_v47 = vsel %vm14043_vm3, %v14023_v30, %v17951_v41  ;;  %v23848_v15 = vld [vmem:[#allocation92_spill] sm:$0xff]  ;;  %v14058_v54 = vsel %vm14043_vm3, %v14025_v37, %v17961_v49 }
 0xc5e   : > { %v22820_v11 = vpop.permute.xlu0 %18014  ;;  %v18005_v39 = vpop.permute.xlu1 %18004  ;;  %16525 = vmatprep.mubr.f32.mxu0 %v14083_v43  ;;  %v14026_v19 = vsel %vm953_vm0, %v23848_v15, %v17957_v34  ;;  %v17966_v43 = vunpack.i.l.bf16 %v22782_v63  ;;  %v17987_v63 = vunpack.i.h.bf16 %v22792_v17  ;;  %v23853_v41 = vld [vmem:[#allocation88_spill] sm:$0xff]  ;;  %v23854_v34 = vld [vmem:[#allocation90_spill] sm:$0xff] }
 0xc5f   : > { %v18007_v35 = vunpack.i.h.bf16 %v18005_v39  ;;  %v18006_v31 = vunpack.i.l.bf16 %v18005_v39  ;;  %16526 = vmatmul.mubr.f32.gmra.mrb[168].mxu0 %v14084_v32  ;;  %v14059_v21 = vsel %vm14043_vm3, %v14026_v19, %v17962_v59  ;;  %v23855_v59 = vld [vmem:[#allocation91_spill] sm:$0xff] }
 0xc60   : > { %v14027_v16 = vsel %vm953_vm0, %v23849_v61, %v17966_v43 }
 0xc61   : > { %v14085_v44 = vsel %vm14076_vm4, %v14052_v46, %v18006_v31  ;;  %v14086_v45 = vsel %vm14076_vm4, %v14053_v10, %v18007_v35  ;;  %v17972_v35 = vunpack.i.h.bf16 %v22764_v24  ;;  %v14028_v46 = vsel %vm953_vm0, %v23850_v57, %v17967_v26 }
 0xc62   : > { %v18020_v13 = vpop.permute.xlu0 %18019  ;;  %16528 = vmatprep.mubr.f32.mxu0 %v14085_v44  ;;  %v22838_v33 = vpop.permute.xlu1 %18009  ;;  %v17986_v10 = vunpack.i.l.bf16 %v22792_v17  ;;  %v14060_v24 = vsel %vm14043_vm3, %v14027_v16, %v17971_v2 }
 0xc63   : > { %v18022_v5 = vunpack.i.h.bf16 %v18020_v13  ;;  %v18021_v58 = vunpack.i.l.bf16 %v18020_v13  ;;  %16529 = vmatmul.mubr.f32.gmra.mrb[170].mxu0 %v14086_v45  ;;  %v14061_v7 = vsel %vm14043_vm3, %v14028_v46, %v17972_v35  ;;  %v18012_v18 = vunpack.i.h.bf16 %v22838_v33  ;;  %v23857_v35 = vld [vmem:[#allocation97_spill] sm:$0xff] }
 0xc64   : > { %v18011_v29 = vunpack.i.l.bf16 %v22838_v33 }
 0xc65   : > { %v14087_v50 = vsel %vm14076_vm4, %v14054_v3, %v18021_v58  ;;  %v14088_v20 = vsel %vm14076_vm4, %v14055_v52, %v18022_v5  ;;  %v23851_v52 = vld [vmem:[#allocation87_spill] sm:$0xff] }
 0xc66   : > { %16531 = vmatprep.mubr.f32.mxu0 %v14087_v50  ;;  %v22847_v14 = vpop.permute.xlu0 %18024  ;;  %v14029_v38 = vsel %vm953_vm0, %v23851_v52, %v17986_v10  ;;  %v23852_v50 = vld [vmem:[#allocation95_spill] sm:$0xff]  ;;  %v14031_v55 = vsel %vm953_vm0, %v23853_v41, %v18011_v29 }
 0xc67   : > { %16532 = vmatmul.mubr.f32.gmra.mrb[172].mxu0 %v14088_v20  ;;  %v14030_v20 = vsel %vm953_vm0, %v23852_v50, %v17987_v63  ;;  %v14062_v1 = vsel %vm14043_vm3, %v14029_v38, %v17996_v9  ;;  %v18027_v53 = vunpack.i.h.bf16 %v22847_v14  ;;  %v18026_v36 = vunpack.i.l.bf16 %v22847_v14 }
 0xc68   : > { %v14063_v33 = vsel %vm14043_vm3, %v14030_v20, %v17997_v6 }
 0xc69   : > { %v18030_v4 = vpop.permute.xlu1 %18029 }
 0xc6a   : > { %v18032_v42 = vunpack.i.h.bf16 %v18030_v4  ;;  %v18031_v22 = vunpack.i.l.bf16 %v18030_v4  ;;  %v14032_v4 = vsel %vm953_vm0, %v23854_v34, %v18012_v18 }
 0xc6c   : > { %v18040_v56 = vpop.permute.xlu0 %18039  ;;  %v14089_v40 = vsel %vm14076_vm4, %v14056_v47, %v18031_v22  ;;  %v14090_v48 = vsel %vm14076_vm4, %v14057_v25, %v18032_v42  ;;  %v18017_v42 = vunpack.i.h.bf16 %v22820_v11  ;;  %v18016_v22 = vunpack.i.l.bf16 %v22820_v11 }
 0xc6d   : > { %v18042_v62 = vunpack.i.h.bf16 %v18040_v56  ;;  %v18041_v51 = vunpack.i.l.bf16 %v18040_v56  ;;  %16534 = vmatprep.mubr.f32.mxu0 %v14089_v40  ;;  %v22869_v32 = vpop.permute.xlu1 %18034 }
 0xc6e   : > { %16535 = vmatmul.mubr.f32.gmra.mrb[174].mxu0 %v14090_v48  ;;  %v18037_v0 = vunpack.i.h.bf16 %v22869_v32  ;;  %v18036_v37 = vunpack.i.l.bf16 %v22869_v32  ;;  %v14064_v49 = vsel %vm14043_vm3, %v14031_v55, %v18016_v22  ;;  %v14065_v56 = vsel %vm14043_vm3, %v14032_v4, %v18017_v42  ;;  %v23861_v55 = vld [vmem:[#allocation101_spill] sm:$0xff]  ;;  %v23862_v4 = vld [vmem:[#allocation100_spill] sm:$0xff] }
 0xc6f   : > { %v14091_v8 = vsel %vm14076_vm4, %v14058_v54, %v18041_v51  ;;  %v14092_v39 = vsel %vm14076_vm4, %v14059_v21, %v18042_v62  ;;  %v14033_v54 = vsel %vm953_vm0, %v23855_v59, %v18026_v36  ;;  %v23864_v59 = vld [vmem:[#allocation102_spill] sm:$0xff] }
 0xc70   : > { %16537 = vmatprep.mubr.f32.mxu0 %v14091_v8  ;;  %v22874_v31 = vpop.permute.xlu0 %18054  ;;  %v23856_v8 = vld [vmem:[#allocation93_spill] sm:$0xff]  ;;  %v14066_v26 = vsel %vm14043_vm3, %v14033_v54, %v18036_v37 }
 0xc71   : > { %v14034_v21 = vsel %vm953_vm0, %v23856_v8, %v18027_v53  ;;  %v18057_v16 = vunpack.i.h.bf16 %v22874_v31  ;;  %v18056_v57 = vunpack.i.l.bf16 %v22874_v31 }
 0xc72   : > { %16538 = vmatmul.mubr.f32.gmra.mrb[176].mxu0 %v14092_v39  ;;  %v14067_v43 = vsel %vm14043_vm3, %v14034_v21, %v18037_v0 }
 0xc75   : > { %v18045_v23 = vpop.permute.xlu1 %18044 }
 0xc76   : > { %v18047_v44 = vunpack.i.h.bf16 %v18045_v23  ;;  %v18046_v45 = vunpack.i.l.bf16 %v18045_v23  ;;  %v23858_v23 = vld [vmem:[#allocation96_spill] sm:$0xff] }
 0xc78   : > { %v14093_v28 = vsel %vm14076_vm4, %v14060_v24, %v18046_v45  ;;  %v14094_v13 = vsel %vm14076_vm4, %v14061_v7, %v18047_v44 }
 0xc79   : > { %v18050_v5 = vpop.permute.xlu1 %18049  ;;  %16540 = vmatprep.mubr.f32.mxu0 %v14093_v28  ;;  %v18060_v17 = vpop.permute.xlu0 %18059 }
 0xc7a   : > { %v18062_v58 = vunpack.i.h.bf16 %v18060_v17  ;;  %v18061_v3 = vunpack.i.l.bf16 %v18060_v17  ;;  %16541 = vmatmul.mubr.f32.gmra.mrb[178].mxu0 %v14094_v13  ;;  %v18052_v40 = vunpack.i.h.bf16 %v18050_v5  ;;  %v18051_v11 = vunpack.i.l.bf16 %v18050_v5  ;;  %v23859_v5 = vld [vmem:[#allocation99_spill] sm:$0xff] }
 0xc7c   : > { %v14095_v60 = vsel %vm14076_vm4, %v14062_v1, %v18061_v3  ;;  %v14096_v27 = vsel %vm14076_vm4, %v14063_v33, %v18062_v58  ;;  %v14035_v2 = vsel %vm953_vm0, %v23857_v35, %v18051_v11  ;;  %v14036_v61 = vsel %vm953_vm0, %v23858_v23, %v18052_v40  ;;  %v23860_v58 = vld [vmem:[#allocation98_spill] sm:$0xff] }
 0xc7d   : > { %v18070_v12 = vpop.permute.xlu1 %18069  ;;  %v18065_v30 = vpop.permute.xlu0 %18064  ;;  %16543 = vmatprep.mubr.f32.mxu0 %v14095_v60  ;;  %v14068_v7 = vsel %vm14043_vm3, %v14035_v2, %v18056_v57  ;;  %v14069_v18 = vsel %vm14043_vm3, %v14036_v61, %v18057_v16 }
 0xc7e   : > { %v18072_v47 = vunpack.i.h.bf16 %v18070_v12  ;;  %v18071_v25 = vunpack.i.l.bf16 %v18070_v12  ;;  %16544 = vmatmul.mubr.f32.gmra.mrb[180].mxu0 %v14096_v27  ;;  %v18067_v46 = vunpack.i.h.bf16 %v18065_v30  ;;  %v18066_v63 = vunpack.i.l.bf16 %v18065_v30 }
 0xc80   : > { %v14097_v48 = vsel %vm14076_vm4, %v14064_v49, %v18071_v25  ;;  %v14098_v62 = vsel %vm14076_vm4, %v14065_v56, %v18072_v47  ;;  %v14037_v17 = vsel %vm953_vm0, %v23859_v5, %v18066_v63  ;;  %v14038_v3 = vsel %vm953_vm0, %v23860_v58, %v18067_v46 }
 0xc81   : > { %v18075_v51 = vpop.permute.xlu1 %18074  ;;  %16546 = vmatprep.mubr.f32.mxu0 %v14097_v48  ;;  %v18080_v14 = vpop.permute.xlu0 %18079 }
 0xc82   : > { %v18082_v15 = vunpack.i.h.bf16 %v18080_v14  ;;  %v18081_v19 = vunpack.i.l.bf16 %v18080_v14  ;;  %16547 = vmatmul.mubr.f32.gmra.mrb[182].mxu0 %v14098_v62  ;;  %v18077_v9 = vunpack.i.h.bf16 %v18075_v51  ;;  %v18076_v24 = vunpack.i.l.bf16 %v18075_v51 }
 0xc84   : > { %v14099_v32 = vsel %vm14076_vm4, %v14066_v26, %v18081_v19  ;;  %v14100_v39 = vsel %vm14076_vm4, %v14067_v43, %v18082_v15  ;;  %v14070_v1 = vsel %vm14043_vm3, %v14037_v17, %v18076_v24  ;;  %v14071_v33 = vsel %vm14043_vm3, %v14038_v3, %v18077_v9  ;;  %v23863_v15 = vld [vmem:[#allocation103_spill] sm:$0xff] }
 0xc85   : > { %v18085_v10 = vpop.permute.xlu1 %18084  ;;  %v18095_v44 = vpop.permute.xlu0 %18094  ;;  %16549 = vmatprep.mubr.f32.mxu0 %v14099_v32  ;;  %v22957_v32 = vld [vmem:[%s23082_s4] ss:$0 sm:$0xff] }
 0xc86   : > { %v18087_v45 = vunpack.i.h.bf16 %v18085_v10  ;;  %v18086_v6 = vunpack.i.l.bf16 %v18085_v10  ;;  %16550 = vmatmul.mubr.f32.gmra.mrb[184].mxu0 %v14100_v39  ;;  %v18097_v22 = vunpack.i.h.bf16 %v18095_v44  ;;  %v18096_v12 = vunpack.i.l.bf16 %v18095_v44 }
 0xc88   : > { %v14101_v29 = vsel %vm14076_vm4, %v14068_v7, %v18086_v6  ;;  %v14102_v28 = vsel %vm14076_vm4, %v14069_v18, %v18087_v45 }
 0xc89   : > { %v18090_v13 = vpop.permute.xlu1 %18089  ;;  %16552 = vmatprep.mubr.f32.mxu0 %v14101_v29  ;;  %v18100_v31 = vpop.permute.xlu0 %18099 }
 0xc8a   : > { %v18092_v52 = vunpack.i.h.bf16 %v18090_v13  ;;  %v18091_v38 = vunpack.i.l.bf16 %v18090_v13  ;;  %v18102_v50 = vunpack.i.h.bf16 %v18100_v31  ;;  %v18101_v20 = vunpack.i.l.bf16 %v18100_v31  ;;  %16553 = vmatmul.mubr.f32.gmra.mrb[186].mxu0 %v14102_v28 }
 0xc8c   : > { %v14103_v60 = vsel %vm14076_vm4, %v14070_v1, %v18101_v20  ;;  %v14104_v27 = vsel %vm14076_vm4, %v14071_v33, %v18102_v50  ;;  %v14039_v34 = vsel %vm953_vm0, %v23861_v55, %v18091_v38  ;;  %v14040_v42 = vsel %vm953_vm0, %v23862_v4, %v18092_v52 }
 0xc8d   : > { %v18105_v41 = vpop.permute.xlu0 %18104  ;;  %16555 = vmatprep.mubr.f32.mxu0 %v14103_v60  ;;  %v14072_v0 = vsel %vm14043_vm3, %v14039_v34, %v18096_v12  ;;  %v14073_v37 = vsel %vm14043_vm3, %v14040_v42, %v18097_v22 }
 0xc8e   : > { %16556 = vmatmul.mubr.f32.gmra.mrb[188].mxu0 %v14104_v27  ;;  %v18107_v47 = vunpack.i.h.bf16 %v18105_v41  ;;  %v18106_v25 = vunpack.i.l.bf16 %v18105_v41 }
 0xc8f   : > { %v18110_v30 = vpop.permute.xlu1 %18109 }
 0xc90   : > { %v18112_v53 = vunpack.i.h.bf16 %v18110_v30  ;;  %v18111_v36 = vunpack.i.l.bf16 %v18110_v30  ;;  %v14041_v19 = vsel %vm953_vm0, %v23863_v15, %v18106_v25  ;;  %v14042_v54 = vsel %vm953_vm0, %v23864_v59, %v18107_v47 }
 0xc91   : > { %v18120_v49 = vpop.permute.xlu0 %18119 }
 0xc92   : > { %v14105_v56 = vsel %vm14076_vm4, %v14072_v0, %v18111_v36  ;;  %v14106_v40 = vsel %vm14076_vm4, %v14073_v37, %v18112_v53  ;;  %v18122_v51 = vunpack.i.h.bf16 %v18120_v49  ;;  %v18121_v14 = vunpack.i.l.bf16 %v18120_v49 }
 0xc93   : > { %v18115_v11 = vpop.permute.xlu1 %18114  ;;  %16558 = vmatprep.mubr.f32.mxu0 %v14105_v56 }
 0xc94   : > { %v18117_v48 = vunpack.i.h.bf16 %v18115_v11  ;;  %v18116_v62 = vunpack.i.l.bf16 %v18115_v11  ;;  %16559 = vmatmul.mubr.f32.gmra.mrb[190].mxu0 %v14106_v40 }
 0xc96   : > { %v14074_v8 = vsel %vm14043_vm3, %v14041_v19, %v18116_v62  ;;  %v14075_v21 = vsel %vm14043_vm3, %v14042_v54, %v18117_v48 }
 0xc97   : > { %v14107_v26 = vsel %vm14076_vm4, %v14074_v8, %v18121_v14  ;;  %v14108_v43 = vsel %vm14076_vm4, %v14075_v21, %v18122_v51 }
 0xc98   : > { %16561 = vmatprep.mubr.f32.mxu0 %v14107_v26 }
 0xc99   : > { %16562 = vmatmul.mubr.f32.gmra.mrb[192].mxu0 %v14108_v43 }
 0xd21   : > { %v16518_v39 = vpop.f32.mrb[162].mxu0 }
 0xd22   : > { %v14187_v35 = vadd.f32 %v16518_v39, %v22957_v32  ;;  %v14181_v2 = vpop.f32.mrb[163].mxu0 }
 0xd23   : > { %v14182_v23 = vadd.f32 %v22957_v32, %v14181_v2 }
 0xd24   : > { %14341 = vst [vmem:[%s22963_s18 + $0x8] sm:$0xff] %v14187_v35 }
 0xd25   : > { %14340 = vst [vmem:[%s22963_s18] sm:$0xff] %v14182_v23 }
 0xd29   : > { %v16521_v61 = vpop.f32.mrb[164].mxu0 }
 0xd2a   : > { %v14197_v16 = vadd.f32 %v16521_v61, %v22957_v32  ;;  %v14191_v57 = vpop.f32.mrb[165].mxu0 }
 0xd2b   : > { %v14192_v46 = vadd.f32 %v22957_v32, %v14191_v57 }
 0xd2c   : > { %14343 = vst [vmem:[%s22963_s18 + $0x18] sm:$0xff] %v14197_v16 }
 0xd2d   : > { %14342 = vst [vmem:[%s22963_s18 + $0x10] sm:$0xff] %v14192_v46 }
 0xd2e   : > { %v16524_v63 = vpop.f32.mrb[166].mxu0 }
 0xd2f   : > { %v14207_v10 = vadd.f32 %v16524_v63, %v22957_v32  ;;  %v14201_v44 = vpop.f32.mrb[167].mxu0 }
 0xd30   : > { %v14202_v45 = vadd.f32 %v22957_v32, %v14201_v44 }
 0xd31   : > { %14345 = vst [vmem:[%s22963_s18 + $0x28] sm:$0xff] %v14207_v10 }
 0xd32   : > { %14344 = vst [vmem:[%s22963_s18 + $0x20] sm:$0xff] %v14202_v45  ;;  %v16527_v6 = vpop.f32.mrb[168].mxu0 }
 0xd33   : > { %v14217_v9 = vadd.f32 %v16527_v6, %v22957_v32  ;;  %v14211_v24 = vpop.f32.mrb[169].mxu0 }
 0xd34   : > { %v14212_v7 = vadd.f32 %v22957_v32, %v14211_v24 }
 0xd35   : > { %14347 = vst [vmem:[%s22963_s18 + $0x38] sm:$0xff] %v14217_v9 }
 0xd36   : > { %14346 = vst [vmem:[%s22963_s18 + $0x30] sm:$0xff] %v14212_v7  ;;  %v16530_v18 = vpop.f32.mrb[170].mxu0 }
 0xd37   : > { %v14227_v29 = vadd.f32 %v16530_v18, %v22957_v32  ;;  %v14221_v28 = vpop.f32.mrb[171].mxu0 }
 0xd38   : > { %v14222_v13 = vadd.f32 %v22957_v32, %v14221_v28 }
 0xd39   : > { %14349 = vst [vmem:[%s22963_s18 + $0x48] sm:$0xff] %v14227_v29 }
 0xd3a   : > { %14348 = vst [vmem:[%s22963_s18 + $0x40] sm:$0xff] %v14222_v13  ;;  %v16533_v31 = vpop.f32.mrb[172].mxu0 }
 0xd3b   : > { %v14237_v5 = vadd.f32 %v16533_v31, %v22957_v32  ;;  %v14231_v17 = vpop.f32.mrb[173].mxu0 }
 0xd3c   : > { %v14232_v58 = vadd.f32 %v22957_v32, %v14231_v17 }
 0xd3d   : > { %14351 = vst [vmem:[%s22963_s18 + $0x58] sm:$0xff] %v14237_v5 }
 0xd3e   : > { %14350 = vst [vmem:[%s22963_s18 + $0x50] sm:$0xff] %v14232_v58 }
 0xd41   : > { %v16536_v3 = vpop.f32.mrb[174].mxu0 }
 0xd42   : > { %v14247_v52 = vadd.f32 %v16536_v3, %v22957_v32  ;;  %v14241_v38 = vpop.f32.mrb[175].mxu0 }
 0xd43   : > { %v14242_v50 = vadd.f32 %v22957_v32, %v14241_v38 }
 0xd44   : > { %14353 = vst [vmem:[%s22963_s18 + $0x68] sm:$0xff] %v14247_v52 }
 0xd45   : > { %14352 = vst [vmem:[%s22963_s18 + $0x60] sm:$0xff] %v14242_v50  ;;  %v16539_v20 = vpop.f32.mrb[176].mxu0 }
 0xd46   : > { %v14257_v1 = vadd.f32 %v16539_v20, %v22957_v32  ;;  %v14251_v33 = vpop.f32.mrb[177].mxu0 }
 0xd47   : > { %v14252_v60 = vadd.f32 %v22957_v32, %v14251_v33 }
 0xd48   : > { %14355 = vst [vmem:[%s22963_s18 + $0x78] sm:$0xff] %v14257_v1 }
 0xd49   : > { %14354 = vst [vmem:[%s22963_s18 + $0x70] sm:$0xff] %v14252_v60 }
 0xd4d   : > { %v16542_v27 = vpop.f32.mrb[178].mxu0 }
 0xd4e   : > { %v14267_v41 = vadd.f32 %v16542_v27, %v22957_v32  ;;  %v14261_v55 = vpop.f32.mrb[179].mxu0 }
 0xd4f   : > { %v14262_v34 = vadd.f32 %v22957_v32, %v14261_v55 }
 0xd50   : > { %14357 = vst [vmem:[%s22963_s18 + $0x88] sm:$0xff] %v14267_v41 }
 0xd51   : > { %14356 = vst [vmem:[%s22963_s18 + $0x80] sm:$0xff] %v14262_v34  ;;  %v16545_v4 = vpop.f32.mrb[180].mxu0 }
 0xd52   : > { %v14277_v42 = vadd.f32 %v16545_v4, %v22957_v32  ;;  %v14271_v22 = vpop.f32.mrb[181].mxu0 }
 0xd53   : > { %v14272_v12 = vadd.f32 %v22957_v32, %v14271_v22 }
 0xd54   : > { %14359 = vst [vmem:[%s22963_s18 + $0x98] sm:$0xff] %v14277_v42 }
 0xd55   : > { %14358 = vst [vmem:[%s22963_s18 + $0x90] sm:$0xff] %v14272_v12  ;;  %v16548_v30 = vpop.f32.mrb[182].mxu0 }
 0xd56   : > { %v14287_v53 = vadd.f32 %v16548_v30, %v22957_v32  ;;  %v14281_v36 = vpop.f32.mrb[183].mxu0 }
 0xd57   : > { %v14282_v47 = vadd.f32 %v22957_v32, %v14281_v36 }
 0xd58   : > { %14361 = vst [vmem:[%s22963_s18 + $0xa8] sm:$0xff] %v14287_v53 }
 0xd59   : > { %14360 = vst [vmem:[%s22963_s18 + $0xa0] sm:$0xff] %v14282_v47  ;;  %v16551_v25 = vpop.f32.mrb[184].mxu0 }
 0xd5a   : > { %v14297_v0 = vadd.f32 %v16551_v25, %v22957_v32  ;;  %v14291_v37 = vpop.f32.mrb[185].mxu0 }
 0xd5b   : > { %v14292_v49 = vadd.f32 %v22957_v32, %v14291_v37 }
 0xd5c   : > { %14363 = vst [vmem:[%s22963_s18 + $0xb8] sm:$0xff] %v14297_v0 }
 0xd5d   : > { %14362 = vst [vmem:[%s22963_s18 + $0xb0] sm:$0xff] %v14292_v49  ;;  %v16554_v56 = vpop.f32.mrb[186].mxu0 }
 0xd5e   : > { %v14307_v40 = vadd.f32 %v16554_v56, %v22957_v32  ;;  %v14301_v11 = vpop.f32.mrb[187].mxu0 }
 0xd5f   : > { %v14302_v48 = vadd.f32 %v22957_v32, %v14301_v11 }
 0xd60   : > { %14365 = vst [vmem:[%s22963_s18 + $0xc8] sm:$0xff] %v14307_v40 }
 0xd61   : > { %14364 = vst [vmem:[%s22963_s18 + $0xc0] sm:$0xff] %v14302_v48  ;;  %v16557_v62 = vpop.f32.mrb[188].mxu0 }
 0xd62   : > { %v14317_v51 = vadd.f32 %v16557_v62, %v22957_v32  ;;  %v14311_v14 = vpop.f32.mrb[189].mxu0 }
 0xd63   : > { %v14312_v15 = vadd.f32 %v22957_v32, %v14311_v14 }
 0xd64   : > { %14367 = vst [vmem:[%s22963_s18 + $0xd8] sm:$0xff] %v14317_v51 }
 0xd65   : > { %14366 = vst [vmem:[%s22963_s18 + $0xd0] sm:$0xff] %v14312_v15 }
 0xd67   : > { %v16560_v19 = vpop.f32.mrb[190].mxu0 }
 0xd68   : > { %v14327_v59 = vadd.f32 %v16560_v19, %v22957_v32  ;;  %v14321_v54 = vpop.f32.mrb[191].mxu0 }
 0xd69   : > { %v14322_v8 = vadd.f32 %v22957_v32, %v14321_v54 }
 0xd6a   : > { %14369 = vst [vmem:[%s22963_s18 + $0xe8] sm:$0xff] %v14327_v59 }
 0xd6b   : > { %14368 = vst [vmem:[%s22963_s18 + $0xe0] sm:$0xff] %v14322_v8 }
 0xd6c   : > { %v16563_v21 = vpop.f32.mrb[192].mxu0 }
 0xd6d   : > { %v14337_v26 = vadd.f32 %v16563_v21, %v22957_v32  ;;  %v14331_v43 = vpop.f32.mrb[193].mxu0 }
 0xd6e   : > { %v14332_v39 = vadd.f32 %v22957_v32, %v14331_v43 }
 0xd6f   : > { %14371 = vst [vmem:[%s22963_s18 + $0xf8] sm:$0xff] %v14337_v26 }
 0xd70   : > { %14370 = vst [vmem:[%s22963_s18 + $0xf0] sm:$0xff] %v14332_v39 }
 0xd71   : > { %18762 = shalt.err (!%p18759_p4)
}
 0xd72   : > { %s18763_s19 = scalar_lea.hbm %s23029_s15, 4096  ;;  %s18767_s10 = scalar_lea.hbm %s23084_s6, 8192 }
 0xd73   : > { %p18764_p9 = scmp.ne.s32.totalorder %s23029_s15, %s18763_s19  ;;  %p18768_p8 = scmp.lt.u32.totalorder %s23029_s15, %s23084_s6 }
 0xd74   : > { %p18769_p13 = scmp.lt.u32.totalorder %s18767_s10, %s18763_s19  ;;  %p18771_p10 = scmp.lt.u32.totalorder %s18763_s19, %s23029_s15 }
 0xd75   : > { %p18765_p0 = pnand %p18764_p9, %p19023_p5 }
 0xd76   : > { %p18770_p6 = por %p18769_p13, %p18768_p8 }
 0xd77   : > { %p18766_p11 = pneg %p18765_p0 }
 0xd78   : > { %p18772_p3 = por %p18771_p10, %p18770_p6 }
 0xd7a   : > { %p18773_p7 = pnand %p18772_p3, %p18766_p11 }
 0xd7c   : > { %18776 = shalt.err (!%p18773_p7)
}
 0xd7d   : > { %s18838_s13 = smov 128   ;;  %s18839_s8 = smov 8  }
 0xd7e   : > { %17330 = dma.vmem_to_hbm [thread:$0]  (%p19023_p5), %s23031_s7, 4096, %s23029_s15, %s14373_s25, %s18838_s13, %s18838_s13, %s18839_s8  }
 0xd7f PF: > { %s14402_s14 = sand.u32 1, %s18811_s21   ;;  %p23865_p12 = scmp.ne.s32.totalorder %s23300_s28, 0 }
 0xd80   : > { %p23866_p2 = scmp.ge.s32.totalorder %s18823_s24, 2  ;;  %s14403_s17 = scalar_lea.sflag [#allocation4], %s14402_s14 }
 0xd82   : > { %p17347_p1 = pnand %p23866_p2, %p23865_p12 }
 0xd84   : > { %18806 = dma.done.wait (!%p17347_p1), %s14403_s17, 4096  }
 0xd85   : > { %18808 = vsyncadd (!%p17347_p1), %s14403_s17, 4294963200  ;;  %p21_p4 = scmp.ge.s32.totalorder %s18988_s12, 4   ;;  %s23867_s21 = smov %s18815_s22 }
 0xd86   : > { %s23868_s22 = smov %s18819_s23  ;;  %s23869_s23 = smov %s19019_s30 }
 0xd87   : > { %s23870_s24 = smov %s18988_s12  ;;  %23 = sbr.rel (!%p21_p4) target bundleno = 9 (0x9), region = 101 }
 0xd8e   :  { %14408 = vsyncpa [#allocation3], 1 }
 0xd8f   :  { %14410 = vsyncpa [#allocation3 + $0x1], 1 }
 0xd90   :  { %14411 = vsyncpa [#allocation6], 1 }
 0xd91   :  { %14412 = vsyncpa [#allocation9], 1 }
 0xd92   :  { %14413 = vsyncpa [#allocation4], 1 }
 0xd93   :  { %14415 = vsyncpa [#allocation4 + $0x1], 1 }

</bundles_post_ra>
